<compile_context>
chip_gen: v5e
topology: v5e:2x2
jax: 0.10.0
libtpu: 0.0.40
codegen_flags: <defaults>
</compile_context>

<pallas_src>
import jax
import jax.numpy as jnp
import numpy as np
from jax.experimental import pallas as pl
from jax.experimental.pallas import tpu as pltpu

N_BATCH = 2
H_IN = W_IN = 28
K = 5
C1 = 20             # conv1 out channels
C2 = 20             # conv2 out channels
H1 = H_IN - K + 1   # 24 (conv1 output spatial)
H2 = H1 - K + 1     # 20 (conv2 output spatial)
FEAT = C2 * H2      # 400
NCLASS = 10


def ocr_kernel(p1_ref, w1_ref, w2_ref, b2_ref, r_ref, fc1w_ref, fcb_ref,
               pw_ref, out_ref):
    lanes = p1_ref.shape[1]            # N * 24 * 24  (lane-dense, 9*128 per image pair)
    n = lanes // (H1 * H1)

    # ---- conv1 (5x5, 1 -> 20): one matmul, bias folded via ones-row --------
    # (20, 26) x (26, lanes) -> (20, lanes), f32 accumulation.
    a1 = jnp.dot(w1_ref[...], p1_ref[...], preferred_element_type=jnp.float32)
    h1 = jnp.maximum(a1, 0.0).astype(jnp.bfloat16)            # (20, lanes) bf16

    # ---- conv2 (5x5, 20 -> 20): 25 per-tap matmuls on lane-shifted h1 ------
    # Pad 128 zero lanes so every tap's window is a static in-bounds slice.
    h1p = jnp.concatenate([h1, jnp.zeros((C1, 128), jnp.bfloat16)], axis=1)
    acc = jnp.zeros((C2, lanes), jnp.float32)
    for kh in range(K):
        for kw in range(K):
            s = kh * H1 + kw                                   # flat spatial shift
            slab = h1p[:, s:s + lanes]                         # (20, lanes) bf16
            acc = acc + jnp.dot(w2_ref[kh * K + kw], slab,
                                preferred_element_type=jnp.float32)
    h2 = jnp.maximum(acc + b2_ref[...], 0.0)                   # (20, lanes) f32

    # ---- W-mean as a matmul against the precomputed reduction matrix ------
    # r zeroes the h>=20 / w>=20 garbage columns and carries the 1/20 scale.
    red = jnp.dot(h2, r_ref[...], preferred_element_type=jnp.float32)  # (20, n*20)

    # (C2, n, H2) -> (n, C2*H2): torch's (C, H) flatten order (tiny relayout).
    feat = jnp.transpose(red.reshape(C2, n, H2), (1, 0, 2)).reshape(n, FEAT)

    # ---- fc1 + ReLU ---------------------------------------------------------
    h3 = jnp.dot(feat.astype(jnp.bfloat16), fc1w_ref[...],
                 preferred_element_type=jnp.float32)
    h3 = jnp.maximum(h3 + fcb_ref[0:1, :], 0.0)                # (n, 400)

    # ---- pred + log_softmax -------------------------------------------------
    logits = jnp.dot(h3.astype(jnp.bfloat16), pw_ref[...],
                     preferred_element_type=jnp.float32) + fcb_ref[1:2, :NCLASS]
    mx = jnp.max(logits, axis=1, keepdims=True)
    sh = logits - mx
    out_ref[...] = sh - jnp.log(jnp.sum(jnp.exp(sh), axis=1, keepdims=True))


def init_params(key):
    # Param convention: conv weights per-tap (kH*kW, Cin[, Cout]); FC weights
    # (in, out) i.e. transposed vs torch.nn.Linear.weight; fc1 rows in torch
    # (C, H) flatten order.
    ks = jax.random.split(key, 8)
    w1 = jax.random.normal(ks[0], (K * K, C1), jnp.float32) * 0.10
    b1 = jax.random.normal(ks[1], (1, C1), jnp.float32) * 0.10
    w2 = jax.random.normal(ks[2], (K * K, C1, C2), jnp.float32) * 0.05
    b2 = jax.random.normal(ks[3], (1, C2), jnp.float32) * 0.10
    fc1w = jax.random.normal(ks[4], (FEAT, FEAT), jnp.float32) * 0.05
    fc1b = jax.random.normal(ks[5], (1, FEAT), jnp.float32) * 0.10
    pw = jax.random.normal(ks[6], (FEAT, NCLASS), jnp.float32) * 0.05
    pb = jax.random.normal(ks[7], (1, NCLASS), jnp.float32) * 0.10
    return (w1, b1, w2, b2, fc1w, fc1b, pw, pb)


def build_reduce_matrix(n):
    """(n*24*24, n*20) f32: sums valid w<20 positions per (n, h<20), scaled 1/20."""
    idx = np.arange(n * H1 * H1)
    ni, rem = idx // (H1 * H1), idx % (H1 * H1)
    hi, wi = rem // H1, rem % H1
    r = np.zeros((n * H1 * H1, n * H2), np.float32)
    valid = (hi < H2) & (wi < H2)
    r[idx[valid], (ni * H2 + hi)[valid]] = 1.0 / H2
    return jnp.asarray(r)


def prepare_params(params, n):
    """One-time host-side packing (amortized across forward calls)."""
    w1, b1, w2, b2, fc1w, fc1b, pw, pb = params
    # conv1: (C1, 25) weight with bias as column 25 (matches p1's ones-row).
    w1aug = jnp.concatenate([w1.T, b1.T], axis=1).astype(jnp.bfloat16)      # (20, 26)
    # conv2 per-tap weights as (tap, Cout, Cin) for (C2,C1)@(C1,lanes) matmuls.
    w2taps = jnp.transpose(w2, (0, 2, 1)).astype(jnp.bfloat16)              # (25, 20, 20)
    b2col = b2.reshape(C2, 1).astype(jnp.float32)                           # (20, 1)
    r = build_reduce_matrix(n)                                              # (n*576, n*20)
    fc1w_b = fc1w.astype(jnp.bfloat16)                                      # (400, 400)
    pw_b = pw.astype(jnp.bfloat16)                                          # (400, 10)
    # fc1 and pred biases packed into one array (row 0: fc1b, row 1: pb padded).
    fcb = jnp.stack([fc1b[0], jnp.pad(pb[0], (0, FEAT - NCLASS))], axis=0)  # (2, 400)
    return (w1aug, w2taps, b2col, r, fc1w_b, fcb.astype(jnp.float32), pw_b)


@jax.jit
def ocr_forward(x_nchw, kparams):
    w1aug, w2taps, b2col, r, fc1w_b, fcb, pw_b = kparams
    n = x_nchw.shape[0]
    lanes = n * H1 * H1
    x = x_nchw[:, 0].astype(jnp.float32)                                    # (n, 28, 28)

    # conv1 im2col in the wrapper (XLA), transposed so batch*spatial is the
    # lane dim; append a ones-row so the conv1 bias rides the matmul.
    taps = [x[:, kh:kh + H1, kw:kw + H1].reshape(n, H1 * H1)
            for kh in range(K) for kw in range(K)]
    p1 = jnp.stack(taps, axis=0).reshape(K * K, lanes)                      # (25, lanes)
    p1aug = jnp.concatenate([p1, jnp.ones((1, lanes), p1.dtype)],
                            axis=0).astype(jnp.bfloat16)                    # (26, lanes)

    vmem = pl.BlockSpec(memory_space=pltpu.MemorySpace.VMEM)
    return pl.pallas_call(
        ocr_kernel,
        out_shape=jax.ShapeDtypeStruct((n, NCLASS), jnp.float32),
        in_specs=[vmem] * 8,
        out_specs=vmem,
    )(p1aug, w1aug, w2taps, b2col, r, fc1w_b, fcb, pw_b)


def ocr_reference(x_nchw, params):
    """Pure-JAX f32 reference mirroring the PyTorch forward semantics."""
    w1, b1, w2, b2, fc1w, fc1b, pw, pb = params
    n = x_nchw.shape[0]
    x = x_nchw[:, 0].astype(jnp.float32)                     # (N, 28, 28)
    a1 = jnp.zeros((n, C1, H1, H1), jnp.float32)
    for kh in range(K):
        for kw in range(K):
            a1 = a1 + (x[:, None, kh:kh + H1, kw:kw + H1]
                       * w1[kh * K + kw].reshape(1, C1, 1, 1))
    h1 = jax.nn.relu(a1 + b1.reshape(1, C1, 1, 1))           # (N,20,24,24)
    a2 = jnp.zeros((n, C2, H2, H2), jnp.float32)
    for kh in range(K):
        for kw in range(K):
            patch = h1[:, :, kh:kh + H2, kw:kw + H2]         # (N,20,20,20)
            a2 = a2 + jnp.einsum('nchw,cd->ndhw', patch, w2[kh * K + kw])
    h2 = jax.nn.relu(a2 + b2.reshape(1, C2, 1, 1))           # (N,20,20,20)
    feat = jnp.mean(h2, axis=-1).reshape(n, FEAT)            # torch (C,H) flatten
    h3 = jax.nn.relu(feat @ fc1w + fc1b)
    logits = h3 @ pw + pb
    return jax.nn.log_softmax(logits, axis=1)


if __name__ == "__main__":
    key = jax.random.PRNGKey(0)
    pkey, xkey = jax.random.split(key)
    params = init_params(pkey)
    x = jax.random.normal(xkey, (N_BATCH, 1, H_IN, W_IN), jnp.float32)

    kparams = prepare_params(params, N_BATCH)        # one-time packing
    out = jax.block_until_ready(ocr_forward(x, kparams))

    assert out.shape == (N_BATCH, NCLASS)
    assert bool(jnp.all(jnp.isfinite(out)))
    # log_softmax rows must exponentiate-sum to 1
    row_sums = jnp.sum(jnp.exp(out), axis=1)
    assert bool(jnp.all(jnp.abs(row_sums - 1.0) < 1e-4))

    # Check against the f32 reference (bf16 matmuls w/ f32 accumulation).
    ref = ocr_reference(x, params)
    assert bool(jnp.max(jnp.abs(out - ref)) < 1e-1)
    print("KERNEL_OK")
</pallas_src>

<mosaic_0001>
module attributes {stable_mosaic.version = 11 : i64} {
  func.func @ocr_kernel(%arg0: memref<26x1152xbf16, #tpu.memory_space<vmem>>, %arg1: memref<20x26xbf16, #tpu.memory_space<vmem>>, %arg2: memref<25x20x20xbf16, #tpu.memory_space<vmem>>, %arg3: memref<20x1xf32, #tpu.memory_space<vmem>>, %arg4: memref<1152x40xf32, #tpu.memory_space<vmem>>, %arg5: memref<400x400xbf16, #tpu.memory_space<vmem>>, %arg6: memref<2x400xf32, #tpu.memory_space<vmem>>, %arg7: memref<400x10xbf16, #tpu.memory_space<vmem>>, %arg8: memref<2x10xf32, #tpu.memory_space<vmem>>) attributes {dimension_semantics = [], scalar_prefetch = 0 : i64, scratch_operands = 0 : i64, tpu.core_type = #tpu.core_type<tc>} {
    %c0 = arith.constant 0 : index
    %c0_0 = arith.constant 0 : index
    %0 = vector.load %arg1[%c0, %c0_0] : memref<20x26xbf16, #tpu.memory_space<vmem>>, vector<20x26xbf16>
    %c0_1 = arith.constant 0 : index
    %c0_2 = arith.constant 0 : index
    %1 = vector.load %arg0[%c0_1, %c0_2] : memref<26x1152xbf16, #tpu.memory_space<vmem>>, vector<26x1152xbf16>
    %cst = arith.constant dense<0.000000e+00> : vector<20x1152xf32>
    %2 = tpu.matmul %0, %1, %cst {dimension_numbers = #tpu.dot_dimension_numbers<[1], [0], [0], [1], [0, 0, 1, 1], [], []>} : vector<20x26xbf16>, vector<26x1152xbf16>, vector<20x1152xf32> -> vector<20x1152xf32>
    %cst_3 = arith.constant 0.000000e+00 : f32
    %3 = vector.broadcast %cst_3 : f32 to vector<20x1152xf32>
    %4 = arith.maximumf %2, %3 : vector<20x1152xf32>
    %5 = arith.truncf %4 : vector<20x1152xf32> to vector<20x1152xbf16>
    %cst_4 = arith.constant 0.000000e+00 : bf16
    %6 = vector.broadcast %cst_4 : bf16 to vector<20x128xbf16>
    %7 = tpu.concatenate %5, %6 in 1 : vector<20x1152xbf16>, vector<20x128xbf16> -> vector<20x1280xbf16>
    %cst_5 = arith.constant 0.000000e+00 : f32
    %8 = vector.broadcast %cst_5 : f32 to vector<20x1152xf32>
    %9 = vector.extract_strided_slice %7 {offsets = [0, 0], sizes = [20, 1152], strides = [1, 1]} : vector<20x1280xbf16> to vector<20x1152xbf16>
    %c0_6 = arith.constant 0 : index
    %c0_7 = arith.constant 0 : index
    %c0_8 = arith.constant 0 : index
    %10 = vector.load %arg2[%c0_6, %c0_7, %c0_8] : memref<25x20x20xbf16, #tpu.memory_space<vmem>>, vector<1x20x20xbf16>
    %11 = vector.shape_cast %10 : vector<1x20x20xbf16> to vector<20x20xbf16>
    %cst_9 = arith.constant dense<0.000000e+00> : vector<20x1152xf32>
    %12 = tpu.matmul %11, %9, %cst_9 {dimension_numbers = #tpu.dot_dimension_numbers<[1], [0], [0], [1], [0, 0, 1, 1], [], []>} : vector<20x20xbf16>, vector<20x1152xbf16>, vector<20x1152xf32> -> vector<20x1152xf32>
    %13 = arith.addf %8, %12 : vector<20x1152xf32>
    %14 = vector.extract_strided_slice %7 {offsets = [0, 1], sizes = [20, 1152], strides = [1, 1]} : vector<20x1280xbf16> to vector<20x1152xbf16>
    %c1 = arith.constant 1 : index
    %c0_10 = arith.constant 0 : index
    %c0_11 = arith.constant 0 : index
    %15 = vector.load %arg2[%c1, %c0_10, %c0_11] : memref<25x20x20xbf16, #tpu.memory_space<vmem>>, vector<1x20x20xbf16>
    %16 = vector.shape_cast %15 : vector<1x20x20xbf16> to vector<20x20xbf16>
    %cst_12 = arith.constant dense<0.000000e+00> : vector<20x1152xf32>
    %17 = tpu.matmul %16, %14, %cst_12 {dimension_numbers = #tpu.dot_dimension_numbers<[1], [0], [0], [1], [0, 0, 1, 1], [], []>} : vector<20x20xbf16>, vector<20x1152xbf16>, vector<20x1152xf32> -> vector<20x1152xf32>
    %18 = arith.addf %13, %17 : vector<20x1152xf32>
    %19 = vector.extract_strided_slice %7 {offsets = [0, 2], sizes = [20, 1152], strides = [1, 1]} : vector<20x1280xbf16> to vector<20x1152xbf16>
    %c2 = arith.constant 2 : index
    %c0_13 = arith.constant 0 : index
    %c0_14 = arith.constant 0 : index
    %20 = vector.load %arg2[%c2, %c0_13, %c0_14] : memref<25x20x20xbf16, #tpu.memory_space<vmem>>, vector<1x20x20xbf16>
    %21 = vector.shape_cast %20 : vector<1x20x20xbf16> to vector<20x20xbf16>
    %cst_15 = arith.constant dense<0.000000e+00> : vector<20x1152xf32>
    %22 = tpu.matmul %21, %19, %cst_15 {dimension_numbers = #tpu.dot_dimension_numbers<[1], [0], [0], [1], [0, 0, 1, 1], [], []>} : vector<20x20xbf16>, vector<20x1152xbf16>, vector<20x1152xf32> -> vector<20x1152xf32>
    %23 = arith.addf %18, %22 : vector<20x1152xf32>
    %24 = vector.extract_strided_slice %7 {offsets = [0, 3], sizes = [20, 1152], strides = [1, 1]} : vector<20x1280xbf16> to vector<20x1152xbf16>
    %c3 = arith.constant 3 : index
    %c0_16 = arith.constant 0 : index
    %c0_17 = arith.constant 0 : index
    %25 = vector.load %arg2[%c3, %c0_16, %c0_17] : memref<25x20x20xbf16, #tpu.memory_space<vmem>>, vector<1x20x20xbf16>
    %26 = vector.shape_cast %25 : vector<1x20x20xbf16> to vector<20x20xbf16>
    %cst_18 = arith.constant dense<0.000000e+00> : vector<20x1152xf32>
    %27 = tpu.matmul %26, %24, %cst_18 {dimension_numbers = #tpu.dot_dimension_numbers<[1], [0], [0], [1], [0, 0, 1, 1], [], []>} : vector<20x20xbf16>, vector<20x1152xbf16>, vector<20x1152xf32> -> vector<20x1152xf32>
    %28 = arith.addf %23, %27 : vector<20x1152xf32>
    %29 = vector.extract_strided_slice %7 {offsets = [0, 4], sizes = [20, 1152], strides = [1, 1]} : vector<20x1280xbf16> to vector<20x1152xbf16>
    %c4 = arith.constant 4 : index
    %c0_19 = arith.constant 0 : index
    %c0_20 = arith.constant 0 : index
    %30 = vector.load %arg2[%c4, %c0_19, %c0_20] : memref<25x20x20xbf16, #tpu.memory_space<vmem>>, vector<1x20x20xbf16>
    %31 = vector.shape_cast %30 : vector<1x20x20xbf16> to vector<20x20xbf16>
    %cst_21 = arith.constant dense<0.000000e+00> : vector<20x1152xf32>
    %32 = tpu.matmul %31, %29, %cst_21 {dimension_numbers = #tpu.dot_dimension_numbers<[1], [0], [0], [1], [0, 0, 1, 1], [], []>} : vector<20x20xbf16>, vector<20x1152xbf16>, vector<20x1152xf32> -> vector<20x1152xf32>
    %33 = arith.addf %28, %32 : vector<20x1152xf32>
    %34 = vector.extract_strided_slice %7 {offsets = [0, 24], sizes = [20, 1152], strides = [1, 1]} : vector<20x1280xbf16> to vector<20x1152xbf16>
    %c5 = arith.constant 5 : index
    %c0_22 = arith.constant 0 : index
    %c0_23 = arith.constant 0 : index
    %35 = vector.load %arg2[%c5, %c0_22, %c0_23] : memref<25x20x20xbf16, #tpu.memory_space<vmem>>, vector<1x20x20xbf16>
    %36 = vector.shape_cast %35 : vector<1x20x20xbf16> to vector<20x20xbf16>
    %cst_24 = arith.constant dense<0.000000e+00> : vector<20x1152xf32>
    %37 = tpu.matmul %36, %34, %cst_24 {dimension_numbers = #tpu.dot_dimension_numbers<[1], [0], [0], [1], [0, 0, 1, 1], [], []>} : vector<20x20xbf16>, vector<20x1152xbf16>, vector<20x1152xf32> -> vector<20x1152xf32>
    %38 = arith.addf %33, %37 : vector<20x1152xf32>
    %39 = vector.extract_strided_slice %7 {offsets = [0, 25], sizes = [20, 1152], strides = [1, 1]} : vector<20x1280xbf16> to vector<20x1152xbf16>
    %c6 = arith.constant 6 : index
    %c0_25 = arith.constant 0 : index
    %c0_26 = arith.constant 0 : index
    %40 = vector.load %arg2[%c6, %c0_25, %c0_26] : memref<25x20x20xbf16, #tpu.memory_space<vmem>>, vector<1x20x20xbf16>
    %41 = vector.shape_cast %40 : vector<1x20x20xbf16> to vector<20x20xbf16>
    %cst_27 = arith.constant dense<0.000000e+00> : vector<20x1152xf32>
    %42 = tpu.matmul %41, %39, %cst_27 {dimension_numbers = #tpu.dot_dimension_numbers<[1], [0], [0], [1], [0, 0, 1, 1], [], []>} : vector<20x20xbf16>, vector<20x1152xbf16>, vector<20x1152xf32> -> vector<20x1152xf32>
    %43 = arith.addf %38, %42 : vector<20x1152xf32>
    %44 = vector.extract_strided_slice %7 {offsets = [0, 26], sizes = [20, 1152], strides = [1, 1]} : vector<20x1280xbf16> to vector<20x1152xbf16>
    %c7 = arith.constant 7 : index
    %c0_28 = arith.constant 0 : index
    %c0_29 = arith.constant 0 : index
    %45 = vector.load %arg2[%c7, %c0_28, %c0_29] : memref<25x20x20xbf16, #tpu.memory_space<vmem>>, vector<1x20x20xbf16>
    %46 = vector.shape_cast %45 : vector<1x20x20xbf16> to vector<20x20xbf16>
    %cst_30 = arith.constant dense<0.000000e+00> : vector<20x1152xf32>
    %47 = tpu.matmul %46, %44, %cst_30 {dimension_numbers = #tpu.dot_dimension_numbers<[1], [0], [0], [1], [0, 0, 1, 1], [], []>} : vector<20x20xbf16>, vector<20x1152xbf16>, vector<20x1152xf32> -> vector<20x1152xf32>
    %48 = arith.addf %43, %47 : vector<20x1152xf32>
    %49 = vector.extract_strided_slice %7 {offsets = [0, 27], sizes = [20, 1152], strides = [1, 1]} : vector<20x1280xbf16> to vector<20x1152xbf16>
    %c8 = arith.constant 8 : index
    %c0_31 = arith.constant 0 : index
    %c0_32 = arith.constant 0 : index
    %50 = vector.load %arg2[%c8, %c0_31, %c0_32] : memref<25x20x20xbf16, #tpu.memory_space<vmem>>, vector<1x20x20xbf16>
    %51 = vector.shape_cast %50 : vector<1x20x20xbf16> to vector<20x20xbf16>
    %cst_33 = arith.constant dense<0.000000e+00> : vector<20x1152xf32>
    %52 = tpu.matmul %51, %49, %cst_33 {dimension_numbers = #tpu.dot_dimension_numbers<[1], [0], [0], [1], [0, 0, 1, 1], [], []>} : vector<20x20xbf16>, vector<20x1152xbf16>, vector<20x1152xf32> -> vector<20x1152xf32>
    %53 = arith.addf %48, %52 : vector<20x1152xf32>
    %54 = vector.extract_strided_slice %7 {offsets = [0, 28], sizes = [20, 1152], strides = [1, 1]} : vector<20x1280xbf16> to vector<20x1152xbf16>
    %c9 = arith.constant 9 : index
    %c0_34 = arith.constant 0 : index
    %c0_35 = arith.constant 0 : index
    %55 = vector.load %arg2[%c9, %c0_34, %c0_35] : memref<25x20x20xbf16, #tpu.memory_space<vmem>>, vector<1x20x20xbf16>
    %56 = vector.shape_cast %55 : vector<1x20x20xbf16> to vector<20x20xbf16>
    %cst_36 = arith.constant dense<0.000000e+00> : vector<20x1152xf32>
    %57 = tpu.matmul %56, %54, %cst_36 {dimension_numbers = #tpu.dot_dimension_numbers<[1], [0], [0], [1], [0, 0, 1, 1], [], []>} : vector<20x20xbf16>, vector<20x1152xbf16>, vector<20x1152xf32> -> vector<20x1152xf32>
    %58 = arith.addf %53, %57 : vector<20x1152xf32>
    %59 = vector.extract_strided_slice %7 {offsets = [0, 48], sizes = [20, 1152], strides = [1, 1]} : vector<20x1280xbf16> to vector<20x1152xbf16>
    %c10 = arith.constant 10 : index
    %c0_37 = arith.constant 0 : index
    %c0_38 = arith.constant 0 : index
    %60 = vector.load %arg2[%c10, %c0_37, %c0_38] : memref<25x20x20xbf16, #tpu.memory_space<vmem>>, vector<1x20x20xbf16>
    %61 = vector.shape_cast %60 : vector<1x20x20xbf16> to vector<20x20xbf16>
    %cst_39 = arith.constant dense<0.000000e+00> : vector<20x1152xf32>
    %62 = tpu.matmul %61, %59, %cst_39 {dimension_numbers = #tpu.dot_dimension_numbers<[1], [0], [0], [1], [0, 0, 1, 1], [], []>} : vector<20x20xbf16>, vector<20x1152xbf16>, vector<20x1152xf32> -> vector<20x1152xf32>
    %63 = arith.addf %58, %62 : vector<20x1152xf32>
    %64 = vector.extract_strided_slice %7 {offsets = [0, 49], sizes = [20, 1152], strides = [1, 1]} : vector<20x1280xbf16> to vector<20x1152xbf16>
    %c11 = arith.constant 11 : index
    %c0_40 = arith.constant 0 : index
    %c0_41 = arith.constant 0 : index
    %65 = vector.load %arg2[%c11, %c0_40, %c0_41] : memref<25x20x20xbf16, #tpu.memory_space<vmem>>, vector<1x20x20xbf16>
    %66 = vector.shape_cast %65 : vector<1x20x20xbf16> to vector<20x20xbf16>
    %cst_42 = arith.constant dense<0.000000e+00> : vector<20x1152xf32>
    %67 = tpu.matmul %66, %64, %cst_42 {dimension_numbers = #tpu.dot_dimension_numbers<[1], [0], [0], [1], [0, 0, 1, 1], [], []>} : vector<20x20xbf16>, vector<20x1152xbf16>, vector<20x1152xf32> -> vector<20x1152xf32>
    %68 = arith.addf %63, %67 : vector<20x1152xf32>
    %69 = vector.extract_strided_slice %7 {offsets = [0, 50], sizes = [20, 1152], strides = [1, 1]} : vector<20x1280xbf16> to vector<20x1152xbf16>
    %c12 = arith.constant 12 : index
    %c0_43 = arith.constant 0 : index
    %c0_44 = arith.constant 0 : index
    %70 = vector.load %arg2[%c12, %c0_43, %c0_44] : memref<25x20x20xbf16, #tpu.memory_space<vmem>>, vector<1x20x20xbf16>
    %71 = vector.shape_cast %70 : vector<1x20x20xbf16> to vector<20x20xbf16>
    %cst_45 = arith.constant dense<0.000000e+00> : vector<20x1152xf32>
    %72 = tpu.matmul %71, %69, %cst_45 {dimension_numbers = #tpu.dot_dimension_numbers<[1], [0], [0], [1], [0, 0, 1, 1], [], []>} : vector<20x20xbf16>, vector<20x1152xbf16>, vector<20x1152xf32> -> vector<20x1152xf32>
    %73 = arith.addf %68, %72 : vector<20x1152xf32>
    %74 = vector.extract_strided_slice %7 {offsets = [0, 51], sizes = [20, 1152], strides = [1, 1]} : vector<20x1280xbf16> to vector<20x1152xbf16>
    %c13 = arith.constant 13 : index
    %c0_46 = arith.constant 0 : index
    %c0_47 = arith.constant 0 : index
    %75 = vector.load %arg2[%c13, %c0_46, %c0_47] : memref<25x20x20xbf16, #tpu.memory_space<vmem>>, vector<1x20x20xbf16>
    %76 = vector.shape_cast %75 : vector<1x20x20xbf16> to vector<20x20xbf16>
    %cst_48 = arith.constant dense<0.000000e+00> : vector<20x1152xf32>
    %77 = tpu.matmul %76, %74, %cst_48 {dimension_numbers = #tpu.dot_dimension_numbers<[1], [0], [0], [1], [0, 0, 1, 1], [], []>} : vector<20x20xbf16>, vector<20x1152xbf16>, vector<20x1152xf32> -> vector<20x1152xf32>
    %78 = arith.addf %73, %77 : vector<20x1152xf32>
    %79 = vector.extract_strided_slice %7 {offsets = [0, 52], sizes = [20, 1152], strides = [1, 1]} : vector<20x1280xbf16> to vector<20x1152xbf16>
    %c14 = arith.constant 14 : index
    %c0_49 = arith.constant 0 : index
    %c0_50 = arith.constant 0 : index
    %80 = vector.load %arg2[%c14, %c0_49, %c0_50] : memref<25x20x20xbf16, #tpu.memory_space<vmem>>, vector<1x20x20xbf16>
    %81 = vector.shape_cast %80 : vector<1x20x20xbf16> to vector<20x20xbf16>
    %cst_51 = arith.constant dense<0.000000e+00> : vector<20x1152xf32>
    %82 = tpu.matmul %81, %79, %cst_51 {dimension_numbers = #tpu.dot_dimension_numbers<[1], [0], [0], [1], [0, 0, 1, 1], [], []>} : vector<20x20xbf16>, vector<20x1152xbf16>, vector<20x1152xf32> -> vector<20x1152xf32>
    %83 = arith.addf %78, %82 : vector<20x1152xf32>
    %84 = vector.extract_strided_slice %7 {offsets = [0, 72], sizes = [20, 1152], strides = [1, 1]} : vector<20x1280xbf16> to vector<20x1152xbf16>
    %c15 = arith.constant 15 : index
    %c0_52 = arith.constant 0 : index
    %c0_53 = arith.constant 0 : index
    %85 = vector.load %arg2[%c15, %c0_52, %c0_53] : memref<25x20x20xbf16, #tpu.memory_space<vmem>>, vector<1x20x20xbf16>
    %86 = vector.shape_cast %85 : vector<1x20x20xbf16> to vector<20x20xbf16>
    %cst_54 = arith.constant dense<0.000000e+00> : vector<20x1152xf32>
    %87 = tpu.matmul %86, %84, %cst_54 {dimension_numbers = #tpu.dot_dimension_numbers<[1], [0], [0], [1], [0, 0, 1, 1], [], []>} : vector<20x20xbf16>, vector<20x1152xbf16>, vector<20x1152xf32> -> vector<20x1152xf32>
    %88 = arith.addf %83, %87 : vector<20x1152xf32>
    %89 = vector.extract_strided_slice %7 {offsets = [0, 73], sizes = [20, 1152], strides = [1, 1]} : vector<20x1280xbf16> to vector<20x1152xbf16>
    %c16 = arith.constant 16 : index
    %c0_55 = arith.constant 0 : index
    %c0_56 = arith.constant 0 : index
    %90 = vector.load %arg2[%c16, %c0_55, %c0_56] : memref<25x20x20xbf16, #tpu.memory_space<vmem>>, vector<1x20x20xbf16>
    %91 = vector.shape_cast %90 : vector<1x20x20xbf16> to vector<20x20xbf16>
    %cst_57 = arith.constant dense<0.000000e+00> : vector<20x1152xf32>
    %92 = tpu.matmul %91, %89, %cst_57 {dimension_numbers = #tpu.dot_dimension_numbers<[1], [0], [0], [1], [0, 0, 1, 1], [], []>} : vector<20x20xbf16>, vector<20x1152xbf16>, vector<20x1152xf32> -> vector<20x1152xf32>
    %93 = arith.addf %88, %92 : vector<20x1152xf32>
    %94 = vector.extract_strided_slice %7 {offsets = [0, 74], sizes = [20, 1152], strides = [1, 1]} : vector<20x1280xbf16> to vector<20x1152xbf16>
    %c17 = arith.constant 17 : index
    %c0_58 = arith.constant 0 : index
    %c0_59 = arith.constant 0 : index
    %95 = vector.load %arg2[%c17, %c0_58, %c0_59] : memref<25x20x20xbf16, #tpu.memory_space<vmem>>, vector<1x20x20xbf16>
    %96 = vector.shape_cast %95 : vector<1x20x20xbf16> to vector<20x20xbf16>
    %cst_60 = arith.constant dense<0.000000e+00> : vector<20x1152xf32>
    %97 = tpu.matmul %96, %94, %cst_60 {dimension_numbers = #tpu.dot_dimension_numbers<[1], [0], [0], [1], [0, 0, 1, 1], [], []>} : vector<20x20xbf16>, vector<20x1152xbf16>, vector<20x1152xf32> -> vector<20x1152xf32>
    %98 = arith.addf %93, %97 : vector<20x1152xf32>
    %99 = vector.extract_strided_slice %7 {offsets = [0, 75], sizes = [20, 1152], strides = [1, 1]} : vector<20x1280xbf16> to vector<20x1152xbf16>
    %c18 = arith.constant 18 : index
    %c0_61 = arith.constant 0 : index
    %c0_62 = arith.constant 0 : index
    %100 = vector.load %arg2[%c18, %c0_61, %c0_62] : memref<25x20x20xbf16, #tpu.memory_space<vmem>>, vector<1x20x20xbf16>
    %101 = vector.shape_cast %100 : vector<1x20x20xbf16> to vector<20x20xbf16>
    %cst_63 = arith.constant dense<0.000000e+00> : vector<20x1152xf32>
    %102 = tpu.matmul %101, %99, %cst_63 {dimension_numbers = #tpu.dot_dimension_numbers<[1], [0], [0], [1], [0, 0, 1, 1], [], []>} : vector<20x20xbf16>, vector<20x1152xbf16>, vector<20x1152xf32> -> vector<20x1152xf32>
    %103 = arith.addf %98, %102 : vector<20x1152xf32>
    %104 = vector.extract_strided_slice %7 {offsets = [0, 76], sizes = [20, 1152], strides = [1, 1]} : vector<20x1280xbf16> to vector<20x1152xbf16>
    %c19 = arith.constant 19 : index
    %c0_64 = arith.constant 0 : index
    %c0_65 = arith.constant 0 : index
    %105 = vector.load %arg2[%c19, %c0_64, %c0_65] : memref<25x20x20xbf16, #tpu.memory_space<vmem>>, vector<1x20x20xbf16>
    %106 = vector.shape_cast %105 : vector<1x20x20xbf16> to vector<20x20xbf16>
    %cst_66 = arith.constant dense<0.000000e+00> : vector<20x1152xf32>
    %107 = tpu.matmul %106, %104, %cst_66 {dimension_numbers = #tpu.dot_dimension_numbers<[1], [0], [0], [1], [0, 0, 1, 1], [], []>} : vector<20x20xbf16>, vector<20x1152xbf16>, vector<20x1152xf32> -> vector<20x1152xf32>
    %108 = arith.addf %103, %107 : vector<20x1152xf32>
    %109 = vector.extract_strided_slice %7 {offsets = [0, 96], sizes = [20, 1152], strides = [1, 1]} : vector<20x1280xbf16> to vector<20x1152xbf16>
    %c20 = arith.constant 20 : index
    %c0_67 = arith.constant 0 : index
    %c0_68 = arith.constant 0 : index
    %110 = vector.load %arg2[%c20, %c0_67, %c0_68] : memref<25x20x20xbf16, #tpu.memory_space<vmem>>, vector<1x20x20xbf16>
    %111 = vector.shape_cast %110 : vector<1x20x20xbf16> to vector<20x20xbf16>
    %cst_69 = arith.constant dense<0.000000e+00> : vector<20x1152xf32>
    %112 = tpu.matmul %111, %109, %cst_69 {dimension_numbers = #tpu.dot_dimension_numbers<[1], [0], [0], [1], [0, 0, 1, 1], [], []>} : vector<20x20xbf16>, vector<20x1152xbf16>, vector<20x1152xf32> -> vector<20x1152xf32>
    %113 = arith.addf %108, %112 : vector<20x1152xf32>
    %114 = vector.extract_strided_slice %7 {offsets = [0, 97], sizes = [20, 1152], strides = [1, 1]} : vector<20x1280xbf16> to vector<20x1152xbf16>
    %c21 = arith.constant 21 : index
    %c0_70 = arith.constant 0 : index
    %c0_71 = arith.constant 0 : index
    %115 = vector.load %arg2[%c21, %c0_70, %c0_71] : memref<25x20x20xbf16, #tpu.memory_space<vmem>>, vector<1x20x20xbf16>
    %116 = vector.shape_cast %115 : vector<1x20x20xbf16> to vector<20x20xbf16>
    %cst_72 = arith.constant dense<0.000000e+00> : vector<20x1152xf32>
    %117 = tpu.matmul %116, %114, %cst_72 {dimension_numbers = #tpu.dot_dimension_numbers<[1], [0], [0], [1], [0, 0, 1, 1], [], []>} : vector<20x20xbf16>, vector<20x1152xbf16>, vector<20x1152xf32> -> vector<20x1152xf32>
    %118 = arith.addf %113, %117 : vector<20x1152xf32>
    %119 = vector.extract_strided_slice %7 {offsets = [0, 98], sizes = [20, 1152], strides = [1, 1]} : vector<20x1280xbf16> to vector<20x1152xbf16>
    %c22 = arith.constant 22 : index
    %c0_73 = arith.constant 0 : index
    %c0_74 = arith.constant 0 : index
    %120 = vector.load %arg2[%c22, %c0_73, %c0_74] : memref<25x20x20xbf16, #tpu.memory_space<vmem>>, vector<1x20x20xbf16>
    %121 = vector.shape_cast %120 : vector<1x20x20xbf16> to vector<20x20xbf16>
    %cst_75 = arith.constant dense<0.000000e+00> : vector<20x1152xf32>
    %122 = tpu.matmul %121, %119, %cst_75 {dimension_numbers = #tpu.dot_dimension_numbers<[1], [0], [0], [1], [0, 0, 1, 1], [], []>} : vector<20x20xbf16>, vector<20x1152xbf16>, vector<20x1152xf32> -> vector<20x1152xf32>
    %123 = arith.addf %118, %122 : vector<20x1152xf32>
    %124 = vector.extract_strided_slice %7 {offsets = [0, 99], sizes = [20, 1152], strides = [1, 1]} : vector<20x1280xbf16> to vector<20x1152xbf16>
    %c23 = arith.constant 23 : index
    %c0_76 = arith.constant 0 : index
    %c0_77 = arith.constant 0 : index
    %125 = vector.load %arg2[%c23, %c0_76, %c0_77] : memref<25x20x20xbf16, #tpu.memory_space<vmem>>, vector<1x20x20xbf16>
    %126 = vector.shape_cast %125 : vector<1x20x20xbf16> to vector<20x20xbf16>
    %cst_78 = arith.constant dense<0.000000e+00> : vector<20x1152xf32>
    %127 = tpu.matmul %126, %124, %cst_78 {dimension_numbers = #tpu.dot_dimension_numbers<[1], [0], [0], [1], [0, 0, 1, 1], [], []>} : vector<20x20xbf16>, vector<20x1152xbf16>, vector<20x1152xf32> -> vector<20x1152xf32>
    %128 = arith.addf %123, %127 : vector<20x1152xf32>
    %129 = vector.extract_strided_slice %7 {offsets = [0, 100], sizes = [20, 1152], strides = [1, 1]} : vector<20x1280xbf16> to vector<20x1152xbf16>
    %c24 = arith.constant 24 : index
    %c0_79 = arith.constant 0 : index
    %c0_80 = arith.constant 0 : index
    %130 = vector.load %arg2[%c24, %c0_79, %c0_80] : memref<25x20x20xbf16, #tpu.memory_space<vmem>>, vector<1x20x20xbf16>
    %131 = vector.shape_cast %130 : vector<1x20x20xbf16> to vector<20x20xbf16>
    %cst_81 = arith.constant dense<0.000000e+00> : vector<20x1152xf32>
    %132 = tpu.matmul %131, %129, %cst_81 {dimension_numbers = #tpu.dot_dimension_numbers<[1], [0], [0], [1], [0, 0, 1, 1], [], []>} : vector<20x20xbf16>, vector<20x1152xbf16>, vector<20x1152xf32> -> vector<20x1152xf32>
    %133 = arith.addf %128, %132 : vector<20x1152xf32>
    %c0_82 = arith.constant 0 : index
    %c0_83 = arith.constant 0 : index
    %134 = vector.load %arg3[%c0_82, %c0_83] : memref<20x1xf32, #tpu.memory_space<vmem>>, vector<20x1xf32>
    %135 = vector.broadcast %134 : vector<20x1xf32> to vector<20x1152xf32>
    %136 = arith.addf %133, %135 : vector<20x1152xf32>
    %cst_84 = arith.constant 0.000000e+00 : f32
    %137 = vector.broadcast %cst_84 : f32 to vector<20x1152xf32>
    %138 = arith.maximumf %136, %137 : vector<20x1152xf32>
    %c0_85 = arith.constant 0 : index
    %c0_86 = arith.constant 0 : index
    %139 = vector.load %arg4[%c0_85, %c0_86] : memref<1152x40xf32, #tpu.memory_space<vmem>>, vector<1152x40xf32>
    %cst_87 = arith.constant dense<0.000000e+00> : vector<20x40xf32>
    %140 = tpu.matmul %138, %139, %cst_87 {dimension_numbers = #tpu.dot_dimension_numbers<[1], [0], [0], [1], [0, 0, 1, 1], [], []>} : vector<20x1152xf32>, vector<1152x40xf32>, vector<20x40xf32> -> vector<20x40xf32>
    %141 = vector.shape_cast %140 : vector<20x40xf32> to vector<20x2x20xf32>
    %142 = tpu.transpose %141, [1, 0, 2] : vector<20x2x20xf32> -> vector<2x20x20xf32>
    %143 = vector.shape_cast %142 : vector<2x20x20xf32> to vector<2x400xf32>
    %144 = arith.truncf %143 : vector<2x400xf32> to vector<2x400xbf16>
    %c0_88 = arith.constant 0 : index
    %c0_89 = arith.constant 0 : index
    %145 = vector.load %arg5[%c0_88, %c0_89] : memref<400x400xbf16, #tpu.memory_space<vmem>>, vector<400x400xbf16>
    %cst_90 = arith.constant dense<0.000000e+00> : vector<2x400xf32>
    %146 = tpu.matmul %144, %145, %cst_90 {dimension_numbers = #tpu.dot_dimension_numbers<[1], [0], [0], [1], [0, 0, 1, 1], [], []>} : vector<2x400xbf16>, vector<400x400xbf16>, vector<2x400xf32> -> vector<2x400xf32>
    %c0_91 = arith.constant 0 : index
    %c0_92 = arith.constant 0 : index
    %147 = vector.load %arg6[%c0_91, %c0_92] : memref<2x400xf32, #tpu.memory_space<vmem>>, vector<1x400xf32>
    %148 = vector.broadcast %147 : vector<1x400xf32> to vector<2x400xf32>
    %149 = arith.addf %146, %148 : vector<2x400xf32>
    %cst_93 = arith.constant 0.000000e+00 : f32
    %150 = vector.broadcast %cst_93 : f32 to vector<2x400xf32>
    %151 = arith.maximumf %149, %150 : vector<2x400xf32>
    %152 = arith.truncf %151 : vector<2x400xf32> to vector<2x400xbf16>
    %c0_94 = arith.constant 0 : index
    %c0_95 = arith.constant 0 : index
    %153 = vector.load %arg7[%c0_94, %c0_95] : memref<400x10xbf16, #tpu.memory_space<vmem>>, vector<400x10xbf16>
    %cst_96 = arith.constant dense<0.000000e+00> : vector<2x10xf32>
    %154 = tpu.matmul %152, %153, %cst_96 {dimension_numbers = #tpu.dot_dimension_numbers<[1], [0], [0], [1], [0, 0, 1, 1], [], []>} : vector<2x400xbf16>, vector<400x10xbf16>, vector<2x10xf32> -> vector<2x10xf32>
    %c1_97 = arith.constant 1 : index
    %c0_98 = arith.constant 0 : index
    %155 = vector.load %arg6[%c1_97, %c0_98] : memref<2x400xf32, #tpu.memory_space<vmem>>, vector<1x10xf32>
    %156 = vector.broadcast %155 : vector<1x10xf32> to vector<2x10xf32>
    %157 = arith.addf %154, %156 : vector<2x10xf32>
    %cst_99 = arith.constant dense<0xFF800000> : vector<2xf32>
    %158 = vector.multi_reduction <maximumf>, %157, %cst_99 [1] : vector<2x10xf32> to vector<2xf32>
    %159 = vector.shape_cast %158 : vector<2xf32> to vector<2x1xf32>
    %160 = vector.broadcast %159 : vector<2x1xf32> to vector<2x10xf32>
    %161 = arith.subf %157, %160 : vector<2x10xf32>
    %162 = math.exp %161 : vector<2x10xf32>
    %cst_100 = arith.constant dense<0.000000e+00> : vector<2xf32>
    %163 = vector.multi_reduction <add>, %162, %cst_100 [1] : vector<2x10xf32> to vector<2xf32>
    %164 = vector.shape_cast %163 : vector<2xf32> to vector<2x1xf32>
    %165 = math.log %164 : vector<2x1xf32>
    %166 = vector.broadcast %165 : vector<2x1xf32> to vector<2x10xf32>
    %167 = arith.subf %161, %166 : vector<2x10xf32>
    %c0_101 = arith.constant 0 : index
    %c0_102 = arith.constant 0 : index
    %168 = vector.load %arg8[%c0_101, %c0_102] : memref<2x10xf32, #tpu.memory_space<vmem>>, vector<2x10xf32>
    tpu.vector_store %arg8[%c0_101, %c0_102], %167 {strides = array<i32>} : memref<2x10xf32, #tpu.memory_space<vmem>>, vector<2x10xf32>,
    return
  }
}

</mosaic_0001>

<bundles_post_ra>
// kernel: ocr_forward.1
= control target key start
LH: loop header
LB: loop body
LE: loop exit
PB: predicated region body
PF: predicated region fallthrough
CT: control target
= control target key end

     0   :  { %vm152_vm0 = vcmask 1044480   ;;  %vm145_vm1 = vcmask 211968   ;;  %s18138_s0 = inlined_call_operand.vmem [shape: bf16[26,1152], index: 0, kind: input, shape index: {}]   ;;  %s18139_s1 = inlined_call_operand.vmem [shape: bf16[20,26], index: 1, kind: input, shape index: {}]   ;;  %s18140_s2 = inlined_call_operand.vmem [shape: bf16[25,20,20], index: 2, kind: input, shape index: {}]   ;;  %s18141_s3 = inlined_call_operand.vmem [shape: f32[20,1], index: 3, kind: input, shape index: {}]   ;;  %s18142_s4 = inlined_call_operand.vmem [shape: f32[1152,40], index: 4, kind: input, shape index: {}]   ;;  %s18143_s5 = inlined_call_operand.vmem [shape: bf16[400,400], index: 5, kind: input, shape index: {}]   ;;  %s18144_s6 = inlined_call_operand.vmem [shape: f32[2,400], index: 6, kind: input, shape index: {}]   ;;  %s18145_s7 = inlined_call_operand.vmem [shape: bf16[400,10], index: 7, kind: input, shape index: {}]   ;;  %s18146_s8 = inlined_call_operand.hbm [shape: f32[2,10], index: 8, kind: output, shape index: {}]  }
   0x1   :  { %v9925_v0 = vld [vmem:[%s18138_s0 + $0x48] sm:$0xf]  ;;  %v11118_v1 = vld [vmem:[%s18138_s0 + $0x68] sm:$0x10]  ;;  %v9927_v4 = vld [vmem:[%s18138_s0 + $0x6c] sm:$0x10] }
   0x2   :  { %v9926_v2 = vor.u32 %v11118_v1, %v9925_v0  ;;  %v11114_v3 = vld [vmem:[%s18138_s0 + $0x4c] sm:$0xf]  ;;  %v9933_v5 = vld [vmem:[%s18138_s0 + $0x50] sm:$0xf]  ;;  %v11119_v7 = vld [vmem:[%s18138_s0 + $0x70] sm:$0x10] }
   0x3   :  { %v9930_v6 = vor.u32 %v11114_v3, %v9927_v4  ;;  %v11115_v8 = vld [vmem:[%s18138_s0 + $0x54] sm:$0xf]  ;;  %v9935_v9 = vld [vmem:[%s18138_s0 + $0x74] sm:$0x10]  ;;  %v9934_v11 = vor.u32 %v11119_v7, %v9933_v5  ;;  %v9889_v13 = vld [vmem:[%s18138_s0] sm:$0xf] }
   0x4   :  { %v154_v10 = vsel %vm152_vm0, %v9926_v2, 0  ;;  %v9938_v12 = vor.u32 %v11115_v8, %v9935_v9  ;;  %v11109_v14 = vld [vmem:[%s18138_s0 + $0x20] sm:$0xf0]  ;;  %v9891_v18 = vld [vmem:[%s18138_s0 + $0x24] sm:$0xf0] }
   0x5   :  { %186 = vmatpush.bf16.msra.mxu0 %v154_v10  ;;  %v157_v15 = vsel %vm152_vm0, %v9930_v6, 0  ;;  %v9890_v16 = vor.u32 %v11109_v14, %v9889_v13  ;;  %v11105_v17 = vld [vmem:[%s18138_s0 + $0x4] sm:$0xf]  ;;  %v160_v19 = vsel %vm152_vm0, %v9934_v11, 0  ;;  %v9897_v22 = vld [vmem:[%s18138_s0 + $0x8] sm:$0xf] }
   0x6   :  { %204 = vmatpush.bf16.msra.mxu1 %v157_v15  ;;  %v163_v20 = vsel %vm152_vm0, %v9938_v12, 0  ;;  %v9894_v21 = vor.u32 %v11105_v17, %v9891_v18  ;;  %v11110_v23 = vld [vmem:[%s18138_s0 + $0x28] sm:$0xf0]  ;;  %222 = vmatpush.bf16.msra.mxu2 %v160_v19  ;;  %v9899_v26 = vld [vmem:[%s18138_s0 + $0x2c] sm:$0xf0]  ;;  %v11491_v27 = vld [vmem:[%s18139_s1] sm:$0xff] }
   0x7   :  { %240 = vmatpush.bf16.msra.mxu3 %v163_v20  ;;  %v9898_v24 = vor.u32 %v11110_v23, %v9897_v22  ;;  %v11106_v25 = vld [vmem:[%s18138_s0 + $0xc] sm:$0xf]  ;;  %v9941_v29 = vld [vmem:[%s18138_s0 + $0x58] sm:$0xf]  ;;  %v11120_v30 = vld [vmem:[%s18138_s0 + $0x78] sm:$0x10] }
   0x8   :  { %v9902_v28 = vor.u32 %v11106_v25, %v9899_v26  ;;  %v11116_v31 = vld [vmem:[%s18138_s0 + $0x5c] sm:$0xf]  ;;  %v9942_v32 = vor.u32 %v11120_v30, %v9941_v29  ;;  %v9943_v33 = vld [vmem:[%s18138_s0 + $0x7c] sm:$0x10]  ;;  %v11121_v35 = vld [vmem:[%s18138_s0 + $0x80] sm:$0x10] }
   0x9   :  { %187 = vmatpush.bf16.msra.mxu0 %v9890_v16  ;;  %v9949_v34 = vld [vmem:[%s18138_s0 + $0x60] sm:$0xf]  ;;  %v9946_v36 = vor.u32 %v11116_v31, %v9943_v33  ;;  %v11117_v38 = vld [vmem:[%s18138_s0 + $0x64] sm:$0xf]  ;;  %v9951_v39 = vld [vmem:[%s18138_s0 + $0x84] sm:$0x10] }
   0xa   :  { %205 = vmatpush.bf16.msra.mxu1 %v9894_v21  ;;  %v9950_v37 = vor.u32 %v11121_v35, %v9949_v34  ;;  %v9905_v40 = vld [vmem:[%s18138_s0 + $0x10] sm:$0xf]  ;;  %223 = vmatpush.bf16.msra.mxu2 %v9898_v24  ;;  %v166_v41 = vsel %vm152_vm0, %v9942_v32, 0  ;;  %v9954_v42 = vor.u32 %v11117_v38, %v9951_v39  ;;  %v11111_v43 = vld [vmem:[%s18138_s0 + $0x30] sm:$0xf0] }
   0xb   :  { %241 = vmatpush.bf16.msra.mxu3 %v9902_v28  ;;  %v11107_v44 = vld [vmem:[%s18138_s0 + $0x14] sm:$0xf]  ;;  %v169_v45 = vsel %vm152_vm0, %v9946_v36, 0  ;;  %v9907_v47 = vld [vmem:[%s18138_s0 + $0x34] sm:$0xf0]  ;;  %v9906_v50 = vor.u32 %v11111_v43, %v9905_v40 }
   0xc   :  { %9959 = vmatmul.msk.bf16.vlgmr.msra.gmra.mxu0 %vm145_vm1, %v11491_v27  ;;  %v172_v46 = vsel %vm152_vm0, %v9950_v37, 0  ;;  %v9913_v48 = vld [vmem:[%s18138_s0 + $0x18] sm:$0xf]  ;;  %v175_v49 = vsel %vm152_vm0, %v9954_v42, 0  ;;  %v11112_v51 = vld [vmem:[%s18138_s0 + $0x38] sm:$0xf0] }
   0xd   :  { %9961 = vmatmul.msk.bf16.vlgmr.msra.gmra.mxu1 %vm145_vm1, %v11491_v27  ;;  %258 = vmatpush.bf16.msrb.mxu0 %v166_v41  ;;  %v11108_v52 = vld [vmem:[%s18138_s0 + $0x1c] sm:$0xf]  ;;  %v9915_v53 = vld [vmem:[%s18138_s0 + $0x3c] sm:$0xf0] }
   0xe   :  { %9963 = vmatmul.msk.bf16.vlgmr.msra.gmra.mxu2 %vm145_vm1, %v11491_v27  ;;  %9965 = vmatmul.msk.bf16.vlgmr.msra.gmra.mxu3 %vm145_vm1, %v11491_v27 }
   0xf   :  { %13 = vsyncpa [#allocation3], 0  ;;  %276 = vmatpush.bf16.msrb.mxu1 %v169_v45  ;;  %294 = vmatpush.bf16.msrb.mxu2 %v172_v46  ;;  %v9910_v54 = vor.u32 %v11107_v44, %v9907_v47  ;;  %v9914_v55 = vor.u32 %v11112_v51, %v9913_v48  ;;  %v9918_v56 = vor.u32 %v11108_v52, %v9915_v53  ;;  %v33_v57 = vld [vmem:[%s18139_s1 + $0x8] sm:$0x3]  ;;  %v11122_v61 = vld [vmem:[%s18138_s0 + $0x88] sm:$0x10] }
  0x10   :  { %312 = vmatpush.bf16.msrb.mxu3 %v175_v49  ;;  %v59_v58 = vunpack.c.l.b16 %v33_v57  ;;  %v9957_v60 = vld [vmem:[%s18138_s0 + $0x68] sm:$0xf]  ;;  %v9921_v63 = vld [vmem:[%s18138_s0 + $0x20] sm:$0xf]  ;;  %v11113_v0 = vld [vmem:[%s18138_s0 + $0x40] sm:$0xf0] }
  0x11   :  { %259 = vmatpush.bf16.msrb.mxu0 %v9906_v50  ;;  %v9958_v62 = vor.u32 %v11122_v61, %v9957_v60  ;;  %v9922_v2 = vor.u32 %v11113_v0, %v9921_v63  ;;  %s11349_s0 = smov 127   ;;  %v18147_v60 = vmov 0   ;;  %s11351_s14 = smov 126   ;;  %vm507_vm2 = vcmask 1039360  }
  0x12   :  { %v61_v59 = vpack.c.b16 %v59_v58, %v59_v58  ;;  %11315 = vset.pattern.permute.xlu0 %v18147_v60  ;;  %11316 = vset.pattern.permute.xlu1 %v18147_v60  ;;  %s11352_s15 = smov 125   ;;  %vm542_vm3 = vcmask 1041408   ;;  %vm535_vm4 = vcmask 162816   ;;  %s11353_s20 = smov 124   ;;  %vm985_vm5 = vcmask 1031168  }
  0x13   :  { %277 = vmatpush.bf16.msrb.mxu1 %v9910_v54  ;;  %295 = vmatpush.bf16.msrb.mxu2 %v9914_v55  ;;  %v178_v1 = vsel %vm152_vm0, %v9958_v62, 0  ;;  %s11354_s25 = smov 104   ;;  %s11355_s26 = smov 103   ;;  %vm1285_vm6 = vcmask 1022976   ;;  %vm1585_vm7 = vcmask 1014784   ;;  %vm1885_vm8 = vcmask 850944  }
  0x14   :  { %313 = vmatpush.bf16.msrb.mxu3 %v9918_v56  ;;  %11317 = vset.pattern.permute.xlu2 %v18147_v60  ;;  %s11356_s9 = smov 102   ;;  %s11357_s13 = smov 101   ;;  %vm2185_vm9 = vcmask 842752   ;;  %vm2485_vm10 = vcmask 834560   ;;  %vm2785_vm11 = vcmask 826368   ;;  %vm3085_vm12 = vcmask 818176  }
  0x15   :  { %330 = vmatpush.bf16.msra.mxu0 %v178_v1  ;;  %s11359_s18 = smov 80   ;;  %s11360_s24 = smov 79   ;;  %vm3385_vm13 = vcmask 654336   ;;  %vm3685_vm14 = vcmask 646144   ;;  %vm3985_vm15 = vcmask 637952   ;;  %vm4285_vm0 = vcmask 629760  }
  0x16   :  { %s11361_s28 = smov 78   ;;  %s11364_s19 = smov 56  }
  0x17   :  { %s11365_s21 = smov 55   ;;  %s11366_s27 = smov 54  }
  0x18   :  { %s11367_s1 = smov 53   ;;  %s11368_s10 = smov 52  }
  0x19   :  { %331 = vmatpush.bf16.msra.mxu0 %v9922_v2  ;;  %s11370_s22 = smov 31   ;;  %s11372_s29 = smov 29  }
  0x1a   :  { %s11373_s12 = smov 28   ;;  %s11377_s11 = smov 40  }
  0x1b   :  { %s11388_s16 = smov 64   ;;  %s11389_s17 = smov 84  }
  0x1c   :  { %9960 = vmatmul.msk.bf16.gmra.mxu0 %vm145_vm1, %v61_v59 }
  0x1d   :  { %9962 = vmatmul.msk.bf16.gmra.mxu1 %vm145_vm1, %v61_v59 }
  0x1e   :  { %9964 = vmatmul.msk.bf16.gmra.mxu2 %vm145_vm1, %v61_v59  ;;  %9966 = vmatmul.msk.bf16.gmra.mxu3 %vm145_vm1, %v61_v59 }
  0x2c   :  { %9967 = vmatmul.msk.bf16.vlgmr.msrb.gmra.mxu0 %vm145_vm1, %v11491_v27 }
  0x2d   :  { %9969 = vmatmul.msk.bf16.vlgmr.msrb.gmra.mxu1 %vm145_vm1, %v11491_v27 }
  0x2e   :  { %9971 = vmatmul.msk.bf16.vlgmr.msrb.gmra.mxu2 %vm145_vm1, %v11491_v27  ;;  %9973 = vmatmul.msk.bf16.vlgmr.msrb.gmra.mxu3 %vm145_vm1, %v11491_v27 }
  0x3c   :  { %9968 = vmatmul.msk.bf16.gmra.mxu0 %vm145_vm1, %v61_v59 }
  0x3d   :  { %9970 = vmatmul.msk.bf16.gmra.mxu1 %vm145_vm1, %v61_v59 }
  0x3e   :  { %9972 = vmatmul.msk.bf16.gmra.mxu2 %vm145_vm1, %v61_v59  ;;  %9974 = vmatmul.msk.bf16.gmra.mxu3 %vm145_vm1, %v61_v59 }
  0x4c   :  { %9975 = vmatmul.msk.bf16.vlgmr.msra.gmra.mxu0 %vm145_vm1, %v11491_v27 }
  0x5c   :  { %9976 = vmatmul.msk.bf16.gmra.mxu0 %vm145_vm1, %v61_v59  ;;  %vm4585_vm1 = vcmask 621568  }
  0x89   :  { %v189_v3 = vpop.f32.mrf.mxu0 }
  0x8a   :  { %v207_v4 = vpop.f32.mrf.mxu1  ;;  %v342_v5 = vmax.f32 %v189_v3, 0.0 }
  0x8b   :  { %v343_v6 = vmax.f32 %v207_v4, 0.0 }
  0x8d   :  { %v369_v11 = vpack.c.bf16 %v343_v6, %v342_v5 }
  0x8f   :  { %v399_v15 = vunpack.c.l.b16 %v369_v11  ;;  %v400_v26 = vunpack.c.h.b16 %v369_v11 }
  0x91   :  { %v225_v7 = vpop.f32.mrf.mxu2  ;;  %v243_v8 = vpop.f32.mrf.mxu3 }
  0x92   :  { %v191_v9 = vpop.f32.mrf.mxu0  ;;  %v209_v10 = vpop.f32.mrf.mxu1  ;;  %v344_v36 = vmax.f32 %v225_v7, 0.0  ;;  %v345_v37 = vmax.f32 %v243_v8, 0.0 }
  0x93   :  { %v351_v12 = vmax.f32 %v191_v9, 0.0  ;;  %v352_v13 = vmax.f32 %v209_v10, 0.0 }
  0x94   :  { %v370_v43 = vpack.c.bf16 %v345_v37, %v344_v36 }
  0x95   :  { %v374_v14 = vpack.c.bf16 %v352_v13, %v351_v12 }
  0x96   :  { %v401_v52 = vunpack.c.l.b16 %v370_v43  ;;  %v402_v61 = vunpack.c.h.b16 %v370_v43 }
  0x97   :  { %v408_v16 = vunpack.c.l.b16 %v374_v14  ;;  %v409_v24 = vunpack.c.h.b16 %v374_v14 }
  0x99   :  { %v11588_v17 = vpack.c.b16 %v408_v16, %v399_v15  ;;  %v227_v18 = vpop.f32.mrf.mxu2  ;;  %v245_v19 = vpop.f32.mrf.mxu3  ;;  %v11592_v28 = vpack.c.b16 %v409_v24, %v400_v26 }
  0x9a   :  { %v194_v20 = vpop.f32.mrf.mxu0  ;;  %v212_v21 = vpop.f32.mrf.mxu1  ;;  %v353_v38 = vmax.f32 %v227_v18, 0.0  ;;  %v354_v39 = vmax.f32 %v245_v19, 0.0 }
  0x9b   :  { %v360_v22 = vmax.f32 %v194_v20, 0.0  ;;  %v361_v23 = vmax.f32 %v212_v21, 0.0  ;;  %469 = vrot.lane.b32.xlu1 %v11588_v17, %s11349_s0 }
  0x9c   :  { %v375_v44 = vpack.c.bf16 %v354_v39, %v353_v38 }
  0x9d   :  { %v379_v25 = vpack.c.bf16 %v361_v23, %v360_v22 }
  0x9e   :  { %v410_v53 = vunpack.c.l.b16 %v375_v44  ;;  %v411_v62 = vunpack.c.h.b16 %v375_v44 }
  0x9f   :  { %v417_v27 = vunpack.c.l.b16 %v379_v25  ;;  %v418_v41 = vunpack.c.h.b16 %v379_v25 }
  0xa0   :  { %v11610_v55 = vpack.c.b16 %v410_v53, %v401_v52  ;;  %v11619_v63 = vpack.c.b16 %v411_v62, %v402_v61 }
  0xa1   :  { %v11594_v29 = vpack.c.b16 %v417_v27, %v417_v27  ;;  %v230_v30 = vpop.f32.mrf.mxu2  ;;  %v248_v31 = vpop.f32.mrf.mxu3  ;;  %v11602_v46 = vpack.c.b16 %v418_v41, %v418_v41 }
  0xa2   :  { %v362_v32 = vmax.f32 %v230_v30, 0.0  ;;  %v363_v33 = vmax.f32 %v248_v31, 0.0  ;;  %v196_v34 = vpop.f32.mrf.mxu0  ;;  %v214_v35 = vpop.f32.mrf.mxu1 }
  0xa3   :  { %471 = vrot.lane.b32.xlu1 %v11592_v28, %s11349_s0  ;;  %489 = vrot.lane.b32.xlu0 %v11594_v29, %s11349_s0 }
  0xa4   :  { %v380_v40 = vpack.c.bf16 %v363_v33, %v362_v32 }
  0xa6   :  { %v419_v42 = vunpack.c.l.b16 %v380_v40  ;;  %v420_v51 = vunpack.c.h.b16 %v380_v40 }
  0xa8   :  { %v11600_v45 = vpack.c.b16 %v419_v42, %v419_v42  ;;  %v11608_v54 = vpack.c.b16 %v420_v51, %v420_v51 }
  0xa9   :  { %v232_v47 = vpop.f32.mrf.mxu2  ;;  %v250_v48 = vpop.f32.mrf.mxu3 }
  0xaa   :  { %493 = vrot.lane.b32.xlu2 %v11600_v45, %s11349_s0  ;;  %v261_v49 = vpop.f32.mrf.mxu0  ;;  %v279_v50 = vpop.f32.mrf.mxu1  ;;  %18158 = vst [vmem:[#allocation5_spill] sm:$0xff] %v11608_v54 }
  0xab   :  { %491 = vrot.lane.b32.xlu0 %v11602_v46, %s11349_s0  ;;  %v346_v9 = vmax.f32 %v261_v49, 0.0  ;;  %v347_v10 = vmax.f32 %v279_v50, 0.0 }
  0xad   :  { %v371_v23 = vpack.c.bf16 %v347_v10, %v346_v9 }
  0xaf   :  { %v403_v34 = vunpack.c.l.b16 %v371_v23  ;;  %v404_v35 = vunpack.c.h.b16 %v371_v23 }
  0xb1   :  { %v297_v56 = vpop.f32.mrf.mxu2  ;;  %v315_v57 = vpop.f32.mrf.mxu3 }
  0xb2   :  { %473 = vrot.lane.b32.xlu2 %v11610_v55, %s11349_s0  ;;  %v263_v58 = vpop.f32.mrf.mxu0  ;;  %v281_v59 = vpop.f32.mrf.mxu1  ;;  %v348_v24 = vmax.f32 %v297_v56, 0.0  ;;  %v349_v25 = vmax.f32 %v315_v57, 0.0 }
  0xb3   :  { %495 = vrot.lane.b32.xlu0 %v11608_v54, %s11349_s0  ;;  %v355_v6 = vmax.f32 %v263_v58, 0.0  ;;  %v356_v7 = vmax.f32 %v281_v59, 0.0 }
  0xb4   :  { %v372_v37 = vpack.c.bf16 %v349_v25, %v348_v24 }
  0xb5   :  { %v376_v13 = vpack.c.bf16 %v356_v7, %v355_v6 }
  0xb6   :  { %v405_v47 = vunpack.c.l.b16 %v372_v37  ;;  %v406_v57 = vunpack.c.h.b16 %v372_v37 }
  0xb7   :  { %v412_v27 = vunpack.c.l.b16 %v376_v13  ;;  %v413_v30 = vunpack.c.h.b16 %v376_v13 }
  0xb9   :  { %v299_v0 = vpop.f32.mrf.mxu2  ;;  %v317_v1 = vpop.f32.mrf.mxu3  ;;  %v11633_v38 = vpack.c.b16 %v412_v27, %v403_v34  ;;  %v11635_v39 = vpack.c.b16 %v413_v30, %v404_v35  ;;  %v9979_v30 = vld [vmem:[%s18140_s2 + $0x14] sm:$0x3] }
  0xba   :  { %v266_v2 = vpop.f32.mrf.mxu0  ;;  %v284_v3 = vpop.f32.mrf.mxu1  ;;  %v357_v31 = vmax.f32 %v299_v0, 0.0  ;;  %v358_v32 = vmax.f32 %v317_v1, 0.0 }
  0xbb   :  { %v364_v4 = vmax.f32 %v266_v2, 0.0  ;;  %v365_v5 = vmax.f32 %v284_v3, 0.0  ;;  %475 = vrot.lane.b32.xlu0 %v11619_v63, %s11349_s0 }
  0xbc   :  { %v377_v40 = vpack.c.bf16 %v358_v32, %v357_v31 }
  0xbd   :  { %v381_v8 = vpack.c.bf16 %v365_v5, %v364_v4 }
  0xbe   :  { %v414_v48 = vunpack.c.l.b16 %v377_v40  ;;  %v415_v58 = vunpack.c.h.b16 %v377_v40 }
  0xbf   :  { %v421_v11 = vunpack.c.l.b16 %v381_v8  ;;  %v422_v12 = vunpack.c.h.b16 %v381_v8 }
  0xc0   :  { %v11645_v51 = vpack.c.b16 %v414_v48, %v405_v47  ;;  %v11653_v0 = vpack.c.b16 %v415_v58, %v406_v57 }
  0xc1   :  { %v11623_v14 = vpack.c.b16 %v421_v11, %v421_v11  ;;  %v11625_v15 = vpack.c.b16 %v422_v12, %v422_v12  ;;  %v302_v16 = vpop.f32.mrf.mxu2  ;;  %v320_v18 = vpop.f32.mrf.mxu3 }
  0xc2   :  { %v366_v19 = vmax.f32 %v302_v16, 0.0  ;;  %v367_v20 = vmax.f32 %v320_v18, 0.0  ;;  %v268_v21 = vpop.f32.mrf.mxu0  ;;  %v286_v22 = vpop.f32.mrf.mxu1  ;;  %18160 = vst [vmem:[#allocation7_spill] sm:$0xff] %v11653_v0 }
  0xc3   :  { %18159 = vst [vmem:[#allocation6_spill] sm:$0xff] %v11625_v15  ;;  %499 = vrot.lane.b32.xlu2 %v11625_v15, %s11349_s0  ;;  %497 = vrot.lane.b32.xlu1 %v11623_v14, %s11349_s0  ;;  %v11704_v22 = vld [vmem:[%s18140_s2 + $0xc] sm:$0xff] }
  0xc4   :  { %v382_v26 = vpack.c.bf16 %v367_v20, %v366_v19 }
  0xc6   :  { %v423_v33 = vunpack.c.l.b16 %v382_v26  ;;  %v424_v44 = vunpack.c.h.b16 %v382_v26 }
  0xc8   :  { %v11631_v36 = vpack.c.b16 %v423_v33, %v423_v33  ;;  %v11643_v50 = vpack.c.b16 %v424_v44, %v424_v44  ;;  %v465_v33 = vunpack.c.l.b16 %v9979_v30 }
  0xc9   :  { %v304_v41 = vpop.f32.mrf.mxu2  ;;  %v322_v42 = vpop.f32.mrf.mxu3 }
  0xca   :  { %501 = vrot.lane.b32.xlu0 %v11631_v36, %s11349_s0  ;;  %v333_v43 = vpop.f32.mrf.mxu0  ;;  %v11731_v35 = vpack.c.b16 %v465_v33, %v465_v33 }
  0xcb   :  { %479 = vrot.lane.b32.xlu2 %v11635_v39, %s11349_s0  ;;  %477 = vrot.lane.b32.xlu1 %v11633_v38, %s11349_s0  ;;  %v350_v49 = vmax.f32 %v333_v43, 0.0 }
  0xcd   :  { %v373_v52 = vpack.c.bf16 %v350_v49, %v350_v49 }
  0xcf   :  { %v407_v59 = vunpack.c.l.b16 %v373_v52 }
  0xd2   :  { %v335_v53 = vpop.f32.mrf.mxu0  ;;  %487 = vrot.lane.b32.xlu0 %v18147_v60, %s11349_s0 }
  0xd3   :  { %v359_v56 = vmax.f32 %v335_v53, 0.0  ;;  %503 = vrot.lane.b32.xlu2 %v11643_v50, %s11349_s0  ;;  %481 = vrot.lane.b32.xlu1 %v11645_v51, %s11349_s0 }
  0xd5   :  { %v378_v61 = vpack.c.bf16 %v359_v56, %v359_v56 }
  0xd7   :  { %v416_v62 = vunpack.c.l.b16 %v378_v61 }
  0xd9   :  { %v11655_v1 = vpack.c.b16 %v416_v62, %v407_v59 }
  0xda   :  { %v338_v2 = vpop.f32.mrf.mxu0 }
  0xdb   :  { %v368_v3 = vmax.f32 %v338_v2, 0.0  ;;  %483 = vrot.lane.b32.xlu2 %v11653_v0, %s11349_s0  ;;  %485 = vrot.lane.b32.xlu0 %v11655_v1, %s11349_s0 }
  0xdd   :  { %v383_v4 = vpack.c.bf16 %v368_v3, %v368_v3  ;;  %v747_v3 = vsel %vm542_vm3, %v11594_v29, 0 }
  0xdf   :  { %v425_v5 = vunpack.c.l.b16 %v383_v4  ;;  %v750_v4 = vsel %vm542_vm3, %v11602_v46, 0 }
  0xe1   :  { %v11661_v6 = vpack.c.b16 %v425_v5, %v425_v5  ;;  %v759_v5 = vsel %vm542_vm3, %v11623_v14, 0 }
  0xe2   :  { %v340_v7 = vpop.f32.mrf.mxu0 }
  0xe3   :  { %969 = vrot.lane.b32.xlu2 %v11602_v46, %s11351_s14  ;;  %971 = vrot.lane.b32.xlu0 %v11600_v45, %s11351_s14 }
  0xe4   :  { %505 = vrot.lane.b32.xlu1 %v11661_v6, %s11349_s0  ;;  %s11380_s0 = smov 120  }
  0xeb   :  { %947 = vrot.lane.b32.xlu2 %v11588_v17, %s11351_s14  ;;  %949 = vrot.lane.b32.xlu0 %v11592_v28, %s11351_s14 }
  0xec   :  { %967 = vrot.lane.b32.xlu1 %v11594_v29, %s11351_s14 }
  0xf3   :  { %953 = vrot.lane.b32.xlu2 %v11619_v63, %s11351_s14  ;;  %975 = vrot.lane.b32.xlu0 %v11623_v14, %s11351_s14 }
  0xf4   :  { %973 = vrot.lane.b32.xlu1 %v11608_v54, %s11351_s14 }
  0xfb   :  { %977 = vrot.lane.b32.xlu2 %v11625_v15, %s11351_s14  ;;  %979 = vrot.lane.b32.xlu0 %v11631_v36, %s11351_s14 }
  0xfc   :  { %951 = vrot.lane.b32.xlu1 %v11610_v55, %s11351_s14 }
 0x103   :  { %957 = vrot.lane.b32.xlu2 %v11635_v39, %s11351_s14  ;;  %959 = vrot.lane.b32.xlu0 %v11645_v51, %s11351_s14 }
 0x104   :  { %955 = vrot.lane.b32.xlu1 %v11633_v38, %s11351_s14  ;;  %v494_v8 = vpop.permute.xlu2 %493 }
 0x10b   :  { %963 = vrot.lane.b32.xlu0 %v11655_v1, %s11351_s14  ;;  %983 = vrot.lane.b32.xlu2 %v11661_v6, %s11351_s14 }
 0x10c   :  { %981 = vrot.lane.b32.xlu1 %v11643_v50, %s11351_s14  ;;  %v474_v16 = vpop.permute.xlu2 %473 }
 0x10d   :  { %v470_v10 = vpop.permute.xlu1 %469 }
 0x113   :  { %1271 = vrot.lane.b32.xlu0 %v11600_v45, %s11352_s15  ;;  %1269 = vrot.lane.b32.xlu2 %v11602_v46, %s11352_s15 }
 0x114   :  { %961 = vrot.lane.b32.xlu1 %v11653_v0, %s11351_s14 }
 0x115   :  { %v490_v9 = vpop.permute.xlu0 %489  ;;  %v472_v20 = vpop.permute.xlu1 %471 }
 0x116   :  { %v508_v21 = vsel %vm507_vm2, %v470_v10, %v472_v20  ;;  %v509_v23 = vsel %vm507_vm2, %v472_v20, %v474_v16  ;;  %v753_v20 = vsel %vm542_vm3, %v11600_v45, 0 }
 0x11b   :  { %1251 = vrot.lane.b32.xlu0 %v11610_v55, %s11352_s15  ;;  %1249 = vrot.lane.b32.xlu2 %v11592_v28, %s11352_s15 }
 0x11c   :  { %965 = vrot.lane.b32.xlu1 %v18147_v60, %s11351_s14  ;;  %s11369_s14 = smov 32  }
 0x11d   :  { %v492_v11 = vpop.permute.xlu0 %491  ;;  %v500_v26 = vpop.permute.xlu2 %499 }
 0x11e   :  { %v517_v12 = vsel %vm507_vm2, %v490_v9, %v492_v11  ;;  %v518_v13 = vsel %vm507_vm2, %v492_v11, %v494_v8 }
 0x11f   :  { %v544_v18 = vsel %vm542_vm3, %v517_v12, 0  ;;  %v547_v19 = vsel %vm542_vm3, %v518_v13, 0 }
 0x120   :  { %576 = vmatpush.bf16.msra.mxu1 %v544_v18  ;;  %594 = vmatpush.bf16.msra.mxu2 %v547_v19 }
 0x123   :  { %1253 = vrot.lane.b32.xlu0 %v11619_v63, %s11352_s15  ;;  %1273 = vrot.lane.b32.xlu2 %v11608_v54, %s11352_s15 }
 0x124   :  { %1267 = vrot.lane.b32.xlu1 %v11594_v29, %s11352_s15  ;;  %577 = vmatpush.bf16.msra.mxu1 %v508_v21  ;;  %v756_v21 = vsel %vm542_vm3, %v11608_v54, 0 }
 0x125   :  { %595 = vmatpush.bf16.msra.mxu2 %v509_v23  ;;  %v496_v24 = vpop.permute.xlu0 %495  ;;  %v480_v34 = vpop.permute.xlu2 %479  ;;  %v765_v23 = vsel %vm542_vm3, %v11631_v36, 0 }
 0x126   :  { %v519_v25 = vsel %vm507_vm2, %v494_v8, %v496_v24  ;;  %v762_v8 = vsel %vm542_vm3, %v11625_v15, 0 }
 0x127   :  { %9984 = vmatmul.msk.bf16.vlgmr.msra.gmra.mxu1 %vm535_vm4, %v11704_v22  ;;  %v550_v27 = vsel %vm542_vm3, %v519_v25, 0  ;;  %v768_v25 = vsel %vm542_vm3, %v11643_v50, 0 }
 0x128   :  { %612 = vmatpush.bf16.msra.mxu3 %v550_v27  ;;  %9986 = vmatmul.msk.bf16.vlgmr.msra.gmra.mxu2 %vm535_vm4, %v11704_v22  ;;  %v771_v27 = vsel %vm542_vm3, %v11661_v6, 0 }
 0x12b   :  { %1279 = vrot.lane.b32.xlu0 %v11631_v36, %s11352_s15  ;;  %1277 = vrot.lane.b32.xlu2 %v11625_v15, %s11352_s15 }
 0x12c   :  { %1247 = vrot.lane.b32.xlu1 %v11588_v17, %s11352_s15 }
 0x12d   :  { %v476_v31 = vpop.permute.xlu0 %475  ;;  %v504_v44 = vpop.permute.xlu2 %503 }
 0x12e   :  { %v510_v32 = vsel %vm507_vm2, %v474_v16, %v476_v31 }
 0x12f   :  { %613 = vmatpush.bf16.msra.mxu3 %v510_v32  ;;  %v455_v32 = vld [vmem:[%s18140_s2 + $0x8] sm:$0x3] }
 0x132   :  { %9988 = vmatmul.msk.bf16.vlgmr.msra.gmra.mxu3 %vm535_vm4, %v11704_v22 }
 0x133   :  { %1259 = vrot.lane.b32.xlu0 %v11645_v51, %s11352_s15  ;;  %1257 = vrot.lane.b32.xlu2 %v11635_v39, %s11352_s15 }
 0x134   :  { %1275 = vrot.lane.b32.xlu1 %v11623_v14, %s11352_s15 }
 0x135   :  { %v498_v37 = vpop.permute.xlu1 %497  ;;  %v484_v59 = vpop.permute.xlu2 %483 }
 0x136   :  { %v520_v40 = vsel %vm507_vm2, %v496_v24, %v498_v37  ;;  %v521_v41 = vsel %vm507_vm2, %v498_v37, %v500_v26  ;;  %v11836_v24 = vld [vmem:[%s18140_s2] sm:$0xff] }
 0x137   :  { %9985 = vmatmul.msk.bf16.gmra.mxu1 %vm535_vm4, %v11731_v35  ;;  %v553_v42 = vsel %vm542_vm3, %v520_v40, 0  ;;  %v556_v43 = vsel %vm542_vm3, %v521_v41, 0 }
 0x138   :  { %630 = vmatpush.bf16.msrb.mxu0 %v553_v42  ;;  %648 = vmatpush.bf16.msrb.mxu1 %v556_v43 }
 0x139   :  { %9987 = vmatmul.msk.bf16.gmra.mxu2 %vm535_vm4, %v11731_v35 }
 0x13b   :  { %1283 = vrot.lane.b32.xlu0 %v11661_v6, %s11352_s15  ;;  %1261 = vrot.lane.b32.xlu2 %v11653_v0, %s11352_s15 }
 0x13c   :  { %v502_v47 = vpop.permute.xlu0 %501  ;;  %1255 = vrot.lane.b32.xlu1 %v11633_v38, %s11352_s15 }
 0x13d   :  { %v522_v48 = vsel %vm507_vm2, %v500_v26, %v502_v47  ;;  %v523_v49 = vsel %vm507_vm2, %v502_v47, %v504_v44  ;;  %v478_v52 = vpop.permute.xlu1 %477  ;;  %v970_v30 = vpop.permute.xlu2 %969 }
 0x13e   :  { %v559_v53 = vsel %vm542_vm3, %v522_v48, 0  ;;  %v562_v56 = vsel %vm542_vm3, %v523_v49, 0  ;;  %v511_v57 = vsel %vm507_vm2, %v476_v31, %v478_v52  ;;  %v512_v58 = vsel %vm507_vm2, %v478_v52, %v480_v34 }
 0x13f   :  { %666 = vmatpush.bf16.msrb.mxu2 %v559_v53  ;;  %684 = vmatpush.bf16.msrb.mxu3 %v562_v56 }
 0x140   :  { %631 = vmatpush.bf16.msrb.mxu0 %v511_v57  ;;  %649 = vmatpush.bf16.msrb.mxu1 %v512_v58 }
 0x142   :  { %9989 = vmatmul.msk.bf16.gmra.mxu3 %vm535_vm4, %v11731_v35 }
 0x143   :  { %9990 = vmatmul.msk.bf16.vlgmr.msrb.gmra.mxu0 %vm535_vm4, %v11704_v22  ;;  %1263 = vrot.lane.b32.xlu0 %v11655_v1, %s11352_s15 }
 0x144   :  { %1569 = vrot.lane.b32.xlu2 %v11602_v46, %s11353_s20  ;;  %1281 = vrot.lane.b32.xlu1 %v11643_v50, %s11352_s15  ;;  %v488_v7 = vpop.permute.xlu0 %487 }
 0x145   :  { %v482_v61 = vpop.permute.xlu1 %481  ;;  %v948_v40 = vpop.permute.xlu2 %947 }
 0x146   :  { %v513_v62 = vsel %vm507_vm2, %v480_v34, %v482_v61  ;;  %v514_v2 = vsel %vm507_vm2, %v482_v61, %v484_v59  ;;  %v737_v34 = vunpack.c.l.b16 %v455_v32  ;;  %v11973_v32 = vld [vmem:[%s18140_s2 + $0x18] sm:$0xff] }
 0x147   :  { %9992 = vmatmul.msk.bf16.vlgmr.msrb.gmra.mxu1 %vm535_vm4, %v11704_v22  ;;  %667 = vmatpush.bf16.msrb.mxu2 %v513_v62 }
 0x148   :  { %685 = vmatpush.bf16.msrb.mxu3 %v514_v2  ;;  %v11871_v42 = vpack.c.b16 %v737_v34, %v737_v34 }
 0x14a   :  { %9994 = vmatmul.msk.bf16.vlgmr.msrb.gmra.mxu2 %vm535_vm4, %v11704_v22 }
 0x14b   :  { %779 = vmatpush.bf16.msra.mxu2 %v747_v3  ;;  %1549 = vrot.lane.b32.xlu0 %v11592_v28, %s11353_s20 }
 0x14c   :  { %797 = vmatpush.bf16.msra.mxu3 %v750_v4  ;;  %1547 = vrot.lane.b32.xlu2 %v11588_v17, %s11353_s20 }
 0x14d   :  { %1567 = vrot.lane.b32.xlu1 %v11594_v29, %s11353_s20  ;;  %v486_v16 = vpop.permute.xlu0 %485  ;;  %v954_v47 = vpop.permute.xlu2 %953 }
 0x14e   :  { %v515_v18 = vsel %vm507_vm2, %v484_v59, %v486_v16  ;;  %v516_v19 = vsel %vm507_vm2, %v486_v16, %v488_v7 }
 0x14f   :  { %780 = vmatpush.bf16.msra.mxu2 %v11588_v17 }
 0x150   :  { %798 = vmatpush.bf16.msra.mxu3 %v11592_v28 }
 0x152   :  { %9996 = vmatmul.msk.bf16.vlgmr.msrb.gmra.mxu3 %vm535_vm4, %v11704_v22 }
 0x153   :  { %851 = vmatpush.bf16.msrb.mxu2 %v759_v5  ;;  %9991 = vmatmul.msk.bf16.gmra.mxu0 %vm535_vm4, %v11731_v35 }
 0x154   :  { %869 = vmatpush.bf16.msrb.mxu3 %v762_v8  ;;  %1573 = vrot.lane.b32.xlu0 %v11608_v54, %s11353_s20 }
 0x155   :  { %1551 = vrot.lane.b32.xlu2 %v11610_v55, %s11353_s20  ;;  %1265 = vrot.lane.b32.xlu1 %v18147_v60, %s11352_s15  ;;  %v972_v26 = vpop.permute.xlu0 %971  ;;  %v978_v59 = vpop.permute.xlu2 %977  ;;  %s11358_s15 = smov 100  }
 0x156   :  { %v506_v9 = vpop.permute.xlu1 %505 }
 0x157   :  { %852 = vmatpush.bf16.msrb.mxu2 %v11633_v38  ;;  %v524_v10 = vsel %vm507_vm2, %v504_v44, %v506_v9  ;;  %v525_v11 = vsel %vm507_vm2, %v506_v9, %v488_v7  ;;  %9993 = vmatmul.msk.bf16.gmra.mxu1 %vm535_vm4, %v11731_v35  ;;  %v996_v44 = vsel %vm985_vm5, %v970_v30, %v972_v26  ;;  %vm4885_vm2 = vcmask 457728  }
 0x158   :  { %870 = vmatpush.bf16.msrb.mxu3 %v11635_v39  ;;  %v565_v12 = vsel %vm542_vm3, %v524_v10, 0  ;;  %v568_v13 = vsel %vm542_vm3, %v525_v11, 0 }
 0x159   :  { %702 = vmatpush.bf16.msra.mxu0 %v565_v12  ;;  %720 = vmatpush.bf16.msra.mxu1 %v568_v13 }
 0x15a   :  { %9995 = vmatmul.msk.bf16.gmra.mxu2 %vm535_vm4, %v11731_v35 }
 0x15c   :  { %1553 = vrot.lane.b32.xlu0 %v11619_v63, %s11353_s20 }
 0x15d   :  { %1577 = vrot.lane.b32.xlu2 %v11625_v15, %s11353_s20  ;;  %1571 = vrot.lane.b32.xlu1 %v11600_v45, %s11353_s20  ;;  %v950_v37 = vpop.permute.xlu0 %949  ;;  %v958_v5 = vpop.permute.xlu2 %957 }
 0x15e   :  { %703 = vmatpush.bf16.msra.mxu0 %v515_v18  ;;  %721 = vmatpush.bf16.msra.mxu1 %v516_v19  ;;  %v968_v31 = vpop.permute.xlu1 %967  ;;  %v986_v41 = vsel %vm985_vm5, %v948_v40, %v950_v37 }
 0x162   :  { %815 = vmatpush.bf16.msrb.mxu0 %v753_v20  ;;  %833 = vmatpush.bf16.msrb.mxu1 %v756_v21 }
 0x163   :  { %9997 = vmatmul.msk.bf16.gmra.mxu3 %vm535_vm4, %v11731_v35  ;;  %9998 = vmatmul.msk.bf16.vlgmr.msra.gmra.mxu0 %vm535_vm4, %v11704_v22 }
 0x164   :  { %1579 = vrot.lane.b32.xlu0 %v11631_v36, %s11353_s20 }
 0x165   :  { %1557 = vrot.lane.b32.xlu2 %v11635_v39, %s11353_s20  ;;  %1575 = vrot.lane.b32.xlu1 %v11623_v14, %s11353_s20  ;;  %v976_v49 = vpop.permute.xlu0 %975  ;;  %v984_v19 = vpop.permute.xlu2 %983 }
 0x166   :  { %816 = vmatpush.bf16.msrb.mxu0 %v11610_v55  ;;  %834 = vmatpush.bf16.msrb.mxu1 %v11619_v63  ;;  %v974_v43 = vpop.permute.xlu1 %973  ;;  %v999_v3 = vsel %vm985_vm5, %v976_v49, %v978_v59 }
 0x167   :  { %10000 = vmatmul.msk.bf16.vlgmr.msra.gmra.mxu1 %vm535_vm4, %v11704_v22  ;;  %v995_v22 = vsel %vm985_vm5, %v968_v31, %v970_v30  ;;  %v997_v52 = vsel %vm985_vm5, %v972_v26, %v974_v43  ;;  %v998_v53 = vsel %vm985_vm5, %v974_v43, %v976_v49  ;;  %v1032_v4 = vsel %vm542_vm3, %v999_v3, 0 }
 0x168   :  { %v1020_v33 = vsel %vm542_vm3, %v995_v22, 0  ;;  %v1026_v57 = vsel %vm542_vm3, %v997_v52, 0  ;;  %v1029_v58 = vsel %vm542_vm3, %v998_v53, 0 }
 0x16a   :  { %887 = vmatpush.bf16.msra.mxu0 %v765_v23  ;;  %905 = vmatpush.bf16.msra.mxu1 %v768_v25 }
 0x16b   :  { %10006 = vmatmul.msk.bf16.vlgmr.msra.gmra.mxu2 %vm535_vm4, %v11836_v24 }
 0x16c   :  { %923 = vmatpush.bf16.msra.mxu2 %v771_v27  ;;  %1565 = vrot.lane.b32.xlu0 %v18147_v60, %s11353_s20 }
 0x16d   :  { %1581 = vrot.lane.b32.xlu2 %v11643_v50, %s11353_s20  ;;  %1555 = vrot.lane.b32.xlu1 %v11633_v38, %s11353_s20  ;;  %v980_v9 = vpop.permute.xlu0 %979  ;;  %v1270_v34 = vpop.permute.xlu2 %1269 }
 0x16e   :  { %888 = vmatpush.bf16.msra.mxu0 %v11645_v51  ;;  %906 = vmatpush.bf16.msra.mxu1 %v11653_v0  ;;  %v952_v48 = vpop.permute.xlu1 %951  ;;  %v1000_v10 = vsel %vm985_vm5, %v978_v59, %v980_v9 }
 0x16f   :  { %v987_v56 = vsel %vm985_vm5, %v950_v37, %v952_v48  ;;  %v988_v62 = vsel %vm985_vm5, %v952_v48, %v954_v47  ;;  %v1035_v13 = vsel %vm542_vm3, %v1000_v10, 0 }
 0x170   :  { %924 = vmatpush.bf16.msra.mxu2 %v11655_v1 }
 0x173   :  { %10008 = vmatmul.msk.bf16.vlgmr.msra.gmra.mxu3 %vm535_vm4, %v11836_v24  ;;  %9999 = vmatmul.msk.bf16.gmra.mxu0 %vm535_vm4, %v11731_v35 }
 0x174   :  { %1052 = vmatpush.bf16.msra.mxu3 %v1020_v33  ;;  %1563 = vrot.lane.b32.xlu0 %v11655_v1, %s11353_s20 }
 0x175   :  { %1561 = vrot.lane.b32.xlu2 %v11653_v0, %s11353_s20  ;;  %1559 = vrot.lane.b32.xlu1 %v11645_v51, %s11353_s20  ;;  %v960_v12 = vpop.permute.xlu0 %959  ;;  %v1250_v52 = vpop.permute.xlu2 %1249 }
 0x176   :  { %v956_v61 = vpop.permute.xlu1 %955  ;;  %v991_v21 = vsel %vm985_vm5, %v958_v5, %v960_v12 }
 0x177   :  { %10001 = vmatmul.msk.bf16.gmra.mxu1 %vm535_vm4, %v11731_v35  ;;  %v1023_v35 = vsel %vm542_vm3, %v996_v44, 0  ;;  %v989_v2 = vsel %vm985_vm5, %v954_v47, %v956_v61  ;;  %v990_v7 = vsel %vm985_vm5, %v956_v61, %v958_v5 }
 0x178   :  { %1053 = vmatpush.bf16.msra.mxu3 %v986_v41 }
 0x17b   :  { %10007 = vmatmul.msk.bf16.gmra.mxu2 %vm535_vm4, %v11871_v42 }
 0x17c   :  { %1847 = vrot.lane.b32.xlu0 %v11588_v17, %s11354_s25 }
 0x17d   :  { %1869 = vrot.lane.b32.xlu2 %v11602_v46, %s11354_s25  ;;  %1583 = vrot.lane.b32.xlu1 %v11661_v6, %s11353_s20  ;;  %v964_v31 = vpop.permute.xlu0 %963 }
 0x17e   :  { %v982_v8 = vpop.permute.xlu1 %981 }
 0x17f   :  { %v1001_v16 = vsel %vm985_vm5, %v980_v9, %v982_v8  ;;  %v1002_v20 = vsel %vm985_vm5, %v982_v8, %v984_v19  ;;  %v1274_v8 = vpop.permute.xlu2 %1273 }
 0x180   :  { %v1038_v23 = vsel %vm542_vm3, %v1001_v16, 0  ;;  %v1041_v25 = vsel %vm542_vm3, %v1002_v20, 0 }
 0x183   :  { %10009 = vmatmul.msk.bf16.gmra.mxu3 %vm535_vm4, %v11871_v42  ;;  %10010 = vmatmul.msk.bf16.vlgmr.msrb.gmra.mxu0 %vm535_vm4, %v11836_v24 }
 0x184   :  { %1070 = vmatpush.bf16.msrb.mxu0 %v1023_v35  ;;  %1873 = vrot.lane.b32.xlu0 %v11608_v54, %s11354_s25  ;;  %v10026_v35 = vld [vmem:[%s18140_s2 + $0x20] sm:$0x3] }
 0x185   :  { %1871 = vrot.lane.b32.xlu2 %v11600_v45, %s11354_s25  ;;  %1867 = vrot.lane.b32.xlu1 %v11594_v29, %s11354_s25  ;;  %v1272_v47 = vpop.permute.xlu0 %1271  ;;  %v944_v49 = vunpack.c.l.b16 %v10026_v35 }
 0x186   :  { %v962_v11 = vpop.permute.xlu1 %961  ;;  %v1296_v3 = vsel %vm1285_vm6, %v1270_v34, %v1272_v47  ;;  %v1297_v9 = vsel %vm1285_vm6, %v1272_v47, %v1274_v8 }
 0x187   :  { %10012 = vmatmul.msk.bf16.vlgmr.msrb.gmra.mxu1 %vm535_vm4, %v11836_v24  ;;  %v992_v27 = vsel %vm985_vm5, %v960_v12, %v962_v11  ;;  %v1278_v35 = vpop.permute.xlu2 %1277 }
 0x188   :  { %1071 = vmatpush.bf16.msrb.mxu0 %v987_v56  ;;  %1088 = vmatpush.bf16.msrb.mxu1 %v1026_v57 }
 0x18b   :  { %10014 = vmatmul.msk.bf16.vlgmr.msrb.gmra.mxu2 %vm535_vm4, %v11836_v24 }
 0x18c   :  { %1106 = vmatpush.bf16.msrb.mxu2 %v1029_v58  ;;  %1853 = vrot.lane.b32.xlu0 %v11619_v63, %s11354_s25  ;;  %v12011_v58 = vpack.c.b16 %v944_v49, %v944_v49 }
 0x18d   :  { %1089 = vmatpush.bf16.msrb.mxu1 %v988_v62  ;;  %1851 = vrot.lane.b32.xlu2 %v11610_v55, %s11354_s25  ;;  %v1252_v59 = vpop.permute.xlu0 %1251 }
 0x18e   :  { %1849 = vrot.lane.b32.xlu1 %v11592_v28, %s11354_s25  ;;  %v966_v26 = vpop.permute.xlu1 %965  ;;  %v1287_v20 = vsel %vm1285_vm6, %v1250_v52, %v1252_v59 }
 0x18f   :  { %v1003_v33 = vsel %vm985_vm5, %v984_v19, %v966_v26  ;;  %v994_v48 = vsel %vm985_vm5, %v964_v31, %v966_v26  ;;  %v1326_v19 = vsel %vm542_vm3, %v1297_v9, 0 }
 0x190   :  { %1107 = vmatpush.bf16.msrb.mxu2 %v989_v2  ;;  %v1044_v37 = vsel %vm542_vm3, %v1003_v33, 0 }
 0x193   :  { %10016 = vmatmul.msk.bf16.vlgmr.msrb.gmra.mxu3 %vm535_vm4, %v11836_v24  ;;  %10011 = vmatmul.msk.bf16.gmra.mxu0 %vm535_vm4, %v11871_v42 }
 0x194   :  { %1124 = vmatpush.bf16.msrb.mxu3 %v1032_v4  ;;  %1857 = vrot.lane.b32.xlu0 %v11635_v39, %s11354_s25 }
 0x195   :  { %1877 = vrot.lane.b32.xlu2 %v11625_v15, %s11354_s25  ;;  %v1254_v16 = vpop.permute.xlu0 %1253 }
 0x196   :  { %1875 = vrot.lane.b32.xlu1 %v11623_v14, %s11354_s25  ;;  %v1268_v43 = vpop.permute.xlu1 %1267  ;;  %v1288_v26 = vsel %vm1285_vm6, %v1252_v59, %v1254_v16 }
 0x197   :  { %10013 = vmatmul.msk.bf16.gmra.mxu1 %vm535_vm4, %v11871_v42  ;;  %v1295_v61 = vsel %vm1285_vm6, %v1268_v43, %v1270_v34 }
 0x198   :  { %1125 = vmatpush.bf16.msrb.mxu3 %v990_v7  ;;  %v1320_v2 = vsel %vm542_vm3, %v1295_v61, 0 }
 0x19b   :  { %10015 = vmatmul.msk.bf16.gmra.mxu2 %vm535_vm4, %v11871_v42 }
 0x19c   :  { %1883 = vrot.lane.b32.xlu0 %v11661_v6, %s11354_s25 }
 0x19d   :  { %1881 = vrot.lane.b32.xlu2 %v11643_v50, %s11354_s25  ;;  %v1280_v34 = vpop.permute.xlu0 %1279 }
 0x19e   :  { %1855 = vrot.lane.b32.xlu1 %v11633_v38, %s11354_s25 }
 0x1a3   :  { %10017 = vmatmul.msk.bf16.gmra.mxu3 %vm535_vm4, %v11871_v42  ;;  %10018 = vmatmul.msk.bf16.vlgmr.msra.gmra.mxu0 %vm535_vm4, %v11836_v24 }
 0x1a4   :  { %1142 = vmatpush.bf16.msra.mxu0 %v1035_v13  ;;  %1863 = vrot.lane.b32.xlu0 %v11655_v1, %s11354_s25  ;;  %v11944_v18 = vpop.f32.mrf.mxu1 }
 0x1a5   :  { %1861 = vrot.lane.b32.xlu2 %v11653_v0, %s11354_s25  ;;  %v1260_v59 = vpop.permute.xlu0 %1259 }
 0x1a6   :  { %1879 = vrot.lane.b32.xlu1 %v11631_v36, %s11354_s25 }
 0x1a7   :  { %10020 = vmatmul.msk.bf16.vlgmr.msra.gmra.mxu1 %vm535_vm4, %v11836_v24 }
 0x1a8   :  { %1143 = vmatpush.bf16.msra.mxu0 %v991_v21  ;;  %1160 = vmatpush.bf16.msra.mxu1 %v1038_v23 }
 0x1ab   :  { %10022 = vmatmul.msk.bf16.vlgmr.msra.gmra.mxu2 %vm535_vm4, %v11836_v24  ;;  %v11959_v30 = vpop.f32.mrf.mxu2  ;;  %v993_v24 = vsel %vm985_vm5, %v962_v11, %v964_v31  ;;  %v1323_v11 = vsel %vm542_vm3, %v1296_v3, 0  ;;  %v1258_v3 = vpop.permute.xlu2 %1257  ;;  %vm5185_vm5 = vcmask 449536  }
 0x1ac   :  { %1178 = vmatpush.bf16.msra.mxu2 %v1041_v25  ;;  %2169 = vrot.lane.b32.xlu0 %v11602_v46, %s11355_s26  ;;  %v11963_v22 = vpop.f32.mrf.mxu1 }
 0x1ad   :  { %1161 = vmatpush.bf16.msra.mxu1 %v992_v27  ;;  %2167 = vrot.lane.b32.xlu2 %v11594_v29, %s11355_s26 }
 0x1ae   :  { %1859 = vrot.lane.b32.xlu1 %v11645_v51, %s11354_s25 }
 0x1b0   :  { %1179 = vmatpush.bf16.msra.mxu2 %v993_v24 }
 0x1b3   :  { %10031 = vmatmul.msk.bf16.vlgmr.msra.gmra.mxu3 %vm535_vm4, %v11973_v32  ;;  %10019 = vmatmul.msk.bf16.gmra.mxu0 %vm535_vm4, %v11871_v42  ;;  %v11981_v40 = vpop.f32.mrf.mxu2 }
 0x1b4   :  { %1196 = vmatpush.bf16.msra.mxu3 %v1044_v37  ;;  %2147 = vrot.lane.b32.xlu0 %v11588_v17, %s11355_s26  ;;  %v11985_v41 = vpop.f32.mrf.mxu1 }
 0x1b5   :  { %2173 = vrot.lane.b32.xlu2 %v11608_v54, %s11355_s26  ;;  %v11991_v44 = vpop.f32.mrf.mxu3 }
 0x1b6   :  { %1865 = vrot.lane.b32.xlu1 %v18147_v60, %s11354_s25 }
 0x1b7   :  { %10021 = vmatmul.msk.bf16.gmra.mxu1 %vm535_vm4, %v11871_v42 }
 0x1b8   :  { %1197 = vmatpush.bf16.msra.mxu3 %v994_v48 }
 0x1bb   :  { %10023 = vmatmul.msk.bf16.gmra.mxu2 %vm535_vm4, %v11871_v42  ;;  %v1248_v42 = vpop.permute.xlu1 %1247 }
 0x1bc   :  { %2153 = vrot.lane.b32.xlu0 %v11619_v63, %s11355_s26  ;;  %v586_v53 = vpop.f32.mrf.mxu1  ;;  %v12003_v56 = vpop.f32.mrf.mxu2  ;;  %v1286_v10 = vsel %vm1285_vm6, %v1248_v42, %v1250_v52 }
 0x1bd   :  { %2151 = vrot.lane.b32.xlu2 %v11610_v55, %s11355_s26  ;;  %v12009_v57 = vpop.f32.mrf.mxu3 }
 0x1be   :  { %2171 = vrot.lane.b32.xlu1 %v11600_v45, %s11355_s26 }
 0x1c0   :  { %v12014_v62 = vpop.f32.mrf.mxu0 }
 0x1c3   :  { %10032 = vmatmul.msk.bf16.gmra.mxu3 %vm535_vm4, %v12011_v58  ;;  %10033 = vmatmul.msk.bf16.vlgmr.msrb.gmra.mxu0 %vm535_vm4, %v11973_v32  ;;  %v1276_v13 = vpop.permute.xlu1 %1275 }
 0x1c4   :  { %1352 = vmatpush.bf16.msrb.mxu0 %v1320_v2  ;;  %2177 = vrot.lane.b32.xlu0 %v11625_v15, %s11355_s26  ;;  %v12024_v4 = vpop.f32.mrf.mxu1  ;;  %v604_v5 = vpop.f32.mrf.mxu2  ;;  %v1298_v27 = vsel %vm1285_vm6, %v1274_v8, %v1276_v13  ;;  %v1299_v61 = vsel %vm1285_vm6, %v1276_v13, %v1278_v35  ;;  %v1300_v8 = vsel %vm1285_vm6, %v1278_v35, %v1280_v34 }
 0x1c5   :  { %2155 = vrot.lane.b32.xlu2 %v11633_v38, %s11355_s26  ;;  %v12030_v7 = vpop.f32.mrf.mxu3  ;;  %v1329_v24 = vsel %vm542_vm3, %v1298_v27, 0  ;;  %v1332_v5 = vsel %vm542_vm3, %v1299_v61, 0 }
 0x1c6   :  { %2149 = vrot.lane.b32.xlu1 %v11592_v28, %s11355_s26 }
 0x1c7   :  { %10035 = vmatmul.msk.bf16.vlgmr.msrb.gmra.mxu1 %vm535_vm4, %v11973_v32 }
 0x1c8   :  { %1353 = vmatpush.bf16.msrb.mxu0 %v1286_v10  ;;  %v12037_v12 = vpop.f32.mrf.mxu0  ;;  %1370 = vmatpush.bf16.msrb.mxu1 %v1323_v11 }
 0x1cb   :  { %10037 = vmatmul.msk.bf16.vlgmr.msrb.gmra.mxu2 %vm535_vm4, %v11973_v32  ;;  %v1256_v33 = vpop.permute.xlu1 %1255 }
 0x1cc   :  { %1388 = vmatpush.bf16.msrb.mxu2 %v1326_v19  ;;  %2157 = vrot.lane.b32.xlu0 %v11635_v39, %s11355_s26  ;;  %v12045_v21 = vpop.f32.mrf.mxu1  ;;  %v1289_v48 = vsel %vm1285_vm6, %v1254_v16, %v1256_v33  ;;  %v1290_v19 = vsel %vm1285_vm6, %v1256_v33, %v1258_v3 }
 0x1cd   :  { %1371 = vmatpush.bf16.msrb.mxu1 %v1287_v20  ;;  %2181 = vrot.lane.b32.xlu2 %v11643_v50, %s11355_s26  ;;  %v622_v23 = vpop.f32.mrf.mxu3  ;;  %v12051_v25 = vpop.f32.mrf.mxu2  ;;  %v1335_v20 = vsel %vm542_vm3, %v1300_v8, 0 }
 0x1ce   :  { %2175 = vrot.lane.b32.xlu1 %v11623_v14, %s11355_s26  ;;  %18161 = vst [vmem:[#allocation8_spill] sm:$0xff] %v12051_v25 }
 0x1d0   :  { %1389 = vmatpush.bf16.msrb.mxu2 %v1288_v26  ;;  %v12055_v31 = vpop.f32.mrf.mxu0  ;;  %v1284_v26 = vpop.permute.xlu0 %1283 }
 0x1d3   :  { %10039 = vmatmul.msk.bf16.vlgmr.msrb.gmra.mxu3 %vm535_vm4, %v11973_v32  ;;  %10034 = vmatmul.msk.bf16.gmra.mxu0 %vm535_vm4, %v12011_v58  ;;  %v1282_v9 = vpop.permute.xlu1 %1281 }
 0x1d4   :  { %1406 = vmatpush.bf16.msrb.mxu3 %v1329_v24  ;;  %2183 = vrot.lane.b32.xlu0 %v11661_v6, %s11355_s26  ;;  %v12064_v37 = vpop.f32.mrf.mxu1  ;;  %v1301_v16 = vsel %vm1285_vm6, %v1280_v34, %v1282_v9  ;;  %v1291_v24 = vsel %vm1285_vm6, %v1258_v3, %v1260_v59  ;;  %v1262_v34 = vpop.permute.xlu2 %1261 }
 0x1d5   :  { %18162 = vst [vmem:[#allocation9_spill] sm:$0xff] %v12064_v37  ;;  %2161 = vrot.lane.b32.xlu2 %v11653_v0, %s11355_s26  ;;  %v12070_v43 = vpop.f32.mrf.mxu2  ;;  %v12072_v47 = vpop.f32.mrf.mxu3  ;;  %v1338_v27 = vsel %vm542_vm3, %v1301_v16, 0 }
 0x1d6   :  { %2179 = vrot.lane.b32.xlu1 %v11631_v36, %s11355_s26  ;;  %18163 = vst [vmem:[#allocation10_spill] sm:$0xff] %v12070_v43 }
 0x1d7   :  { %18164 = vst [vmem:[#allocation11_spill] sm:$0xff] %v12072_v47  ;;  %10036 = vmatmul.msk.bf16.gmra.mxu1 %vm535_vm4, %v12011_v58 }
 0x1d8   :  { %1407 = vmatpush.bf16.msrb.mxu3 %v1289_v48  ;;  %v640_v49 = vpop.f32.mrf.mxu0  ;;  %v1264_v8 = vpop.permute.xlu0 %1263 }
 0x1d9   :  { %v1292_v49 = vsel %vm1285_vm6, %v1260_v59, %v1262_v34 }
 0x1db   :  { %10038 = vmatmul.msk.bf16.gmra.mxu2 %vm535_vm4, %v12011_v58  ;;  %v1568_v61 = vpop.permute.xlu1 %1567 }
 0x1dc   :  { %2469 = vrot.lane.b32.xlu0 %v11602_v46, %s11356_s9  ;;  %v658_v52 = vpop.f32.mrf.mxu1  ;;  %v1570_v16 = vpop.permute.xlu2 %1569 }
 0x1dd   :  { %2165 = vrot.lane.b32.xlu2 %v18147_v60, %s11355_s26  ;;  %v12085_v53 = vpop.f32.mrf.mxu2  ;;  %v12087_v42 = vpop.f32.mrf.mxu3  ;;  %v1302_v52 = vsel %vm1285_vm6, %v1282_v9, %v1284_v26 }
 0x1de   :  { %2159 = vrot.lane.b32.xlu1 %v11645_v51, %s11355_s26  ;;  %18165 = vst [vmem:[#allocation12_spill] sm:$0xff] %v12085_v53 }
 0x1df   :  { %18166 = vst [vmem:[#allocation13_spill] sm:$0xff] %v12087_v42 }
 0x1e0   :  { %v12090_v2 = vpop.f32.mrf.mxu0 }
 0x1e3   :  { %10040 = vmatmul.msk.bf16.gmra.mxu3 %vm535_vm4, %v12011_v58  ;;  %10041 = vmatmul.msk.bf16.vlgmr.msra.gmra.mxu0 %vm535_vm4, %v11973_v32 }
 0x1e4   :  { %1424 = vmatpush.bf16.msra.mxu0 %v1332_v5  ;;  %2449 = vrot.lane.b32.xlu0 %v11592_v28, %s11356_s9  ;;  %v12100_v10 = vpop.f32.mrf.mxu1  ;;  %v1341_v5 = vsel %vm542_vm3, %v1302_v52, 0 }
 0x1e5   :  { %18167 = vst [vmem:[#allocation14_spill] sm:$0xff] %v12100_v10  ;;  %2467 = vrot.lane.b32.xlu2 %v11594_v29, %s11356_s9  ;;  %v676_v11 = vpop.f32.mrf.mxu2 }
 0x1e6   :  { %2163 = vrot.lane.b32.xlu1 %v11655_v1, %s11355_s26  ;;  %v12106_v13 = vpop.f32.mrf.mxu3  ;;  %v1293_v11 = vsel %vm1285_vm6, %v1262_v34, %v1264_v8 }
 0x1e7   :  { %18168 = vst [vmem:[#allocation15_spill] sm:$0xff] %v12106_v13  ;;  %10043 = vmatmul.msk.bf16.vlgmr.msra.gmra.mxu1 %vm535_vm4, %v11973_v32 }
 0x1e8   :  { %1425 = vmatpush.bf16.msra.mxu0 %v1290_v19  ;;  %v12113_v23 = vpop.f32.mrf.mxu0  ;;  %1442 = vmatpush.bf16.msra.mxu1 %v1335_v20  ;;  %v1266_v20 = vpop.permute.xlu1 %1265 }
 0x1e9   :  { %v1303_v52 = vsel %vm1285_vm6, %v1284_v26, %v1266_v20 }
 0x1eb   :  { %10045 = vmatmul.msk.bf16.vlgmr.msra.gmra.mxu2 %vm535_vm4, %v11973_v32 }
 0x1ec   :  { %1460 = vmatpush.bf16.msra.mxu2 %v1338_v27  ;;  %2473 = vrot.lane.b32.xlu0 %v11608_v54, %s11356_s9  ;;  %v12121_v33 = vpop.f32.mrf.mxu1 }
 0x1ed   :  { %1443 = vmatpush.bf16.msra.mxu1 %v1291_v24  ;;  %18169 = vst [vmem:[#allocation16_spill] sm:$0xff] %v12121_v33  ;;  %2447 = vrot.lane.b32.xlu2 %v11588_v17, %s11356_s9 }
 0x1ee   :  { %2471 = vrot.lane.b32.xlu1 %v11600_v45, %s11356_s9  ;;  %v694_v48 = vpop.f32.mrf.mxu3  ;;  %v12127_v35 = vpop.f32.mrf.mxu2 }
 0x1ef   :  { %v1550_v48 = vpop.permute.xlu0 %1549 }
 0x1f0   :  { %1461 = vmatpush.bf16.msra.mxu2 %v1292_v49  ;;  %v12131_v3 = vpop.f32.mrf.mxu0  ;;  %v12168_v49 = vld [vmem:[%s18140_s2 + $0x24] sm:$0xff]  ;;  %v1572_v60 = vpop.permute.xlu1 %1571 }
 0x1f3   :  { %10047 = vmatmul.msk.bf16.vlgmr.msra.gmra.mxu3 %vm535_vm4, %v11973_v32  ;;  %10042 = vmatmul.msk.bf16.gmra.mxu0 %vm535_vm4, %v12011_v58 }
 0x1f4   :  { %1478 = vmatpush.bf16.msra.mxu3 %v1341_v5  ;;  %2477 = vrot.lane.b32.xlu0 %v11625_v15, %s11356_s9  ;;  %v12140_v59 = vpop.f32.mrf.mxu1 }
 0x1f5   :  { %18170 = vst [vmem:[#allocation17_spill] sm:$0xff] %v12140_v59  ;;  %2475 = vrot.lane.b32.xlu2 %v11623_v14, %s11356_s9 }
 0x1f6   :  { %2451 = vrot.lane.b32.xlu1 %v11610_v55, %s11356_s9  ;;  %v12146_v9 = vpop.f32.mrf.mxu2  ;;  %v12148_v32 = vpop.f32.mrf.mxu3 }
 0x1f7   :  { %10044 = vmatmul.msk.bf16.gmra.mxu1 %vm535_vm4, %v12011_v58 }
 0x1f8   :  { %1479 = vmatpush.bf16.msra.mxu3 %v1293_v11  ;;  %v712_v19 = vpop.f32.mrf.mxu0  ;;  %v1548_v11 = vpop.permute.xlu2 %1547 }
 0x1f9   :  { %v1344_v19 = vsel %vm542_vm3, %v1303_v52, 0  ;;  %v1596_v52 = vsel %vm1585_vm7, %v1570_v16, %v1572_v60 }
 0x1fb   :  { %10046 = vmatmul.msk.bf16.gmra.mxu2 %vm535_vm4, %v12011_v58 }
 0x1fc   :  { %2457 = vrot.lane.b32.xlu0 %v11635_v39, %s11356_s9  ;;  %v730_v27 = vpop.f32.mrf.mxu1 }
 0x1fd   :  { %2455 = vrot.lane.b32.xlu2 %v11633_v38, %s11356_s9  ;;  %v1595_v27 = vsel %vm1585_vm7, %v1568_v61, %v1570_v16 }
 0x1fe   :  { %2453 = vrot.lane.b32.xlu1 %v11619_v63, %s11356_s9  ;;  %v12161_v24 = vpop.f32.mrf.mxu2  ;;  %v12163_v34 = vpop.f32.mrf.mxu3  ;;  %v1620_v61 = vsel %vm542_vm3, %v1595_v27, 0  ;;  %v1623_v27 = vsel %vm542_vm3, %v1596_v52, 0 }
 0x200   :  { %v12171_v5 = vpop.f32.mrf.mxu0 }
 0x203   :  { %10048 = vmatmul.msk.bf16.gmra.mxu3 %vm535_vm4, %v12011_v58  ;;  %10056 = vmatmul.msk.bf16.vlgmr.msrb.gmra.mxu0 %vm535_vm4, %v12168_v49 }
 0x204   :  { %1496 = vmatpush.bf16.msrb.mxu0 %v1344_v19  ;;  %2461 = vrot.lane.b32.xlu0 %v11653_v0, %s11356_s9  ;;  %v836_v26 = vpop.f32.mrf.mxu1  ;;  %v1294_v19 = vsel %vm1285_vm6, %v1264_v8, %v1266_v20  ;;  %v1586_v8 = vsel %vm1585_vm7, %v1548_v11, %v1550_v48  ;;  %v1552_v20 = vpop.permute.xlu2 %1551  ;;  %vm5485_vm6 = vcmask 441344  }
 0x205   :  { %2481 = vrot.lane.b32.xlu2 %v11643_v50, %s11356_s9  ;;  %v12186_v58 = vadd.f32 %v836_v26, %v12014_v62  ;;  %v10051_v62 = vld [vmem:[%s18140_s2 + $0x2c] sm:$0x3]  ;;  %v1587_v11 = vsel %vm1585_vm7, %v1550_v48, %v1552_v20 }
 0x206   :  { %2479 = vrot.lane.b32.xlu1 %v11631_v36, %s11356_s9  ;;  %v789_v59 = vpop.f32.mrf.mxu2  ;;  %v12188_v33 = vpop.f32.mrf.mxu3  ;;  %v1244_v16 = vunpack.c.l.b16 %v10051_v62 }
 0x207   :  { %10058 = vmatmul.msk.bf16.vlgmr.msrb.gmra.mxu1 %vm535_vm4, %v12168_v49  ;;  %v1574_v59 = vpop.permute.xlu0 %1573 }
 0x208   :  { %1497 = vmatpush.bf16.msrb.mxu0 %v1294_v19  ;;  %v12195_v10 = vpop.f32.mrf.mxu0  ;;  %1652 = vmatpush.bf16.msrb.mxu1 %v1620_v61  ;;  %v1597_v62 = vsel %vm1585_vm7, %v1572_v60, %v1574_v59  ;;  %v18171_v60 = vmov 0  }
 0x209   :  { %v1626_v13 = vsel %vm542_vm3, %v1597_v62, 0 }
 0x20b   :  { %10060 = vmatmul.msk.bf16.vlgmr.msrb.gmra.mxu2 %vm535_vm4, %v12168_v49 }
 0x20c   :  { %1670 = vmatpush.bf16.msrb.mxu2 %v1623_v27  ;;  %2769 = vrot.lane.b32.xlu0 %v11602_v46, %s11357_s13  ;;  %v838_v26 = vpop.f32.mrf.mxu1  ;;  %v12217_v27 = vpack.c.b16 %v1244_v16, %v1244_v16 }
 0x20d   :  { %1653 = vmatpush.bf16.msrb.mxu1 %v1586_v8  ;;  %2767 = vrot.lane.b32.xlu2 %v11594_v29, %s11357_s13  ;;  %v12211_v61 = vadd.f32 %v838_v26, %v12037_v12 }
 0x20e   :  { %2459 = vrot.lane.b32.xlu1 %v11645_v51, %s11356_s9  ;;  %v807_v52 = vpop.f32.mrf.mxu3  ;;  %v12213_v19 = vpop.f32.mrf.mxu2 }
 0x20f   :  { %v1554_v53 = vpop.permute.xlu0 %1553  ;;  %v1578_v52 = vpop.permute.xlu2 %1577 }
 0x210   :  { %1671 = vmatpush.bf16.msrb.mxu2 %v1587_v11  ;;  %v12219_v8 = vpop.f32.mrf.mxu0  ;;  %v1576_v11 = vpop.permute.xlu1 %1575 }
 0x211   :  { %v1599_v47 = vsel %vm1585_vm7, %v1576_v11, %v1578_v52 }
 0x213   :  { %10062 = vmatmul.msk.bf16.vlgmr.msrb.gmra.mxu3 %vm535_vm4, %v12168_v49  ;;  %10057 = vmatmul.msk.bf16.gmra.mxu0 %vm535_vm4, %v12217_v27 }
 0x214   :  { %1688 = vmatpush.bf16.msrb.mxu3 %v1626_v13  ;;  %2747 = vrot.lane.b32.xlu0 %v11588_v17, %s11357_s13  ;;  %v841_v12 = vpop.f32.mrf.mxu1  ;;  %v1588_v13 = vsel %vm1585_vm7, %v1552_v20, %v1554_v53 }
 0x215   :  { %2465 = vrot.lane.b32.xlu2 %v18171_v60, %s11356_s9  ;;  %v12233_v48 = vadd.f32 %v841_v12, %v12055_v31 }
 0x216   :  { %2483 = vrot.lane.b32.xlu1 %v11661_v6, %s11356_s9  ;;  %v12235_v16 = vpop.f32.mrf.mxu2  ;;  %v12237_v26 = vpop.f32.mrf.mxu3 }
 0x217   :  { %18172 = vst [vmem:[#allocation18_spill] sm:$0xff] %v12237_v26  ;;  %10059 = vmatmul.msk.bf16.gmra.mxu1 %vm535_vm4, %v12217_v27  ;;  %v1580_v37 = vpop.permute.xlu0 %1579 }
 0x218   :  { %1689 = vmatpush.bf16.msrb.mxu3 %v1588_v13  ;;  %v825_v62 = vpop.f32.mrf.mxu0  ;;  %v1558_v13 = vpop.permute.xlu2 %1557 }
 0x219   :  { %v1598_v62 = vsel %vm1585_vm7, %v1574_v59, %v1576_v11  ;;  %v1556_v43 = vpop.permute.xlu1 %1555 }
 0x21a   :  { %v1589_v11 = vsel %vm1585_vm7, %v1554_v53, %v1556_v43 }
 0x21b   :  { %10061 = vmatmul.msk.bf16.gmra.mxu2 %vm535_vm4, %v12217_v27 }
 0x21c   :  { %2751 = vrot.lane.b32.xlu0 %v11610_v55, %s11357_s13  ;;  %v843_v31 = vpop.f32.mrf.mxu1 }
 0x21d   :  { %2771 = vrot.lane.b32.xlu2 %v11600_v45, %s11357_s13  ;;  %v1629_v31 = vsel %vm542_vm3, %v1598_v62, 0  ;;  %v1600_v62 = vsel %vm1585_vm7, %v1578_v52, %v1580_v37  ;;  %v1590_v52 = vsel %vm1585_vm7, %v1556_v43, %v1558_v13 }
 0x21e   :  { %2463 = vrot.lane.b32.xlu1 %v11655_v1, %s11356_s9  ;;  %v12250_v20 = vpop.f32.mrf.mxu2  ;;  %v12252_v12 = vpop.f32.mrf.mxu3  ;;  %s11362_s9 = smov 77  }
 0x21f   :  { %18173 = vst [vmem:[#allocation19_spill] sm:$0xff] %v12250_v20 }
 0x220   :  { %18174 = vst [vmem:[#allocation20_spill] sm:$0xff] %v12252_v12  ;;  %v12255_v42 = vpop.f32.mrf.mxu0  ;;  %v1582_v25 = vpop.permute.xlu2 %1581 }
 0x221   :  { %18175 = vst [vmem:[#allocation21_spill] sm:$0xff] %v12255_v42  ;;  %v1601_v43 = vsel %vm1585_vm7, %v1580_v37, %v1582_v25 }
 0x223   :  { %10063 = vmatmul.msk.bf16.gmra.mxu3 %vm535_vm4, %v12217_v27  ;;  %10064 = vmatmul.msk.bf16.vlgmr.msra.gmra.mxu0 %vm535_vm4, %v12168_v49 }
 0x224   :  { %1706 = vmatpush.bf16.msra.mxu0 %v1629_v31  ;;  %2777 = vrot.lane.b32.xlu0 %v11625_v15, %s11357_s13  ;;  %v908_v12 = vpop.f32.mrf.mxu1  ;;  %v1632_v31 = vsel %vm542_vm3, %v1599_v47, 0 }
 0x225   :  { %2775 = vrot.lane.b32.xlu2 %v11623_v14, %s11357_s13  ;;  %v12270_v59 = vadd.f32 %v908_v12, %v12090_v2  ;;  %v1635_v2 = vsel %vm542_vm3, %v1600_v62, 0 }
 0x226   :  { %2749 = vrot.lane.b32.xlu1 %v11592_v28, %s11357_s13  ;;  %v861_v20 = vpop.f32.mrf.mxu2  ;;  %v12272_v42 = vpop.f32.mrf.mxu3 }
 0x227   :  { %10066 = vmatmul.msk.bf16.vlgmr.msra.gmra.mxu1 %vm535_vm4, %v12168_v49  ;;  %v1560_v20 = vpop.permute.xlu1 %1559 }
 0x228   :  { %1707 = vmatpush.bf16.msra.mxu0 %v1589_v11  ;;  %v12279_v26 = vpop.f32.mrf.mxu0  ;;  %1724 = vmatpush.bf16.msra.mxu1 %v1632_v31  ;;  %v1591_v11 = vsel %vm1585_vm7, %v1558_v13, %v1560_v20 }
 0x22b   :  { %10068 = vmatmul.msk.bf16.vlgmr.msra.gmra.mxu2 %vm535_vm4, %v12168_v49 }
 0x22c   :  { %1742 = vmatpush.bf16.msra.mxu2 %v1635_v2  ;;  %2757 = vrot.lane.b32.xlu0 %v11635_v39, %s11357_s13  ;;  %v910_v53 = vpop.f32.mrf.mxu1  ;;  %v1638_v2 = vsel %vm542_vm3, %v1601_v43, 0 }
 0x22d   :  { %1725 = vmatpush.bf16.msra.mxu1 %v1590_v52  ;;  %2755 = vrot.lane.b32.xlu2 %v11633_v38, %s11357_s13  ;;  %v12292_v47 = vadd.f32 %v910_v53, %v12113_v23  ;;  %v1562_v23 = vpop.permute.xlu2 %1561  ;;  %v783_v52 = vadd.f32 %v12127_v35, %v11944_v18  ;;  %v1566_v35 = vpop.permute.xlu0 %1565 }
 0x22e   :  { %2773 = vrot.lane.b32.xlu1 %v11608_v54, %s11357_s13  ;;  %v879_v12 = vpop.f32.mrf.mxu3  ;;  %v12294_v62 = vpop.f32.mrf.mxu2  ;;  %v1592_v18 = vsel %vm1585_vm7, %v1560_v20, %v1562_v23 }
 0x230   :  { %1743 = vmatpush.bf16.msra.mxu2 %v1591_v11  ;;  %v12298_v31 = vpop.f32.mrf.mxu0  ;;  %v1584_v11 = vpop.permute.xlu1 %1583 }
 0x233   :  { %10070 = vmatmul.msk.bf16.vlgmr.msra.gmra.mxu3 %vm535_vm4, %v12168_v49  ;;  %10065 = vmatmul.msk.bf16.gmra.mxu0 %vm535_vm4, %v12217_v27 }
 0x234   :  { %1760 = vmatpush.bf16.msra.mxu3 %v1638_v2  ;;  %2781 = vrot.lane.b32.xlu0 %v11643_v50, %s11357_s13  ;;  %v913_v37 = vpop.f32.mrf.mxu1 }
 0x235   :  { %2759 = vrot.lane.b32.xlu2 %v11645_v51, %s11357_s13  ;;  %v12314_v13 = vadd.f32 %v913_v37, %v12131_v3  ;;  %v785_v3 = vadd.f32 %v12146_v9, %v11963_v22  ;;  %v1602_v22 = vsel %vm1585_vm7, %v1582_v25, %v1584_v11  ;;  %v1603_v25 = vsel %vm1585_vm7, %v1584_v11, %v1566_v35 }
 0x236   :  { %2753 = vrot.lane.b32.xlu1 %v11619_v63, %s11357_s13  ;;  %v1055_v53 = vpop.f32.mrf.mxu3  ;;  %v12316_v12 = vpop.f32.mrf.mxu2 }
 0x237   :  { %18176 = vst [vmem:[#allocation22_spill] sm:$0xff] %v12314_v13  ;;  %v12318_v43 = vadd.f32 %v1055_v53, %v783_v52  ;;  %10067 = vmatmul.msk.bf16.gmra.mxu1 %vm535_vm4, %v12217_v27  ;;  %v1564_v13 = vpop.permute.xlu0 %1563 }
 0x238   :  { %18177 = vst [vmem:[#allocation23_spill] sm:$0xff] %v12316_v12  ;;  %1761 = vmatpush.bf16.msra.mxu3 %v1592_v18  ;;  %v897_v2 = vpop.f32.mrf.mxu0  ;;  %v1870_v18 = vpop.permute.xlu2 %1869  ;;  %v819_v12 = vadd.f32 %v12171_v5, %v11991_v44 }
 0x239   :  { %18178 = vst [vmem:[#allocation24_spill] sm:$0xff] %v12318_v43  ;;  %v801_v2 = vadd.f32 %v12148_v32, %v11959_v30  ;;  %v1868_v9 = vpop.permute.xlu1 %1867  ;;  %v12352_v30 = vld [vmem:[%s18140_s2 + $0x30] sm:$0xff]  ;;  %v788_v32 = vadd.f32 %v12161_v24, %v11985_v41  ;;  %v803_v24 = vadd.f32 %v12163_v34, %v11981_v40  ;;  %v821_v40 = vadd.f32 %v12195_v10, %v12009_v57 }
 0x23a   :  { %v1895_v41 = vsel %vm1885_vm8, %v1868_v9, %v1870_v18  ;;  %v1594_v34 = vsel %vm1585_vm7, %v1564_v13, %v1566_v35 }
 0x23b   :  { %10069 = vmatmul.msk.bf16.gmra.mxu2 %vm535_vm4, %v12217_v27 }
 0x23c   :  { %2761 = vrot.lane.b32.xlu0 %v11653_v0, %s11357_s13  ;;  %v915_v37 = vpop.f32.mrf.mxu1 }
 0x23d   :  { %2783 = vrot.lane.b32.xlu2 %v11661_v6, %s11357_s13 }
 0x23e   :  { %2779 = vrot.lane.b32.xlu1 %v11631_v36, %s11357_s13  ;;  %v1057_v20 = vpop.f32.mrf.mxu3  ;;  %v12333_v52 = vpop.f32.mrf.mxu2 }
 0x23f   :  { %v12335_v53 = vadd.f32 %v1057_v20, %v785_v3  ;;  %v1641_v3 = vsel %vm542_vm3, %v1602_v22, 0  ;;  %v1593_v20 = vsel %vm1585_vm7, %v1562_v23, %v1564_v13  ;;  %v1848_v23 = vpop.permute.xlu0 %1847 }
 0x240   :  { %v1073_v43 = vpop.f32.mrf.mxu0  ;;  %v1872_v22 = vpop.permute.xlu2 %1871 }
 0x241   :  { %v12340_v37 = vadd.f32 %v1073_v43, %v801_v2  ;;  %v1644_v2 = vsel %vm542_vm3, %v1603_v25, 0  ;;  %v10076_v25 = vld [vmem:[%s18140_s2 + $0x38] sm:$0x3] }
 0x243   :  { %10071 = vmatmul.msk.bf16.gmra.mxu3 %vm535_vm4, %v12217_v27  ;;  %10072 = vmatmul.msk.bf16.vlgmr.msrb.gmra.mxu0 %vm535_vm4, %v12168_v49 }
 0x244   :  { %1778 = vmatpush.bf16.msrb.mxu0 %v1641_v3  ;;  %3069 = vrot.lane.b32.xlu0 %v11602_v46, %s11358_s15  ;;  %v1091_v44 = vpop.f32.mrf.mxu1 }
 0x245   :  { %3067 = vrot.lane.b32.xlu2 %v11594_v29, %s11358_s15  ;;  %v12363_v49 = vadd.f32 %v1091_v44, %v819_v12  ;;  %v1850_v44 = vpop.permute.xlu1 %1849 }
 0x246   :  { %2765 = vrot.lane.b32.xlu1 %v18171_v60, %s11357_s13  ;;  %v1060_v5 = vpop.f32.mrf.mxu3  ;;  %v933_v43 = vpop.f32.mrf.mxu2 }
 0x247   :  { %v12365_v11 = vadd.f32 %v1060_v5, %v788_v32  ;;  %10081 = vmatmul.msk.bf16.vlgmr.msrb.gmra.mxu1 %vm535_vm4, %v12352_v30  ;;  %v1920_v32 = vsel %vm542_vm3, %v1895_v41, 0  ;;  %v1886_v5 = vsel %vm1885_vm8, %v1848_v23, %v1850_v44  ;;  %v1896_v43 = vsel %vm1885_vm8, %v1870_v18, %v1872_v22 }
 0x248   :  { %1779 = vmatpush.bf16.msrb.mxu0 %v1593_v20  ;;  %v1075_v12 = vpop.f32.mrf.mxu0  ;;  %1796 = vmatpush.bf16.msrb.mxu1 %v1644_v2  ;;  %v806_v41 = vadd.f32 %v12188_v33, %v12003_v56  ;;  %v855_v33 = vadd.f32 %v12213_v19, %v12024_v4  ;;  %v1874_v19 = vpop.permute.xlu0 %1873 }
 0x249   :  { %v12374_v3 = vadd.f32 %v1075_v12, %v803_v24  ;;  %v1544_v24 = vunpack.c.l.b16 %v10076_v25  ;;  %v1923_v12 = vsel %vm542_vm3, %v1896_v43, 0  ;;  %v857_v25 = vadd.f32 %v12235_v16, %v12045_v21  ;;  %v18180_v21 = vld [vmem:[#allocation18_spill] sm:$0xff] }
 0x24b   :  { %10083 = vmatmul.msk.bf16.vlgmr.msrb.gmra.mxu2 %vm535_vm4, %v12352_v30  ;;  %v12409_v18 = vpack.c.b16 %v1544_v24, %v1544_v24  ;;  %v1897_v24 = vsel %vm1885_vm8, %v1872_v22, %v1874_v19 }
 0x24c   :  { %1952 = vmatpush.bf16.msrb.mxu2 %v1920_v32  ;;  %3071 = vrot.lane.b32.xlu0 %v11600_v45, %s11358_s15  ;;  %v1093_v9 = vpop.f32.mrf.mxu1  ;;  %v1852_v32 = vpop.permute.xlu2 %1851 }
 0x24d   :  { %1797 = vmatpush.bf16.msrb.mxu1 %v1594_v34  ;;  %3049 = vrot.lane.b32.xlu2 %v11592_v28, %s11358_s15  ;;  %v12391_v57 = vadd.f32 %v1093_v9, %v821_v40  ;;  %v1876_v56 = vpop.permute.xlu1 %1875  ;;  %v1887_v4 = vsel %vm1885_vm8, %v1850_v44, %v1852_v32 }
 0x24e   :  { %2763 = vrot.lane.b32.xlu1 %v11655_v1, %s11357_s13  ;;  %v1062_v10 = vpop.f32.mrf.mxu3  ;;  %v1109_v13 = vpop.f32.mrf.mxu2  ;;  %s11363_s13 = smov 76  }
 0x24f   :  { %v12394_v35 = vadd.f32 %v1109_v13, %v12186_v58  ;;  %v824_v58 = vadd.f32 %v12219_v8, %v12030_v7 }
 0x250   :  { %1953 = vmatpush.bf16.msrb.mxu2 %v1886_v5  ;;  %v1078_v20 = vpop.f32.mrf.mxu0 }
 0x251   :  { %v12400_v2 = vadd.f32 %v1078_v20, %v806_v41  ;;  %v18179_v41 = vld [vmem:[#allocation8_spill] sm:$0xff] }
 0x252   :  { %v873_v16 = vadd.f32 %v18180_v21, %v18179_v41 }
 0x253   :  { %10085 = vmatmul.msk.bf16.vlgmr.msrb.gmra.mxu3 %vm535_vm4, %v12352_v30  ;;  %10073 = vmatmul.msk.bf16.gmra.mxu0 %vm535_vm4, %v12217_v27 }
 0x254   :  { %1970 = vmatpush.bf16.msrb.mxu3 %v1923_v12  ;;  %3051 = vrot.lane.b32.xlu0 %v11610_v55, %s11358_s15  ;;  %v1096_v40 = vpop.f32.mrf.mxu1  ;;  %v1878_v41 = vpop.permute.xlu2 %1877 }
 0x255   :  { %3075 = vrot.lane.b32.xlu2 %v11623_v14, %s11358_s15  ;;  %v12419_v7 = vadd.f32 %v1096_v40, %v824_v58  ;;  %v1856_v43 = vpop.permute.xlu1 %1855  ;;  %v1854_v58 = vpop.permute.xlu0 %1853  ;;  %v18182_v40 = vld [vmem:[#allocation21_spill] sm:$0xff]  ;;  %v1899_v21 = vsel %vm1885_vm8, %v1876_v56, %v1878_v41 }
 0x256   :  { %3047 = vrot.lane.b32.xlu1 %v11588_v17, %s11358_s15  ;;  %v1127_v27 = vpop.f32.mrf.mxu3  ;;  %v1111_v8 = vpop.f32.mrf.mxu2 }
 0x257   :  { %v12421_v34 = vadd.f32 %v1127_v27, %v855_v33  ;;  %v12424_v23 = vadd.f32 %v1111_v8, %v12211_v61  ;;  %10082 = vmatmul.msk.bf16.gmra.mxu1 %vm535_vm4, %v12409_v18  ;;  %v18181_v33 = vld [vmem:[#allocation11_spill] sm:$0xff]  ;;  %v1898_v8 = vsel %vm1885_vm8, %v1874_v19, %v1876_v56  ;;  %v1932_v56 = vsel %vm542_vm3, %v1899_v21, 0 }
 0x258   :  { %1971 = vmatpush.bf16.msrb.mxu3 %v1887_v4  ;;  %v1080_v9 = vpop.f32.mrf.mxu0  ;;  %v891_v27 = vadd.f32 %v18182_v40, %v18181_v33  ;;  %v18183_v4 = vld [vmem:[#allocation9_spill] sm:$0xff]  ;;  %v1888_v33 = vsel %vm1885_vm8, %v1852_v32, %v1854_v58  ;;  %v1929_v40 = vsel %vm542_vm3, %v1898_v8, 0  ;;  %v1889_v32 = vsel %vm1885_vm8, %v1854_v58, %v1856_v43 }
 0x259   :  { %v18184_v9 = vld [vmem:[#allocation19_spill] sm:$0xff] }
 0x25a   :  { %v860_v22 = vadd.f32 %v18184_v9, %v18183_v4  ;;  %v18187_v9 = vld [vmem:[#allocation13_spill] sm:$0xff] }
 0x25b   :  { %10084 = vmatmul.msk.bf16.gmra.mxu2 %vm535_vm4, %v12409_v18 }
 0x25c   :  { %3077 = vrot.lane.b32.xlu0 %v11625_v15, %s11358_s15  ;;  %v1098_v10 = vpop.f32.mrf.mxu1 }
 0x25d   :  { %3055 = vrot.lane.b32.xlu2 %v11633_v38, %s11358_s15 }
 0x25e   :  { %3073 = vrot.lane.b32.xlu1 %v11608_v54, %s11358_s15  ;;  %v1129_v61 = vpop.f32.mrf.mxu3  ;;  %v1114_v44 = vpop.f32.mrf.mxu2 }
 0x25f   :  { %v12439_v13 = vadd.f32 %v1129_v61, %v857_v25  ;;  %v12442_v5 = vadd.f32 %v1114_v44, %v12233_v48  ;;  %v1926_v48 = vsel %vm542_vm3, %v1897_v24, 0  ;;  %v18186_v24 = vld [vmem:[#allocation20_spill] sm:$0xff] }
 0x260   :  { %v1145_v20 = vpop.f32.mrf.mxu0 }
 0x261   :  { %v12447_v12 = vadd.f32 %v1145_v20, %v873_v16  ;;  %v18185_v16 = vld [vmem:[#allocation10_spill] sm:$0xff] }
 0x262   :  { %v875_v20 = vadd.f32 %v18186_v24, %v18185_v16  ;;  %v18188_v24 = vld [vmem:[#allocation12_spill] sm:$0xff] }
 0x263   :  { %10086 = vmatmul.msk.bf16.gmra.mxu3 %vm535_vm4, %v12409_v18  ;;  %10087 = vmatmul.msk.bf16.vlgmr.msra.gmra.mxu0 %vm535_vm4, %v12352_v30 }
 0x264   :  { %1988 = vmatpush.bf16.msra.mxu0 %v1926_v48  ;;  %3081 = vrot.lane.b32.xlu0 %v11643_v50, %s11358_s15  ;;  %v1163_v25 = vpop.f32.mrf.mxu1  ;;  %v1880_v48 = vpop.permute.xlu1 %1879 }
 0x265   :  { %3079 = vrot.lane.b32.xlu2 %v11631_v36, %s11358_s15  ;;  %v12465_v10 = vadd.f32 %v1163_v25, %v891_v27  ;;  %v1858_v25 = vpop.permute.xlu0 %1857  ;;  %v1900_v16 = vsel %vm1885_vm8, %v1878_v41, %v1880_v48 }
 0x266   :  { %3053 = vrot.lane.b32.xlu1 %v11619_v63, %s11358_s15  ;;  %v1132_v61 = vpop.f32.mrf.mxu3  ;;  %v1116_v44 = vpop.f32.mrf.mxu2  ;;  %v1890_v58 = vsel %vm1885_vm8, %v1856_v43, %v1858_v25  ;;  %v18190_v43 = vld [vmem:[#allocation14_spill] sm:$0xff] }
 0x267   :  { %v12467_v19 = vadd.f32 %v1132_v61, %v860_v22  ;;  %10089 = vmatmul.msk.bf16.vlgmr.msra.gmra.mxu1 %vm535_vm4, %v12352_v30  ;;  %v893_v22 = vadd.f32 %v12279_v26, %v18187_v9  ;;  %v18189_v9 = vld [vmem:[#allocation15_spill] sm:$0xff] }
 0x268   :  { %1989 = vmatpush.bf16.msra.mxu0 %v1888_v33  ;;  %v1147_v27 = vpop.f32.mrf.mxu0  ;;  %2006 = vmatpush.bf16.msra.mxu1 %v1929_v40 }
 0x269   :  { %v12476_v4 = vadd.f32 %v1147_v27, %v875_v20  ;;  %v878_v20 = vadd.f32 %v12272_v42, %v18188_v24  ;;  %v1935_v27 = vsel %vm542_vm3, %v1900_v16, 0  ;;  %v927_v42 = vadd.f32 %v12294_v62, %v18190_v43  ;;  %v1882_v16 = vpop.permute.xlu2 %1881  ;;  %v18191_v24 = vld [vmem:[#allocation16_spill] sm:$0xff] }
 0x26b   :  { %10091 = vmatmul.msk.bf16.vlgmr.msra.gmra.mxu2 %vm535_vm4, %v12352_v30 }
 0x26c   :  { %2024 = vmatpush.bf16.msra.mxu2 %v1932_v56  ;;  %3061 = vrot.lane.b32.xlu0 %v11653_v0, %s11358_s15  ;;  %v1165_v8 = vpop.f32.mrf.mxu1  ;;  %v1860_v56 = vpop.permute.xlu1 %1859 }
 0x26d   :  { %2007 = vmatpush.bf16.msra.mxu1 %v1889_v32  ;;  %3059 = vrot.lane.b32.xlu2 %v11645_v51, %s11358_s15  ;;  %v12490_v61 = vadd.f32 %v1165_v8, %v893_v22  ;;  %v1884_v8 = vpop.permute.xlu0 %1883 }
 0x26e   :  { %3057 = vrot.lane.b32.xlu1 %v11635_v39, %s11358_s15  ;;  %v1134_v44 = vpop.f32.mrf.mxu3  ;;  %v1181_v21 = vpop.f32.mrf.mxu2 }
 0x26f   :  { %v12493_v26 = vadd.f32 %v1181_v21, %v12270_v59  ;;  %v896_v59 = vadd.f32 %v12298_v31, %v18189_v9  ;;  %v1891_v21 = vsel %vm1885_vm8, %v1858_v25, %v1860_v56 }
 0x270   :  { %2025 = vmatpush.bf16.msra.mxu2 %v1890_v58  ;;  %v1150_v33 = vpop.f32.mrf.mxu0 }
 0x271   :  { %v12499_v40 = vadd.f32 %v1150_v33, %v878_v20  ;;  %v18192_v20 = vld [vmem:[#allocation23_spill] sm:$0xff] }
 0x272   :  { %v929_v33 = vadd.f32 %v18192_v20, %v18191_v24  ;;  %v1862_v20 = vpop.permute.xlu2 %1861 }
 0x273   :  { %10093 = vmatmul.msk.bf16.vlgmr.msra.gmra.mxu3 %vm535_vm4, %v12352_v30  ;;  %10088 = vmatmul.msk.bf16.gmra.mxu0 %vm535_vm4, %v12409_v18 }
 0x274   :  { %2042 = vmatpush.bf16.msra.mxu3 %v1935_v27  ;;  %3367 = vrot.lane.b32.xlu0 %v11594_v29, %s11359_s18  ;;  %v1168_v41 = vpop.f32.mrf.mxu1 }
 0x275   :  { %3065 = vrot.lane.b32.xlu2 %v18171_v60, %s11358_s15  ;;  %v12516_v22 = vadd.f32 %v1168_v41, %v896_v59  ;;  %v18193_v59 = vld [vmem:[#allocation22_spill] sm:$0xff]  ;;  %v1864_v41 = vpop.permute.xlu0 %1863 }
 0x276   :  { %3083 = vrot.lane.b32.xlu1 %v11661_v6, %s11358_s15  ;;  %v1199_v31 = vpop.f32.mrf.mxu3  ;;  %v1183_v32 = vpop.f32.mrf.mxu2 }
 0x277   :  { %v12518_v44 = vadd.f32 %v1199_v31, %v927_v42  ;;  %v12521_v62 = vadd.f32 %v1183_v32, %v12292_v47  ;;  %10090 = vmatmul.msk.bf16.gmra.mxu1 %vm535_vm4, %v12409_v18  ;;  %v1866_v42 = vpop.permute.xlu1 %1865  ;;  %v1901_v31 = vsel %vm1885_vm8, %v1880_v48, %v1882_v16 }
 0x278   :  { %2043 = vmatpush.bf16.msra.mxu3 %v1891_v21  ;;  %v1152_v58 = vpop.f32.mrf.mxu0  ;;  %v18194_v21 = vld [vmem:[#allocation24_spill] sm:$0xff]  ;;  %v1938_v24 = vsel %vm542_vm3, %v1901_v31, 0 }
 0x27b   :  { %10092 = vmatmul.msk.bf16.gmra.mxu2 %vm535_vm4, %v12409_v18 }
 0x27c   :  { %3373 = vrot.lane.b32.xlu0 %v11608_v54, %s11359_s18  ;;  %v1170_v27 = vpop.f32.mrf.mxu1 }
 0x27d   :  { %3371 = vrot.lane.b32.xlu2 %v11600_v45, %s11359_s18  ;;  %v18195_v27 = vld [vmem:[#allocation17_spill] sm:$0xff] }
 0x27e   :  { %3063 = vrot.lane.b32.xlu1 %v11655_v1, %s11358_s15  ;;  %v1201_v47 = vpop.f32.mrf.mxu3  ;;  %v1186_v25 = vpop.f32.mrf.mxu2 }
 0x27f   :  { %v12536_v9 = vadd.f32 %v1201_v47, %v929_v33  ;;  %v12539_v43 = vadd.f32 %v1186_v25, %v18193_v59  ;;  %v1902_v33 = vsel %vm1885_vm8, %v1882_v16, %v1884_v8  ;;  %v932_v47 = vadd.f32 %v12333_v52, %v18195_v27  ;;  %v12567_v52 = vld [vmem:[%s18140_s2 + $0x3c] sm:$0xff]  ;;  %v12574_v27 = vpop.permute.xlu1 %2171 }
 0x280   :  { %v1355_v32 = vpop.f32.mrf.mxu0 }
 0x281   :  { %v12543_v58 = vadd.f32 %v1355_v32, %v18194_v21  ;;  %v1903_v32 = vsel %vm1885_vm8, %v1884_v8, %v1866_v42  ;;  %v1892_v21 = vsel %vm1885_vm8, %v1860_v56, %v1862_v20  ;;  %v1893_v56 = vsel %vm1885_vm8, %v1862_v20, %v1864_v41 }
 0x282   :  { %v1944_v8 = vsel %vm542_vm3, %v1903_v32, 0  ;;  %v1894_v32 = vsel %vm1885_vm8, %v1864_v41, %v1866_v42 }
 0x283   :  { %10094 = vmatmul.msk.bf16.gmra.mxu3 %vm535_vm4, %v12409_v18  ;;  %10095 = vmatmul.msk.bf16.vlgmr.msrb.gmra.mxu0 %vm535_vm4, %v12352_v30 }
 0x284   :  { %2060 = vmatpush.bf16.msrb.mxu0 %v1938_v24  ;;  %3351 = vrot.lane.b32.xlu0 %v11610_v55, %s11359_s18  ;;  %v1373_v48 = vpop.f32.mrf.mxu1  ;;  %v1941_v24 = vsel %vm542_vm3, %v1902_v33, 0 }
 0x285   :  { %3349 = vrot.lane.b32.xlu2 %v11592_v28, %s11359_s18  ;;  %v12560_v25 = vadd.f32 %v1373_v48, %v12340_v37  ;;  %v2170_v48 = vpop.permute.xlu0 %2169 }
 0x286   :  { %3369 = vrot.lane.b32.xlu1 %v11602_v46, %s11359_s18  ;;  %v1204_v59 = vpop.f32.mrf.mxu3  ;;  %v1188_v31 = vpop.f32.mrf.mxu2 }
 0x287   :  { %v12562_v16 = vadd.f32 %v1204_v59, %v932_v47  ;;  %10097 = vmatmul.msk.bf16.vlgmr.msrb.gmra.mxu1 %vm535_vm4, %v12352_v30  ;;  %v2168_v31 = vpop.permute.xlu2 %2167 }
 0x288   :  { %2061 = vmatpush.bf16.msrb.mxu0 %v1892_v21  ;;  %v1357_v37 = vpop.f32.mrf.mxu0  ;;  %2078 = vmatpush.bf16.msrb.mxu1 %v1941_v24  ;;  %v2195_v21 = vsel %vm2185_vm9, %v2168_v31, %v2170_v48  ;;  %v10101_v24 = vld [vmem:[%s18140_s2 + $0x44] sm:$0x3] }
 0x289   :  { %v12577_v47 = vadd.f32 %v1357_v37, %v12335_v53 }
 0x28b   :  { %10106 = vmatmul.msk.bf16.vlgmr.msrb.gmra.mxu2 %vm535_vm4, %v12567_v52 }
 0x28c   :  { %2096 = vmatpush.bf16.msrb.mxu2 %v1944_v8  ;;  %3355 = vrot.lane.b32.xlu0 %v11633_v38, %s11359_s18  ;;  %v1375_v30 = vpop.f32.mrf.mxu1 }
 0x28d   :  { %2079 = vmatpush.bf16.msrb.mxu1 %v1893_v56  ;;  %3375 = vrot.lane.b32.xlu2 %v11623_v14, %s11359_s18  ;;  %v12590_v53 = vadd.f32 %v1375_v30, %v12374_v3  ;;  %v2220_v3 = vsel %vm542_vm3, %v2195_v21, 0  ;;  %v2150_v56 = vpop.permute.xlu1 %2149  ;;  %v2148_v42 = vpop.permute.xlu0 %2147 }
 0x28e   :  { %3347 = vrot.lane.b32.xlu1 %v11588_v17, %s11359_s18  ;;  %v1206_v33 = vpop.f32.mrf.mxu3  ;;  %v1391_v59 = vpop.f32.mrf.mxu2 }
 0x28f   :  { %v12593_v20 = vadd.f32 %v1391_v59, %v12363_v49  ;;  %v1844_v49 = vunpack.c.l.b16 %v10101_v24  ;;  %v2174_v24 = vpop.permute.xlu2 %2173 }
 0x290   :  { %2097 = vmatpush.bf16.msrb.mxu2 %v1894_v32  ;;  %v1360_v37 = vpop.f32.mrf.mxu0  ;;  %v2186_v32 = vsel %vm2185_vm9, %v2148_v42, %v2150_v56  ;;  %v2196_v42 = vsel %vm2185_vm9, %v2170_v48, %v12574_v27 }
 0x291   :  { %v12601_v8 = vadd.f32 %v1360_v37, %v12365_v11  ;;  %v12624_v21 = vpack.c.b16 %v1844_v49, %v1844_v49 }
 0x293   :  { %10108 = vmatmul.msk.bf16.vlgmr.msrb.gmra.mxu3 %vm535_vm4, %v12567_v52  ;;  %10096 = vmatmul.msk.bf16.gmra.mxu0 %vm535_vm4, %v12409_v18 }
 0x294   :  { %2252 = vmatpush.bf16.msrb.mxu3 %v2220_v3  ;;  %3381 = vrot.lane.b32.xlu0 %v11643_v50, %s11359_s18  ;;  %v1378_v41 = vpop.f32.mrf.mxu1 }
 0x295   :  { %3379 = vrot.lane.b32.xlu2 %v11631_v36, %s11359_s18  ;;  %v12615_v11 = vadd.f32 %v1378_v41, %v12400_v2  ;;  %v2154_v49 = vpop.permute.xlu0 %2153 }
 0x296   :  { %3353 = vrot.lane.b32.xlu1 %v11619_v63, %s11359_s18  ;;  %v1409_v30 = vpop.f32.mrf.mxu3  ;;  %v1393_v33 = vpop.f32.mrf.mxu2 }
 0x297   :  { %v12618_v59 = vadd.f32 %v1409_v30, %v12394_v35  ;;  %v12621_v31 = vadd.f32 %v1393_v33, %v12391_v57  ;;  %10098 = vmatmul.msk.bf16.gmra.mxu1 %vm535_vm4, %v12409_v18  ;;  %v2152_v33 = vpop.permute.xlu2 %2151 }
 0x298   :  { %2253 = vmatpush.bf16.msrb.mxu3 %v2186_v32  ;;  %v1362_v37 = vpop.f32.mrf.mxu0  ;;  %v2176_v32 = vpop.permute.xlu1 %2175 }
 0x29b   :  { %10107 = vmatmul.msk.bf16.gmra.mxu2 %vm535_vm4, %v12624_v21 }
 0x29c   :  { %3361 = vrot.lane.b32.xlu0 %v11653_v0, %s11359_s18  ;;  %v1380_v35 = vpop.f32.mrf.mxu1 }
 0x29d   :  { %3359 = vrot.lane.b32.xlu2 %v11645_v51, %s11359_s18 }
 0x29e   :  { %3377 = vrot.lane.b32.xlu1 %v11625_v15, %s11359_s18  ;;  %v1411_v57 = vpop.f32.mrf.mxu3  ;;  %v1396_v2 = vpop.f32.mrf.mxu2 }
 0x29f   :  { %v12637_v3 = vadd.f32 %v1411_v57, %v12424_v23  ;;  %v12640_v18 = vadd.f32 %v1396_v2, %v12419_v7  ;;  %v2223_v23 = vsel %vm542_vm3, %v2196_v42, 0  ;;  %v2197_v7 = vsel %vm2185_vm9, %v12574_v27, %v2174_v24 }
 0x2a0   :  { %v1427_v41 = vpop.f32.mrf.mxu0  ;;  %v2198_v27 = vsel %vm2185_vm9, %v2174_v24, %v2176_v32  ;;  %v2187_v2 = vsel %vm2185_vm9, %v2150_v56, %v2152_v33  ;;  %v2226_v42 = vsel %vm542_vm3, %v2197_v7, 0  ;;  %v2188_v56 = vsel %vm2185_vm9, %v2152_v33, %v2154_v49  ;;  %v2156_v24 = vpop.permute.xlu2 %2155 }
 0x2a1   :  { %v12645_v30 = vadd.f32 %v1427_v41, %v12421_v34 }
 0x2a3   :  { %10109 = vmatmul.msk.bf16.gmra.mxu3 %vm535_vm4, %v12624_v21  ;;  %10110 = vmatmul.msk.bf16.vlgmr.msra.gmra.mxu0 %vm535_vm4, %v12567_v52 }
 0x2a4   :  { %2270 = vmatpush.bf16.msra.mxu0 %v2223_v23  ;;  %3365 = vrot.lane.b32.xlu0 %v18171_v60, %s11359_s18  ;;  %v1445_v48 = vpop.f32.mrf.mxu1  ;;  %v2178_v23 = vpop.permute.xlu0 %2177 }
 0x2a5   :  { %3363 = vrot.lane.b32.xlu2 %v11655_v1, %s11359_s18  ;;  %v12661_v34 = vadd.f32 %v1445_v48, %v12447_v12 }
 0x2a6   :  { %3357 = vrot.lane.b32.xlu1 %v11635_v39, %s11359_s18  ;;  %v1414_v37 = vpop.f32.mrf.mxu3  ;;  %v1398_v35 = vpop.f32.mrf.mxu2 }
 0x2a7   :  { %v12664_v57 = vadd.f32 %v1414_v37, %v12442_v5  ;;  %10112 = vmatmul.msk.bf16.vlgmr.msra.gmra.mxu1 %vm535_vm4, %v12567_v52  ;;  %v2229_v5 = vsel %vm542_vm3, %v2198_v27, 0  ;;  %v2189_v35 = vsel %vm2185_vm9, %v2154_v49, %v2156_v24  ;;  %v2199_v27 = vsel %vm2185_vm9, %v2176_v32, %v2178_v23 }
 0x2a8   :  { %2271 = vmatpush.bf16.msra.mxu0 %v2187_v2  ;;  %v1429_v41 = vpop.f32.mrf.mxu0  ;;  %2288 = vmatpush.bf16.msra.mxu1 %v2226_v42 }
 0x2a9   :  { %v12672_v12 = vadd.f32 %v1429_v41, %v12439_v13 }
 0x2ab   :  { %10114 = vmatmul.msk.bf16.vlgmr.msra.gmra.mxu2 %vm535_vm4, %v12567_v52 }
 0x2ac   :  { %2306 = vmatpush.bf16.msra.mxu2 %v2229_v5  ;;  %3667 = vrot.lane.b32.xlu0 %v11594_v29, %s11360_s24  ;;  %v1447_v7 = vpop.f32.mrf.mxu1  ;;  %v2158_v41 = vpop.permute.xlu0 %2157 }
 0x2ad   :  { %2289 = vmatpush.bf16.msra.mxu1 %v2188_v56  ;;  %3671 = vrot.lane.b32.xlu2 %v11600_v45, %s11360_s24  ;;  %v12685_v13 = vadd.f32 %v1447_v7, %v12476_v4  ;;  %v2232_v4 = vsel %vm542_vm3, %v2199_v27, 0  ;;  %v2182_v5 = vpop.permute.xlu2 %2181 }
 0x2ae   :  { %3383 = vrot.lane.b32.xlu1 %v11661_v6, %s11359_s18  ;;  %v1416_v48 = vpop.f32.mrf.mxu3  ;;  %v1463_v37 = vpop.f32.mrf.mxu2 }
 0x2af   :  { %v12688_v33 = vadd.f32 %v1463_v37, %v12465_v10  ;;  %v2190_v48 = vsel %vm2185_vm9, %v2156_v24, %v2158_v41  ;;  %v2180_v37 = vpop.permute.xlu1 %2179 }
 0x2b0   :  { %2307 = vmatpush.bf16.msra.mxu2 %v2189_v35  ;;  %v1432_v2 = vpop.f32.mrf.mxu0 }
 0x2b1   :  { %v12693_v42 = vadd.f32 %v1432_v2, %v12467_v19 }
 0x2b3   :  { %10116 = vmatmul.msk.bf16.vlgmr.msra.gmra.mxu3 %vm535_vm4, %v12567_v52  ;;  %10111 = vmatmul.msk.bf16.gmra.mxu0 %vm535_vm4, %v12624_v21 }
 0x2b4   :  { %2324 = vmatpush.bf16.msra.mxu3 %v2232_v4  ;;  %3647 = vrot.lane.b32.xlu0 %v11588_v17, %s11360_s24  ;;  %v1450_v10 = vpop.f32.mrf.mxu1  ;;  %v2200_v4 = vsel %vm2185_vm9, %v2178_v23, %v2180_v37 }
 0x2b5   :  { %3651 = vrot.lane.b32.xlu2 %v11610_v55, %s11360_s24  ;;  %v12707_v19 = vadd.f32 %v1450_v10, %v12499_v40  ;;  %v2162_v2 = vpop.permute.xlu2 %2161 }
 0x2b6   :  { %3669 = vrot.lane.b32.xlu1 %v11602_v46, %s11360_s24  ;;  %v1481_v49 = vpop.f32.mrf.mxu3  ;;  %v1465_v32 = vpop.f32.mrf.mxu2 }
 0x2b7   :  { %v12710_v56 = vadd.f32 %v1481_v49, %v12493_v26  ;;  %v12713_v7 = vadd.f32 %v1465_v32, %v12490_v61  ;;  %10113 = vmatmul.msk.bf16.gmra.mxu1 %vm535_vm4, %v12624_v21  ;;  %v2160_v49 = vpop.permute.xlu1 %2159 }
 0x2b8   :  { %2325 = vmatpush.bf16.msra.mxu3 %v2190_v48  ;;  %v1434_v35 = vpop.f32.mrf.mxu0  ;;  %v2184_v48 = vpop.permute.xlu0 %2183 }
 0x2bb   :  { %10115 = vmatmul.msk.bf16.gmra.mxu2 %vm535_vm4, %v12624_v21 }
 0x2bc   :  { %3675 = vrot.lane.b32.xlu0 %v11623_v14, %s11360_s24  ;;  %v1452_v40 = vpop.f32.mrf.mxu1 }
 0x2bd   :  { %3653 = vrot.lane.b32.xlu2 %v11619_v63, %s11360_s24 }
 0x2be   :  { %3649 = vrot.lane.b32.xlu1 %v11592_v28, %s11360_s24  ;;  %v1483_v61 = vpop.f32.mrf.mxu3  ;;  %v1468_v26 = vpop.f32.mrf.mxu2 }
 0x2bf   :  { %v12727_v24 = vadd.f32 %v1483_v61, %v12521_v62  ;;  %v12730_v27 = vadd.f32 %v1468_v26, %v12516_v22  ;;  %v2235_v62 = vsel %vm542_vm3, %v2200_v4, 0  ;;  %v2201_v22 = vsel %vm2185_vm9, %v2180_v37, %v2182_v5 }
 0x2c0   :  { %v1499_v10 = vpop.f32.mrf.mxu0  ;;  %v2202_v37 = vsel %vm2185_vm9, %v2182_v5, %v2184_v48  ;;  %v2191_v26 = vsel %vm2185_vm9, %v2158_v41, %v2160_v49  ;;  %v2238_v4 = vsel %vm542_vm3, %v2201_v22, 0  ;;  %v2164_v5 = vpop.permute.xlu1 %2163  ;;  %v2192_v41 = vsel %vm2185_vm9, %v2160_v49, %v2162_v2 }
 0x2c1   :  { %v12734_v32 = vadd.f32 %v1499_v10, %v12518_v44  ;;  %v2193_v49 = vsel %vm2185_vm9, %v2162_v2, %v2164_v5 }
 0x2c3   :  { %10117 = vmatmul.msk.bf16.gmra.mxu3 %vm535_vm4, %v12624_v21  ;;  %10118 = vmatmul.msk.bf16.vlgmr.msrb.gmra.mxu0 %vm535_vm4, %v12567_v52 }
 0x2c4   :  { %2342 = vmatpush.bf16.msrb.mxu0 %v2235_v62  ;;  %3655 = vrot.lane.b32.xlu0 %v11633_v38, %s11360_s24  ;;  %v1655_v23 = vpop.f32.mrf.mxu1  ;;  %v2166_v62 = vpop.permute.xlu2 %2165 }
 0x2c5   :  { %3679 = vrot.lane.b32.xlu2 %v11631_v36, %s11360_s24  ;;  %v12749_v44 = vadd.f32 %v1655_v23, %v12543_v58 }
 0x2c6   :  { %3673 = vrot.lane.b32.xlu1 %v11608_v54, %s11360_s24  ;;  %v1486_v35 = vpop.f32.mrf.mxu3  ;;  %v1470_v40 = vpop.f32.mrf.mxu2 }
 0x2c7   :  { %v12752_v61 = vadd.f32 %v1486_v35, %v12539_v43  ;;  %10120 = vmatmul.msk.bf16.vlgmr.msrb.gmra.mxu1 %vm535_vm4, %v12567_v52  ;;  %v2241_v43 = vsel %vm542_vm3, %v2202_v37, 0  ;;  %v12782_v40 = vld [vmem:[%s18140_s2 + $0x48] sm:$0xff]  ;;  %v2203_v37 = vsel %vm2185_vm9, %v2184_v48, %v2166_v62 }
 0x2c8   :  { %2343 = vmatpush.bf16.msrb.mxu0 %v2191_v26  ;;  %v1501_v10 = vpop.f32.mrf.mxu0  ;;  %2360 = vmatpush.bf16.msrb.mxu1 %v2238_v4  ;;  %v2470_v26 = vpop.permute.xlu0 %2469 }
 0x2c9   :  { %v12760_v58 = vadd.f32 %v1501_v10, %v12536_v9 }
 0x2cb   :  { %10122 = vmatmul.msk.bf16.vlgmr.msrb.gmra.mxu2 %vm535_vm4, %v12567_v52 }
 0x2cc   :  { %2378 = vmatpush.bf16.msrb.mxu2 %v2241_v43  ;;  %3681 = vrot.lane.b32.xlu0 %v11643_v50, %s11360_s24  ;;  %v1657_v22 = vpop.f32.mrf.mxu1  ;;  %v2468_v2 = vpop.permute.xlu2 %2467 }
 0x2cd   :  { %2361 = vmatpush.bf16.msrb.mxu1 %v2192_v41  ;;  %3659 = vrot.lane.b32.xlu2 %v11645_v51, %s11360_s24  ;;  %v12773_v9 = vadd.f32 %v1657_v22, %v12577_v47  ;;  %v2472_v41 = vpop.permute.xlu1 %2471 }
 0x2ce   :  { %3677 = vrot.lane.b32.xlu1 %v11625_v15, %s11360_s24  ;;  %v1488_v52 = vpop.f32.mrf.mxu3  ;;  %v1673_v23 = vpop.f32.mrf.mxu2 }
 0x2cf   :  { %v12776_v35 = vadd.f32 %v1673_v23, %v12560_v25  ;;  %v2244_v25 = vsel %vm542_vm3, %v2203_v37, 0  ;;  %v2194_v23 = vsel %vm2185_vm9, %v2164_v5, %v2166_v62  ;;  %vm5785_vm9 = vcmask 433152  }
 0x2d0   :  { %2379 = vmatpush.bf16.msrb.mxu2 %v2193_v49  ;;  %v1504_v4 = vpop.f32.mrf.mxu0  ;;  %v2450_v37 = vpop.permute.xlu0 %2449 }
 0x2d1   :  { %v12786_v47 = vadd.f32 %v1504_v4, %v12562_v16 }
 0x2d3   :  { %10131 = vmatmul.msk.bf16.vlgmr.msrb.gmra.mxu3 %vm535_vm4, %v12782_v40  ;;  %10119 = vmatmul.msk.bf16.gmra.mxu0 %vm535_vm4, %v12624_v21 }
 0x2d4   :  { %2396 = vmatpush.bf16.msrb.mxu3 %v2244_v25  ;;  %3967 = vrot.lane.b32.xlu0 %v11594_v29, %s11361_s28  ;;  %v1660_v48 = vpop.f32.mrf.mxu1 }
 0x2d5   :  { %3683 = vrot.lane.b32.xlu2 %v11661_v6, %s11360_s24  ;;  %v12800_v16 = vadd.f32 %v1660_v48, %v12601_v8  ;;  %v10126_v8 = vld [vmem:[%s18140_s2 + $0x50] sm:$0x3]  ;;  %v2448_v48 = vpop.permute.xlu2 %2447 }
 0x2d6   :  { %3657 = vrot.lane.b32.xlu1 %v11635_v39, %s11360_s24  ;;  %v1691_v10 = vpop.f32.mrf.mxu3  ;;  %v1675_v43 = vpop.f32.mrf.mxu2 }
 0x2d7   :  { %v12803_v22 = vadd.f32 %v1691_v10, %v12593_v20  ;;  %v12806_v52 = vadd.f32 %v1675_v43, %v12590_v53  ;;  %10121 = vmatmul.msk.bf16.gmra.mxu1 %vm535_vm4, %v12624_v21  ;;  %v2144_v20 = vunpack.c.l.b16 %v10126_v8  ;;  %v2495_v10 = vsel %vm2485_vm10, %v2468_v2, %v2470_v26  ;;  %v2452_v43 = vpop.permute.xlu1 %2451 }
 0x2d8   :  { %2397 = vmatpush.bf16.msrb.mxu3 %v2194_v23  ;;  %v1506_v49 = vpop.f32.mrf.mxu0 }
 0x2d9   :  { %v2496_v49 = vsel %vm2485_vm10, %v2470_v26, %v2472_v41 }
 0x2db   :  { %10123 = vmatmul.msk.bf16.gmra.mxu2 %vm535_vm4, %v12624_v21  ;;  %v12828_v21 = vpack.c.b16 %v2144_v20, %v2144_v20 }
 0x2dc   :  { %3665 = vrot.lane.b32.xlu0 %v18171_v60, %s11360_s24  ;;  %v1662_v53 = vpop.f32.mrf.mxu1 }
 0x2dd   :  { %3663 = vrot.lane.b32.xlu2 %v11655_v1, %s11360_s24 }
 0x2de   :  { %3661 = vrot.lane.b32.xlu1 %v11653_v0, %s11360_s24  ;;  %v1693_v62 = vpop.f32.mrf.mxu3  ;;  %v1678_v5 = vpop.f32.mrf.mxu2 }
 0x2df   :  { %v12823_v4 = vadd.f32 %v1693_v62, %v12621_v31  ;;  %v12826_v25 = vadd.f32 %v1678_v5, %v12615_v11  ;;  %v2520_v31 = vsel %vm542_vm3, %v2495_v10, 0  ;;  %v2474_v11 = vpop.permute.xlu0 %2473  ;;  %v2486_v5 = vsel %vm2485_vm10, %v2448_v48, %v2450_v37 }
 0x2e0   :  { %v1709_v23 = vpop.f32.mrf.mxu0  ;;  %v2497_v26 = vsel %vm2485_vm10, %v2472_v41, %v2474_v11  ;;  %v2523_v10 = vsel %vm542_vm3, %v2496_v49, 0  ;;  %v2487_v41 = vsel %vm2485_vm10, %v2450_v37, %v2452_v43 }
 0x2e1   :  { %v12832_v8 = vadd.f32 %v1709_v23, %v12618_v59 }
 0x2e3   :  { %10132 = vmatmul.msk.bf16.gmra.mxu3 %vm535_vm4, %v12828_v21  ;;  %10133 = vmatmul.msk.bf16.vlgmr.msra.gmra.mxu0 %vm535_vm4, %v12782_v40 }
 0x2e4   :  { %2552 = vmatpush.bf16.msra.mxu0 %v2520_v31  ;;  %3971 = vrot.lane.b32.xlu0 %v11600_v45, %s11361_s28  ;;  %v1727_v2 = vpop.f32.mrf.mxu1  ;;  %v2476_v31 = vpop.permute.xlu2 %2475 }
 0x2e5   :  { %3949 = vrot.lane.b32.xlu2 %v11592_v28, %s11361_s28  ;;  %v12847_v59 = vadd.f32 %v1727_v2, %v12645_v30  ;;  %v2454_v2 = vpop.permute.xlu1 %2453 }
 0x2e6   :  { %3969 = vrot.lane.b32.xlu1 %v11602_v46, %s11361_s28  ;;  %v1696_v20 = vpop.f32.mrf.mxu3  ;;  %v1680_v53 = vpop.f32.mrf.mxu2  ;;  %v2488_v37 = vsel %vm2485_vm10, %v2452_v43, %v2454_v2 }
 0x2e7   :  { %v12850_v62 = vadd.f32 %v1696_v20, %v12640_v18  ;;  %10135 = vmatmul.msk.bf16.vlgmr.msra.gmra.mxu1 %vm535_vm4, %v12782_v40  ;;  %v2526_v18 = vsel %vm542_vm3, %v2497_v26, 0  ;;  %v2498_v26 = vsel %vm2485_vm10, %v2474_v11, %v2476_v31 }
 0x2e8   :  { %2553 = vmatpush.bf16.msra.mxu0 %v2486_v5  ;;  %v1711_v23 = vpop.f32.mrf.mxu0  ;;  %2570 = vmatpush.bf16.msra.mxu1 %v2523_v10 }
 0x2e9   :  { %v12858_v30 = vadd.f32 %v1711_v23, %v12637_v3 }
 0x2eb   :  { %10137 = vmatmul.msk.bf16.vlgmr.msra.gmra.mxu2 %vm535_vm4, %v12782_v40 }
 0x2ec   :  { %2588 = vmatpush.bf16.msra.mxu2 %v2526_v18  ;;  %3975 = vrot.lane.b32.xlu0 %v11623_v14, %s11361_s28  ;;  %v1729_v48 = vpop.f32.mrf.mxu1  ;;  %v2456_v23 = vpop.permute.xlu2 %2455 }
 0x2ed   :  { %2571 = vmatpush.bf16.msra.mxu1 %v2487_v41  ;;  %3973 = vrot.lane.b32.xlu2 %v11608_v54, %s11361_s28  ;;  %v12871_v3 = vadd.f32 %v1729_v48, %v12672_v12  ;;  %v2529_v12 = vsel %vm542_vm3, %v2498_v26, 0 }
 0x2ee   :  { %3947 = vrot.lane.b32.xlu1 %v11588_v17, %s11361_s28  ;;  %v1698_v49 = vpop.f32.mrf.mxu3  ;;  %v1745_v20 = vpop.f32.mrf.mxu2 }
 0x2ef   :  { %v12874_v53 = vadd.f32 %v1745_v20, %v12661_v34  ;;  %v2480_v34 = vpop.permute.xlu1 %2479  ;;  %v2489_v49 = vsel %vm2485_vm10, %v2454_v2, %v2456_v23  ;;  %v2478_v20 = vpop.permute.xlu0 %2477 }
 0x2f0   :  { %2589 = vmatpush.bf16.msra.mxu2 %v2488_v37  ;;  %v1714_v5 = vpop.f32.mrf.mxu0 }
 0x2f1   :  { %v12879_v10 = vadd.f32 %v1714_v5, %v12664_v57 }
 0x2f3   :  { %10139 = vmatmul.msk.bf16.vlgmr.msra.gmra.mxu3 %vm535_vm4, %v12782_v40  ;;  %10134 = vmatmul.msk.bf16.gmra.mxu0 %vm535_vm4, %v12828_v21 }
 0x2f4   :  { %2606 = vmatpush.bf16.msra.mxu3 %v2529_v12  ;;  %3955 = vrot.lane.b32.xlu0 %v11633_v38, %s11361_s28  ;;  %v1732_v43 = vpop.f32.mrf.mxu1  ;;  %v2499_v12 = vsel %vm2485_vm10, %v2476_v31, %v2478_v20 }
 0x2f5   :  { %3953 = vrot.lane.b32.xlu2 %v11619_v63, %s11361_s28  ;;  %v12893_v57 = vadd.f32 %v1732_v43, %v12693_v42 }
 0x2f6   :  { %3951 = vrot.lane.b32.xlu1 %v11610_v55, %s11361_s28  ;;  %v1763_v11 = vpop.f32.mrf.mxu3  ;;  %v1747_v18 = vpop.f32.mrf.mxu2 }
 0x2f7   :  { %v12896_v41 = vadd.f32 %v1763_v11, %v12688_v33  ;;  %v12899_v48 = vadd.f32 %v1747_v18, %v12685_v13  ;;  %10136 = vmatmul.msk.bf16.gmra.mxu1 %vm535_vm4, %v12828_v21  ;;  %v2460_v5 = vpop.permute.xlu1 %2459  ;;  %v2458_v18 = vpop.permute.xlu0 %2457 }
 0x2f8   :  { %2607 = vmatpush.bf16.msra.mxu3 %v2489_v49  ;;  %v1716_v37 = vpop.f32.mrf.mxu0  ;;  %v2500_v49 = vsel %vm2485_vm10, %v2478_v20, %v2480_v34 }
 0x2fb   :  { %10138 = vmatmul.msk.bf16.gmra.mxu2 %vm535_vm4, %v12828_v21 }
 0x2fc   :  { %3959 = vrot.lane.b32.xlu0 %v11645_v51, %s11361_s28  ;;  %v1734_v42 = vpop.f32.mrf.mxu1 }
 0x2fd   :  { %3979 = vrot.lane.b32.xlu2 %v11631_v36, %s11361_s28  ;;  %v2482_v42 = vpop.permute.xlu2 %2481 }
 0x2fe   :  { %3977 = vrot.lane.b32.xlu1 %v11625_v15, %s11361_s28  ;;  %v1765_v13 = vpop.f32.mrf.mxu3  ;;  %v1750_v33 = vpop.f32.mrf.mxu2  ;;  %v2501_v20 = vsel %vm2485_vm10, %v2480_v34, %v2482_v42 }
 0x2ff   :  { %v12913_v2 = vadd.f32 %v1765_v13, %v12713_v7  ;;  %v12916_v26 = vadd.f32 %v1750_v33, %v12707_v19  ;;  %v2532_v7 = vsel %vm542_vm3, %v2499_v12, 0  ;;  %v2490_v33 = vsel %vm2485_vm10, %v2456_v23, %v2458_v18  ;;  %v2462_v34 = vpop.permute.xlu0 %2461 }
 0x300   :  { %v1781_v43 = vpop.f32.mrf.mxu0  ;;  %v2535_v12 = vsel %vm542_vm3, %v2500_v49, 0  ;;  %v2491_v23 = vsel %vm2485_vm10, %v2458_v18, %v2460_v5 }
 0x301   :  { %v12920_v11 = vadd.f32 %v1781_v43, %v12710_v56 }
 0x303   :  { %10140 = vmatmul.msk.bf16.gmra.mxu3 %vm535_vm4, %v12828_v21  ;;  %10141 = vmatmul.msk.bf16.vlgmr.msrb.gmra.mxu0 %vm535_vm4, %v12782_v40 }
 0x304   :  { %2624 = vmatpush.bf16.msrb.mxu0 %v2532_v7  ;;  %3983 = vrot.lane.b32.xlu0 %v11661_v6, %s11361_s28  ;;  %v1799_v19 = vpop.f32.mrf.mxu1 }
 0x305   :  { %3965 = vrot.lane.b32.xlu2 %v18171_v60, %s11361_s28  ;;  %v12935_v56 = vadd.f32 %v1799_v19, %v12734_v32  ;;  %v2484_v32 = vpop.permute.xlu1 %2483 }
 0x306   :  { %3957 = vrot.lane.b32.xlu1 %v11635_v39, %s11361_s28  ;;  %v1768_v31 = vpop.f32.mrf.mxu3  ;;  %v1752_v37 = vpop.f32.mrf.mxu2 }
 0x307   :  { %v12938_v13 = vadd.f32 %v1768_v31, %v12730_v27  ;;  %10143 = vmatmul.msk.bf16.vlgmr.msrb.gmra.mxu1 %vm535_vm4, %v12782_v40  ;;  %v2538_v27 = vsel %vm542_vm3, %v2501_v20, 0  ;;  %v2492_v37 = vsel %vm2485_vm10, %v2460_v5, %v2462_v34  ;;  %v2502_v20 = vsel %vm2485_vm10, %v2482_v42, %v2484_v32  ;;  %v2770_v42 = vpop.permute.xlu0 %2769 }
 0x308   :  { %2625 = vmatpush.bf16.msrb.mxu0 %v2490_v33  ;;  %v1783_v43 = vpop.f32.mrf.mxu0  ;;  %2642 = vmatpush.bf16.msrb.mxu1 %v2535_v12 }
 0x309   :  { %v12946_v7 = vadd.f32 %v1783_v43, %v12727_v24  ;;  %v2768_v43 = vpop.permute.xlu2 %2767 }
 0x30b   :  { %10145 = vmatmul.msk.bf16.vlgmr.msrb.gmra.mxu2 %vm535_vm4, %v12782_v40 }
 0x30c   :  { %2660 = vmatpush.bf16.msrb.mxu2 %v2538_v27  ;;  %4267 = vrot.lane.b32.xlu0 %v11594_v29, %s11362_s9  ;;  %v1801_v49 = vpop.f32.mrf.mxu1 }
 0x30d   :  { %2643 = vmatpush.bf16.msrb.mxu1 %v2491_v23  ;;  %3963 = vrot.lane.b32.xlu2 %v11655_v1, %s11361_s28  ;;  %v12959_v24 = vadd.f32 %v1801_v49, %v12760_v58  ;;  %v2541_v58 = vsel %vm542_vm3, %v2502_v20, 0  ;;  %v2464_v27 = vpop.permute.xlu1 %2463 }
 0x30e   :  { %3981 = vrot.lane.b32.xlu1 %v11643_v50, %s11361_s28  ;;  %v1770_v19 = vpop.f32.mrf.mxu3  ;;  %v1955_v31 = vpop.f32.mrf.mxu2 }
 0x30f   :  { %v12962_v18 = vadd.f32 %v1955_v31, %v12749_v44  ;;  %v2493_v19 = vsel %vm2485_vm10, %v2462_v34, %v2464_v27 }
 0x310   :  { %2661 = vmatpush.bf16.msrb.mxu2 %v2492_v37  ;;  %v1786_v33 = vpop.f32.mrf.mxu0 }
 0x311   :  { %v12967_v12 = vadd.f32 %v1786_v33, %v12752_v61 }
 0x313   :  { %10147 = vmatmul.msk.bf16.vlgmr.msrb.gmra.mxu3 %vm535_vm4, %v12782_v40  ;;  %10142 = vmatmul.msk.bf16.gmra.mxu0 %vm535_vm4, %v12828_v21 }
 0x314   :  { %2678 = vmatpush.bf16.msrb.mxu3 %v2541_v58  ;;  %4249 = vrot.lane.b32.xlu0 %v11592_v28, %s11362_s9  ;;  %v1804_v44 = vpop.f32.mrf.mxu1  ;;  %v13009_v58 = vld [vmem:[%s18140_s2 + $0x54] sm:$0xff] }
 0x315   :  { %4247 = vrot.lane.b32.xlu2 %v11588_v17, %s11362_s9  ;;  %v12981_v61 = vadd.f32 %v1804_v44, %v12786_v47  ;;  %v2466_v47 = vpop.permute.xlu2 %2465  ;;  %v2750_v33 = vpop.permute.xlu1 %2749 }
 0x316   :  { %3961 = vrot.lane.b32.xlu1 %v11653_v0, %s11361_s28  ;;  %v1973_v40 = vpop.f32.mrf.mxu3  ;;  %v1957_v5 = vpop.f32.mrf.mxu2  ;;  %s11371_s28 = smov 30  }
 0x317   :  { %v12984_v23 = vadd.f32 %v1973_v40, %v12776_v35  ;;  %v12987_v49 = vadd.f32 %v1957_v5, %v12773_v9  ;;  %10144 = vmatmul.msk.bf16.gmra.mxu1 %vm535_vm4, %v12828_v21  ;;  %v2748_v44 = vpop.permute.xlu0 %2747  ;;  %v2503_v40 = vsel %vm2485_vm10, %v2484_v32, %v2466_v47 }
 0x318   :  { %2679 = vmatpush.bf16.msrb.mxu3 %v2493_v19  ;;  %v1788_v31 = vpop.f32.mrf.mxu0 }
 0x31b   :  { %10146 = vmatmul.msk.bf16.gmra.mxu2 %vm535_vm4, %v12828_v21 }
 0x31c   :  { %4275 = vrot.lane.b32.xlu0 %v11623_v14, %s11362_s9  ;;  %v1806_v37 = vpop.f32.mrf.mxu1 }
 0x31d   :  { %4273 = vrot.lane.b32.xlu2 %v11608_v54, %s11362_s9  ;;  %v2772_v37 = vpop.permute.xlu2 %2771 }
 0x31e   :  { %4269 = vrot.lane.b32.xlu1 %v11602_v46, %s11362_s9  ;;  %v1975_v9 = vpop.f32.mrf.mxu3  ;;  %v1960_v35 = vpop.f32.mrf.mxu2 }
 0x31f   :  { %v13001_v34 = vadd.f32 %v1975_v9, %v12806_v52  ;;  %v13004_v20 = vadd.f32 %v1960_v35, %v12800_v16  ;;  %v2544_v16 = vsel %vm542_vm3, %v2503_v40, 0  ;;  %v2795_v52 = vsel %vm2785_vm11, %v2768_v43, %v2770_v42 }
 0x320   :  { %v1991_v5 = vpop.f32.mrf.mxu0  ;;  %v2796_v43 = vsel %vm2785_vm11, %v2770_v42, %v2772_v37  ;;  %v2494_v35 = vsel %vm2485_vm10, %v2464_v27, %v2466_v47  ;;  %v2820_v40 = vsel %vm542_vm3, %v2795_v52, 0  ;;  %v2786_v42 = vsel %vm2785_vm11, %v2748_v44, %v2750_v33 }
 0x321   :  { %v13013_v19 = vadd.f32 %v1991_v5, %v12803_v22  ;;  %v2823_v27 = vsel %vm542_vm3, %v2796_v43, 0  ;;  %vm6085_vm10 = vcmask 424960  }
 0x323   :  { %10148 = vmatmul.msk.bf16.gmra.mxu3 %vm535_vm4, %v12828_v21  ;;  %10156 = vmatmul.msk.bf16.vlgmr.msra.gmra.mxu0 %vm535_vm4, %v13009_v58 }
 0x324   :  { %2696 = vmatpush.bf16.msra.mxu0 %v2544_v16  ;;  %4255 = vrot.lane.b32.xlu0 %v11633_v38, %s11362_s9  ;;  %v2009_v32 = vpop.f32.mrf.mxu1  ;;  %v2774_v16 = vpop.permute.xlu1 %2773 }
 0x325   :  { %4253 = vrot.lane.b32.xlu2 %v11619_v63, %s11362_s9  ;;  %v13028_v22 = vadd.f32 %v2009_v32, %v12832_v8  ;;  %v10151_v8 = vld [vmem:[%s18140_s2 + $0x5c] sm:$0x3]  ;;  %v2752_v32 = vpop.permute.xlu0 %2751 }
 0x326   :  { %4271 = vrot.lane.b32.xlu1 %v11600_v45, %s11362_s9  ;;  %v1978_v21 = vpop.f32.mrf.mxu3  ;;  %v1962_v31 = vpop.f32.mrf.mxu2  ;;  %v2444_v47 = vunpack.c.l.b16 %v10151_v8  ;;  %v2787_v44 = vsel %vm2785_vm11, %v2750_v33, %v2752_v32 }
 0x327   :  { %v13031_v9 = vadd.f32 %v1978_v21, %v12826_v25  ;;  %10158 = vmatmul.msk.bf16.vlgmr.msra.gmra.mxu1 %vm535_vm4, %v13009_v58 }
 0x328   :  { %2697 = vmatpush.bf16.msra.mxu0 %v2494_v35  ;;  %v1993_v5 = vpop.f32.mrf.mxu0  ;;  %2852 = vmatpush.bf16.msra.mxu1 %v2820_v40  ;;  %v2797_v35 = vsel %vm2785_vm11, %v2772_v37, %v2774_v16  ;;  %v13062_v40 = vpack.c.b16 %v2444_v47, %v2444_v47 }
 0x329   :  { %v13042_v25 = vadd.f32 %v1993_v5, %v12823_v4 }
 0x32b   :  { %10160 = vmatmul.msk.bf16.vlgmr.msra.gmra.mxu2 %vm535_vm4, %v13009_v58 }
 0x32c   :  { %2870 = vmatpush.bf16.msra.mxu2 %v2823_v27  ;;  %4279 = vrot.lane.b32.xlu0 %v11631_v36, %s11362_s9  ;;  %v2011_v52 = vpop.f32.mrf.mxu1  ;;  %v2754_v27 = vpop.permute.xlu1 %2753 }
 0x32d   :  { %2853 = vmatpush.bf16.msra.mxu1 %v2786_v42  ;;  %4257 = vrot.lane.b32.xlu2 %v11635_v39, %s11362_s9  ;;  %v13055_v4 = vadd.f32 %v2011_v52, %v12858_v30  ;;  %v2826_v30 = vsel %vm542_vm3, %v2797_v35, 0 }
 0x32e   :  { %4251 = vrot.lane.b32.xlu1 %v11610_v55, %s11362_s9  ;;  %v1980_v21 = vpop.f32.mrf.mxu3  ;;  %v2027_v31 = vpop.f32.mrf.mxu2 }
 0x32f   :  { %v13058_v43 = vadd.f32 %v2027_v31, %v12847_v59  ;;  %v2778_v59 = vpop.permute.xlu0 %2777  ;;  %v2788_v21 = vsel %vm2785_vm11, %v2752_v32, %v2754_v27  ;;  %v2776_v31 = vpop.permute.xlu2 %2775 }
 0x330   :  { %2871 = vmatpush.bf16.msra.mxu2 %v2787_v44  ;;  %v1996_v5 = vpop.f32.mrf.mxu0 }
 0x331   :  { %v13065_v8 = vadd.f32 %v1996_v5, %v12850_v62 }
 0x333   :  { %10162 = vmatmul.msk.bf16.vlgmr.msra.gmra.mxu3 %vm535_vm4, %v13009_v58  ;;  %10157 = vmatmul.msk.bf16.gmra.mxu0 %vm535_vm4, %v13062_v40 }
 0x334   :  { %2888 = vmatpush.bf16.msra.mxu3 %v2826_v30  ;;  %4259 = vrot.lane.b32.xlu0 %v11645_v51, %s11362_s9  ;;  %v2014_v33 = vpop.f32.mrf.mxu1  ;;  %v2798_v30 = vsel %vm2785_vm11, %v2774_v16, %v2776_v31 }
 0x335   :  { %4283 = vrot.lane.b32.xlu2 %v11661_v6, %s11362_s9  ;;  %v13079_v62 = vadd.f32 %v2014_v33, %v12879_v10 }
 0x336   :  { %4277 = vrot.lane.b32.xlu1 %v11625_v15, %s11362_s9  ;;  %v2045_v37 = vpop.f32.mrf.mxu3  ;;  %v2029_v42 = vpop.f32.mrf.mxu2 }
 0x337   :  { %v13082_v47 = vadd.f32 %v2045_v37, %v12874_v53  ;;  %v13085_v52 = vadd.f32 %v2029_v42, %v12871_v3  ;;  %10159 = vmatmul.msk.bf16.gmra.mxu1 %vm535_vm4, %v13062_v40  ;;  %v2758_v5 = vpop.permute.xlu0 %2757  ;;  %v2756_v42 = vpop.permute.xlu2 %2755 }
 0x338   :  { %2889 = vmatpush.bf16.msra.mxu3 %v2788_v21  ;;  %v1998_v44 = vpop.f32.mrf.mxu0  ;;  %v2799_v21 = vsel %vm2785_vm11, %v2776_v31, %v2778_v59 }
 0x33b   :  { %10161 = vmatmul.msk.bf16.gmra.mxu2 %vm535_vm4, %v13062_v40 }
 0x33c   :  { %4265 = vrot.lane.b32.xlu0 %v18171_v60, %s11362_s9  ;;  %v2016_v10 = vpop.f32.mrf.mxu1 }
 0x33d   :  { %4263 = vrot.lane.b32.xlu2 %v11655_v1, %s11362_s9 }
 0x33e   :  { %4281 = vrot.lane.b32.xlu1 %v11643_v50, %s11362_s9  ;;  %v2047_v3 = vpop.f32.mrf.mxu3  ;;  %v2032_v53 = vpop.f32.mrf.mxu2 }
 0x33f   :  { %v13099_v32 = vadd.f32 %v2047_v3, %v12899_v48  ;;  %v13102_v35 = vadd.f32 %v2032_v53, %v12893_v57  ;;  %v2829_v48 = vsel %vm542_vm3, %v2798_v30, 0  ;;  %v2780_v57 = vpop.permute.xlu1 %2779  ;;  %v2789_v53 = vsel %vm2785_vm11, %v2754_v27, %v2756_v42 }
 0x340   :  { %v2063_v33 = vpop.f32.mrf.mxu0  ;;  %v2800_v3 = vsel %vm2785_vm11, %v2778_v59, %v2780_v57  ;;  %v2832_v30 = vsel %vm542_vm3, %v2799_v21, 0  ;;  %v2790_v27 = vsel %vm2785_vm11, %v2756_v42, %v2758_v5  ;;  %v2760_v59 = vpop.permute.xlu2 %2759 }
 0x341   :  { %v13106_v37 = vadd.f32 %v2063_v33, %v12896_v41  ;;  %v2791_v42 = vsel %vm2785_vm11, %v2758_v5, %v2760_v59 }
 0x343   :  { %10163 = vmatmul.msk.bf16.gmra.mxu3 %vm535_vm4, %v13062_v40  ;;  %10164 = vmatmul.msk.bf16.vlgmr.msrb.gmra.mxu0 %vm535_vm4, %v13009_v58 }
 0x344   :  { %2906 = vmatpush.bf16.msrb.mxu0 %v2829_v48  ;;  %4571 = vrot.lane.b32.xlu0 %v11600_v45, %s11363_s13  ;;  %v2081_v16 = vpop.f32.mrf.mxu1  ;;  %v2782_v48 = vpop.permute.xlu0 %2781 }
 0x345   :  { %4569 = vrot.lane.b32.xlu2 %v11602_v46, %s11363_s13  ;;  %v13121_v41 = vadd.f32 %v2081_v16, %v12920_v11 }
 0x346   :  { %4261 = vrot.lane.b32.xlu1 %v11653_v0, %s11362_s9  ;;  %v2050_v44 = vpop.f32.mrf.mxu3  ;;  %v2034_v10 = vpop.f32.mrf.mxu2 }
 0x347   :  { %v13124_v31 = vadd.f32 %v2050_v44, %v12916_v26  ;;  %10166 = vmatmul.msk.bf16.vlgmr.msrb.gmra.mxu1 %vm535_vm4, %v13009_v58  ;;  %v2835_v26 = vsel %vm542_vm3, %v2800_v3, 0  ;;  %v2801_v3 = vsel %vm2785_vm11, %v2780_v57, %v2782_v48 }
 0x348   :  { %2907 = vmatpush.bf16.msrb.mxu0 %v2789_v53  ;;  %v2065_v33 = vpop.f32.mrf.mxu0  ;;  %2924 = vmatpush.bf16.msrb.mxu1 %v2832_v30 }
 0x349   :  { %v13132_v11 = vadd.f32 %v2065_v33, %v12913_v2 }
 0x34b   :  { %10168 = vmatmul.msk.bf16.vlgmr.msrb.gmra.mxu2 %vm535_vm4, %v13009_v58 }
 0x34c   :  { %2942 = vmatpush.bf16.msrb.mxu2 %v2835_v26  ;;  %4549 = vrot.lane.b32.xlu0 %v11592_v28, %s11363_s13  ;;  %v2083_v21 = vpop.f32.mrf.mxu1  ;;  %v2762_v33 = vpop.permute.xlu0 %2761 }
 0x34d   :  { %2925 = vmatpush.bf16.msrb.mxu1 %v2790_v27  ;;  %4547 = vrot.lane.b32.xlu2 %v11588_v17, %s11363_s13  ;;  %v13145_v2 = vadd.f32 %v2083_v21, %v12946_v7  ;;  %v2838_v7 = vsel %vm542_vm3, %v2801_v3, 0  ;;  %v2784_v26 = vpop.permute.xlu2 %2783 }
 0x34e   :  { %4567 = vrot.lane.b32.xlu1 %v11594_v29, %s11363_s13  ;;  %v2052_v16 = vpop.f32.mrf.mxu3  ;;  %v2099_v44 = vpop.f32.mrf.mxu2 }
 0x34f   :  { %v13148_v10 = vadd.f32 %v2099_v44, %v12935_v56  ;;  %v2792_v16 = vsel %vm2785_vm11, %v2760_v59, %v2762_v33  ;;  %v2766_v44 = vpop.permute.xlu1 %2765 }
 0x350   :  { %2943 = vmatpush.bf16.msrb.mxu2 %v2791_v42  ;;  %v2068_v53 = vpop.f32.mrf.mxu0 }
 0x351   :  { %v13153_v30 = vadd.f32 %v2068_v53, %v12938_v13 }
 0x353   :  { %10170 = vmatmul.msk.bf16.vlgmr.msrb.gmra.mxu3 %vm535_vm4, %v13009_v58  ;;  %10165 = vmatmul.msk.bf16.gmra.mxu0 %vm535_vm4, %v13062_v40 }
 0x354   :  { %2960 = vmatpush.bf16.msrb.mxu3 %v2838_v7  ;;  %4575 = vrot.lane.b32.xlu0 %v11623_v14, %s11363_s13  ;;  %v2086_v56 = vpop.f32.mrf.mxu1  ;;  %v3070_v53 = vpop.permute.xlu0 %3069 }
 0x355   :  { %4553 = vrot.lane.b32.xlu2 %v11619_v63, %s11363_s13  ;;  %v13167_v13 = vadd.f32 %v2086_v56, %v12967_v12  ;;  %v3068_v7 = vpop.permute.xlu2 %3067  ;;  %v2802_v56 = vsel %vm2785_vm11, %v2782_v48, %v2784_v26  ;;  %v2803_v48 = vsel %vm2785_vm11, %v2784_v26, %v2766_v44 }
 0x356   :  { %4573 = vrot.lane.b32.xlu1 %v11608_v54, %s11363_s13  ;;  %v2255_v5 = vpop.f32.mrf.mxu3  ;;  %v2101_v57 = vpop.f32.mrf.mxu2  ;;  %v3095_v26 = vsel %vm3085_vm12, %v3068_v7, %v3070_v53 }
 0x357   :  { %v13170_v27 = vadd.f32 %v2255_v5, %v12962_v18  ;;  %v13173_v21 = vadd.f32 %v2101_v57, %v12959_v24  ;;  %10167 = vmatmul.msk.bf16.gmra.mxu1 %vm535_vm4, %v13062_v40  ;;  %v2764_v57 = vpop.permute.xlu1 %2763 }
 0x358   :  { %2961 = vmatpush.bf16.msrb.mxu3 %v2792_v16  ;;  %v2070_v42 = vpop.f32.mrf.mxu0 }
 0x35b   :  { %10169 = vmatmul.msk.bf16.gmra.mxu2 %vm535_vm4, %v13062_v40 }
 0x35c   :  { %4579 = vrot.lane.b32.xlu0 %v11631_v36, %s11363_s13  ;;  %v2088_v12 = vpop.f32.mrf.mxu1 }
 0x35d   :  { %4577 = vrot.lane.b32.xlu2 %v11625_v15, %s11363_s13 }
 0x35e   :  { %4551 = vrot.lane.b32.xlu1 %v11610_v55, %s11363_s13  ;;  %v2257_v24 = vpop.f32.mrf.mxu3  ;;  %v2104_v18 = vpop.f32.mrf.mxu2 }
 0x35f   :  { %v13187_v59 = vadd.f32 %v2257_v24, %v12987_v49  ;;  %v13190_v3 = vadd.f32 %v2104_v18, %v12981_v61  ;;  %v2841_v49 = vsel %vm542_vm3, %v2802_v56, 0  ;;  %v13204_v61 = vld [vmem:[%s18140_s2 + $0x60] sm:$0xff]  ;;  %v2793_v18 = vsel %vm2785_vm11, %v2762_v33, %v2764_v57  ;;  %v3048_v7 = vpop.permute.xlu1 %3047 }
 0x360   :  { %v2273_v5 = vpop.f32.mrf.mxu0  ;;  %v2844_v56 = vsel %vm542_vm3, %v2803_v48, 0  ;;  %v2794_v33 = vsel %vm2785_vm11, %v2764_v57, %v2766_v44  ;;  %vm6385_vm11 = vcmask 261120  }
 0x361   :  { %v13194_v16 = vadd.f32 %v2273_v5, %v12984_v23 }
 0x363   :  { %10171 = vmatmul.msk.bf16.gmra.mxu3 %vm535_vm4, %v13062_v40  ;;  %10172 = vmatmul.msk.bf16.vlgmr.msra.gmra.mxu0 %vm535_vm4, %v13009_v58 }
 0x364   :  { %2978 = vmatpush.bf16.msra.mxu0 %v2841_v49  ;;  %4559 = vrot.lane.b32.xlu0 %v11645_v51, %s11363_s13  ;;  %v2291_v23 = vpop.f32.mrf.mxu1  ;;  %v3072_v49 = vpop.permute.xlu0 %3071 }
 0x365   :  { %4557 = vrot.lane.b32.xlu2 %v11635_v39, %s11363_s13  ;;  %v13214_v58 = vadd.f32 %v2291_v23, %v13013_v19  ;;  %v3050_v23 = vpop.permute.xlu2 %3049 }
 0x366   :  { %4555 = vrot.lane.b32.xlu1 %v11633_v38, %s11363_s13  ;;  %v2260_v42 = vpop.f32.mrf.mxu3  ;;  %v2106_v12 = vpop.f32.mrf.mxu2 }
 0x367   :  { %v13217_v24 = vadd.f32 %v2260_v42, %v13004_v20  ;;  %10181 = vmatmul.msk.bf16.vlgmr.msra.gmra.mxu1 %vm535_vm4, %v13204_v61  ;;  %v3120_v20 = vsel %vm542_vm3, %v3095_v26, 0  ;;  %v3086_v26 = vsel %vm3085_vm12, %v3048_v7, %v3050_v23 }
 0x368   :  { %2979 = vmatpush.bf16.msra.mxu0 %v2793_v18  ;;  %v2275_v5 = vpop.f32.mrf.mxu0  ;;  %2996 = vmatpush.bf16.msra.mxu1 %v2844_v56  ;;  %v3096_v18 = vsel %vm3085_vm12, %v3070_v53, %v3072_v49 }
 0x369   :  { %v13225_v19 = vadd.f32 %v2275_v5, %v13001_v34  ;;  %v10176_v34 = vld [vmem:[%s18140_s2 + $0x68] sm:$0x3] }
 0x36a   :  { %v2744_v56 = vunpack.c.l.b16 %v10176_v34  ;;  %v3074_v34 = vpop.permute.xlu1 %3073 }
 0x36b   :  { %10183 = vmatmul.msk.bf16.vlgmr.msra.gmra.mxu2 %vm535_vm4, %v13204_v61 }
 0x36c   :  { %3152 = vmatpush.bf16.msra.mxu2 %v3120_v20  ;;  %4563 = vrot.lane.b32.xlu0 %v11655_v1, %s11363_s13  ;;  %v2293_v48 = vpop.f32.mrf.mxu1 }
 0x36d   :  { %2997 = vmatpush.bf16.msra.mxu1 %v2794_v33  ;;  %4583 = vrot.lane.b32.xlu2 %v11661_v6, %s11363_s13  ;;  %v13241_v42 = vadd.f32 %v2293_v48, %v13042_v25  ;;  %v3123_v25 = vsel %vm542_vm3, %v3096_v18, 0  ;;  %v3052_v33 = vpop.permute.xlu0 %3051  ;;  %v3076_v7 = vpop.permute.xlu2 %3075 }
 0x36e   :  { %4581 = vrot.lane.b32.xlu1 %v11643_v50, %s11363_s13  ;;  %v2262_v12 = vpop.f32.mrf.mxu3  ;;  %v2309_v44 = vpop.f32.mrf.mxu2 }
 0x36f   :  { %v13244_v57 = vadd.f32 %v2309_v44, %v13028_v22  ;;  %v13256_v22 = vpack.c.b16 %v2744_v56, %v2744_v56 }
 0x370   :  { %3153 = vmatpush.bf16.msra.mxu2 %v3086_v26  ;;  %v2278_v5 = vpop.f32.mrf.mxu0  ;;  %v3087_v26 = vsel %vm3085_vm12, %v3050_v23, %v3052_v33 }
 0x371   :  { %v13249_v20 = vadd.f32 %v2278_v5, %v13031_v9 }
 0x373   :  { %10185 = vmatmul.msk.bf16.vlgmr.msra.gmra.mxu3 %vm535_vm4, %v13204_v61  ;;  %10173 = vmatmul.msk.bf16.gmra.mxu0 %vm535_vm4, %v13062_v40 }
 0x374   :  { %3170 = vmatpush.bf16.msra.mxu3 %v3123_v25  ;;  %4871 = vrot.lane.b32.xlu0 %v11600_v45, %s11364_s19  ;;  %v2296_v53 = vpop.f32.mrf.mxu1  ;;  %v3097_v25 = vsel %vm3085_vm12, %v3072_v49, %v3074_v34 }
 0x375   :  { %4869 = vrot.lane.b32.xlu2 %v11602_v46, %s11364_s19  ;;  %v13265_v9 = vadd.f32 %v2296_v53, %v13065_v8  ;;  %v3056_v5 = vpop.permute.xlu2 %3055  ;;  %v3054_v53 = vpop.permute.xlu1 %3053 }
 0x376   :  { %4561 = vrot.lane.b32.xlu1 %v11653_v0, %s11363_s13  ;;  %v2327_v48 = vpop.f32.mrf.mxu3  ;;  %v2311_v40 = vpop.f32.mrf.mxu2 }
 0x377   :  { %v13268_v12 = vadd.f32 %v2327_v48, %v13058_v43  ;;  %v13271_v44 = vadd.f32 %v2311_v40, %v13055_v4  ;;  %10182 = vmatmul.msk.bf16.gmra.mxu1 %vm535_vm4, %v13256_v22 }
 0x378   :  { %3171 = vmatpush.bf16.msra.mxu3 %v3087_v26  ;;  %v2280_v18 = vpop.f32.mrf.mxu0  ;;  %v3078_v26 = vpop.permute.xlu0 %3077 }
 0x37b   :  { %10184 = vmatmul.msk.bf16.gmra.mxu2 %vm535_vm4, %v13256_v22 }
 0x37c   :  { %4851 = vrot.lane.b32.xlu0 %v11610_v55, %s11364_s19  ;;  %v2298_v8 = vpop.f32.mrf.mxu1 }
 0x37d   :  { %4849 = vrot.lane.b32.xlu2 %v11592_v28, %s11364_s19 }
 0x37e   :  { %4565 = vrot.lane.b32.xlu1 %v18171_v60, %s11363_s13  ;;  %v2329_v4 = vpop.f32.mrf.mxu3  ;;  %v2314_v43 = vpop.f32.mrf.mxu2  ;;  %s11379_s13 = smov 60  }
 0x37f   :  { %v13285_v23 = vadd.f32 %v2329_v4, %v13085_v52  ;;  %v13288_v56 = vadd.f32 %v2314_v43, %v13079_v62  ;;  %v3126_v52 = vsel %vm542_vm3, %v3097_v25, 0  ;;  %v3098_v62 = vsel %vm3085_vm12, %v3074_v34, %v3076_v7 }
 0x380   :  { %v2345_v48 = vpop.f32.mrf.mxu0  ;;  %v3099_v34 = vsel %vm3085_vm12, %v3076_v7, %v3078_v26  ;;  %v3088_v43 = vsel %vm3085_vm12, %v3052_v33, %v3054_v53  ;;  %v3129_v25 = vsel %vm542_vm3, %v3098_v62, 0  ;;  %v3089_v33 = vsel %vm3085_vm12, %v3054_v53, %v3056_v5 }
 0x381   :  { %v13292_v40 = vadd.f32 %v2345_v48, %v13082_v47 }
 0x383   :  { %10186 = vmatmul.msk.bf16.gmra.mxu3 %vm535_vm4, %v13256_v22  ;;  %10187 = vmatmul.msk.bf16.vlgmr.msrb.gmra.mxu0 %vm535_vm4, %v13204_v61 }
 0x384   :  { %3188 = vmatpush.bf16.msrb.mxu0 %v3126_v52  ;;  %4853 = vrot.lane.b32.xlu0 %v11619_v63, %s11364_s19  ;;  %v2363_v49 = vpop.f32.mrf.mxu1  ;;  %v3080_v52 = vpop.permute.xlu2 %3079 }
 0x385   :  { %4873 = vrot.lane.b32.xlu2 %v11608_v54, %s11364_s19  ;;  %v13307_v47 = vadd.f32 %v2363_v49, %v13106_v37  ;;  %v3058_v49 = vpop.permute.xlu1 %3057 }
 0x386   :  { %4867 = vrot.lane.b32.xlu1 %v11594_v29, %s11364_s19  ;;  %v2332_v18 = vpop.f32.mrf.mxu3  ;;  %v2316_v8 = vpop.f32.mrf.mxu2  ;;  %v3090_v53 = vsel %vm3085_vm12, %v3056_v5, %v3058_v49 }
 0x387   :  { %v13310_v4 = vadd.f32 %v2332_v18, %v13102_v35  ;;  %10189 = vmatmul.msk.bf16.vlgmr.msrb.gmra.mxu1 %vm535_vm4, %v13204_v61  ;;  %v3132_v35 = vsel %vm542_vm3, %v3099_v34, 0  ;;  %v3082_v8 = vpop.permute.xlu0 %3081 }
 0x388   :  { %3189 = vmatpush.bf16.msrb.mxu0 %v3088_v43  ;;  %v2347_v48 = vpop.f32.mrf.mxu0  ;;  %3206 = vmatpush.bf16.msrb.mxu1 %v3129_v25  ;;  %v3100_v43 = vsel %vm3085_vm12, %v3078_v26, %v3080_v52 }
 0x389   :  { %v13318_v37 = vadd.f32 %v2347_v48, %v13099_v32 }
 0x38b   :  { %10191 = vmatmul.msk.bf16.vlgmr.msrb.gmra.mxu2 %vm535_vm4, %v13204_v61 }
 0x38c   :  { %3224 = vmatpush.bf16.msrb.mxu2 %v3132_v35  ;;  %4879 = vrot.lane.b32.xlu0 %v11631_v36, %s11364_s19  ;;  %v2365_v7 = vpop.f32.mrf.mxu1  ;;  %v3060_v35 = vpop.permute.xlu2 %3059 }
 0x38d   :  { %3207 = vmatpush.bf16.msrb.mxu1 %v3089_v33  ;;  %4877 = vrot.lane.b32.xlu2 %v11625_v15, %s11364_s19  ;;  %v13331_v32 = vadd.f32 %v2365_v7, %v13132_v11  ;;  %v3135_v11 = vsel %vm542_vm3, %v3100_v43, 0 }
 0x38e   :  { %4847 = vrot.lane.b32.xlu1 %v11588_v17, %s11364_s19  ;;  %v2334_v62 = vpop.f32.mrf.mxu3  ;;  %v2381_v18 = vpop.f32.mrf.mxu2 }
 0x38f   :  { %v13334_v34 = vadd.f32 %v2381_v18, %v13121_v41  ;;  %v3084_v41 = vpop.permute.xlu1 %3083  ;;  %v3091_v18 = vsel %vm3085_vm12, %v3058_v49, %v3060_v35 }
 0x390   :  { %3225 = vmatpush.bf16.msrb.mxu2 %v3090_v53  ;;  %v2350_v25 = vpop.f32.mrf.mxu0  ;;  %v3062_v53 = vpop.permute.xlu0 %3061 }
 0x391   :  { %v13339_v48 = vadd.f32 %v2350_v25, %v13124_v31 }
 0x393   :  { %10193 = vmatmul.msk.bf16.vlgmr.msrb.gmra.mxu3 %vm535_vm4, %v13204_v61  ;;  %10188 = vmatmul.msk.bf16.gmra.mxu0 %vm535_vm4, %v13256_v22 }
 0x394   :  { %3242 = vmatpush.bf16.msrb.mxu3 %v3135_v11  ;;  %4859 = vrot.lane.b32.xlu0 %v11645_v51, %s11364_s19  ;;  %v2368_v5 = vpop.f32.mrf.mxu1 }
 0x395   :  { %4857 = vrot.lane.b32.xlu2 %v11635_v39, %s11364_s19  ;;  %v13353_v31 = vadd.f32 %v2368_v5, %v13153_v30  ;;  %v3066_v5 = vpop.permute.xlu2 %3065 }
 0x396   :  { %4875 = vrot.lane.b32.xlu1 %v11623_v14, %s11364_s19  ;;  %v2399_v26 = vpop.f32.mrf.mxu3  ;;  %v2383_v33 = vpop.f32.mrf.mxu2 }
 0x397   :  { %v13356_v7 = vadd.f32 %v2399_v26, %v13148_v10  ;;  %v13359_v62 = vadd.f32 %v2383_v33, %v13145_v2  ;;  %10190 = vmatmul.msk.bf16.gmra.mxu1 %vm535_vm4, %v13256_v22  ;;  %v3064_v11 = vpop.permute.xlu1 %3063  ;;  %v3101_v26 = vsel %vm3085_vm12, %v3080_v52, %v3082_v8 }
 0x398   :  { %3243 = vmatpush.bf16.msrb.mxu3 %v3091_v18  ;;  %v2352_v43 = vpop.f32.mrf.mxu0 }
 0x399   :  { %v3368_v43 = vpop.permute.xlu0 %3367 }
 0x39b   :  { %10192 = vmatmul.msk.bf16.gmra.mxu2 %vm535_vm4, %v13256_v22 }
 0x39c   :  { %4883 = vrot.lane.b32.xlu0 %v11661_v6, %s11364_s19  ;;  %v2370_v30 = vpop.f32.mrf.mxu1 }
 0x39d   :  { %4861 = vrot.lane.b32.xlu2 %v11653_v0, %s11364_s19 }
 0x39e   :  { %4855 = vrot.lane.b32.xlu1 %v11633_v38, %s11364_s19  ;;  %v2401_v2 = vpop.f32.mrf.mxu3  ;;  %v2386_v10 = vpop.f32.mrf.mxu2 }
 0x39f   :  { %v13373_v49 = vadd.f32 %v2401_v2, %v13173_v21  ;;  %v13376_v25 = vadd.f32 %v2386_v10, %v13167_v13  ;;  %v3138_v21 = vsel %vm542_vm3, %v3101_v26, 0  ;;  %v3102_v13 = vsel %vm3085_vm12, %v3082_v8, %v3084_v41  ;;  %v13403_v8 = vld [vmem:[%s18140_s2 + $0x6c] sm:$0xff] }
 0x3a0   :  { %v2555_v33 = vpop.f32.mrf.mxu0  ;;  %v3103_v26 = vsel %vm3085_vm12, %v3084_v41, %v3066_v5 }
 0x3a1   :  { %v13380_v18 = vadd.f32 %v2555_v33, %v13170_v27  ;;  %v3092_v33 = vsel %vm3085_vm12, %v3060_v35, %v3062_v53  ;;  %v3144_v41 = vsel %vm542_vm3, %v3103_v26, 0  ;;  %v3093_v35 = vsel %vm3085_vm12, %v3062_v53, %v3064_v11 }
 0x3a3   :  { %10194 = vmatmul.msk.bf16.gmra.mxu3 %vm535_vm4, %v13256_v22  ;;  %10195 = vmatmul.msk.bf16.vlgmr.msra.gmra.mxu0 %vm535_vm4, %v13204_v61 }
 0x3a4   :  { %3260 = vmatpush.bf16.msra.mxu0 %v3138_v21  ;;  %4863 = vrot.lane.b32.xlu0 %v11655_v1, %s11364_s19  ;;  %v2573_v52 = vpop.f32.mrf.mxu1 }
 0x3a5   :  { %5169 = vrot.lane.b32.xlu2 %v11602_v46, %s11365_s21  ;;  %v13395_v27 = vadd.f32 %v2573_v52, %v13194_v16  ;;  %v3141_v16 = vsel %vm542_vm3, %v3102_v13, 0  ;;  %v3370_v52 = vpop.permute.xlu1 %3369 }
 0x3a6   :  { %4881 = vrot.lane.b32.xlu1 %v11643_v50, %s11364_s19  ;;  %v2404_v30 = vpop.f32.mrf.mxu3  ;;  %v2388_v2 = vpop.f32.mrf.mxu2 }
 0x3a7   :  { %v13398_v10 = vadd.f32 %v2404_v30, %v13190_v3  ;;  %10197 = vmatmul.msk.bf16.vlgmr.msra.gmra.mxu1 %vm535_vm4, %v13204_v61  ;;  %v13413_v30 = vpop.permute.xlu2 %3371  ;;  %v13419_v61 = vpop.permute.xlu0 %3373 }
 0x3a8   :  { %3261 = vmatpush.bf16.msra.mxu0 %v3092_v33  ;;  %v2557_v21 = vpop.f32.mrf.mxu0  ;;  %3278 = vmatpush.bf16.msra.mxu1 %v3141_v16  ;;  %v3094_v33 = vsel %vm3085_vm12, %v3064_v11, %v3066_v5  ;;  %v3395_v16 = vsel %vm3385_vm13, %v3368_v43, %v3370_v52 }
 0x3a9   :  { %v13411_v3 = vadd.f32 %v2557_v21, %v13187_v59  ;;  %v10201_v21 = vld [vmem:[%s18140_s2 + $0x74] sm:$0x3] }
 0x3ab   :  { %10206 = vmatmul.msk.bf16.vlgmr.msra.gmra.mxu2 %vm535_vm4, %v13403_v8 }
 0x3ac   :  { %3296 = vmatpush.bf16.msra.mxu2 %v3144_v41  ;;  %5149 = vrot.lane.b32.xlu0 %v11592_v28, %s11365_s21  ;;  %v2575_v13 = vpop.f32.mrf.mxu1 }
 0x3ad   :  { %3279 = vmatpush.bf16.msra.mxu1 %v3093_v35  ;;  %5147 = vrot.lane.b32.xlu2 %v11588_v17, %s11365_s21  ;;  %v13428_v59 = vadd.f32 %v2575_v13, %v13225_v19  ;;  %v3420_v19 = vsel %vm542_vm3, %v3395_v16, 0  ;;  %v3348_v13 = vpop.permute.xlu1 %3347 }
 0x3ae   :  { %5167 = vrot.lane.b32.xlu1 %v11594_v29, %s11365_s21  ;;  %v2406_v2 = vpop.f32.mrf.mxu3  ;;  %v2591_v26 = vpop.f32.mrf.mxu2 }
 0x3af   :  { %v13431_v53 = vadd.f32 %v2591_v26, %v13214_v58  ;;  %v3044_v58 = vunpack.c.l.b16 %v10201_v21  ;;  %v3350_v11 = vpop.permute.xlu2 %3349  ;;  %v3352_v26 = vpop.permute.xlu0 %3351 }
 0x3b0   :  { %3297 = vmatpush.bf16.msra.mxu2 %v3094_v33  ;;  %v2560_v41 = vpop.f32.mrf.mxu0  ;;  %v3386_v21 = vsel %vm3385_vm13, %v3348_v13, %v3350_v11 }
 0x3b1   :  { %v13439_v35 = vadd.f32 %v2560_v41, %v13217_v24  ;;  %v13462_v41 = vpack.c.b16 %v3044_v58, %v3044_v58 }
 0x3b3   :  { %10208 = vmatmul.msk.bf16.vlgmr.msra.gmra.mxu3 %vm535_vm4, %v13403_v8  ;;  %10196 = vmatmul.msk.bf16.gmra.mxu0 %vm535_vm4, %v13256_v22 }
 0x3b4   :  { %3452 = vmatpush.bf16.msra.mxu3 %v3420_v19  ;;  %5173 = vrot.lane.b32.xlu0 %v11608_v54, %s11365_s21  ;;  %v2578_v5 = vpop.f32.mrf.mxu1 }
 0x3b5   :  { %5151 = vrot.lane.b32.xlu2 %v11610_v55, %s11365_s21  ;;  %v13453_v24 = vadd.f32 %v2578_v5, %v13249_v20  ;;  %v3354_v5 = vpop.permute.xlu1 %3353 }
 0x3b6   :  { %4865 = vrot.lane.b32.xlu1 %v18171_v60, %s11364_s19  ;;  %v2609_v43 = vpop.f32.mrf.mxu3  ;;  %v2593_v2 = vpop.f32.mrf.mxu2 }
 0x3b7   :  { %v13456_v33 = vadd.f32 %v2609_v43, %v13244_v57  ;;  %v13459_v16 = vadd.f32 %v2593_v2, %v13241_v42  ;;  %10198 = vmatmul.msk.bf16.gmra.mxu1 %vm535_vm4, %v13256_v22  ;;  %v3376_v58 = vpop.permute.xlu2 %3375  ;;  %v3396_v43 = vsel %vm3385_vm13, %v3370_v52, %v13413_v30  ;;  %v3356_v2 = vpop.permute.xlu0 %3355 }
 0x3b8   :  { %3453 = vmatpush.bf16.msra.mxu3 %v3386_v21  ;;  %v2562_v19 = vpop.f32.mrf.mxu0 }
 0x3bb   :  { %10207 = vmatmul.msk.bf16.gmra.mxu2 %vm535_vm4, %v13462_v41 }
 0x3bc   :  { %5153 = vrot.lane.b32.xlu0 %v11619_v63, %s11365_s21  ;;  %v2580_v57 = vpop.f32.mrf.mxu1 }
 0x3bd   :  { %5177 = vrot.lane.b32.xlu2 %v11625_v15, %s11365_s21 }
 0x3be   :  { %5171 = vrot.lane.b32.xlu1 %v11600_v45, %s11365_s21  ;;  %v2611_v42 = vpop.f32.mrf.mxu3  ;;  %v2596_v20 = vpop.f32.mrf.mxu2 }
 0x3bf   :  { %v13475_v13 = vadd.f32 %v2611_v42, %v13271_v44  ;;  %v13478_v22 = vadd.f32 %v2596_v20, %v13265_v9  ;;  %v3423_v44 = vsel %vm542_vm3, %v3396_v43, 0  ;;  %v3397_v9 = vsel %vm3385_vm13, %v13413_v30, %v13419_v61 }
 0x3c0   :  { %v2627_v21 = vpop.f32.mrf.mxu0  ;;  %v3398_v30 = vsel %vm3385_vm13, %v13419_v61, %v3376_v58  ;;  %v3387_v43 = vsel %vm3385_vm13, %v3350_v11, %v3352_v26  ;;  %v3388_v11 = vsel %vm3385_vm13, %v3352_v26, %v3354_v5  ;;  %v3389_v26 = vsel %vm3385_vm13, %v3354_v5, %v3356_v2 }
 0x3c1   :  { %v13483_v19 = vadd.f32 %v2627_v21, %v13268_v12  ;;  %v3426_v21 = vsel %vm542_vm3, %v3397_v9, 0  ;;  %v3429_v61 = vsel %vm542_vm3, %v3398_v30, 0 }
 0x3c3   :  { %10209 = vmatmul.msk.bf16.gmra.mxu3 %vm535_vm4, %v13462_v41  ;;  %10210 = vmatmul.msk.bf16.vlgmr.msrb.gmra.mxu0 %vm535_vm4, %v13403_v8 }
 0x3c4   :  { %3470 = vmatpush.bf16.msrb.mxu0 %v3423_v44  ;;  %5179 = vrot.lane.b32.xlu0 %v11631_v36, %s11365_s21  ;;  %v2645_v52 = vpop.f32.mrf.mxu1  ;;  %v13511_v44 = vpop.permute.xlu2 %3379 }
 0x3c5   :  { %5157 = vrot.lane.b32.xlu2 %v11635_v39, %s11365_s21  ;;  %v13500_v12 = vadd.f32 %v2645_v52, %v13292_v40  ;;  %v3378_v52 = vpop.permute.xlu1 %3377 }
 0x3c6   :  { %5175 = vrot.lane.b32.xlu1 %v11623_v14, %s11365_s21  ;;  %v2614_v57 = vpop.f32.mrf.mxu3  ;;  %v2598_v42 = vpop.f32.mrf.mxu2 }
 0x3c7   :  { %v13503_v20 = vadd.f32 %v2614_v57, %v13288_v56  ;;  %10212 = vmatmul.msk.bf16.vlgmr.msrb.gmra.mxu1 %vm535_vm4, %v13403_v8  ;;  %v13516_v56 = vpop.permute.xlu0 %3381 }
 0x3c8   :  { %3471 = vmatpush.bf16.msrb.mxu0 %v3387_v43  ;;  %v2629_v40 = vpop.f32.mrf.mxu0  ;;  %3488 = vmatpush.bf16.msrb.mxu1 %v3426_v21  ;;  %v3399_v21 = vsel %vm3385_vm13, %v3376_v58, %v3378_v52 }
 0x3c9   :  { %v13514_v42 = vadd.f32 %v2629_v40, %v13285_v23 }
 0x3cb   :  { %10214 = vmatmul.msk.bf16.vlgmr.msrb.gmra.mxu2 %vm535_vm4, %v13403_v8 }
 0x3cc   :  { %3506 = vmatpush.bf16.msrb.mxu2 %v3429_v61  ;;  %5165 = vrot.lane.b32.xlu0 %v18171_v60, %s11365_s21  ;;  %v2647_v9 = vpop.f32.mrf.mxu1 }
 0x3cd   :  { %3489 = vmatpush.bf16.msrb.mxu1 %v3388_v11  ;;  %5181 = vrot.lane.b32.xlu2 %v11643_v50, %s11365_s21  ;;  %v13529_v23 = vadd.f32 %v2647_v9, %v13318_v37  ;;  %v13539_v11 = vpop.permute.xlu2 %3359  ;;  %v3432_v37 = vsel %vm542_vm3, %v3399_v21, 0  ;;  %v3358_v9 = vpop.permute.xlu1 %3357 }
 0x3ce   :  { %5155 = vrot.lane.b32.xlu1 %v11633_v38, %s11365_s21  ;;  %v2616_v57 = vpop.f32.mrf.mxu3  ;;  %v2663_v43 = vpop.f32.mrf.mxu2  ;;  %v3390_v21 = vsel %vm3385_vm13, %v3356_v2, %v3358_v9 }
 0x3cf   :  { %v13532_v30 = vadd.f32 %v2663_v43, %v13307_v47  ;;  %v13546_v47 = vpop.permute.xlu0 %3361 }
 0x3d0   :  { %3507 = vmatpush.bf16.msrb.mxu2 %v3389_v26  ;;  %v2632_v40 = vpop.f32.mrf.mxu0 }
 0x3d1   :  { %v13537_v61 = vadd.f32 %v2632_v40, %v13310_v4 }
 0x3d3   :  { %10216 = vmatmul.msk.bf16.vlgmr.msrb.gmra.mxu3 %vm535_vm4, %v13403_v8  ;;  %10211 = vmatmul.msk.bf16.gmra.mxu0 %vm535_vm4, %v13462_v41 }
 0x3d4   :  { %3524 = vmatpush.bf16.msrb.mxu3 %v3432_v37  ;;  %5163 = vrot.lane.b32.xlu0 %v11655_v1, %s11365_s21  ;;  %v2650_v58 = vpop.f32.mrf.mxu1 }
 0x3d5   :  { %5161 = vrot.lane.b32.xlu2 %v11653_v0, %s11365_s21  ;;  %v13555_v4 = vadd.f32 %v2650_v58, %v13339_v48  ;;  %v13568_v48 = vpop.permute.xlu2 %3363 }
 0x3d6   :  { %5159 = vrot.lane.b32.xlu1 %v11645_v51, %s11365_s21  ;;  %v2681_v5 = vpop.f32.mrf.mxu3  ;;  %v2665_v57 = vpop.f32.mrf.mxu2 }
 0x3d7   :  { %v13558_v43 = vadd.f32 %v2681_v5, %v13334_v34  ;;  %v13561_v26 = vadd.f32 %v2665_v57, %v13331_v32  ;;  %10213 = vmatmul.msk.bf16.gmra.mxu1 %vm535_vm4, %v13462_v41  ;;  %v13576_v37 = vpop.permute.xlu0 %3365  ;;  %v3400_v57 = vsel %vm3385_vm13, %v3378_v52, %v13511_v44 }
 0x3d8   :  { %3525 = vmatpush.bf16.msrb.mxu3 %v3390_v21  ;;  %v2634_v40 = vpop.f32.mrf.mxu0 }
 0x3db   :  { %10215 = vmatmul.msk.bf16.gmra.mxu2 %vm535_vm4, %v13462_v41 }
 0x3dc   :  { %5447 = vrot.lane.b32.xlu0 %v11588_v17, %s11366_s27  ;;  %v2652_v34 = vpop.f32.mrf.mxu1 }
 0x3dd   :  { %5469 = vrot.lane.b32.xlu2 %v11602_v46, %s11366_s27  ;;  %v3435_v34 = vsel %vm542_vm3, %v3400_v57, 0  ;;  %v13606_v57 = vpop.permute.xlu2 %3671 }
 0x3de   :  { %5183 = vrot.lane.b32.xlu1 %v11661_v6, %s11365_s21  ;;  %v2683_v32 = vpop.f32.mrf.mxu3  ;;  %v2668_v2 = vpop.f32.mrf.mxu2 }
 0x3df   :  { %v13579_v58 = vadd.f32 %v2683_v32, %v13359_v62  ;;  %v13582_v5 = vadd.f32 %v2668_v2, %v13353_v31  ;;  %v3401_v31 = vsel %vm3385_vm13, %v13511_v44, %v13516_v56  ;;  %v3384_v62 = vpop.permute.xlu1 %3383 }
 0x3e0   :  { %v2699_v21 = vpop.f32.mrf.mxu0 }
 0x3e1   :  { %18196 = vst [vmem:[#allocation8_spill] sm:$0xff] %v13579_v58  ;;  %v13587_v40 = vadd.f32 %v2699_v21, %v13356_v7  ;;  %v3402_v21 = vsel %vm3385_vm13, %v13516_v56, %v3384_v62  ;;  %v3438_v58 = vsel %vm542_vm3, %v3401_v31, 0  ;;  %v3392_v56 = vsel %vm3385_vm13, %v13539_v11, %v13546_v47 }
 0x3e3   :  { %10217 = vmatmul.msk.bf16.gmra.mxu3 %vm535_vm4, %v13462_v41  ;;  %10218 = vmatmul.msk.bf16.vlgmr.msra.gmra.mxu0 %vm535_vm4, %v13403_v8 }
 0x3e4   :  { %3542 = vmatpush.bf16.msra.mxu0 %v3435_v34  ;;  %5473 = vrot.lane.b32.xlu0 %v11608_v54, %s11366_s27  ;;  %v2855_v52 = vpop.f32.mrf.mxu1  ;;  %v3391_v34 = vsel %vm3385_vm13, %v3358_v9, %v13539_v11  ;;  %v3393_v11 = vsel %vm3385_vm13, %v13546_v47, %v13568_v48 }
 0x3e5   :  { %5471 = vrot.lane.b32.xlu2 %v11600_v45, %s11366_s27  ;;  %v13604_v7 = vadd.f32 %v2855_v52, %v13380_v18  ;;  %v3668_v18 = vpop.permute.xlu0 %3667 }
 0x3e6   :  { %5467 = vrot.lane.b32.xlu1 %v11594_v29, %s11366_s27  ;;  %v2686_v32 = vpop.f32.mrf.mxu3  ;;  %v2670_v2 = vpop.f32.mrf.mxu2 }
 0x3e7   :  { %v13609_v44 = vadd.f32 %v2686_v32, %v13376_v25  ;;  %10220 = vmatmul.msk.bf16.vlgmr.msra.gmra.mxu1 %vm535_vm4, %v13403_v8  ;;  %v3441_v25 = vsel %vm542_vm3, %v3402_v21, 0  ;;  %v3670_v31 = vpop.permute.xlu1 %3669  ;;  %v13645_v21 = vld [vmem:[%s18140_s2 + $0x78] sm:$0xff] }
 0x3e8   :  { %3543 = vmatpush.bf16.msra.mxu0 %v3391_v34  ;;  %v2701_v52 = vpop.f32.mrf.mxu0  ;;  %3560 = vmatpush.bf16.msra.mxu1 %v3438_v58  ;;  %v3403_v34 = vsel %vm3385_vm13, %v3384_v62, %v13576_v37 }
 0x3e9   :  { %v13619_v2 = vadd.f32 %v2701_v52, %v13373_v49  ;;  %v3444_v47 = vsel %vm542_vm3, %v3403_v34, 0 }
 0x3eb   :  { %10222 = vmatmul.msk.bf16.vlgmr.msra.gmra.mxu2 %vm535_vm4, %v13403_v8 }
 0x3ec   :  { %3578 = vmatpush.bf16.msra.mxu2 %v3441_v25  ;;  %5453 = vrot.lane.b32.xlu0 %v11619_v63, %s11366_s27  ;;  %v2857_v9 = vpop.f32.mrf.mxu1 }
 0x3ed   :  { %3561 = vmatpush.bf16.msra.mxu1 %v3392_v56  ;;  %5451 = vrot.lane.b32.xlu2 %v11610_v55, %s11366_s27  ;;  %v13634_v49 = vadd.f32 %v2857_v9, %v13411_v3  ;;  %v13649_v3 = vpop.permute.xlu2 %3651 }
 0x3ee   :  { %5449 = vrot.lane.b32.xlu1 %v11592_v28, %s11366_s27  ;;  %v2688_v8 = vpop.f32.mrf.mxu3  ;;  %v2873_v58 = vpop.f32.mrf.mxu2 }
 0x3ef   :  { %v13637_v32 = vadd.f32 %v2873_v58, %v13395_v27  ;;  %v3648_v27 = vpop.permute.xlu0 %3647  ;;  %v3650_v34 = vpop.permute.xlu1 %3649 }
 0x3f0   :  { %3579 = vmatpush.bf16.msra.mxu2 %v3393_v11  ;;  %v2704_v52 = vpop.f32.mrf.mxu0  ;;  %v3394_v11 = vsel %vm3385_vm13, %v13568_v48, %v13576_v37 }
 0x3f1   :  { %v13652_v25 = vadd.f32 %v2704_v52, %v13398_v10 }
 0x3f3   :  { %10231 = vmatmul.msk.bf16.vlgmr.msra.gmra.mxu3 %vm535_vm4, %v13645_v21  ;;  %10219 = vmatmul.msk.bf16.gmra.mxu0 %vm535_vm4, %v13462_v41 }
 0x3f4   :  { %3596 = vmatpush.bf16.msra.mxu3 %v3444_v47  ;;  %5457 = vrot.lane.b32.xlu0 %v11635_v39, %s11366_s27  ;;  %v2860_v62 = vpop.f32.mrf.mxu1 }
 0x3f5   :  { %5477 = vrot.lane.b32.xlu2 %v11625_v15, %s11366_s27  ;;  %v13666_v10 = vadd.f32 %v2860_v62, %v13439_v35  ;;  %v10226_v35 = vld [vmem:[%s18140_s2 + $0x80] sm:$0x3]  ;;  %v13682_v47 = vpop.permute.xlu2 %3653 }
 0x3f6   :  { %5475 = vrot.lane.b32.xlu1 %v11623_v14, %s11366_s27  ;;  %v2891_v56 = vpop.f32.mrf.mxu3  ;;  %v2875_v9 = vpop.f32.mrf.mxu2 }
 0x3f7   :  { %v13669_v8 = vadd.f32 %v2891_v56, %v13431_v53  ;;  %v13672_v58 = vadd.f32 %v2875_v9, %v13428_v59  ;;  %10221 = vmatmul.msk.bf16.gmra.mxu1 %vm535_vm4, %v13462_v41  ;;  %v3344_v59 = vunpack.c.l.b16 %v10226_v35  ;;  %v13686_v53 = vpop.permute.xlu0 %3675 }
 0x3f8   :  { %3597 = vmatpush.bf16.msra.mxu3 %v3394_v11  ;;  %v2706_v52 = vpop.f32.mrf.mxu0  ;;  %v3695_v11 = vsel %vm3685_vm14, %v3668_v18, %v3670_v31 }
 0x3f9   :  { %v13700_v9 = vpack.c.b16 %v3344_v59, %v3344_v59  ;;  %v3696_v59 = vsel %vm3685_vm14, %v3670_v31, %v13606_v57 }
 0x3fb   :  { %10223 = vmatmul.msk.bf16.gmra.mxu2 %vm535_vm4, %v13462_v41 }
 0x3fc   :  { %5483 = vrot.lane.b32.xlu0 %v11661_v6, %s11366_s27  ;;  %v2862_v48 = vpop.f32.mrf.mxu1 }
 0x3fd   :  { %5481 = vrot.lane.b32.xlu2 %v11643_v50, %s11366_s27  ;;  %v3674_v48 = vpop.permute.xlu1 %3673 }
 0x3fe   :  { %5455 = vrot.lane.b32.xlu1 %v11633_v38, %s11366_s27  ;;  %v2893_v37 = vpop.f32.mrf.mxu3  ;;  %v2878_v62 = vpop.f32.mrf.mxu2 }
 0x3ff   :  { %v13695_v56 = vadd.f32 %v2893_v37, %v13459_v16  ;;  %v13698_v41 = vadd.f32 %v2878_v62, %v13453_v24  ;;  %v3720_v16 = vsel %vm542_vm3, %v3695_v11, 0  ;;  %v13711_v24 = vpop.permute.xlu2 %3679  ;;  %v13724_v11 = vpop.permute.xlu0 %3655 }
 0x400   :  { %v2909_v35 = vpop.f32.mrf.mxu0 }
 0x401   :  { %18197 = vst [vmem:[#allocation18_spill] sm:$0xff] %v13695_v56  ;;  %v13704_v52 = vadd.f32 %v2909_v35, %v13456_v33  ;;  %v3697_v35 = vsel %vm3685_vm14, %v13606_v57, %v3674_v48  ;;  %v3723_v56 = vsel %vm542_vm3, %v3696_v59, 0  ;;  %v3687_v57 = vsel %vm3685_vm14, %v3650_v34, %v13649_v3 }
 0x403   :  { %10232 = vmatmul.msk.bf16.gmra.mxu3 %vm535_vm4, %v13700_v9  ;;  %10233 = vmatmul.msk.bf16.vlgmr.msrb.gmra.mxu0 %vm535_vm4, %v13645_v21 }
 0x404   :  { %3752 = vmatpush.bf16.msrb.mxu0 %v3720_v16  ;;  %5463 = vrot.lane.b32.xlu0 %v11655_v1, %s11366_s27  ;;  %v2927_v33 = vpop.f32.mrf.mxu1  ;;  %v3686_v16 = vsel %vm3685_vm14, %v3648_v27, %v3650_v34 }
 0x405   :  { %5461 = vrot.lane.b32.xlu2 %v11653_v0, %s11366_s27  ;;  %v13722_v18 = vadd.f32 %v2927_v33, %v13483_v19  ;;  %v3678_v27 = vpop.permute.xlu1 %3677 }
 0x406   :  { %5479 = vrot.lane.b32.xlu1 %v11631_v36, %s11366_s27  ;;  %v2896_v37 = vpop.f32.mrf.mxu3  ;;  %v2880_v62 = vpop.f32.mrf.mxu2 }
 0x407   :  { %v13727_v31 = vadd.f32 %v2896_v37, %v13478_v22  ;;  %10235 = vmatmul.msk.bf16.vlgmr.msrb.gmra.mxu1 %vm535_vm4, %v13645_v21  ;;  %v3726_v22 = vsel %vm542_vm3, %v3697_v35, 0  ;;  %v13752_v62 = vpop.permute.xlu2 %3659  ;;  %v3688_v35 = vsel %vm3685_vm14, %v13649_v3, %v13682_v47 }
 0x408   :  { %3753 = vmatpush.bf16.msrb.mxu0 %v3686_v16  ;;  %v2911_v19 = vpop.f32.mrf.mxu0  ;;  %3770 = vmatpush.bf16.msrb.mxu1 %v3723_v56  ;;  %v3698_v16 = vsel %vm3685_vm14, %v3674_v48, %v13686_v53 }
 0x409   :  { %v13736_v33 = vadd.f32 %v2911_v19, %v13475_v13  ;;  %v13762_v19 = vpop.permute.xlu0 %3681 }
 0x40b   :  { %10237 = vmatmul.msk.bf16.vlgmr.msrb.gmra.mxu2 %vm535_vm4, %v13645_v21 }
 0x40c   :  { %3788 = vmatpush.bf16.msrb.mxu2 %v3726_v22  ;;  %5769 = vrot.lane.b32.xlu0 %v11602_v46, %s11367_s1  ;;  %v2929_v59 = vpop.f32.mrf.mxu1 }
 0x40d   :  { %3771 = vmatpush.bf16.msrb.mxu1 %v3687_v57  ;;  %5767 = vrot.lane.b32.xlu2 %v11594_v29, %s11367_s1  ;;  %v13750_v13 = vadd.f32 %v2929_v59, %v13514_v42  ;;  %v3658_v59 = vpop.permute.xlu1 %3657 }
 0x40e   :  { %5459 = vrot.lane.b32.xlu1 %v11645_v51, %s11366_s27  ;;  %v2898_v56 = vpop.f32.mrf.mxu3  ;;  %v2945_v37 = vpop.f32.mrf.mxu2 }
 0x40f   :  { %v13755_v34 = vadd.f32 %v2945_v37, %v13500_v12  ;;  %v3729_v12 = vsel %vm542_vm3, %v3698_v16, 0  ;;  %v13792_v16 = vpop.permute.xlu2 %3683 }
 0x410   :  { %3789 = vmatpush.bf16.msrb.mxu2 %v3688_v35  ;;  %v2914_v22 = vpop.f32.mrf.mxu0  ;;  %v3689_v35 = vsel %vm3685_vm14, %v13682_v47, %v13724_v11 }
 0x411   :  { %v13765_v42 = vadd.f32 %v2914_v22, %v13503_v20  ;;  %v13794_v22 = vpop.permute.xlu0 %3967 }
 0x413   :  { %10239 = vmatmul.msk.bf16.vlgmr.msrb.gmra.mxu3 %vm535_vm4, %v13645_v21  ;;  %10234 = vmatmul.msk.bf16.gmra.mxu0 %vm535_vm4, %v13700_v9 }
 0x414   :  { %3806 = vmatpush.bf16.msrb.mxu3 %v3729_v12  ;;  %5747 = vrot.lane.b32.xlu0 %v11588_v17, %s11367_s1  ;;  %v2932_v3 = vpop.f32.mrf.mxu1 }
 0x415   :  { %5773 = vrot.lane.b32.xlu2 %v11608_v54, %s11367_s1  ;;  %v13779_v20 = vadd.f32 %v2932_v3, %v13537_v61 }
 0x416   :  { %5465 = vrot.lane.b32.xlu1 %v18171_v60, %s11366_s27  ;;  %v2963_v48 = vpop.f32.mrf.mxu3  ;;  %v2947_v57 = vpop.f32.mrf.mxu2 }
 0x417   :  { %v13782_v56 = vadd.f32 %v2963_v48, %v13532_v30  ;;  %v13785_v37 = vadd.f32 %v2947_v57, %v13529_v23  ;;  %10236 = vmatmul.msk.bf16.gmra.mxu1 %vm535_vm4, %v13700_v9  ;;  %v3699_v48 = vsel %vm3685_vm14, %v13686_v53, %v3678_v27  ;;  %v13812_v57 = vpop.permute.xlu1 %3661 }
 0x418   :  { %3807 = vmatpush.bf16.msrb.mxu3 %v3689_v35  ;;  %v2916_v61 = vpop.f32.mrf.mxu0 }
 0x419   :  { %v13826_v53 = vpop.permute.xlu0 %3665 }
 0x41b   :  { %10238 = vmatmul.msk.bf16.gmra.mxu2 %vm535_vm4, %v13700_v9 }
 0x41c   :  { %5753 = vrot.lane.b32.xlu0 %v11619_v63, %s11367_s1  ;;  %v2934_v23 = vpop.f32.mrf.mxu1 }
 0x41d   :  { %5751 = vrot.lane.b32.xlu2 %v11610_v55, %s11367_s1  ;;  %v13817_v23 = vpop.permute.xlu2 %3663 }
 0x41e   :  { %5771 = vrot.lane.b32.xlu1 %v11600_v45, %s11367_s1  ;;  %v2965_v30 = vpop.f32.mrf.mxu3  ;;  %v2950_v47 = vpop.f32.mrf.mxu2 }
 0x41f   :  { %v13805_v12 = vadd.f32 %v2965_v30, %v13561_v26  ;;  %v13808_v3 = vadd.f32 %v2950_v47, %v13555_v4  ;;  %v3732_v4 = vsel %vm542_vm3, %v3699_v48, 0  ;;  %v3700_v26 = vsel %vm3685_vm14, %v3678_v27, %v13711_v24 }
 0x420   :  { %v2981_v35 = vpop.f32.mrf.mxu0 }
 0x421   :  { %18198 = vst [vmem:[#allocation11_spill] sm:$0xff] %v13805_v12  ;;  %v13815_v61 = vadd.f32 %v2981_v35, %v13558_v43  ;;  %v3701_v35 = vsel %vm3685_vm14, %v13711_v24, %v13762_v19  ;;  %v3735_v12 = vsel %vm542_vm3, %v3700_v26, 0 }
 0x422   :  { %v3738_v24 = vsel %vm542_vm3, %v3701_v35, 0 }
 0x423   :  { %10240 = vmatmul.msk.bf16.gmra.mxu3 %vm535_vm4, %v13700_v9  ;;  %10241 = vmatmul.msk.bf16.vlgmr.msra.gmra.mxu0 %vm535_vm4, %v13645_v21 }
 0x424   :  { %3824 = vmatpush.bf16.msra.mxu0 %v3732_v4  ;;  %5777 = vrot.lane.b32.xlu0 %v11625_v15, %s11367_s1  ;;  %v2999_v43 = vpop.f32.mrf.mxu1  ;;  %v3690_v4 = vsel %vm3685_vm14, %v13724_v11, %v3658_v59  ;;  %v3691_v11 = vsel %vm3685_vm14, %v3658_v59, %v13752_v62 }
 0x425   :  { %5755 = vrot.lane.b32.xlu2 %v11633_v38, %s11367_s1  ;;  %v13835_v30 = vadd.f32 %v2999_v43, %v13587_v40  ;;  %v18199_v43 = vld [vmem:[#allocation8_spill] sm:$0xff] }
 0x426   :  { %5749 = vrot.lane.b32.xlu1 %v11592_v28, %s11367_s1  ;;  %v2968_v47 = vpop.f32.mrf.mxu3  ;;  %v2952_v48 = vpop.f32.mrf.mxu2 }
 0x427   :  { %v13838_v27 = vadd.f32 %v2968_v47, %v13582_v5  ;;  %10243 = vmatmul.msk.bf16.vlgmr.msra.gmra.mxu1 %vm535_vm4, %v13645_v21  ;;  %v13851_v5 = vpop.permute.xlu1 %3969  ;;  %v13858_v47 = vpop.permute.xlu2 %3949 }
 0x428   :  { %3825 = vmatpush.bf16.msra.mxu0 %v3690_v4  ;;  %v2983_v40 = vpop.f32.mrf.mxu0  ;;  %3842 = vmatpush.bf16.msra.mxu1 %v3735_v12 }
 0x429   :  { %v13849_v48 = vadd.f32 %v2983_v40, %v18199_v43  ;;  %v13869_v40 = vpop.permute.xlu0 %3971  ;;  %v3692_v43 = vsel %vm3685_vm14, %v13752_v62, %v13812_v57 }
 0x42b   :  { %10245 = vmatmul.msk.bf16.vlgmr.msra.gmra.mxu2 %vm535_vm4, %v13645_v21 }
 0x42c   :  { %3860 = vmatpush.bf16.msra.mxu2 %v3738_v24  ;;  %5757 = vrot.lane.b32.xlu0 %v11635_v39, %s11367_s1  ;;  %v3001_v12 = vpop.f32.mrf.mxu1  ;;  %v3702_v24 = vsel %vm3685_vm14, %v13762_v19, %v13792_v16 }
 0x42d   :  { %3843 = vmatpush.bf16.msra.mxu1 %v3691_v11  ;;  %5781 = vrot.lane.b32.xlu2 %v11643_v50, %s11367_s1  ;;  %v13867_v26 = vadd.f32 %v3001_v12, %v13619_v2  ;;  %v3741_v12 = vsel %vm542_vm3, %v3702_v24, 0  ;;  %v3693_v24 = vsel %vm3685_vm14, %v13812_v57, %v13817_v23 }
 0x42e   :  { %5775 = vrot.lane.b32.xlu1 %v11623_v14, %s11367_s1  ;;  %v2970_v35 = vpop.f32.mrf.mxu3  ;;  %v3155_v4 = vpop.f32.mrf.mxu2 }
 0x42f   :  { %v13872_v59 = vadd.f32 %v3155_v4, %v13604_v7  ;;  %v3948_v7 = vpop.permute.xlu1 %3947  ;;  %v13897_v35 = vpop.permute.xlu2 %3973 }
 0x430   :  { %3861 = vmatpush.bf16.msra.mxu2 %v3692_v43  ;;  %v2986_v11 = vpop.f32.mrf.mxu0 }
 0x431   :  { %v13881_v2 = vadd.f32 %v2986_v11, %v13609_v44 }
 0x433   :  { %10247 = vmatmul.msk.bf16.vlgmr.msra.gmra.mxu3 %vm535_vm4, %v13645_v21  ;;  %10242 = vmatmul.msk.bf16.gmra.mxu0 %vm535_vm4, %v13700_v9 }
 0x434   :  { %3878 = vmatpush.bf16.msra.mxu3 %v3741_v12  ;;  %5783 = vrot.lane.b32.xlu0 %v11661_v6, %s11367_s1  ;;  %v3004_v62 = vpop.f32.mrf.mxu1 }
 0x435   :  { %5761 = vrot.lane.b32.xlu2 %v11653_v0, %s11367_s1  ;;  %v13895_v44 = vadd.f32 %v3004_v62, %v13652_v25  ;;  %v13910_v25 = vpop.permute.xlu0 %3975 }
 0x436   :  { %5779 = vrot.lane.b32.xlu1 %v11631_v36, %s11367_s1  ;;  %v3173_v21 = vpop.f32.mrf.mxu3  ;;  %v3157_v19 = vpop.f32.mrf.mxu2 }
 0x437   :  { %v13900_v4 = vadd.f32 %v3173_v21, %v13637_v32  ;;  %v13903_v43 = vadd.f32 %v3157_v19, %v13634_v49  ;;  %10244 = vmatmul.msk.bf16.gmra.mxu1 %vm535_vm4, %v13700_v9  ;;  %v13920_v12 = vpop.permute.xlu1 %3951  ;;  %v13931_v19 = vld [vmem:[%s18140_s2 + $0x84] sm:$0xff] }
 0x438   :  { %3879 = vmatpush.bf16.msra.mxu3 %v3693_v24  ;;  %v2988_v11 = vpop.f32.mrf.mxu0  ;;  %v3703_v24 = vsel %vm3685_vm14, %v13792_v16, %v13826_v53  ;;  %v3995_v16 = vsel %vm3985_vm15, %v13794_v22, %v13851_v5  ;;  %v3996_v22 = vsel %vm3985_vm15, %v13851_v5, %v13869_v40 }
 0x439   :  { %18200 = vst [vmem:[#allocation21_spill] sm:$0xff] %v13900_v4  ;;  %v13936_v11 = vpop.permute.xlu2 %3953 }
 0x43b   :  { %10246 = vmatmul.msk.bf16.gmra.mxu2 %vm535_vm4, %v13700_v9 }
 0x43c   :  { %6069 = vrot.lane.b32.xlu0 %v11602_v46, %s11368_s10  ;;  %v3006_v49 = vpop.f32.mrf.mxu1 }
 0x43d   :  { %5765 = vrot.lane.b32.xlu2 %v18171_v60, %s11367_s1 }
 0x43e   :  { %5759 = vrot.lane.b32.xlu1 %v11645_v51, %s11367_s1  ;;  %v3175_v32 = vpop.f32.mrf.mxu3  ;;  %v3160_v57 = vpop.f32.mrf.mxu2 }
 0x43f   :  { %v13923_v62 = vadd.f32 %v3175_v32, %v13672_v58  ;;  %v13926_v21 = vadd.f32 %v3160_v57, %v13666_v10  ;;  %v13941_v58 = vpop.permute.xlu0 %3955  ;;  %v3744_v10 = vsel %vm542_vm3, %v3703_v24, 0 }
 0x440   :  { %v3191_v49 = vpop.f32.mrf.mxu0 }
 0x441   :  { %v13939_v4 = vadd.f32 %v3191_v49, %v13669_v8  ;;  %v3694_v49 = vsel %vm3685_vm14, %v13817_v23, %v13826_v53  ;;  %v4023_v23 = vsel %vm542_vm3, %v3996_v22, 0  ;;  %v3986_v53 = vsel %vm3985_vm15, %v3948_v7, %v13858_v47 }
 0x442   :  { %vm6685_vm14 = vcmask 252928  }
 0x443   :  { %10248 = vmatmul.msk.bf16.gmra.mxu3 %vm535_vm4, %v13700_v9  ;;  %10256 = vmatmul.msk.bf16.vlgmr.msrb.gmra.mxu0 %vm535_vm4, %v13931_v19 }
 0x444   :  { %3896 = vmatpush.bf16.msrb.mxu0 %v3744_v10  ;;  %6049 = vrot.lane.b32.xlu0 %v11592_v28, %s11368_s10  ;;  %v3209_v8 = vpop.f32.mrf.mxu1  ;;  %v4020_v10 = vsel %vm542_vm3, %v3995_v16, 0 }
 0x445   :  { %6067 = vrot.lane.b32.xlu2 %v11594_v29, %s11368_s10  ;;  %v13958_v9 = vadd.f32 %v3209_v8, %v13704_v52  ;;  %v13972_v52 = vpop.permute.xlu1 %3977 }
 0x446   :  { %5763 = vrot.lane.b32.xlu1 %v11655_v1, %s11367_s1  ;;  %v3178_v32 = vpop.f32.mrf.mxu3  ;;  %v3162_v57 = vpop.f32.mrf.mxu2 }
 0x447   :  { %v13961_v24 = vadd.f32 %v3178_v32, %v13698_v41  ;;  %10258 = vmatmul.msk.bf16.vlgmr.msrb.gmra.mxu1 %vm535_vm4, %v13931_v19  ;;  %v10251_v41 = vld [vmem:[%s18140_s2 + $0x8c] sm:$0x3]  ;;  %v13980_v57 = vpop.permute.xlu2 %3979 }
 0x448   :  { %3897 = vmatpush.bf16.msrb.mxu0 %v3694_v49  ;;  %v3193_v8 = vpop.f32.mrf.mxu0  ;;  %4052 = vmatpush.bf16.msrb.mxu1 %v4020_v10  ;;  %v18202_v32 = vld [vmem:[#allocation18_spill] sm:$0xff]  ;;  %v3644_v16 = vunpack.c.l.b16 %v10251_v41  ;;  %v13987_v49 = vpop.permute.xlu0 %3959  ;;  %v3987_v41 = vsel %vm3985_vm15, %v13858_v47, %v13920_v12 }
 0x449   :  { %18201 = vst [vmem:[#allocation9_spill] sm:$0xff] %v13961_v24  ;;  %v13978_v5 = vadd.f32 %v3193_v8, %v18202_v32 }
 0x44b   :  { %10260 = vmatmul.msk.bf16.vlgmr.msrb.gmra.mxu2 %vm535_vm4, %v13931_v19 }
 0x44c   :  { %4070 = vmatpush.bf16.msrb.mxu2 %v4023_v23  ;;  %6073 = vrot.lane.b32.xlu0 %v11608_v54, %s11368_s10  ;;  %v3211_v10 = vpop.f32.mrf.mxu1  ;;  %v3997_v23 = vsel %vm3985_vm15, %v13869_v40, %v13897_v35 }
 0x44d   :  { %4053 = vmatpush.bf16.msrb.mxu1 %v3986_v53  ;;  %6047 = vrot.lane.b32.xlu2 %v11588_v17, %s11368_s10  ;;  %v13996_v22 = vadd.f32 %v3211_v10, %v13736_v33  ;;  %v14007_v53 = vpack.c.b16 %v3644_v16, %v3644_v16  ;;  %v14012_v10 = vpop.permute.xlu1 %3957 }
 0x44e   :  { %6071 = vrot.lane.b32.xlu1 %v11600_v45, %s11368_s10  ;;  %v3180_v8 = vpop.f32.mrf.mxu3  ;;  %v3227_v32 = vpop.f32.mrf.mxu2 }
 0x44f   :  { %v13999_v7 = vadd.f32 %v3227_v32, %v13722_v18  ;;  %v4026_v18 = vsel %vm542_vm3, %v3997_v23, 0  ;;  %v14019_v47 = vpop.permute.xlu2 %3965  ;;  %v3988_v23 = vsel %vm3985_vm15, %v13920_v12, %v13936_v11 }
 0x450   :  { %4071 = vmatpush.bf16.msrb.mxu2 %v3987_v41  ;;  %v3196_v24 = vpop.f32.mrf.mxu0  ;;  %v14030_v8 = vpop.permute.xlu0 %3983 }
 0x451   :  { %v14010_v33 = vadd.f32 %v3196_v24, %v13727_v31 }
 0x453   :  { %10262 = vmatmul.msk.bf16.vlgmr.msrb.gmra.mxu3 %vm535_vm4, %v13931_v19  ;;  %10257 = vmatmul.msk.bf16.gmra.mxu0 %vm535_vm4, %v14007_v53 }
 0x454   :  { %4088 = vmatpush.bf16.msrb.mxu3 %v4026_v18  ;;  %6077 = vrot.lane.b32.xlu0 %v11625_v15, %s11368_s10  ;;  %v3214_v40 = vpop.f32.mrf.mxu1 }
 0x455   :  { %6075 = vrot.lane.b32.xlu2 %v11623_v14, %s11368_s10  ;;  %v14028_v31 = vadd.f32 %v3214_v40, %v13765_v42  ;;  %v14045_v18 = vpop.permute.xlu1 %3981 }
 0x456   :  { %6051 = vrot.lane.b32.xlu1 %v11610_v55, %s11368_s10  ;;  %v3245_v24 = vpop.f32.mrf.mxu3  ;;  %v3229_v16 = vpop.f32.mrf.mxu2 }
 0x457   :  { %v14033_v32 = vadd.f32 %v3245_v24, %v13755_v34  ;;  %v14036_v41 = vadd.f32 %v3229_v16, %v13750_v13  ;;  %10259 = vmatmul.msk.bf16.gmra.mxu1 %vm535_vm4, %v14007_v53  ;;  %v14053_v40 = vpop.permute.xlu2 %3963 }
 0x458   :  { %4089 = vmatpush.bf16.msrb.mxu3 %v3988_v23  ;;  %v3198_v42 = vpop.f32.mrf.mxu0  ;;  %v3998_v23 = vsel %vm3985_vm15, %v13897_v35, %v13910_v25 }
 0x459   :  { %18203 = vst [vmem:[#allocation19_spill] sm:$0xff] %v14033_v32  ;;  %v14064_v42 = vpop.permute.xlu0 %4267 }
 0x45b   :  { %10261 = vmatmul.msk.bf16.gmra.mxu2 %vm535_vm4, %v14007_v53 }
 0x45c   :  { %6057 = vrot.lane.b32.xlu0 %v11635_v39, %s11368_s10  ;;  %v3216_v34 = vpop.f32.mrf.mxu1 }
 0x45d   :  { %6055 = vrot.lane.b32.xlu2 %v11633_v38, %s11368_s10 }
 0x45e   :  { %6053 = vrot.lane.b32.xlu1 %v11619_v63, %s11368_s10  ;;  %v3247_v13 = vpop.f32.mrf.mxu3  ;;  %v3232_v12 = vpop.f32.mrf.mxu2 }
 0x45f   :  { %v14056_v24 = vadd.f32 %v3247_v13, %v13785_v37  ;;  %v14059_v16 = vadd.f32 %v3232_v12, %v13779_v20  ;;  %v4029_v37 = vsel %vm542_vm3, %v3998_v23, 0  ;;  %v3999_v20 = vsel %vm3985_vm15, %v13910_v25, %v13972_v52  ;;  %v14086_v23 = vpop.permute.xlu1 %3961 }
 0x460   :  { %v3263_v34 = vpop.f32.mrf.mxu0 }
 0x461   :  { %v14067_v32 = vadd.f32 %v3263_v34, %v13782_v56  ;;  %v4000_v34 = vsel %vm3985_vm15, %v13972_v52, %v13980_v57  ;;  %v3990_v52 = vsel %vm3985_vm15, %v13941_v58, %v14012_v10 }
 0x463   :  { %10263 = vmatmul.msk.bf16.gmra.mxu3 %vm535_vm4, %v14007_v53  ;;  %10264 = vmatmul.msk.bf16.vlgmr.msra.gmra.mxu0 %vm535_vm4, %v13931_v19 }
 0x464   :  { %4106 = vmatpush.bf16.msra.mxu0 %v4029_v37  ;;  %6061 = vrot.lane.b32.xlu0 %v11653_v0, %s11368_s10  ;;  %v3281_v35 = vpop.f32.mrf.mxu1  ;;  %v3989_v37 = vsel %vm3985_vm15, %v13936_v11, %v13941_v58  ;;  %v4035_v11 = vsel %vm542_vm3, %v4000_v34, 0  ;;  %v3991_v58 = vsel %vm3985_vm15, %v14012_v10, %v13987_v49 }
 0x465   :  { %6081 = vrot.lane.b32.xlu2 %v11643_v50, %s11368_s10  ;;  %v14084_v56 = vadd.f32 %v3281_v35, %v13815_v61  ;;  %v4032_v61 = vsel %vm542_vm3, %v3999_v20, 0  ;;  %v14100_v35 = vpop.permute.xlu2 %4247 }
 0x466   :  { %6079 = vrot.lane.b32.xlu1 %v11631_v36, %s11368_s10  ;;  %v3250_v13 = vpop.f32.mrf.mxu3  ;;  %v3234_v12 = vpop.f32.mrf.mxu2 }
 0x467   :  { %v14089_v25 = vadd.f32 %v3250_v13, %v13808_v3  ;;  %10266 = vmatmul.msk.bf16.vlgmr.msra.gmra.mxu1 %vm535_vm4, %v13931_v19  ;;  %v18205_v3 = vld [vmem:[#allocation11_spill] sm:$0xff] }
 0x468   :  { %4107 = vmatpush.bf16.msra.mxu0 %v3989_v37  ;;  %v3265_v12 = vpop.f32.mrf.mxu0  ;;  %4124 = vmatpush.bf16.msra.mxu1 %v4032_v61 }
 0x469   :  { %18204 = vst [vmem:[#allocation10_spill] sm:$0xff] %v14089_v25  ;;  %v14103_v13 = vadd.f32 %v3265_v12, %v18205_v3  ;;  %v14105_v25 = vpop.permute.xlu0 %4249  ;;  %v4001_v3 = vsel %vm3985_vm15, %v13980_v57, %v14045_v18 }
 0x46b   :  { %10268 = vmatmul.msk.bf16.vlgmr.msra.gmra.mxu2 %vm535_vm4, %v13931_v19 }
 0x46c   :  { %4142 = vmatpush.bf16.msra.mxu2 %v4035_v11  ;;  %6369 = vrot.lane.b32.xlu0 %v11602_v46, %s11369_s14  ;;  %v3283_v20 = vpop.f32.mrf.mxu1  ;;  %v14131_v11 = vpop.permute.xlu1 %4269 }
 0x46d   :  { %4125 = vmatpush.bf16.msra.mxu1 %v3990_v52  ;;  %6367 = vrot.lane.b32.xlu2 %v11594_v29, %s11369_s14  ;;  %v14120_v37 = vadd.f32 %v3283_v20, %v13849_v48  ;;  %v14136_v20 = vpop.permute.xlu2 %4273 }
 0x46e   :  { %6059 = vrot.lane.b32.xlu1 %v11645_v51, %s11368_s10  ;;  %v3252_v34 = vpop.f32.mrf.mxu3  ;;  %v3299_v61 = vpop.f32.mrf.mxu2 }
 0x46f   :  { %18206 = vst [vmem:[#allocation20_spill] sm:$0xff] %v14120_v37  ;;  %v14123_v12 = vadd.f32 %v3299_v61, %v13835_v30  ;;  %v4038_v30 = vsel %vm542_vm3, %v4001_v3, 0 }
 0x470   :  { %4143 = vmatpush.bf16.msra.mxu2 %v3991_v58  ;;  %v3268_v52 = vpop.f32.mrf.mxu0 }
 0x471   :  { %v14134_v48 = vadd.f32 %v3268_v52, %v13838_v27  ;;  %v14143_v10 = vpop.permute.xlu0 %4275  ;;  %v3992_v52 = vsel %vm3985_vm15, %v13987_v49, %v14086_v23 }
 0x473   :  { %10270 = vmatmul.msk.bf16.vlgmr.msra.gmra.mxu3 %vm535_vm4, %v13931_v19  ;;  %10265 = vmatmul.msk.bf16.gmra.mxu0 %vm535_vm4, %v14007_v53 }
 0x474   :  { %4160 = vmatpush.bf16.msra.mxu3 %v4038_v30  ;;  %6347 = vrot.lane.b32.xlu0 %v11588_v17, %s11369_s14  ;;  %v3286_v57 = vpop.f32.mrf.mxu1  ;;  %v14165_v37 = vpop.permute.xlu1 %4271 }
 0x475   :  { %6065 = vrot.lane.b32.xlu2 %v18171_v60, %s11368_s10  ;;  %v14152_v27 = vadd.f32 %v3286_v57, %v13881_v2  ;;  %v14169_v2 = vpop.permute.xlu2 %4253 }
 0x476   :  { %6083 = vrot.lane.b32.xlu1 %v11661_v6, %s11368_s10  ;;  %v3455_v34 = vpop.f32.mrf.mxu3  ;;  %v3301_v61 = vpop.f32.mrf.mxu2 }
 0x477   :  { %v14155_v58 = vadd.f32 %v3455_v34, %v13872_v59  ;;  %v14158_v3 = vadd.f32 %v3301_v61, %v13867_v26  ;;  %10267 = vmatmul.msk.bf16.gmra.mxu1 %vm535_vm4, %v14007_v53 }
 0x478   :  { %4161 = vmatpush.bf16.msra.mxu3 %v3992_v52  ;;  %v3270_v30 = vpop.f32.mrf.mxu0  ;;  %v4002_v52 = vsel %vm3985_vm15, %v14045_v18, %v14030_v8  ;;  %v4003_v18 = vsel %vm3985_vm15, %v14030_v8, %v14019_v47 }
 0x479   :  { %18207 = vst [vmem:[#allocation13_spill] sm:$0xff] %v14155_v58  ;;  %v14177_v57 = vpop.permute.xlu0 %4255 }
 0x47b   :  { %10269 = vmatmul.msk.bf16.gmra.mxu2 %vm535_vm4, %v14007_v53 }
 0x47c   :  { %6351 = vrot.lane.b32.xlu0 %v11610_v55, %s11369_s14  ;;  %v3288_v26 = vpop.f32.mrf.mxu1 }
 0x47d   :  { %6371 = vrot.lane.b32.xlu2 %v11600_v45, %s11369_s14  ;;  %v18209_v26 = vld [vmem:[#allocation21_spill] sm:$0xff] }
 0x47e   :  { %6063 = vrot.lane.b32.xlu1 %v11655_v1, %s11368_s10  ;;  %v3457_v59 = vpop.f32.mrf.mxu3  ;;  %v3304_v49 = vpop.f32.mrf.mxu2 }
 0x47f   :  { %v14180_v34 = vadd.f32 %v3457_v59, %v13903_v43  ;;  %v14183_v61 = vadd.f32 %v3304_v49, %v13895_v44  ;;  %v4041_v43 = vsel %vm542_vm3, %v4002_v52, 0  ;;  %v14199_v44 = vld [vmem:[%s18140_s2 + $0x90] sm:$0xff]  ;;  %v14204_v59 = vpop.permute.xlu1 %4251 }
 0x480   :  { %v3473_v30 = vpop.f32.mrf.mxu0 }
 0x481   :  { %18208 = vst [vmem:[#allocation12_spill] sm:$0xff] %v14180_v34  ;;  %v14189_v58 = vadd.f32 %v3473_v30, %v18209_v26  ;;  %v14215_v26 = vpop.permute.xlu2 %4257  ;;  %v3993_v34 = vsel %vm3985_vm15, %v14086_v23, %v14053_v40  ;;  %v3994_v23 = vsel %vm3985_vm15, %v14053_v40, %v14019_v47  ;;  %vm6985_vm15 = vcmask 244736  }
 0x483   :  { %10271 = vmatmul.msk.bf16.gmra.mxu3 %vm535_vm4, %v14007_v53  ;;  %10272 = vmatmul.msk.bf16.vlgmr.msrb.gmra.mxu0 %vm535_vm4, %v13931_v19 }
 0x484   :  { %4178 = vmatpush.bf16.msrb.mxu0 %v4041_v43  ;;  %6377 = vrot.lane.b32.xlu0 %v11625_v15, %s11369_s14  ;;  %v3491_v49 = vpop.f32.mrf.mxu1  ;;  %v4295_v43 = vsel %vm4285_vm0, %v14064_v42, %v14131_v11 }
 0x485   :  { %6375 = vrot.lane.b32.xlu2 %v11623_v14, %s11369_s14  ;;  %v14213_v19 = vadd.f32 %v3491_v49, %v13939_v4  ;;  %v4044_v4 = vsel %vm542_vm3, %v4003_v18, 0  ;;  %v14229_v49 = vpop.permute.xlu0 %4279  ;;  %v4320_v42 = vsel %vm542_vm3, %v4295_v43, 0 }
 0x486   :  { %6349 = vrot.lane.b32.xlu1 %v11592_v28, %s11369_s14  ;;  %v3460_v52 = vpop.f32.mrf.mxu3  ;;  %v3306_v30 = vpop.f32.mrf.mxu2 }
 0x487   :  { %v14218_v8 = vadd.f32 %v3460_v52, %v13926_v21  ;;  %10281 = vmatmul.msk.bf16.vlgmr.msrb.gmra.mxu1 %vm535_vm4, %v14199_v44  ;;  %v14252_v40 = vpop.permute.xlu1 %4277 }
 0x488   :  { %4179 = vmatpush.bf16.msrb.mxu0 %v3993_v34  ;;  %v3475_v30 = vpop.f32.mrf.mxu0  ;;  %4196 = vmatpush.bf16.msrb.mxu1 %v4044_v4  ;;  %v4286_v4 = vsel %vm4285_vm0, %v14100_v35, %v14105_v25 }
 0x489   :  { %v14232_v21 = vadd.f32 %v3475_v30, %v13923_v62  ;;  %v10276_v62 = vld [vmem:[%s18140_s2 + $0x98] sm:$0x3]  ;;  %v4296_v30 = vsel %vm4285_vm0, %v14131_v11, %v14165_v37 }
 0x48b   :  { %10283 = vmatmul.msk.bf16.vlgmr.msrb.gmra.mxu2 %vm535_vm4, %v14199_v44 }
 0x48c   :  { %4352 = vmatpush.bf16.msrb.mxu2 %v4320_v42  ;;  %6357 = vrot.lane.b32.xlu0 %v11635_v39, %s11369_s14  ;;  %v3493_v34 = vpop.f32.mrf.mxu1  ;;  %v3944_v42 = vunpack.c.l.b16 %v10276_v62 }
 0x48d   :  { %4197 = vmatpush.bf16.msrb.mxu1 %v3994_v23  ;;  %6355 = vrot.lane.b32.xlu2 %v11633_v38, %s11369_s14  ;;  %v14250_v18 = vadd.f32 %v3493_v34, %v13978_v5  ;;  %v14263_v23 = vpop.permute.xlu2 %4283  ;;  %v18211_v34 = vld [vmem:[#allocation9_spill] sm:$0xff] }
 0x48e   :  { %6373 = vrot.lane.b32.xlu1 %v11608_v54, %s11369_s14  ;;  %v3462_v52 = vpop.f32.mrf.mxu3  ;;  %v3509_v47 = vpop.f32.mrf.mxu2  ;;  %v14275_v35 = vpack.c.b16 %v3944_v42, %v3944_v42  ;;  %v4287_v42 = vsel %vm4285_vm0, %v14105_v25, %v14204_v59 }
 0x48f   :  { %18210 = vst [vmem:[#allocation15_spill] sm:$0xff] %v14250_v18  ;;  %v14255_v43 = vadd.f32 %v3509_v47, %v13958_v9  ;;  %v14268_v18 = vpop.permute.xlu0 %4259  ;;  %v4323_v9 = vsel %vm542_vm3, %v4296_v30, 0 }
 0x490   :  { %4353 = vmatpush.bf16.msrb.mxu2 %v4286_v4  ;;  %v3478_v5 = vpop.f32.mrf.mxu0 }
 0x491   :  { %v14266_v52 = vadd.f32 %v3478_v5, %v18211_v34  ;;  %v14297_v5 = vpop.permute.xlu1 %4281 }
 0x493   :  { %10285 = vmatmul.msk.bf16.vlgmr.msrb.gmra.mxu3 %vm535_vm4, %v14199_v44  ;;  %10273 = vmatmul.msk.bf16.gmra.mxu0 %vm535_vm4, %v14007_v53 }
 0x494   :  { %4370 = vmatpush.bf16.msrb.mxu3 %v4323_v9  ;;  %6381 = vrot.lane.b32.xlu0 %v11643_v50, %s11369_s14  ;;  %v3496_v11 = vpop.f32.mrf.mxu1 }
 0x495   :  { %6359 = vrot.lane.b32.xlu2 %v11645_v51, %s11369_s14  ;;  %v14284_v62 = vadd.f32 %v3496_v11, %v14010_v33  ;;  %v14299_v34 = vpop.permute.xlu2 %4263 }
 0x496   :  { %6353 = vrot.lane.b32.xlu1 %v11619_v63, %s11369_s14  ;;  %v3527_v47 = vpop.f32.mrf.mxu3  ;;  %v3511_v4 = vpop.f32.mrf.mxu2 }
 0x497   :  { %v14287_v53 = vadd.f32 %v3527_v47, %v13999_v7  ;;  %v14290_v30 = vadd.f32 %v3511_v4, %v13996_v22  ;;  %10282 = vmatmul.msk.bf16.gmra.mxu1 %vm535_vm4, %v14275_v35  ;;  %v14303_v7 = vpop.permute.xlu0 %4265  ;;  %v4297_v4 = vsel %vm4285_vm0, %v14165_v37, %v14136_v20 }
 0x498   :  { %4371 = vmatpush.bf16.msrb.mxu3 %v4287_v42  ;;  %v3480_v33 = vpop.f32.mrf.mxu0 }
 0x499   :  { %18212 = vst [vmem:[#allocation14_spill] sm:$0xff] %v14287_v53  ;;  %v18214_v33 = vld [vmem:[#allocation19_spill] sm:$0xff]  ;;  %v14323_v53 = vpop.permute.xlu1 %4261 }
 0x49b   :  { %10284 = vmatmul.msk.bf16.gmra.mxu2 %vm535_vm4, %v14275_v35 }
 0x49c   :  { %6361 = vrot.lane.b32.xlu0 %v11653_v0, %s11369_s14  ;;  %v3498_v22 = vpop.f32.mrf.mxu1 }
 0x49d   :  { %6383 = vrot.lane.b32.xlu2 %v11661_v6, %s11369_s14 }
 0x49e   :  { %6379 = vrot.lane.b32.xlu1 %v11631_v36, %s11369_s14  ;;  %v3529_v25 = vpop.f32.mrf.mxu3  ;;  %v3514_v9 = vpop.f32.mrf.mxu2 }
 0x49f   :  { %v14312_v11 = vadd.f32 %v3529_v25, %v14036_v41  ;;  %v14315_v47 = vadd.f32 %v3514_v9, %v14028_v31  ;;  %v4326_v41 = vsel %vm542_vm3, %v4297_v4, 0  ;;  %v4298_v31 = vsel %vm4285_vm0, %v14136_v20, %v14143_v10  ;;  %v14333_v25 = vpop.permute.xlu2 %4569  ;;  %v14344_v20 = vpop.permute.xlu0 %4571 }
 0x4a0   :  { %v3545_v42 = vpop.f32.mrf.mxu0 }
 0x4a1   :  { %18213 = vst [vmem:[#allocation16_spill] sm:$0xff] %v14312_v11  ;;  %v14321_v22 = vadd.f32 %v3545_v42, %v18214_v33  ;;  %v4288_v11 = vsel %vm4285_vm0, %v14204_v59, %v14169_v2  ;;  %v14367_v59 = vpop.permute.xlu1 %4567 }
 0x4a3   :  { %10286 = vmatmul.msk.bf16.gmra.mxu3 %vm535_vm4, %v14275_v35  ;;  %10287 = vmatmul.msk.bf16.vlgmr.msra.gmra.mxu0 %vm535_vm4, %v14199_v44 }
 0x4a4   :  { %4388 = vmatpush.bf16.msra.mxu0 %v4326_v41  ;;  %6669 = vrot.lane.b32.xlu0 %v11602_v46, %s11370_s22  ;;  %v3563_v37 = vpop.f32.mrf.mxu1  ;;  %v4299_v41 = vsel %vm4285_vm0, %v14143_v10, %v14252_v40  ;;  %v4289_v10 = vsel %vm4285_vm0, %v14169_v2, %v14177_v57 }
 0x4a5   :  { %6667 = vrot.lane.b32.xlu2 %v11594_v29, %s11370_s22  ;;  %v14342_v9 = vadd.f32 %v3563_v37, %v14067_v32  ;;  %v4329_v32 = vsel %vm542_vm3, %v4298_v31, 0 }
 0x4a6   :  { %6365 = vrot.lane.b32.xlu1 %v18171_v60, %s11369_s14  ;;  %v3532_v4 = vpop.f32.mrf.mxu3  ;;  %v3516_v42 = vpop.f32.mrf.mxu2 }
 0x4a7   :  { %v14347_v33 = vadd.f32 %v3532_v4, %v14059_v16  ;;  %10289 = vmatmul.msk.bf16.vlgmr.msra.gmra.mxu1 %vm535_vm4, %v14199_v44  ;;  %v4332_v16 = vsel %vm542_vm3, %v4299_v41, 0  ;;  %v14378_v41 = vpop.permute.xlu2 %4547 }
 0x4a8   :  { %4389 = vmatpush.bf16.msra.mxu0 %v4288_v11  ;;  %v3547_v37 = vpop.f32.mrf.mxu0  ;;  %4406 = vmatpush.bf16.msra.mxu1 %v4329_v32  ;;  %v4290_v32 = vsel %vm4285_vm0, %v14177_v57, %v14215_v26 }
 0x4a9   :  { %v14359_v42 = vadd.f32 %v3547_v37, %v14056_v24  ;;  %v4300_v37 = vsel %vm4285_vm0, %v14252_v40, %v14229_v49 }
 0x4ab   :  { %10291 = vmatmul.msk.bf16.vlgmr.msra.gmra.mxu2 %vm535_vm4, %v14199_v44 }
 0x4ac   :  { %4424 = vmatpush.bf16.msra.mxu2 %v4332_v16  ;;  %6671 = vrot.lane.b32.xlu0 %v11600_v45, %s11370_s22  ;;  %v3565_v11 = vpop.f32.mrf.mxu1  ;;  %v14389_v16 = vpop.permute.xlu0 %4549 }
 0x4ad   :  { %4407 = vmatpush.bf16.msra.mxu1 %v4289_v10  ;;  %6649 = vrot.lane.b32.xlu2 %v11592_v28, %s11370_s22  ;;  %v14376_v24 = vadd.f32 %v3565_v11, %v14103_v13  ;;  %v18215_v10 = vld [vmem:[#allocation10_spill] sm:$0xff] }
 0x4ae   :  { %6363 = vrot.lane.b32.xlu1 %v11655_v1, %s11369_s14  ;;  %v3534_v31 = vpop.f32.mrf.mxu3  ;;  %v3581_v4 = vpop.f32.mrf.mxu2 }
 0x4af   :  { %v14381_v2 = vadd.f32 %v3581_v4, %v14084_v56  ;;  %v4335_v56 = vsel %vm542_vm3, %v4300_v37, 0 }
 0x4b0   :  { %4425 = vmatpush.bf16.msra.mxu2 %v4290_v32  ;;  %v3550_v13 = vpop.f32.mrf.mxu0  ;;  %v14408_v32 = vpop.permute.xlu1 %4573 }
 0x4b1   :  { %v14392_v11 = vadd.f32 %v3550_v13, %v18215_v10  ;;  %v18218_v13 = vld [vmem:[#allocation20_spill] sm:$0xff] }
 0x4b3   :  { %10293 = vmatmul.msk.bf16.vlgmr.msra.gmra.mxu3 %vm535_vm4, %v14199_v44  ;;  %10288 = vmatmul.msk.bf16.gmra.mxu0 %vm535_vm4, %v14275_v35 }
 0x4b4   :  { %4442 = vmatpush.bf16.msra.mxu3 %v4335_v56  ;;  %6651 = vrot.lane.b32.xlu0 %v11610_v55, %s11370_s22  ;;  %v3568_v57 = vpop.f32.mrf.mxu1  ;;  %v4291_v56 = vsel %vm4285_vm0, %v14215_v26, %v14268_v18 }
 0x4b5   :  { %6675 = vrot.lane.b32.xlu2 %v11623_v14, %s11370_s22  ;;  %v14406_v40 = vadd.f32 %v3568_v57, %v14134_v48  ;;  %v14421_v48 = vpop.permute.xlu2 %4553 }
 0x4b6   :  { %6647 = vrot.lane.b32.xlu1 %v11588_v17, %s11370_s22  ;;  %v3599_v31 = vpop.f32.mrf.mxu3  ;;  %v3583_v4 = vpop.f32.mrf.mxu2 }
 0x4b7   :  { %18216 = vst [vmem:[#allocation23_spill] sm:$0xff] %v14406_v40  ;;  %v14411_v37 = vadd.f32 %v3599_v31, %v14123_v12  ;;  %v14414_v10 = vadd.f32 %v3583_v4, %v18218_v13  ;;  %10290 = vmatmul.msk.bf16.gmra.mxu1 %vm535_vm4, %v14275_v35  ;;  %v14423_v40 = vpop.permute.xlu0 %4575 }
 0x4b8   :  { %4443 = vmatpush.bf16.msra.mxu3 %v4291_v56  ;;  %v3552_v57 = vpop.f32.mrf.mxu0  ;;  %v4301_v56 = vsel %vm4285_vm0, %v14229_v49, %v14297_v5 }
 0x4b9   :  { %18217 = vst [vmem:[#allocation22_spill] sm:$0xff] %v14411_v37  ;;  %v14442_v57 = vpop.permute.xlu1 %4551  ;;  %v18221_v37 = vld [vmem:[#allocation13_spill] sm:$0xff] }
 0x4ba   :  { %18219 = vst [vmem:[#allocation24_spill] sm:$0xff] %v14414_v10 }
 0x4bb   :  { %10292 = vmatmul.msk.bf16.gmra.mxu2 %vm535_vm4, %v14275_v35 }
 0x4bc   :  { %6677 = vrot.lane.b32.xlu0 %v11625_v15, %s11370_s22  ;;  %v3570_v12 = vpop.f32.mrf.mxu1 }
 0x4bd   :  { %6655 = vrot.lane.b32.xlu2 %v11633_v38, %s11370_s22  ;;  %v14447_v15 = vpop.permute.xlu2 %4577 }
 0x4be   :  { %6673 = vrot.lane.b32.xlu1 %v11608_v54, %s11370_s22  ;;  %v3601_v26 = vpop.f32.mrf.mxu3  ;;  %v3586_v31 = vpop.f32.mrf.mxu2 }
 0x4bf   :  { %v14434_v4 = vadd.f32 %v3601_v26, %v14158_v3  ;;  %v14437_v13 = vadd.f32 %v3586_v31, %v14152_v27  ;;  %v4338_v27 = vsel %vm542_vm3, %v4301_v56, 0  ;;  %v4302_v3 = vsel %vm4285_vm0, %v14297_v5, %v14263_v23  ;;  %v14457_v49 = vpop.permute.xlu0 %4579 }
 0x4c0   :  { %v3755_v12 = vpop.f32.mrf.mxu0 }
 0x4c1   :  { %18220 = vst [vmem:[#allocation17_spill] sm:$0xff] %v14434_v4  ;;  %v14445_v10 = vadd.f32 %v3755_v12, %v18221_v37  ;;  %v14474_v12 = vld [vmem:[%s18140_s2 + $0x9c] sm:$0xff]  ;;  %v4292_v4 = vsel %vm4285_vm0, %v14268_v18, %v14323_v53 }
 0x4c3   :  { %10294 = vmatmul.msk.bf16.gmra.mxu3 %vm535_vm4, %v14275_v35  ;;  %10295 = vmatmul.msk.bf16.vlgmr.msrb.gmra.mxu0 %vm535_vm4, %v14199_v44 }
 0x4c4   :  { %4460 = vmatpush.bf16.msrb.mxu0 %v4338_v27  ;;  %6681 = vrot.lane.b32.xlu0 %v11643_v50, %s11370_s22  ;;  %v3773_v37 = vpop.f32.mrf.mxu1  ;;  %v4303_v27 = vsel %vm4285_vm0, %v14263_v23, %v14303_v7 }
 0x4c5   :  { %6679 = vrot.lane.b32.xlu2 %v11631_v36, %s11370_s22  ;;  %v14466_v26 = vadd.f32 %v3773_v37, %v14189_v58  ;;  %v4341_v58 = vsel %vm542_vm3, %v4302_v3, 0  ;;  %v18222_v37 = vld [vmem:[#allocation12_spill] sm:$0xff]  ;;  %v4344_v23 = vsel %vm542_vm3, %v4303_v27, 0  ;;  %v14496_v18 = vpop.permute.xlu2 %4557 }
 0x4c6   :  { %6653 = vrot.lane.b32.xlu1 %v11619_v63, %s11370_s22  ;;  %v3604_v31 = vpop.f32.mrf.mxu3  ;;  %v3588_v56 = vpop.f32.mrf.mxu2 }
 0x4c7   :  { %v14469_v5 = vadd.f32 %v3604_v31, %v14183_v61  ;;  %10297 = vmatmul.msk.bf16.vlgmr.msrb.gmra.mxu1 %vm535_vm4, %v14199_v44  ;;  %v14488_v56 = vpop.permute.xlu1 %4555  ;;  %v4293_v44 = vsel %vm4285_vm0, %v14323_v53, %v14299_v34  ;;  %v14507_v53 = vpop.permute.xlu0 %4559 }
 0x4c8   :  { %4461 = vmatpush.bf16.msrb.mxu0 %v4292_v4  ;;  %v3757_v61 = vpop.f32.mrf.mxu0  ;;  %4478 = vmatpush.bf16.msrb.mxu1 %v4341_v58 }
 0x4c9   :  { %v14486_v31 = vadd.f32 %v3757_v61, %v18222_v37  ;;  %v4294_v37 = vsel %vm4285_vm0, %v14299_v34, %v14303_v7  ;;  %vm7285_vm0 = vcmask 236544  }
 0x4cb   :  { %10306 = vmatmul.msk.bf16.vlgmr.msrb.gmra.mxu2 %vm535_vm4, %v14474_v12 }
 0x4cc   :  { %4496 = vmatpush.bf16.msrb.mxu2 %v4344_v23  ;;  %6661 = vrot.lane.b32.xlu0 %v11653_v0, %s11370_s22  ;;  %v3775_v4 = vpop.f32.mrf.mxu1  ;;  %v4595_v23 = vsel %vm4585_vm1, %v14367_v59, %v14333_v25 }
 0x4cd   :  { %4479 = vmatpush.bf16.msrb.mxu1 %v4293_v44  ;;  %6659 = vrot.lane.b32.xlu2 %v11645_v51, %s11370_s22  ;;  %v14505_v3 = vadd.f32 %v3775_v4, %v14232_v21  ;;  %v10301_v21 = vld [vmem:[%s18140_s2 + $0xa4] sm:$0x3] }
 0x4ce   :  { %6657 = vrot.lane.b32.xlu1 %v11635_v39, %s11370_s22  ;;  %v3606_v27 = vpop.f32.mrf.mxu3  ;;  %v3791_v58 = vpop.f32.mrf.mxu2 }
 0x4cf   :  { %18223 = vst [vmem:[#allocation8_spill] sm:$0xff] %v14505_v3  ;;  %v14510_v61 = vadd.f32 %v3791_v58, %v14213_v19  ;;  %v4620_v19 = vsel %vm542_vm3, %v4595_v23, 0  ;;  %v4244_v27 = vunpack.c.l.b16 %v10301_v21  ;;  %v14529_v34 = vpop.permute.xlu1 %4581  ;;  %v18225_v21 = vld [vmem:[#allocation15_spill] sm:$0xff] }
 0x4d0   :  { %4497 = vmatpush.bf16.msrb.mxu2 %v4294_v37  ;;  %v3760_v44 = vpop.f32.mrf.mxu0  ;;  %v14540_v37 = vpop.permute.xlu2 %4583 }
 0x4d1   :  { %v14522_v4 = vadd.f32 %v3760_v44, %v14218_v8  ;;  %v14551_v3 = vpack.c.b16 %v4244_v27, %v4244_v27 }
 0x4d3   :  { %10308 = vmatmul.msk.bf16.vlgmr.msrb.gmra.mxu3 %vm535_vm4, %v14474_v12  ;;  %10296 = vmatmul.msk.bf16.gmra.mxu0 %vm535_vm4, %v14275_v35 }
 0x4d4   :  { %4652 = vmatpush.bf16.msrb.mxu3 %v4620_v19  ;;  %6967 = vrot.lane.b32.xlu0 %v11594_v29, %s11371_s28  ;;  %v3778_v7 = vpop.f32.mrf.mxu1  ;;  %v4586_v19 = vsel %vm4585_vm1, %v14378_v41, %v14389_v16 }
 0x4d5   :  { %6665 = vrot.lane.b32.xlu2 %v18171_v60, %s11370_s22  ;;  %v14538_v8 = vadd.f32 %v3778_v7, %v14266_v52  ;;  %v14555_v52 = vpop.permute.xlu0 %4563 }
 0x4d6   :  { %6683 = vrot.lane.b32.xlu1 %v11661_v6, %s11370_s22  ;;  %v3809_v59 = vpop.f32.mrf.mxu3  ;;  %v3793_v58 = vpop.f32.mrf.mxu2 }
 0x4d7   :  { %v14543_v23 = vadd.f32 %v3809_v59, %v14255_v43  ;;  %v14546_v44 = vadd.f32 %v3793_v58, %v18225_v21  ;;  %10298 = vmatmul.msk.bf16.gmra.mxu1 %vm535_vm4, %v14275_v35  ;;  %v14565_v59 = vpop.permute.xlu1 %4561  ;;  %v4596_v21 = vsel %vm4585_vm1, %v14333_v25, %v14344_v20 }
 0x4d8   :  { %4653 = vmatpush.bf16.msrb.mxu3 %v4586_v19  ;;  %v3762_v7 = vpop.f32.mrf.mxu0  ;;  %v14576_v19 = vpop.permute.xlu2 %4869 }
 0x4d9   :  { %18224 = vst [vmem:[#allocation18_spill] sm:$0xff] %v14543_v23 }
 0x4db   :  { %10307 = vmatmul.msk.bf16.gmra.mxu2 %vm535_vm4, %v14551_v3 }
 0x4dc   :  { %6973 = vrot.lane.b32.xlu0 %v11608_v54, %s11371_s28  ;;  %v3780_v43 = vpop.f32.mrf.mxu1 }
 0x4dd   :  { %6971 = vrot.lane.b32.xlu2 %v11600_v45, %s11371_s28  ;;  %v18226_v43 = vld [vmem:[#allocation14_spill] sm:$0xff]  ;;  %v14581_v23 = vpop.permute.xlu0 %4871 }
 0x4de   :  { %6663 = vrot.lane.b32.xlu1 %v11655_v1, %s11370_s22  ;;  %v3811_v41 = vpop.f32.mrf.mxu3  ;;  %v3796_v27 = vpop.f32.mrf.mxu2  ;;  %s9874_s22 = sshll.u32 %s18146_s8, 4  ;;  %s9875_s22 = int_to_ptr.hbm [resolvable:$true] %s9874_s22 }
 0x4df   :  { %v14568_v35 = vadd.f32 %v3811_v41, %v14290_v30  ;;  %v14571_v58 = vadd.f32 %v3796_v27, %v14284_v62  ;;  %v4623_v62 = vsel %vm542_vm3, %v4596_v21, 0  ;;  %v4597_v30 = vsel %vm4585_vm1, %v14344_v20, %v14408_v32 }
 0x4e0   :  { %v3827_v7 = vpop.f32.mrf.mxu0  ;;  %v4598_v20 = vsel %vm4585_vm1, %v14408_v32, %v14423_v40  ;;  %v4588_v32 = vsel %vm4585_vm1, %v14442_v57, %v14421_v48 }
 0x4e1   :  { %v14579_v54 = vadd.f32 %v3827_v7, %v18226_v43  ;;  %v4587_v43 = vsel %vm4585_vm1, %v14389_v16, %v14442_v57  ;;  %v4629_v16 = vsel %vm542_vm3, %v4598_v20, 0 }
 0x4e3   :  { %10309 = vmatmul.msk.bf16.gmra.mxu3 %vm535_vm4, %v14551_v3  ;;  %10310 = vmatmul.msk.bf16.vlgmr.msra.gmra.mxu0 %vm535_vm4, %v14474_v12 }
 0x4e4   :  { %4670 = vmatpush.bf16.msra.mxu0 %v4623_v62  ;;  %6951 = vrot.lane.b32.xlu0 %v11610_v55, %s11371_s28  ;;  %v3845_v25 = vpop.f32.mrf.mxu1  ;;  %v4626_v62 = vsel %vm542_vm3, %v4597_v30, 0 }
 0x4e5   :  { %6949 = vrot.lane.b32.xlu2 %v11592_v28, %s11371_s28  ;;  %v14598_v41 = vadd.f32 %v3845_v25, %v14321_v22  ;;  %v14612_v22 = vpop.permute.xlu1 %4565  ;;  %v14625_v30 = vpop.permute.xlu0 %4851 }
 0x4e6   :  { %6969 = vrot.lane.b32.xlu1 %v11602_v46, %s11371_s28  ;;  %v3814_v27 = vpop.f32.mrf.mxu3  ;;  %v3798_v21 = vpop.f32.mrf.mxu2 }
 0x4e7   :  { %v14601_v7 = vadd.f32 %v3814_v27, %v14315_v47  ;;  %10312 = vmatmul.msk.bf16.vlgmr.msra.gmra.mxu1 %vm535_vm4, %v14474_v12  ;;  %v18228_v47 = vld [vmem:[#allocation16_spill] sm:$0xff]  ;;  %v14617_v21 = vpop.permute.xlu2 %4849 }
 0x4e8   :  { %4671 = vmatpush.bf16.msra.mxu0 %v4587_v43  ;;  %v3829_v25 = vpop.f32.mrf.mxu0  ;;  %4688 = vmatpush.bf16.msra.mxu1 %v4626_v62 }
 0x4e9   :  { %18227 = vst [vmem:[#allocation11_spill] sm:$0xff] %v14601_v7  ;;  %v14615_v27 = vadd.f32 %v3829_v25, %v18228_v47  ;;  %v4589_v47 = vsel %vm4585_vm1, %v14421_v48, %v14488_v56 }
 0x4eb   :  { %10314 = vmatmul.msk.bf16.vlgmr.msra.gmra.mxu2 %vm535_vm4, %v14474_v12 }
 0x4ec   :  { %4706 = vmatpush.bf16.msra.mxu2 %v4629_v16  ;;  %6955 = vrot.lane.b32.xlu0 %v11633_v38, %s11371_s28  ;;  %v3847_v43 = vpop.f32.mrf.mxu1  ;;  %v4599_v16 = vsel %vm4585_vm1, %v14423_v40, %v14447_v15 }
 0x4ed   :  { %4689 = vmatpush.bf16.msra.mxu1 %v4588_v32  ;;  %6975 = vrot.lane.b32.xlu2 %v11623_v14, %s11371_s28  ;;  %v14634_v20 = vadd.f32 %v3847_v43, %v14359_v42  ;;  %v14648_v42 = vpop.permute.xlu1 %4867 }
 0x4ee   :  { %6947 = vrot.lane.b32.xlu1 %v11588_v17, %s11371_s28  ;;  %v3816_v62 = vpop.f32.mrf.mxu3  ;;  %v3863_v25 = vpop.f32.mrf.mxu2 }
 0x4ef   :  { %18229 = vst [vmem:[#allocation21_spill] sm:$0xff] %v14634_v20  ;;  %v14637_v57 = vadd.f32 %v3863_v25, %v14342_v9  ;;  %v4632_v9 = vsel %vm542_vm3, %v4599_v16, 0  ;;  %v14655_v48 = vpop.permute.xlu2 %4873  ;;  %v14666_v25 = vpop.permute.xlu0 %4853 }
 0x4f0   :  { %4707 = vmatpush.bf16.msra.mxu2 %v4589_v47  ;;  %v3832_v32 = vpop.f32.mrf.mxu0 }
 0x4f1   :  { %v14646_v7 = vadd.f32 %v3832_v32, %v14347_v33  ;;  %v4590_v32 = vsel %vm4585_vm1, %v14488_v56, %v14496_v18 }
 0x4f3   :  { %10316 = vmatmul.msk.bf16.vlgmr.msra.gmra.mxu3 %vm535_vm4, %v14474_v12  ;;  %10311 = vmatmul.msk.bf16.gmra.mxu0 %vm535_vm4, %v14551_v3 }
 0x4f4   :  { %4724 = vmatpush.bf16.msra.mxu3 %v4632_v9  ;;  %6981 = vrot.lane.b32.xlu0 %v11643_v50, %s11371_s28  ;;  %v3850_v40 = vpop.f32.mrf.mxu1 }
 0x4f5   :  { %6979 = vrot.lane.b32.xlu2 %v11631_v36, %s11371_s28  ;;  %v14664_v33 = vadd.f32 %v3850_v40, %v14392_v11  ;;  %v14681_v9 = vpop.permute.xlu1 %4847 }
 0x4f6   :  { %6953 = vrot.lane.b32.xlu1 %v11619_v63, %s11371_s28  ;;  %v3881_v43 = vpop.f32.mrf.mxu3  ;;  %v3865_v62 = vpop.f32.mrf.mxu2 }
 0x4f7   :  { %18230 = vst [vmem:[#allocation9_spill] sm:$0xff] %v14664_v33  ;;  %v14669_v47 = vadd.f32 %v3881_v43, %v14381_v2  ;;  %v14672_v16 = vadd.f32 %v3865_v62, %v14376_v24  ;;  %10313 = vmatmul.msk.bf16.gmra.mxu1 %vm535_vm4, %v14551_v3  ;;  %v18233_v24 = vld [vmem:[#allocation6_spill] sm:$0xff]  ;;  %v14689_v43 = vpop.permute.xlu2 %4877  ;;  %v18234_v62 = vld [vmem:[#allocation24_spill] sm:$0xff]  ;;  %v14700_v33 = vpop.permute.xlu0 %4879 }
 0x4f8   :  { %4725 = vmatpush.bf16.msra.mxu3 %v4590_v32  ;;  %v3834_v11 = vpop.f32.mrf.mxu0 }
 0x4f9   :  { %18231 = vst [vmem:[#allocation19_spill] sm:$0xff] %v14669_v47  ;;  %v18235_v11 = vld [vmem:[#allocation23_spill] sm:$0xff] }
 0x4fa   :  { %18232 = vst [vmem:[#allocation10_spill] sm:$0xff] %v14672_v16 }
 0x4fb   :  { %10315 = vmatmul.msk.bf16.gmra.mxu2 %vm535_vm4, %v14551_v3 }
 0x4fc   :  { %6961 = vrot.lane.b32.xlu0 %v11653_v0, %s11371_s28  ;;  %v3852_v2 = vpop.f32.mrf.mxu1  ;;  %v18236_v0 = vld [vmem:[#allocation22_spill] sm:$0xff] }
 0x4fd   :  { %6959 = vrot.lane.b32.xlu2 %v11645_v51, %s11371_s28  ;;  %v4600_v2 = vsel %vm4585_vm1, %v14447_v15, %v14457_v49 }
 0x4fe   :  { %6977 = vrot.lane.b32.xlu1 %v18233_v24, %s11371_s28  ;;  %v3883_v56 = vpop.f32.mrf.mxu3  ;;  %v3868_v40 = vpop.f32.mrf.mxu2 }
 0x4ff   :  { %v14692_v32 = vadd.f32 %v3883_v56, %v18234_v62  ;;  %v14695_v47 = vadd.f32 %v3868_v40, %v18235_v11  ;;  %v4635_v56 = vsel %vm542_vm3, %v4600_v2, 0  ;;  %v4601_v40 = vsel %vm4585_vm1, %v14457_v49, %v14529_v34  ;;  %v14722_v11 = vpop.permute.xlu1 %4875 }
 0x500   :  { %v3899_v16 = vpop.f32.mrf.mxu0  ;;  %v4602_v2 = vsel %vm4585_vm1, %v14529_v34, %v14540_v37  ;;  %v4592_v34 = vsel %vm4585_vm1, %v14507_v53, %v14565_v59 }
 0x501   :  { %v14703_v20 = vadd.f32 %v3899_v16, %v18236_v0 }
 0x503   :  { %10317 = vmatmul.msk.bf16.gmra.mxu3 %vm535_vm4, %v14551_v3  ;;  %10318 = vmatmul.msk.bf16.vlgmr.msrb.gmra.mxu0 %vm535_vm4, %v14474_v12 }
 0x504   :  { %4742 = vmatpush.bf16.msrb.mxu0 %v4635_v56  ;;  %6965 = vrot.lane.b32.xlu0 %v18171_v60, %s11371_s28  ;;  %v4055_v15 = vpop.f32.mrf.mxu1  ;;  %v4591_v56 = vsel %vm4585_vm1, %v14496_v18, %v14507_v53  ;;  %v4641_v18 = vsel %vm542_vm3, %v4602_v2, 0  ;;  %v4593_v53 = vsel %vm4585_vm1, %v14565_v59, %v14555_v52 }
 0x505   :  { %6963 = vrot.lane.b32.xlu2 %v11655_v1, %s11371_s28  ;;  %v14720_v0 = vadd.f32 %v4055_v15, %v14445_v10  ;;  %v4638_v10 = vsel %vm542_vm3, %v4601_v40, 0  ;;  %v14736_v15 = vpop.permute.xlu2 %4857 }
 0x506   :  { %6957 = vrot.lane.b32.xlu1 %v11635_v39, %s11371_s28  ;;  %v3886_v16 = vpop.f32.mrf.mxu3  ;;  %v3870_v62 = vpop.f32.mrf.mxu2 }
 0x507   :  { %v14725_v49 = vadd.f32 %v3886_v16, %v14437_v13  ;;  %10320 = vmatmul.msk.bf16.vlgmr.msrb.gmra.mxu1 %vm535_vm4, %v14474_v12  ;;  %v18238_v13 = vld [vmem:[#allocation17_spill] sm:$0xff] }
 0x508   :  { %4743 = vmatpush.bf16.msrb.mxu0 %v4591_v56  ;;  %v3901_v62 = vpop.f32.mrf.mxu0  ;;  %4760 = vmatpush.bf16.msrb.mxu1 %v4638_v10 }
 0x509   :  { %18237 = vst [vmem:[#allocation20_spill] sm:$0xff] %v14725_v49  ;;  %v14739_v16 = vadd.f32 %v3901_v62, %v18238_v13  ;;  %v14741_v49 = vpop.permute.xlu0 %4859  ;;  %v14767_v62 = vld [vmem:[%s18140_s2 + $0xa8] sm:$0xff]  ;;  %v4603_v13 = vsel %vm4585_vm1, %v14540_v37, %v14612_v22 }
 0x50a   :  { %v4644_v59 = vsel %vm542_vm3, %v4603_v13, 0  ;;  %v18241_v13 = vld [vmem:[#allocation8_spill] sm:$0xff] }
 0x50b   :  { %10322 = vmatmul.msk.bf16.vlgmr.msrb.gmra.mxu2 %vm535_vm4, %v14474_v12 }
 0x50c   :  { %4778 = vmatpush.bf16.msrb.mxu2 %v4641_v18  ;;  %7267 = vrot.lane.b32.xlu0 %v11594_v29, %s11372_s29  ;;  %v4057_v40 = vpop.f32.mrf.mxu1 }
 0x50d   :  { %4761 = vmatpush.bf16.msrb.mxu1 %v4592_v34  ;;  %7271 = vrot.lane.b32.xlu2 %v11600_v45, %s11372_s29  ;;  %v14756_v12 = vadd.f32 %v4057_v40, %v14486_v31  ;;  %v14772_v31 = vpop.permute.xlu1 %4855  ;;  %v14777_v34 = vpop.permute.xlu2 %4861 }
 0x50e   :  { %6983 = vrot.lane.b32.xlu1 %v11661_v6, %s11371_s28  ;;  %v3888_v2 = vpop.f32.mrf.mxu3  ;;  %v4073_v56 = vpop.f32.mrf.mxu2  ;;  %s11383_s28 = smov 72  }
 0x50f   :  { %v14759_v10 = vadd.f32 %v4073_v56, %v14466_v26 }
 0x510   :  { %4779 = vmatpush.bf16.msrb.mxu2 %v4593_v53  ;;  %v3904_v18 = vpop.f32.mrf.mxu0 }
 0x511   :  { %v14775_v26 = vadd.f32 %v3904_v18, %v14469_v5  ;;  %v14784_v40 = vpop.permute.xlu0 %4883 }
 0x513   :  { %10331 = vmatmul.msk.bf16.vlgmr.msrb.gmra.mxu3 %vm535_vm4, %v14767_v62  ;;  %10319 = vmatmul.msk.bf16.gmra.mxu0 %vm535_vm4, %v14551_v3 }
 0x514   :  { %4796 = vmatpush.bf16.msrb.mxu3 %v4644_v59  ;;  %7247 = vrot.lane.b32.xlu0 %v11588_v17, %s11372_s29  ;;  %v4060_v37 = vpop.f32.mrf.mxu1  ;;  %v4594_v59 = vsel %vm4585_vm1, %v14555_v52, %v14612_v22  ;;  %vm7585_vm1 = vcmask 228352  }
 0x515   :  { %7251 = vrot.lane.b32.xlu2 %v11610_v55, %s11372_s29  ;;  %v14793_v5 = vadd.f32 %v4060_v37, %v14522_v4  ;;  %v10326_v4 = vld [vmem:[%s18140_s2 + $0xb0] sm:$0x3] }
 0x516   :  { %7269 = vrot.lane.b32.xlu1 %v11602_v46, %s11372_s29  ;;  %v4091_v2 = vpop.f32.mrf.mxu3  ;;  %v4075_v56 = vpop.f32.mrf.mxu2 }
 0x517   :  { %18239 = vst [vmem:[#allocation13_spill] sm:$0xff] %v14793_v5  ;;  %v14796_v53 = vadd.f32 %v4091_v2, %v14510_v61  ;;  %v14799_v18 = vadd.f32 %v4075_v56, %v18241_v13  ;;  %10321 = vmatmul.msk.bf16.gmra.mxu1 %vm535_vm4, %v14551_v3  ;;  %v14809_v5 = vpop.permute.xlu1 %4881  ;;  %v4544_v61 = vunpack.c.l.b16 %v10326_v4  ;;  %v14813_v2 = vpop.permute.xlu2 %5169 }
 0x518   :  { %4797 = vmatpush.bf16.msrb.mxu3 %v4594_v59  ;;  %v3906_v37 = vpop.f32.mrf.mxu0  ;;  %18242 = vst [vmem:[#allocation15_spill] sm:$0xff] %v14813_v2  ;;  %v18244_v2 = vld [vmem:[#allocation18_spill] sm:$0xff] }
 0x519   :  { %18240 = vst [vmem:[#allocation12_spill] sm:$0xff] %v14796_v53  ;;  %v14821_v13 = vpop.permute.xlu0 %4863  ;;  %v14829_v4 = vpack.c.b16 %v4544_v61, %v4544_v61  ;;  %v4895_v37 = vsel %vm4885_vm2, %v14648_v42, %v14576_v19 }
 0x51b   :  { %10323 = vmatmul.msk.bf16.gmra.mxu2 %vm535_vm4, %v14551_v3 }
 0x51c   :  { %7275 = vrot.lane.b32.xlu0 %v11623_v14, %s11372_s29  ;;  %v4062_v52 = vpop.f32.mrf.mxu1 }
 0x51d   :  { %7253 = vrot.lane.b32.xlu2 %v11619_v63, %s11372_s29 }
 0x51e   :  { %7249 = vrot.lane.b32.xlu1 %v11592_v28, %s11372_s29  ;;  %v4093_v22 = vpop.f32.mrf.mxu3  ;;  %v4078_v56 = vpop.f32.mrf.mxu2 }
 0x51f   :  { %v14824_v59 = vadd.f32 %v4093_v22, %v14546_v44  ;;  %v14827_v3 = vadd.f32 %v4078_v56, %v14538_v8  ;;  %v4920_v44 = vsel %vm542_vm3, %v4895_v37, 0  ;;  %v4896_v8 = vsel %vm4885_vm2, %v14576_v19, %v14581_v23  ;;  %v14845_v61 = vpop.permute.xlu1 %5167 }
 0x520   :  { %v4109_v52 = vpop.f32.mrf.mxu0 }
 0x521   :  { %18243 = vst [vmem:[#allocation14_spill] sm:$0xff] %v14824_v59  ;;  %v14835_v53 = vadd.f32 %v4109_v52, %v18244_v2  ;;  %v18245_v2 = vld [vmem:[#allocation5_spill] sm:$0xff]  ;;  %v14856_v52 = vpop.permute.xlu2 %5147  ;;  %v4886_v59 = vsel %vm4885_vm2, %v14681_v9, %v14617_v21  ;;  %v4887_v9 = vsel %vm4885_vm2, %v14617_v21, %v14625_v30 }
 0x523   :  { %10332 = vmatmul.msk.bf16.gmra.mxu3 %vm535_vm4, %v14829_v4  ;;  %10333 = vmatmul.msk.bf16.vlgmr.msra.gmra.mxu0 %vm535_vm4, %v14767_v62 }
 0x524   :  { %4952 = vmatpush.bf16.msra.mxu0 %v4920_v44  ;;  %7255 = vrot.lane.b32.xlu0 %v11633_v38, %s11372_s29  ;;  %v4127_v42 = vpop.f32.mrf.mxu1  ;;  %v4897_v44 = vsel %vm4885_vm2, %v14581_v23, %v14655_v48 }
 0x525   :  { %7279 = vrot.lane.b32.xlu2 %v11631_v36, %s11372_s29  ;;  %v14854_v22 = vadd.f32 %v4127_v42, %v14579_v54  ;;  %v4923_v54 = vsel %vm542_vm3, %v4896_v8, 0  ;;  %v14870_v42 = vpop.permute.xlu0 %5149  ;;  %v4926_v23 = vsel %vm542_vm3, %v4897_v44, 0 }
 0x526   :  { %7273 = vrot.lane.b32.xlu1 %v18245_v2, %s11372_s29  ;;  %v4096_v56 = vpop.f32.mrf.mxu3  ;;  %v4080_v37 = vpop.f32.mrf.mxu2 }
 0x527   :  { %v14859_v19 = vadd.f32 %v4096_v56, %v14571_v58  ;;  %10335 = vmatmul.msk.bf16.vlgmr.msra.gmra.mxu1 %vm535_vm4, %v14767_v62  ;;  %v14890_v44 = vpop.permute.xlu1 %4865 }
 0x528   :  { %4953 = vmatpush.bf16.msra.mxu0 %v4886_v59  ;;  %v4111_v37 = vpop.f32.mrf.mxu0  ;;  %4970 = vmatpush.bf16.msra.mxu1 %v4923_v54  ;;  %v4888_v54 = vsel %vm4885_vm2, %v14625_v30, %v14666_v25 }
 0x529   :  { %v14873_v58 = vadd.f32 %v4111_v37, %v14568_v35  ;;  %v4898_v37 = vsel %vm4885_vm2, %v14655_v48, %v14722_v11 }
 0x52b   :  { %10337 = vmatmul.msk.bf16.vlgmr.msra.gmra.mxu2 %vm535_vm4, %v14767_v62 }
 0x52c   :  { %4988 = vmatpush.bf16.msra.mxu2 %v4926_v23  ;;  %7281 = vrot.lane.b32.xlu0 %v11643_v50, %s11372_s29  ;;  %v4129_v59 = vpop.f32.mrf.mxu1  ;;  %v14901_v23 = vpop.permute.xlu2 %5151 }
 0x52d   :  { %4971 = vmatpush.bf16.msra.mxu1 %v4887_v9  ;;  %7259 = vrot.lane.b32.xlu2 %v11645_v51, %s11372_s29  ;;  %v14888_v35 = vadd.f32 %v4129_v59, %v14615_v27  ;;  %v18247_v9 = vld [vmem:[#allocation11_spill] sm:$0xff] }
 0x52e   :  { %7277 = vrot.lane.b32.xlu1 %v18233_v24, %s11372_s29  ;;  %v4098_v8 = vpop.f32.mrf.mxu3  ;;  %v4145_v56 = vpop.f32.mrf.mxu2 }
 0x52f   :  { %18246 = vst [vmem:[#allocation16_spill] sm:$0xff] %v14888_v35  ;;  %v14893_v21 = vadd.f32 %v4145_v56, %v14598_v41  ;;  %v14906_v8 = vpop.permute.xlu0 %5173  ;;  %v4929_v41 = vsel %vm542_vm3, %v4898_v37, 0 }
 0x530   :  { %4989 = vmatpush.bf16.msra.mxu2 %v4888_v54  ;;  %v4114_v27 = vpop.f32.mrf.mxu0 }
 0x531   :  { %v14904_v59 = vadd.f32 %v4114_v27, %v18247_v9  ;;  %v18250_v27 = vld [vmem:[#allocation21_spill] sm:$0xff] }
 0x533   :  { %10339 = vmatmul.msk.bf16.vlgmr.msra.gmra.mxu3 %vm535_vm4, %v14767_v62  ;;  %10334 = vmatmul.msk.bf16.gmra.mxu0 %vm535_vm4, %v14829_v4 }
 0x534   :  { %5006 = vmatpush.bf16.msra.mxu3 %v4929_v41  ;;  %7567 = vrot.lane.b32.xlu0 %v11594_v29, %s11373_s12  ;;  %v4132_v30 = vpop.f32.mrf.mxu1  ;;  %v4889_v29 = vsel %vm4885_vm2, %v14666_v25, %v14772_v31  ;;  %v14933_v41 = vpop.permute.xlu1 %5171  ;;  %v18254_v25 = vld [vmem:[#allocation7_spill] sm:$0xff] }
 0x535   :  { %7283 = vrot.lane.b32.xlu2 %v11661_v6, %s11372_s29  ;;  %v14920_v48 = vadd.f32 %v4132_v30, %v14646_v7  ;;  %v14935_v30 = vpop.permute.xlu2 %5177 }
 0x536   :  { %7257 = vrot.lane.b32.xlu1 %v11635_v39, %s11372_s29  ;;  %v4163_v56 = vpop.f32.mrf.mxu3  ;;  %v4147_v54 = vpop.f32.mrf.mxu2  ;;  %18252 = vst [vmem:[#allocation22_spill] sm:$0xff] %v14935_v30  ;;  %v18256_v30 = vld [vmem:[#allocation9_spill] sm:$0xff] }
 0x537   :  { %18248 = vst [vmem:[#allocation6_spill] sm:$0xff] %v14920_v48  ;;  %v14923_v37 = vadd.f32 %v4163_v56, %v14637_v57  ;;  %v14926_v9 = vadd.f32 %v4147_v54, %v18250_v27  ;;  %10336 = vmatmul.msk.bf16.gmra.mxu1 %vm535_vm4, %v14829_v4  ;;  %v14939_v57 = vpop.permute.xlu0 %5153  ;;  %v4899_v48 = vsel %vm4885_vm2, %v14722_v11, %v14689_v43 }
 0x538   :  { %5007 = vmatpush.bf16.msra.mxu3 %v4889_v29  ;;  %v4116_v7 = vpop.f32.mrf.mxu0  ;;  %18253 = vst [vmem:[#allocation17_spill] sm:$0xff] %v14939_v57  ;;  %v18255_v29 = vld [vmem:[#allocation10_spill] sm:$0xff] }
 0x539   :  { %18249 = vst [vmem:[#allocation24_spill] sm:$0xff] %v14923_v37 }
 0x53a   :  { %18251 = vst [vmem:[#allocation23_spill] sm:$0xff] %v14926_v9 }
 0x53b   :  { %10338 = vmatmul.msk.bf16.gmra.mxu2 %vm535_vm4, %v14829_v4 }
 0x53c   :  { %7265 = vrot.lane.b32.xlu0 %v18171_v60, %s11372_s29  ;;  %v4134_v56 = vpop.f32.mrf.mxu1  ;;  %v14959_v35 = vpop.permute.xlu1 %5175 }
 0x53d   :  { %7263 = vrot.lane.b32.xlu2 %v11655_v1, %s11372_s29  ;;  %v18257_v56 = vld [vmem:[#allocation19_spill] sm:$0xff] }
 0x53e   :  { %7261 = vrot.lane.b32.xlu1 %v18254_v25, %s11372_s29  ;;  %v4165_v54 = vpop.f32.mrf.mxu3  ;;  %v4150_v27 = vpop.f32.mrf.mxu2 }
 0x53f   :  { %v14948_v7 = vadd.f32 %v4165_v54, %v18255_v29  ;;  %v14951_v37 = vadd.f32 %v4150_v27, %v18256_v30  ;;  %v4932_v54 = vsel %vm542_vm3, %v4899_v48, 0  ;;  %v4900_v30 = vsel %vm4885_vm2, %v14689_v43, %v14700_v33  ;;  %v14969_v27 = vpop.permute.xlu2 %5157 }
 0x540   :  { %v4181_v9 = vpop.f32.mrf.mxu0 }
 0x541   :  { %v14957_v57 = vadd.f32 %v4181_v9, %v18257_v56  ;;  %v14980_v56 = vpop.permute.xlu0 %5179 }
 0x543   :  { %10340 = vmatmul.msk.bf16.gmra.mxu3 %vm535_vm4, %v14829_v4  ;;  %10341 = vmatmul.msk.bf16.vlgmr.msrb.gmra.mxu0 %vm535_vm4, %v14767_v62 }
 0x544   :  { %5024 = vmatpush.bf16.msrb.mxu0 %v4932_v54  ;;  %7571 = vrot.lane.b32.xlu0 %v11600_v45, %s11373_s12  ;;  %v4199_v11 = vpop.f32.mrf.mxu1  ;;  %v4901_v45 = vsel %vm4885_vm2, %v14700_v33, %v14809_v5 }
 0x545   :  { %7549 = vrot.lane.b32.xlu2 %v11592_v28, %s11373_s12  ;;  %v14978_v9 = vadd.f32 %v4199_v11, %v14703_v20  ;;  %v4890_v28 = vsel %vm4885_vm2, %v14772_v31, %v14736_v15  ;;  %v4938_v33 = vsel %vm542_vm3, %v4901_v45, 0  ;;  %v15003_v31 = vpop.permute.xlu1 %5155  ;;  %v18258_v45 = vld [vmem:[#allocation20_spill] sm:$0xff] }
 0x546   :  { %7569 = vrot.lane.b32.xlu1 %v11602_v46, %s11373_s12  ;;  %v4168_v48 = vpop.f32.mrf.mxu3  ;;  %v4152_v29 = vpop.f32.mrf.mxu2  ;;  %v4935_v46 = vsel %vm542_vm3, %v4900_v30, 0 }
 0x547   :  { %v14983_v43 = vadd.f32 %v4168_v48, %v14695_v47  ;;  %10343 = vmatmul.msk.bf16.vlgmr.msrb.gmra.mxu1 %vm535_vm4, %v14767_v62  ;;  %v4891_v47 = vsel %vm4885_vm2, %v14736_v15, %v14741_v49  ;;  %v15014_v29 = vpop.permute.xlu2 %5181 }
 0x548   :  { %5025 = vmatpush.bf16.msrb.mxu0 %v4890_v28  ;;  %v4183_v20 = vpop.f32.mrf.mxu0  ;;  %5042 = vmatpush.bf16.msrb.mxu1 %v4935_v46 }
 0x549   :  { %v14995_v54 = vadd.f32 %v4183_v20, %v14692_v32 }
 0x54b   :  { %10345 = vmatmul.msk.bf16.vlgmr.msrb.gmra.mxu2 %vm535_vm4, %v14767_v62 }
 0x54c   :  { %5060 = vmatpush.bf16.msrb.mxu2 %v4938_v33  ;;  %7575 = vrot.lane.b32.xlu0 %v11623_v14, %s11373_s12  ;;  %v4201_v30 = vpop.f32.mrf.mxu1  ;;  %v4892_v14 = vsel %vm4885_vm2, %v14741_v49, %v14777_v34 }
 0x54d   :  { %5043 = vmatpush.bf16.msrb.mxu1 %v4891_v47  ;;  %7573 = vrot.lane.b32.xlu2 %v18245_v2, %s11373_s12  ;;  %v15012_v32 = vadd.f32 %v4201_v30, %v14739_v16  ;;  %v4902_v2 = vsel %vm4885_vm2, %v14809_v5, %v14784_v40  ;;  %v15044_v20 = vpop.permute.xlu1 %5159 }
 0x54e   :  { %7547 = vrot.lane.b32.xlu1 %v11588_v17, %s11373_s12  ;;  %v4170_v11 = vpop.f32.mrf.mxu3  ;;  %v4355_v48 = vpop.f32.mrf.mxu2 }
 0x54f   :  { %v15017_v15 = vadd.f32 %v4355_v48, %v14720_v0  ;;  %v15025_v17 = vpop.permute.xlu0 %5165  ;;  %v4941_v0 = vsel %vm542_vm3, %v4902_v2, 0  ;;  %v18259_v11 = vld [vmem:[#allocation13_spill] sm:$0xff]  ;;  %v18260_v2 = vld [vmem:[#allocation12_spill] sm:$0xff] }
 0x550   :  { %5061 = vmatpush.bf16.msrb.mxu2 %v4892_v14  ;;  %v4186_v16 = vpop.f32.mrf.mxu0  ;;  %v15078_v14 = vld [vmem:[%s18140_s2 + $0xb4] sm:$0xff] }
 0x551   :  { %v15028_v28 = vadd.f32 %v4186_v16, %v18258_v45 }
 0x553   :  { %10347 = vmatmul.msk.bf16.vlgmr.msrb.gmra.mxu3 %vm535_vm4, %v14767_v62  ;;  %10342 = vmatmul.msk.bf16.gmra.mxu0 %vm535_vm4, %v14829_v4 }
 0x554   :  { %5078 = vmatpush.bf16.msrb.mxu3 %v4941_v0  ;;  %7555 = vrot.lane.b32.xlu0 %v11633_v38, %s11373_s12  ;;  %v4204_v49 = vpop.f32.mrf.mxu1  ;;  %v18261_v0 = vld [vmem:[#allocation15_spill] sm:$0xff] }
 0x555   :  { %7553 = vrot.lane.b32.xlu2 %v11619_v63, %s11373_s12  ;;  %v15042_v5 = vadd.f32 %v4204_v49, %v14775_v26  ;;  %v4893_v63 = vsel %vm4885_vm2, %v14777_v34, %v14821_v13 }
 0x556   :  { %7551 = vrot.lane.b32.xlu1 %v11610_v55, %s11373_s12  ;;  %v4373_v62 = vpop.f32.mrf.mxu3  ;;  %v4357_v46 = vpop.f32.mrf.mxu2 }
 0x557   :  { %v15047_v33 = vadd.f32 %v4373_v62, %v14759_v10  ;;  %v15050_v47 = vadd.f32 %v4357_v46, %v14756_v12  ;;  %10344 = vmatmul.msk.bf16.gmra.mxu1 %vm535_vm4, %v14829_v4  ;;  %v15057_v55 = vpop.permute.xlu2 %5161  ;;  %v15059_v26 = vpop.permute.xlu0 %5163 }
 0x558   :  { %5079 = vmatpush.bf16.msrb.mxu3 %v4893_v63  ;;  %v4188_v38 = vpop.f32.mrf.mxu0 }
 0x55b   :  { %10346 = vmatmul.msk.bf16.gmra.mxu2 %vm535_vm4, %v14829_v4 }
 0x55c   :  { %7559 = vrot.lane.b32.xlu0 %v11645_v51, %s11373_s12  ;;  %v4206_v12 = vpop.f32.mrf.mxu1  ;;  %v15083_v51 = vpop.permute.xlu1 %5183 }
 0x55d   :  { %7579 = vrot.lane.b32.xlu2 %v11631_v36, %s11373_s12  ;;  %v4903_v36 = vsel %vm4885_vm2, %v14784_v40, %v14890_v44  ;;  %v5195_v40 = vsel %vm5185_vm5, %v14845_v61, %v18261_v0 }
 0x55e   :  { %7577 = vrot.lane.b32.xlu1 %v18233_v24, %s11373_s12  ;;  %v4375_v10 = vpop.f32.mrf.mxu3  ;;  %v4360_v34 = vpop.f32.mrf.mxu2  ;;  %v4944_v45 = vsel %vm542_vm3, %v4903_v36, 0  ;;  %v5220_v38 = vsel %vm542_vm3, %v5195_v40, 0  ;;  %v5197_v40 = vsel %vm5185_vm5, %v14933_v41, %v14906_v8 }
 0x55f   :  { %v15070_v30 = vadd.f32 %v4375_v10, %v14799_v18  ;;  %v15073_v48 = vadd.f32 %v4360_v34, %v18259_v11  ;;  %v15088_v18 = vpop.permute.xlu2 %5469  ;;  %v15098_v49 = vpop.permute.xlu0 %5447 }
 0x560   :  { %v4391_v24 = vpop.f32.mrf.mxu0 }
 0x561   :  { %v15086_v16 = vadd.f32 %v4391_v24, %v18260_v2 }
 0x563   :  { %10348 = vmatmul.msk.bf16.gmra.mxu3 %vm535_vm4, %v14829_v4  ;;  %10356 = vmatmul.msk.bf16.vlgmr.msra.gmra.mxu0 %vm535_vm4, %v15078_v14 }
 0x564   :  { %5096 = vmatpush.bf16.msra.mxu0 %v4944_v45  ;;  %7583 = vrot.lane.b32.xlu0 %v11661_v6, %s11373_s12  ;;  %v4409_v62 = vpop.f32.mrf.mxu1  ;;  %v5196_v6 = vsel %vm5185_vm5, %v18261_v0, %v14933_v41  ;;  %v15127_v10 = vpop.permute.xlu1 %5467 }
 0x565   :  { %7565 = vrot.lane.b32.xlu2 %v18171_v60, %s11373_s12  ;;  %v15107_v4 = vadd.f32 %v4409_v62, %v14835_v53  ;;  %v4894_v60 = vsel %vm4885_vm2, %v14821_v13, %v14890_v44  ;;  %v10351_v53 = vld [vmem:[%s18140_s2 + $0xbc] sm:$0x3]  ;;  %v5223_v13 = vsel %vm542_vm3, %v5196_v6, 0  ;;  %v5186_v44 = vsel %vm5185_vm5, %v14856_v52, %v14870_v42 }
 0x566   :  { %7557 = vrot.lane.b32.xlu1 %v11635_v39, %s11373_s12  ;;  %v4378_v46 = vpop.f32.mrf.mxu3  ;;  %v4362_v63 = vpop.f32.mrf.mxu2  ;;  %v4844_v34 = vunpack.c.l.b16 %v10351_v53  ;;  %v5187_v52 = vsel %vm5185_vm5, %v14870_v42, %v14901_v23  ;;  %vm8726_vm2 = vcmask 326656  }
 0x567   :  { %v15110_v61 = vadd.f32 %v4378_v46, %v14827_v3  ;;  %10358 = vmatmul.msk.bf16.vlgmr.msra.gmra.mxu1 %vm535_vm4, %v15078_v14  ;;  %v18262_v3 = vld [vmem:[#allocation14_spill] sm:$0xff]  ;;  %v15135_v11 = vpop.permute.xlu2 %5471 }
 0x568   :  { %5097 = vmatpush.bf16.msra.mxu0 %v4894_v60  ;;  %v4393_v39 = vpop.f32.mrf.mxu0  ;;  %5252 = vmatpush.bf16.msra.mxu1 %v5220_v38  ;;  %v18263_v38 = vld [vmem:[#allocation16_spill] sm:$0xff]  ;;  %v18264_v60 = vld [vmem:[#allocation17_spill] sm:$0xff] }
 0x569   :  { %v15125_v12 = vadd.f32 %v4393_v39, %v18262_v3  ;;  %v5188_v39 = vsel %vm5185_vm5, %v14901_v23, %v18264_v60  ;;  %v5198_v23 = vsel %vm5185_vm5, %v14906_v8, %v14959_v35 }
 0x56b   :  { %10360 = vmatmul.msk.bf16.vlgmr.msra.gmra.mxu2 %vm535_vm4, %v15078_v14 }
 0x56c   :  { %5270 = vmatpush.bf16.msra.mxu2 %v5223_v13  ;;  %5253 = vmatpush.bf16.msra.mxu1 %v5186_v44  ;;  %v4411_v36 = vpop.f32.mrf.mxu1  ;;  %v15163_v42 = vpop.permute.xlu1 %5449  ;;  %v18266_v44 = vld [vmem:[#allocation6_spill] sm:$0xff] }
 0x56d   :  { %7563 = vrot.lane.b32.xlu2 %v11655_v1, %s11373_s12  ;;  %v15142_v24 = vadd.f32 %v4411_v36, %v14873_v58  ;;  %v15153_v1 = vpack.c.b16 %v4844_v34, %v4844_v34 }
 0x56e   :  { %7581 = vrot.lane.b32.xlu1 %v11643_v50, %s11373_s12  ;;  %v4380_v2 = vpop.f32.mrf.mxu3  ;;  %v4427_v45 = vpop.f32.mrf.mxu2 }
 0x56f   :  { %v15145_v0 = vadd.f32 %v4427_v45, %v14854_v22  ;;  %v5226_v22 = vsel %vm542_vm3, %v5197_v40, 0  ;;  %v18267_v2 = vld [vmem:[#allocation24_spill] sm:$0xff]  ;;  %v18268_v40 = vld [vmem:[#allocation22_spill] sm:$0xff] }
 0x570   :  { %5271 = vmatpush.bf16.msra.mxu2 %v5187_v52  ;;  %v4396_v50 = vpop.f32.mrf.mxu0  ;;  %v5229_v52 = vsel %vm542_vm3, %v5198_v23, 0  ;;  %v5201_v23 = vsel %vm5185_vm5, %v14980_v56, %v15014_v29 }
 0x571   :  { %v15156_v58 = vadd.f32 %v4396_v50, %v14859_v19  ;;  %v5199_v50 = vsel %vm5185_vm5, %v14959_v35, %v18268_v40 }
 0x572   :  { %v5232_v35 = vsel %vm542_vm3, %v5199_v50, 0 }
 0x573   :  { %10362 = vmatmul.msk.bf16.vlgmr.msra.gmra.mxu3 %vm535_vm4, %v15078_v14  ;;  %10357 = vmatmul.msk.bf16.gmra.mxu0 %vm535_vm4, %v15153_v1 }
 0x574   :  { %5288 = vmatpush.bf16.msra.mxu3 %v5226_v22  ;;  %v4414_v62 = vpop.f32.mrf.mxu1 }
 0x575   :  { %v15168_v41 = vadd.f32 %v4414_v62, %v14904_v59 }
 0x576   :  { %7561 = vrot.lane.b32.xlu1 %v18254_v25, %s11373_s12  ;;  %v4445_v19 = vpop.f32.mrf.mxu3  ;;  %v4429_v46 = vpop.f32.mrf.mxu2  ;;  %s11378_s12 = smov 20  }
 0x577   :  { %v15171_v63 = vadd.f32 %v4445_v19, %v14893_v21  ;;  %v15174_v6 = vadd.f32 %v4429_v46, %v18263_v38  ;;  %10359 = vmatmul.msk.bf16.gmra.mxu1 %vm535_vm4, %v15153_v1  ;;  %v18265_v21 = vld [vmem:[#allocation23_spill] sm:$0xff]  ;;  %v5200_v38 = vsel %vm5185_vm5, %v18268_v40, %v14980_v56  ;;  %v5192_v40 = vsel %vm5185_vm5, %v15044_v20, %v15057_v55 }
 0x578   :  { %5289 = vmatpush.bf16.msra.mxu3 %v5188_v39  ;;  %v4398_v25 = vpop.f32.mrf.mxu0  ;;  %v5189_v39 = vsel %vm5185_vm5, %v18264_v60, %v15003_v31  ;;  %v5190_v60 = vsel %vm5185_vm5, %v15003_v31, %v14969_v27 }
 0x57b   :  { %10361 = vmatmul.msk.bf16.gmra.mxu2 %vm535_vm4, %v15153_v1 }
 0x57c   :  { %v4416_v59 = vpop.f32.mrf.mxu1 }
 0x57e   :  { %v4447_v53 = vpop.f32.mrf.mxu3  ;;  %v4432_v3 = vpop.f32.mrf.mxu2 }
 0x57f   :  { %v15184_v13 = vadd.f32 %v4447_v53, %v18265_v21  ;;  %v15187_v34 = vadd.f32 %v4432_v3, %v18266_v44  ;;  %v5191_v44 = vsel %vm5185_vm5, %v14969_v27, %v15044_v20  ;;  %v5202_v20 = vsel %vm5185_vm5, %v15014_v29, %v15083_v51 }
 0x580   :  { %v4463_v36 = vpop.f32.mrf.mxu0  ;;  %v5203_v29 = vsel %vm5185_vm5, %v15083_v51, %v15025_v17 }
 0x581   :  { %v15193_v45 = vadd.f32 %v4463_v36, %v18267_v2  ;;  %v5244_v51 = vsel %vm542_vm3, %v5203_v29, 0 }
 0x583   :  { %10363 = vmatmul.msk.bf16.gmra.mxu3 %vm535_vm4, %v15153_v1  ;;  %10364 = vmatmul.msk.bf16.vlgmr.msrb.gmra.mxu0 %vm535_vm4, %v15078_v14 }
 0x584   :  { %5306 = vmatpush.bf16.msrb.mxu0 %v5229_v52  ;;  %v4481_v22 = vpop.f32.mrf.mxu1 }
 0x585   :  { %v15204_v8 = vadd.f32 %v4481_v22, %v14957_v57 }
 0x586   :  { %v4450_v62 = vpop.f32.mrf.mxu3  ;;  %v4434_v19 = vpop.f32.mrf.mxu2 }
 0x587   :  { %v15207_v46 = vadd.f32 %v4450_v62, %v14951_v37  ;;  %10366 = vmatmul.msk.bf16.vlgmr.msrb.gmra.mxu1 %vm535_vm4, %v15078_v14  ;;  %v5235_v37 = vsel %vm542_vm3, %v5200_v38, 0 }
 0x588   :  { %5307 = vmatpush.bf16.msrb.mxu0 %v5189_v39  ;;  %v4465_v57 = vpop.f32.mrf.mxu0  ;;  %5324 = vmatpush.bf16.msrb.mxu1 %v5232_v35 }
 0x589   :  { %v15219_v25 = vadd.f32 %v4465_v57, %v14948_v7 }
 0x58b   :  { %10368 = vmatmul.msk.bf16.vlgmr.msrb.gmra.mxu2 %vm535_vm4, %v15078_v14 }
 0x58c   :  { %5342 = vmatpush.bf16.msrb.mxu2 %v5235_v37  ;;  %5325 = vmatpush.bf16.msrb.mxu1 %v5190_v60  ;;  %v4483_v59 = vpop.f32.mrf.mxu1  ;;  %v5495_v37 = vsel %vm5485_vm6, %v15127_v10, %v15088_v18  ;;  %v5193_v60 = vsel %vm5185_vm5, %v15057_v55, %v15059_v26  ;;  %v5194_v55 = vsel %vm5185_vm5, %v15059_v26, %v15025_v17  ;;  %vm8728_vm5 = vcmask 490496  }
 0x58d   :  { %v15228_v53 = vadd.f32 %v4483_v59, %v14995_v54  ;;  %v5238_v54 = vsel %vm542_vm3, %v5201_v23, 0  ;;  %v5496_v17 = vsel %vm5485_vm6, %v15088_v18, %v15135_v11 }
 0x58e   :  { %v4452_v3 = vpop.f32.mrf.mxu3  ;;  %v4499_v21 = vpop.f32.mrf.mxu2 }
 0x58f   :  { %v15231_v7 = vadd.f32 %v4499_v21, %v14978_v9  ;;  %v10376_v3 = vld [vmem:[%s18140_s2 + $0xc8] sm:$0x3] }
 0x590   :  { %5343 = vmatpush.bf16.msrb.mxu2 %v5191_v44  ;;  %v4468_v31 = vpop.f32.mrf.mxu0  ;;  %v5144_v26 = vunpack.c.l.b16 %v10376_v3 }
 0x591   :  { %v15240_v36 = vadd.f32 %v4468_v31, %v14983_v43  ;;  %v5486_v31 = vsel %vm5485_vm6, %v15098_v49, %v15163_v42 }
 0x592   :  { %v15335_v49 = vpack.c.b16 %v5144_v26, %v5144_v26 }
 0x593   :  { %10370 = vmatmul.msk.bf16.vlgmr.msrb.gmra.mxu3 %vm535_vm4, %v15078_v14  ;;  %10365 = vmatmul.msk.bf16.gmra.mxu0 %vm535_vm4, %v15153_v1 }
 0x594   :  { %5360 = vmatpush.bf16.msrb.mxu3 %v5238_v54  ;;  %v4486_v9 = vpop.f32.mrf.mxu1 }
 0x595   :  { %v15248_v27 = vadd.f32 %v4486_v9, %v15028_v28 }
 0x596   :  { %v4655_v2 = vpop.f32.mrf.mxu3  ;;  %v4501_v56 = vpop.f32.mrf.mxu2 }
 0x597   :  { %v15251_v52 = vadd.f32 %v4655_v2, %v15017_v15  ;;  %v15254_v43 = vadd.f32 %v4501_v56, %v15012_v32  ;;  %10367 = vmatmul.msk.bf16.gmra.mxu1 %vm535_vm4, %v15153_v1  ;;  %v5476_v2 = vpop.permute.xlu1 %5475 }
 0x598   :  { %5361 = vmatpush.bf16.msrb.mxu3 %v5192_v40  ;;  %v4470_v50 = vpop.f32.mrf.mxu0 }
 0x59b   :  { %10369 = vmatmul.msk.bf16.gmra.mxu2 %vm535_vm4, %v15153_v1 }
 0x59c   :  { %v4488_v28 = vpop.f32.mrf.mxu1 }
 0x59e   :  { %v4657_v22 = vpop.f32.mrf.mxu3  ;;  %v4504_v62 = vpop.f32.mrf.mxu2 }
 0x59f   :  { %v15264_v15 = vadd.f32 %v4657_v22, %v15050_v47  ;;  %v15267_v32 = vadd.f32 %v4504_v62, %v15042_v5  ;;  %v5241_v47 = vsel %vm542_vm3, %v5202_v20, 0  ;;  %v15283_v5 = vld [vmem:[%s18140_s2 + $0xc0] sm:$0xff] }
 0x5a0   :  { %v4673_v19 = vpop.f32.mrf.mxu0 }
 0x5a1   :  { %v15273_v38 = vadd.f32 %v4673_v19, %v15047_v33 }
 0x5a3   :  { %10371 = vmatmul.msk.bf16.gmra.mxu3 %vm535_vm4, %v15153_v1  ;;  %10372 = vmatmul.msk.bf16.vlgmr.msra.gmra.mxu0 %vm535_vm4, %v15078_v14 }
 0x5a4   :  { %5378 = vmatpush.bf16.msra.mxu0 %v5241_v47  ;;  %v4691_v33 = vpop.f32.mrf.mxu1  ;;  %v5456_v47 = vpop.permute.xlu1 %5455 }
 0x5a5   :  { %v15289_v39 = vadd.f32 %v4691_v33, %v15086_v16 }
 0x5a6   :  { %v4660_v35 = vpop.f32.mrf.mxu3  ;;  %v4506_v57 = vpop.f32.mrf.mxu2 }
 0x5a7   :  { %v15292_v14 = vadd.f32 %v4660_v35, %v15073_v48  ;;  %10381 = vmatmul.msk.bf16.vlgmr.msra.gmra.mxu1 %vm535_vm4, %v15283_v5  ;;  %v5520_v48 = vsel %vm542_vm3, %v5495_v37, 0 }
 0x5a8   :  { %5379 = vmatpush.bf16.msra.mxu0 %v5193_v60  ;;  %v4675_v16 = vpop.f32.mrf.mxu0  ;;  %5396 = vmatpush.bf16.msra.mxu1 %v5244_v51 }
 0x5a9   :  { %v15304_v59 = vadd.f32 %v4675_v16, %v15070_v30 }
 0x5ab   :  { %10383 = vmatmul.msk.bf16.vlgmr.msra.gmra.mxu2 %vm535_vm4, %v15283_v5 }
 0x5ac   :  { %5552 = vmatpush.bf16.msra.mxu2 %v5520_v48  ;;  %5397 = vmatpush.bf16.msra.mxu1 %v5194_v55  ;;  %v4693_v10 = vpop.f32.mrf.mxu1 }
 0x5ad   :  { %v15316_v21 = vadd.f32 %v4693_v10, %v15125_v12  ;;  %v5452_v12 = vpop.permute.xlu2 %5451 }
 0x5ae   :  { %v4662_v30 = vpop.f32.mrf.mxu3  ;;  %v4709_v44 = vpop.f32.mrf.mxu2  ;;  %v5487_v22 = vsel %vm5485_vm6, %v15163_v42, %v5452_v12 }
 0x5af   :  { %v15319_v23 = vadd.f32 %v4709_v44, %v15107_v4  ;;  %v5523_v4 = vsel %vm542_vm3, %v5496_v17, 0 }
 0x5b0   :  { %5553 = vmatpush.bf16.msra.mxu2 %v5486_v31  ;;  %v4678_v54 = vpop.f32.mrf.mxu0 }
 0x5b1   :  { %v15328_v9 = vadd.f32 %v4678_v54, %v15110_v61 }
 0x5b3   :  { %10385 = vmatmul.msk.bf16.vlgmr.msra.gmra.mxu3 %vm535_vm4, %v15283_v5  ;;  %10373 = vmatmul.msk.bf16.gmra.mxu0 %vm535_vm4, %v15153_v1  ;;  %v5474_v1 = vpop.permute.xlu0 %5473 }
 0x5b4   :  { %5570 = vmatpush.bf16.msra.mxu3 %v5523_v4  ;;  %v4696_v18 = vpop.f32.mrf.mxu1  ;;  %v5497_v42 = vsel %vm5485_vm6, %v15135_v11, %v5474_v1 }
 0x5b5   :  { %v15338_v56 = vadd.f32 %v4696_v18, %v15156_v58 }
 0x5b6   :  { %v4727_v40 = vpop.f32.mrf.mxu3  ;;  %v4711_v61 = vpop.f32.mrf.mxu2 }
 0x5b7   :  { %v15341_v50 = vadd.f32 %v4727_v40, %v15145_v0  ;;  %v15344_v28 = vadd.f32 %v4711_v61, %v15142_v24  ;;  %10382 = vmatmul.msk.bf16.gmra.mxu1 %vm535_vm4, %v15335_v49 }
 0x5b8   :  { %5571 = vmatpush.bf16.msra.mxu3 %v5487_v22  ;;  %v4680_v62 = vpop.f32.mrf.mxu0 }
 0x5bb   :  { %10384 = vmatmul.msk.bf16.gmra.mxu2 %vm535_vm4, %v15335_v49  ;;  %v5454_v35 = vpop.permute.xlu0 %5453 }
 0x5bc   :  { %v4698_v58 = vpop.f32.mrf.mxu1  ;;  %v5488_v48 = vsel %vm5485_vm6, %v5452_v12, %v5454_v35  ;;  %v5489_v30 = vsel %vm5485_vm6, %v5454_v35, %v5456_v47 }
 0x5be   :  { %v4729_v20 = vpop.f32.mrf.mxu3  ;;  %v4714_v19 = vpop.f32.mrf.mxu2 }
 0x5bf   :  { %v15353_v0 = vadd.f32 %v4729_v20, %v15174_v6  ;;  %v15356_v24 = vadd.f32 %v4714_v19, %v15168_v41  ;;  %v5526_v6 = vsel %vm542_vm3, %v5497_v42, 0  ;;  %v5498_v41 = vsel %vm5485_vm6, %v5474_v1, %v5476_v2 }
 0x5c0   :  { %v4745_v29 = vpop.f32.mrf.mxu0  ;;  %v5529_v55 = vsel %vm542_vm3, %v5498_v41, 0 }
 0x5c1   :  { %v15361_v33 = vadd.f32 %v4745_v29, %v15171_v63  ;;  %v5478_v63 = vpop.permute.xlu2 %5477 }
 0x5c2   :  { %v5499_v16 = vsel %vm5485_vm6, %v5476_v2, %v5478_v63 }
 0x5c3   :  { %10386 = vmatmul.msk.bf16.gmra.mxu3 %vm535_vm4, %v15335_v49  ;;  %10387 = vmatmul.msk.bf16.vlgmr.msrb.gmra.mxu0 %vm535_vm4, %v15283_v5  ;;  %v5458_v44 = vpop.permute.xlu0 %5457 }
 0x5c4   :  { %5588 = vmatpush.bf16.msrb.mxu0 %v5526_v6  ;;  %v4763_v57 = vpop.f32.mrf.mxu1 }
 0x5c5   :  { %v15370_v37 = vadd.f32 %v4763_v57, %v15193_v45  ;;  %v5480_v45 = vpop.permute.xlu1 %5479 }
 0x5c6   :  { %v4732_v11 = vpop.f32.mrf.mxu3  ;;  %v4716_v60 = vpop.f32.mrf.mxu2  ;;  %v5500_v12 = vsel %vm5485_vm6, %v5478_v63, %v5480_v45 }
 0x5c7   :  { %v15373_v51 = vadd.f32 %v4732_v11, %v15187_v34  ;;  %10389 = vmatmul.msk.bf16.vlgmr.msrb.gmra.mxu1 %vm535_vm4, %v15283_v5  ;;  %v5532_v34 = vsel %vm542_vm3, %v5499_v16, 0 }
 0x5c8   :  { %5589 = vmatpush.bf16.msrb.mxu0 %v5488_v48  ;;  %v4747_v10 = vpop.f32.mrf.mxu0  ;;  %5606 = vmatpush.bf16.msrb.mxu1 %v5529_v55 }
 0x5c9   :  { %v15381_v3 = vadd.f32 %v4747_v10, %v15184_v13  ;;  %v5490_v13 = vsel %vm5485_vm6, %v5456_v47, %v5458_v44  ;;  %v5482_v47 = vpop.permute.xlu2 %5481  ;;  %v15442_v10 = vld [vmem:[%s18140_s2 + $0xcc] sm:$0xff] }
 0x5ca   :  { %v5501_v41 = vsel %vm5485_vm6, %v5480_v45, %v5482_v47 }
 0x5cb   :  { %10391 = vmatmul.msk.bf16.vlgmr.msrb.gmra.mxu2 %vm535_vm4, %v15283_v5  ;;  %v5484_v62 = vpop.permute.xlu0 %5483 }
 0x5cc   :  { %5624 = vmatpush.bf16.msrb.mxu2 %v5532_v34  ;;  %5607 = vmatpush.bf16.msrb.mxu1 %v5489_v30  ;;  %v4765_v31 = vpop.f32.mrf.mxu1 }
 0x5cd   :  { %v15388_v17 = vadd.f32 %v4765_v31, %v15219_v25  ;;  %v5535_v25 = vsel %vm542_vm3, %v5500_v12, 0  ;;  %v5460_v40 = vpop.permute.xlu1 %5459 }
 0x5ce   :  { %v4734_v26 = vpop.f32.mrf.mxu3  ;;  %v4781_v54 = vpop.f32.mrf.mxu2  ;;  %v5491_v20 = vsel %vm5485_vm6, %v5458_v44, %v5460_v40 }
 0x5cf   :  { %v15391_v4 = vadd.f32 %v4781_v54, %v15204_v8 }
 0x5d0   :  { %5625 = vmatpush.bf16.msrb.mxu2 %v5490_v13  ;;  %v4750_v2 = vpop.f32.mrf.mxu0 }
 0x5d1   :  { %v15396_v18 = vadd.f32 %v4750_v2, %v15207_v46  ;;  %v5462_v60 = vpop.permute.xlu2 %5461 }
 0x5d2   :  { %v5492_v34 = vsel %vm5485_vm6, %v5460_v40, %v5462_v60 }
 0x5d3   :  { %10393 = vmatmul.msk.bf16.vlgmr.msrb.gmra.mxu3 %vm535_vm4, %v15283_v5  ;;  %10388 = vmatmul.msk.bf16.gmra.mxu0 %vm535_vm4, %v15335_v49  ;;  %v5464_v6 = vpop.permute.xlu0 %5463 }
 0x5d4   :  { %5642 = vmatpush.bf16.msrb.mxu3 %v5535_v25  ;;  %v4768_v8 = vpop.f32.mrf.mxu1  ;;  %v5493_v54 = vsel %vm5485_vm6, %v5462_v60, %v5464_v6 }
 0x5d5   :  { %v15404_v61 = vadd.f32 %v4768_v8, %v15240_v36  ;;  %v5466_v35 = vpop.permute.xlu1 %5465 }
 0x5d6   :  { %v4799_v22 = vpop.f32.mrf.mxu3  ;;  %v4783_v1 = vpop.f32.mrf.mxu2  ;;  %v5503_v45 = vsel %vm5485_vm6, %v5484_v62, %v5466_v35  ;;  %v5494_v40 = vsel %vm5485_vm6, %v5464_v6, %v5466_v35 }
 0x5d7   :  { %v15407_v46 = vadd.f32 %v4799_v22, %v15231_v7  ;;  %v15410_v58 = vadd.f32 %v4783_v1, %v15228_v53  ;;  %10390 = vmatmul.msk.bf16.gmra.mxu1 %vm535_vm4, %v15335_v49  ;;  %v5544_v26 = vsel %vm542_vm3, %v5503_v45, 0  ;;  %v10401_v22 = vld [vmem:[%s18140_s2 + $0xd4] sm:$0x3] }
 0x5d8   :  { %5643 = vmatpush.bf16.msrb.mxu3 %v5491_v20  ;;  %v4752_v19 = vpop.f32.mrf.mxu0 }
 0x5d9   :  { %v5768_v25 = vpop.permute.xlu2 %5767 }
 0x5db   :  { %10392 = vmatmul.msk.bf16.gmra.mxu2 %vm535_vm4, %v15335_v49  ;;  %v5770_v31 = vpop.permute.xlu0 %5769 }
 0x5dc   :  { %v4770_v36 = vpop.f32.mrf.mxu1  ;;  %v5795_v8 = vsel %vm5785_vm9, %v5768_v25, %v5770_v31 }
 0x5dd   :  { %v5772_v44 = vpop.permute.xlu1 %5771 }
 0x5de   :  { %v4801_v42 = vpop.f32.mrf.mxu3  ;;  %v4786_v29 = vpop.f32.mrf.mxu2 }
 0x5df   :  { %v15418_v7 = vadd.f32 %v4801_v42, %v15254_v43  ;;  %v15421_v53 = vadd.f32 %v4786_v29, %v15248_v27  ;;  %v5538_v43 = vsel %vm542_vm3, %v5501_v41, 0  ;;  %v5502_v27 = vsel %vm5485_vm6, %v5482_v47, %v5484_v62 }
 0x5e0   :  { %v4955_v57 = vpop.f32.mrf.mxu0  ;;  %vm8734_vm6 = vcmask 982016  }
 0x5e1   :  { %v15425_v11 = vadd.f32 %v4955_v57, %v15251_v52  ;;  %v5774_v57 = vpop.permute.xlu2 %5773 }
 0x5e3   :  { %10394 = vmatmul.msk.bf16.gmra.mxu3 %vm535_vm4, %v15335_v49  ;;  %10395 = vmatmul.msk.bf16.vlgmr.msra.gmra.mxu0 %vm535_vm4, %v15283_v5  ;;  %v5748_v19 = vpop.permute.xlu0 %5747 }
 0x5e4   :  { %5660 = vmatpush.bf16.msra.mxu0 %v5538_v43  ;;  %v4973_v63 = vpop.f32.mrf.mxu1 }
 0x5e5   :  { %v15434_v16 = vadd.f32 %v4973_v63, %v15273_v38  ;;  %v5541_v38 = vsel %vm542_vm3, %v5502_v27, 0  ;;  %v5750_v20 = vpop.permute.xlu1 %5749 }
 0x5e6   :  { %v4804_v48 = vpop.f32.mrf.mxu3  ;;  %v4788_v55 = vpop.f32.mrf.mxu2  ;;  %v5786_v6 = vsel %vm5785_vm9, %v5748_v19, %v5750_v20 }
 0x5e7   :  { %v15437_v52 = vadd.f32 %v4804_v48, %v15267_v32  ;;  %10397 = vmatmul.msk.bf16.vlgmr.msra.gmra.mxu1 %vm535_vm4, %v15283_v5  ;;  %v5796_v48 = vsel %vm5785_vm9, %v5770_v31, %v5772_v44 }
 0x5e8   :  { %5661 = vmatpush.bf16.msra.mxu0 %v5492_v34  ;;  %v4957_v30 = vpop.f32.mrf.mxu0  ;;  %5678 = vmatpush.bf16.msra.mxu1 %v5541_v38  ;;  %v5797_v34 = vsel %vm5785_vm9, %v5772_v44, %v5774_v57 }
 0x5e9   :  { %v15450_v32 = vadd.f32 %v4957_v30, %v15264_v15  ;;  %v5752_v45 = vpop.permute.xlu2 %5751  ;;  %v5826_v44 = vsel %vm542_vm3, %v5797_v34, 0 }
 0x5eb   :  { %10406 = vmatmul.msk.bf16.vlgmr.msra.gmra.mxu2 %vm535_vm4, %v15442_v10  ;;  %v5754_v63 = vpop.permute.xlu0 %5753 }
 0x5ec   :  { %5696 = vmatpush.bf16.msra.mxu2 %v5544_v26  ;;  %5679 = vmatpush.bf16.msra.mxu1 %v5493_v54  ;;  %v4975_v5 = vpop.f32.mrf.mxu1  ;;  %v5788_v25 = vsel %vm5785_vm9, %v5752_v45, %v5754_v63 }
 0x5ed   :  { %v15457_v13 = vadd.f32 %v4975_v5, %v15304_v59  ;;  %v5820_v59 = vsel %vm542_vm3, %v5795_v8, 0  ;;  %v5787_v5 = vsel %vm5785_vm9, %v5750_v20, %v5752_v45 }
 0x5ee   :  { %v4806_v12 = vpop.f32.mrf.mxu3  ;;  %v4991_v2 = vpop.f32.mrf.mxu2 }
 0x5ef   :  { %v15460_v15 = vadd.f32 %v4991_v2, %v15289_v39  ;;  %v5444_v39 = vunpack.c.l.b16 %v10401_v22 }
 0x5f0   :  { %5697 = vmatpush.bf16.msra.mxu2 %v5494_v40  ;;  %v4960_v1 = vpop.f32.mrf.mxu0 }
 0x5f1   :  { %v15468_v62 = vadd.f32 %v4960_v1, %v15292_v14  ;;  %v15485_v41 = vpack.c.b16 %v5444_v39, %v5444_v39  ;;  %v5756_v40 = vpop.permute.xlu2 %5755 }
 0x5f3   :  { %10408 = vmatmul.msk.bf16.vlgmr.msra.gmra.mxu3 %vm535_vm4, %v15442_v10  ;;  %10396 = vmatmul.msk.bf16.gmra.mxu0 %vm535_vm4, %v15335_v49  ;;  %v5778_v2 = vpop.permute.xlu0 %5777 }
 0x5f4   :  { %5852 = vmatpush.bf16.msra.mxu3 %v5820_v59  ;;  %v4978_v47 = vpop.f32.mrf.mxu1 }
 0x5f5   :  { %v15476_v36 = vadd.f32 %v4978_v47, %v15328_v9 }
 0x5f6   :  { %v4993_v42 = vpop.f32.mrf.mxu2  ;;  %v5009_v29 = vpop.f32.mrf.mxu3 }
 0x5f7   :  { %v15479_v14 = vadd.f32 %v4993_v42, %v15316_v21  ;;  %v15482_v35 = vadd.f32 %v5009_v29, %v15319_v23  ;;  %10398 = vmatmul.msk.bf16.gmra.mxu1 %vm535_vm4, %v15335_v49 }
 0x5f8   :  { %5853 = vmatpush.bf16.msra.mxu3 %v5786_v6  ;;  %v4962_v43 = vpop.f32.mrf.mxu0 }
 0x5f9   :  { %v5782_v43 = vpop.permute.xlu2 %5781 }
 0x5fb   :  { %10407 = vmatmul.msk.bf16.gmra.mxu2 %vm535_vm4, %v15485_v41  ;;  %v5758_v42 = vpop.permute.xlu0 %5757 }
 0x5fc   :  { %v4980_v9 = vpop.f32.mrf.mxu1 }
 0x5fe   :  { %v4996_v60 = vpop.f32.mrf.mxu2  ;;  %v5011_v21 = vpop.f32.mrf.mxu3 }
 0x5ff   :  { %v15492_v27 = vadd.f32 %v4996_v60, %v15338_v56  ;;  %v15495_v23 = vadd.f32 %v5011_v21, %v15344_v28  ;;  %v5823_v56 = vsel %vm542_vm3, %v5796_v48, 0  ;;  %v5776_v28 = vpop.permute.xlu1 %5775  ;;  %v5790_v60 = vsel %vm5785_vm9, %v5756_v40, %v5758_v42 }
 0x600   :  { %v5027_v55 = vpop.f32.mrf.mxu0  ;;  %v5798_v54 = vsel %vm5785_vm9, %v5774_v57, %v5776_v28  ;;  %v5799_v20 = vsel %vm5785_vm9, %v5776_v28, %v5778_v2 }
 0x601   :  { %v15499_v49 = vadd.f32 %v5027_v55, %v15341_v50  ;;  %v5762_v45 = vpop.permute.xlu2 %5761 }
 0x603   :  { %10409 = vmatmul.msk.bf16.gmra.mxu3 %vm535_vm4, %v15485_v41  ;;  %10410 = vmatmul.msk.bf16.vlgmr.msrb.gmra.mxu0 %vm535_vm4, %v15442_v10 }
 0x604   :  { %5870 = vmatpush.bf16.msrb.mxu0 %v5823_v56  ;;  %v5045_v38 = vpop.f32.mrf.mxu1 }
 0x605   :  { %v15508_v30 = vadd.f32 %v5045_v38, %v15361_v33 }
 0x606   :  { %v4998_v31 = vpop.f32.mrf.mxu2  ;;  %v5014_v50 = vpop.f32.mrf.mxu3 }
 0x607   :  { %v15511_v26 = vadd.f32 %v5014_v50, %v15356_v24  ;;  %10412 = vmatmul.msk.bf16.vlgmr.msrb.gmra.mxu1 %vm535_vm4, %v15442_v10  ;;  %v5829_v24 = vsel %vm542_vm3, %v5798_v54, 0  ;;  %v5780_v21 = vpop.permute.xlu1 %5779  ;;  %v5784_v31 = vpop.permute.xlu0 %5783 }
 0x608   :  { %5871 = vmatpush.bf16.msrb.mxu0 %v5787_v5  ;;  %v5029_v12 = vpop.f32.mrf.mxu0  ;;  %5888 = vmatpush.bf16.msrb.mxu1 %v5826_v44  ;;  %v5800_v56 = vsel %vm5785_vm9, %v5778_v2, %v5780_v21 }
 0x609   :  { %v15519_v33 = vadd.f32 %v5029_v12, %v15353_v0  ;;  %v5789_v0 = vsel %vm5785_vm9, %v5754_v63, %v5756_v40  ;;  %v5802_v12 = vsel %vm5785_vm9, %v5782_v43, %v5784_v31  ;;  %v5766_v40 = vpop.permute.xlu2 %5765 }
 0x60b   :  { %10414 = vmatmul.msk.bf16.vlgmr.msrb.gmra.mxu2 %vm535_vm4, %v15442_v10 }
 0x60c   :  { %5906 = vmatpush.bf16.msrb.mxu2 %v5829_v24  ;;  %5889 = vmatpush.bf16.msrb.mxu1 %v5788_v25  ;;  %v5047_v8 = vpop.f32.mrf.mxu1 }
 0x60d   :  { %v15526_v22 = vadd.f32 %v5047_v8, %v15381_v3  ;;  %v5832_v3 = vsel %vm542_vm3, %v5799_v20, 0  ;;  %v5841_v8 = vsel %vm542_vm3, %v5802_v12, 0 }
 0x60e   :  { %v5016_v1 = vpop.f32.mrf.mxu3  ;;  %v5063_v59 = vpop.f32.mrf.mxu2 }
 0x60f   :  { %v15529_v39 = vadd.f32 %v5063_v59, %v15370_v37  ;;  %v5760_v28 = vpop.permute.xlu1 %5759 }
 0x610   :  { %5907 = vmatpush.bf16.msrb.mxu2 %v5789_v0  ;;  %v5032_v19 = vpop.f32.mrf.mxu0  ;;  %v5791_v2 = vsel %vm5785_vm9, %v5758_v42, %v5760_v28  ;;  %v5792_v1 = vsel %vm5785_vm9, %v5760_v28, %v5762_v45  ;;  %v5803_v42 = vsel %vm5785_vm9, %v5784_v31, %v5766_v40 }
 0x611   :  { %v15534_v47 = vadd.f32 %v5032_v19, %v15373_v51 }
 0x613   :  { %10416 = vmatmul.msk.bf16.vlgmr.msrb.gmra.mxu3 %vm535_vm4, %v15442_v10  ;;  %10411 = vmatmul.msk.bf16.gmra.mxu0 %vm535_vm4, %v15485_v41 }
 0x614   :  { %5924 = vmatpush.bf16.msrb.mxu3 %v5832_v3  ;;  %v5050_v37 = vpop.f32.mrf.mxu1 }
 0x615   :  { %v15542_v29 = vadd.f32 %v5050_v37, %v15396_v18  ;;  %v6070_v37 = vpop.permute.xlu0 %6069 }
 0x616   :  { %v5065_v6 = vpop.f32.mrf.mxu2  ;;  %v5081_v57 = vpop.f32.mrf.mxu3 }
 0x617   :  { %v15545_v51 = vadd.f32 %v5065_v6, %v15388_v17  ;;  %v15548_v9 = vadd.f32 %v5081_v57, %v15391_v4  ;;  %10413 = vmatmul.msk.bf16.gmra.mxu1 %vm535_vm4, %v15485_v41  ;;  %v5844_v57 = vsel %vm542_vm3, %v5803_v42, 0 }
 0x618   :  { %5925 = vmatpush.bf16.msrb.mxu3 %v5790_v60  ;;  %v5034_v63 = vpop.f32.mrf.mxu0 }
 0x61b   :  { %10415 = vmatmul.msk.bf16.gmra.mxu2 %vm535_vm4, %v15485_v41 }
 0x61c   :  { %v5052_v18 = vpop.f32.mrf.mxu1 }
 0x61e   :  { %v5068_v48 = vpop.f32.mrf.mxu2  ;;  %v5083_v55 = vpop.f32.mrf.mxu3 }
 0x61f   :  { %v15556_v17 = vadd.f32 %v5068_v48, %v15404_v61  ;;  %v15559_v4 = vadd.f32 %v5083_v55, %v15410_v58  ;;  %v5835_v61 = vsel %vm542_vm3, %v5800_v56, 0  ;;  %v5801_v58 = vsel %vm5785_vm9, %v5780_v21, %v5782_v43  ;;  %v6050_v56 = vpop.permute.xlu0 %6049 }
 0x620   :  { %v5099_v34 = vpop.f32.mrf.mxu0  ;;  %v5838_v24 = vsel %vm542_vm3, %v5801_v58, 0 }
 0x621   :  { %v15563_v38 = vadd.f32 %v5099_v34, %v15407_v46 }
 0x623   :  { %10417 = vmatmul.msk.bf16.gmra.mxu3 %vm535_vm4, %v15485_v41  ;;  %10418 = vmatmul.msk.bf16.vlgmr.msra.gmra.mxu0 %vm535_vm4, %v15442_v10 }
 0x624   :  { %5942 = vmatpush.bf16.msra.mxu0 %v5835_v61  ;;  %v5255_v50 = vpop.f32.mrf.mxu1 }
 0x625   :  { %v15572_v54 = vadd.f32 %v5255_v50, %v15425_v11 }
 0x626   :  { %v5070_v5 = vpop.f32.mrf.mxu2  ;;  %v5086_v44 = vpop.f32.mrf.mxu3 }
 0x627   :  { %v15575_v46 = vadd.f32 %v5086_v44, %v15421_v53  ;;  %10420 = vmatmul.msk.bf16.vlgmr.msra.gmra.mxu1 %vm535_vm4, %v15442_v10  ;;  %v5764_v53 = vpop.permute.xlu1 %5763 }
 0x628   :  { %5943 = vmatpush.bf16.msra.mxu0 %v5791_v2  ;;  %v5101_v25 = vpop.f32.mrf.mxu0  ;;  %5960 = vmatpush.bf16.msra.mxu1 %v5838_v24  ;;  %v5793_v3 = vsel %vm5785_vm9, %v5762_v45, %v5764_v53  ;;  %v5794_v55 = vsel %vm5785_vm9, %v5764_v53, %v5766_v40  ;;  %vm8744_vm9 = vcmask 752640  }
 0x629   :  { %v15583_v11 = vadd.f32 %v5101_v25, %v15418_v7 }
 0x62b   :  { %10422 = vmatmul.msk.bf16.vlgmr.msra.gmra.mxu2 %vm535_vm4, %v15442_v10  ;;  %v15599_v10 = vld [vmem:[%s18140_s2 + $0xd8] sm:$0xff] }
 0x62c   :  { %5978 = vmatpush.bf16.msra.mxu2 %v5841_v8  ;;  %5961 = vmatpush.bf16.msra.mxu1 %v5792_v1  ;;  %v5257_v59 = vpop.f32.mrf.mxu1 }
 0x62d   :  { %v15590_v0 = vadd.f32 %v5257_v59, %v15450_v32 }
 0x62e   :  { %v5088_v20 = vpop.f32.mrf.mxu3  ;;  %v5273_v19 = vpop.f32.mrf.mxu2 }
 0x62f   :  { %v15593_v7 = vadd.f32 %v5273_v19, %v15434_v16  ;;  %v6068_v16 = vpop.permute.xlu2 %6067  ;;  %v6072_v18 = vpop.permute.xlu1 %6071 }
 0x630   :  { %5979 = vmatpush.bf16.msra.mxu2 %v5793_v3  ;;  %v5104_v6 = vpop.f32.mrf.mxu0  ;;  %v6095_v5 = vsel %vm6085_vm10, %v6068_v16, %v6070_v37 }
 0x631   :  { %v15603_v32 = vadd.f32 %v5104_v6, %v15437_v52  ;;  %v6120_v2 = vsel %vm542_vm3, %v6095_v5, 0 }
 0x633   :  { %10431 = vmatmul.msk.bf16.vlgmr.msra.gmra.mxu3 %vm535_vm4, %v15599_v10  ;;  %10419 = vmatmul.msk.bf16.gmra.mxu0 %vm535_vm4, %v15485_v41 }
 0x634   :  { %5996 = vmatpush.bf16.msra.mxu3 %v5844_v57  ;;  %v5260_v43 = vpop.f32.mrf.mxu1 }
 0x635   :  { %v15611_v60 = vadd.f32 %v5260_v43, %v15468_v62  ;;  %v10426_v62 = vld [vmem:[%s18140_s2 + $0xe0] sm:$0x3] }
 0x636   :  { %v5275_v21 = vpop.f32.mrf.mxu2  ;;  %v5291_v63 = vpop.f32.mrf.mxu3 }
 0x637   :  { %v15614_v52 = vadd.f32 %v5275_v21, %v15457_v13  ;;  %v15617_v48 = vadd.f32 %v5291_v63, %v15460_v15  ;;  %10421 = vmatmul.msk.bf16.gmra.mxu1 %vm535_vm4, %v15485_v41  ;;  %v5744_v13 = vunpack.c.l.b16 %v10426_v62  ;;  %v6048_v50 = vpop.permute.xlu2 %6047  ;;  %v6052_v44 = vpop.permute.xlu1 %6051 }
 0x638   :  { %5997 = vmatpush.bf16.msra.mxu3 %v5794_v55  ;;  %v5106_v45 = vpop.f32.mrf.mxu0  ;;  %v6086_v59 = vsel %vm6085_vm10, %v6048_v50, %v6050_v56  ;;  %v6087_v42 = vsel %vm6085_vm10, %v6050_v56, %v6052_v44 }
 0x639   :  { %v15633_v58 = vpack.c.b16 %v5744_v13, %v5744_v13 }
 0x63b   :  { %10423 = vmatmul.msk.bf16.gmra.mxu2 %vm535_vm4, %v15485_v41 }
 0x63c   :  { %v5262_v34 = vpop.f32.mrf.mxu1 }
 0x63e   :  { %v5278_v15 = vpop.f32.mrf.mxu2  ;;  %v5293_v28 = vpop.f32.mrf.mxu3 }
 0x63f   :  { %v15628_v61 = vadd.f32 %v5278_v15, %v15476_v36  ;;  %v15631_v31 = vadd.f32 %v5293_v28, %v15479_v14  ;;  %v6074_v36 = vpop.permute.xlu0 %6073  ;;  %v6096_v14 = vsel %vm6085_vm10, %v6070_v37, %v6072_v18  ;;  %v6076_v19 = vpop.permute.xlu2 %6075 }
 0x640   :  { %v5309_v12 = vpop.f32.mrf.mxu0  ;;  %v6097_v53 = vsel %vm6085_vm10, %v6072_v18, %v6074_v36  ;;  %v6123_v1 = vsel %vm542_vm3, %v6096_v14, 0  ;;  %v6098_v21 = vsel %vm6085_vm10, %v6074_v36, %v6076_v19 }
 0x641   :  { %v15637_v41 = vadd.f32 %v5309_v12, %v15482_v35  ;;  %v6126_v3 = vsel %vm542_vm3, %v6097_v53, 0  ;;  %v6129_v55 = vsel %vm542_vm3, %v6098_v21, 0 }
 0x643   :  { %10432 = vmatmul.msk.bf16.gmra.mxu3 %vm535_vm4, %v15633_v58  ;;  %10433 = vmatmul.msk.bf16.vlgmr.msrb.gmra.mxu0 %vm535_vm4, %v15599_v10 }
 0x644   :  { %6152 = vmatpush.bf16.msrb.mxu0 %v6120_v2  ;;  %v5327_v24 = vpop.f32.mrf.mxu1 }
 0x645   :  { %v15646_v25 = vadd.f32 %v5327_v24, %v15499_v49 }
 0x646   :  { %v5280_v40 = vpop.f32.mrf.mxu2  ;;  %v5296_v8 = vpop.f32.mrf.mxu3 }
 0x647   :  { %v15649_v35 = vadd.f32 %v5296_v8, %v15492_v27  ;;  %10435 = vmatmul.msk.bf16.vlgmr.msrb.gmra.mxu1 %vm535_vm4, %v15599_v10  ;;  %v6054_v27 = vpop.permute.xlu1 %6053  ;;  %v6078_v28 = vpop.permute.xlu0 %6077 }
 0x648   :  { %6153 = vmatpush.bf16.msrb.mxu0 %v6086_v59  ;;  %v5311_v20 = vpop.f32.mrf.mxu0  ;;  %6170 = vmatpush.bf16.msrb.mxu1 %v6123_v1  ;;  %v6099_v2 = vsel %vm6085_vm10, %v6076_v19, %v6078_v28 }
 0x649   :  { %v15657_v49 = vadd.f32 %v5311_v20, %v15495_v23  ;;  %v6088_v23 = vsel %vm6085_vm10, %v6052_v44, %v6054_v27  ;;  %v6132_v40 = vsel %vm542_vm3, %v6099_v2, 0 }
 0x64b   :  { %10437 = vmatmul.msk.bf16.vlgmr.msrb.gmra.mxu2 %vm535_vm4, %v15599_v10 }
 0x64c   :  { %6188 = vmatpush.bf16.msrb.mxu2 %v6126_v3  ;;  %6171 = vmatpush.bf16.msrb.mxu1 %v6087_v42  ;;  %v5329_v37 = vpop.f32.mrf.mxu1 }
 0x64d   :  { %v15664_v6 = vadd.f32 %v5329_v37, %v15519_v33  ;;  %v6056_v33 = vpop.permute.xlu2 %6055 }
 0x64e   :  { %v5298_v57 = vpop.f32.mrf.mxu3  ;;  %v5345_v16 = vpop.f32.mrf.mxu2  ;;  %v6089_v15 = vsel %vm6085_vm10, %v6054_v27, %v6056_v33 }
 0x64f   :  { %v15667_v43 = vadd.f32 %v5345_v16, %v15508_v30  ;;  %v6080_v30 = vpop.permute.xlu1 %6079  ;;  %v6058_v24 = vpop.permute.xlu0 %6057 }
 0x650   :  { %6189 = vmatpush.bf16.msrb.mxu2 %v6088_v23  ;;  %v5314_v63 = vpop.f32.mrf.mxu0  ;;  %v6090_v3 = vsel %vm6085_vm10, %v6056_v33, %v6058_v24 }
 0x651   :  { %v15672_v18 = vadd.f32 %v5314_v63, %v15511_v26 }
 0x653   :  { %10439 = vmatmul.msk.bf16.vlgmr.msrb.gmra.mxu3 %vm535_vm4, %v15599_v10  ;;  %10434 = vmatmul.msk.bf16.gmra.mxu0 %vm535_vm4, %v15633_v58 }
 0x654   :  { %6206 = vmatpush.bf16.msrb.mxu3 %v6129_v55  ;;  %v5332_v62 = vpop.f32.mrf.mxu1 }
 0x655   :  { %v15680_v45 = vadd.f32 %v5332_v62, %v15534_v47 }
 0x656   :  { %v5347_v56 = vpop.f32.mrf.mxu2  ;;  %v5363_v13 = vpop.f32.mrf.mxu3 }
 0x657   :  { %v15683_v26 = vadd.f32 %v5347_v56, %v15526_v22  ;;  %v15686_v34 = vadd.f32 %v5363_v13, %v15529_v39  ;;  %10436 = vmatmul.msk.bf16.gmra.mxu1 %vm535_vm4, %v15633_v58  ;;  %v6060_v12 = vpop.permute.xlu1 %6059  ;;  %v6062_v57 = vpop.permute.xlu0 %6061 }
 0x658   :  { %6207 = vmatpush.bf16.msrb.mxu3 %v6089_v15  ;;  %v5316_v50 = vpop.f32.mrf.mxu0 }
 0x65b   :  { %10438 = vmatmul.msk.bf16.gmra.mxu2 %vm535_vm4, %v15633_v58 }
 0x65c   :  { %v5334_v47 = vpop.f32.mrf.mxu1 }
 0x65e   :  { %v5350_v5 = vpop.f32.mrf.mxu2  ;;  %v5365_v44 = vpop.f32.mrf.mxu3 }
 0x65f   :  { %v15694_v22 = vadd.f32 %v5350_v5, %v15542_v29  ;;  %v15697_v39 = vadd.f32 %v5365_v44, %v15545_v51  ;;  %v6100_v29 = vsel %vm6085_vm10, %v6078_v28, %v6080_v30  ;;  %v6370_v47 = vpop.permute.xlu0 %6369 }
 0x660   :  { %v5381_v36 = vpop.f32.mrf.mxu0  ;;  %v6135_v19 = vsel %vm542_vm3, %v6100_v29, 0 }
 0x661   :  { %v15701_v14 = vadd.f32 %v5381_v36, %v15548_v9  ;;  %v6082_v9 = vpop.permute.xlu2 %6081 }
 0x662   :  { %v6101_v20 = vsel %vm6085_vm10, %v6080_v30, %v6082_v9 }
 0x663   :  { %10440 = vmatmul.msk.bf16.gmra.mxu3 %vm535_vm4, %v15633_v58  ;;  %10441 = vmatmul.msk.bf16.vlgmr.msra.gmra.mxu0 %vm535_vm4, %v15599_v10  ;;  %v6138_v37 = vsel %vm542_vm3, %v6101_v20, 0 }
 0x664   :  { %6224 = vmatpush.bf16.msra.mxu0 %v6132_v40  ;;  %v5399_v51 = vpop.f32.mrf.mxu1  ;;  %v15766_v40 = vld [vmem:[%s18140_s2 + $0xe4] sm:$0xff] }
 0x665   :  { %v15710_v8 = vadd.f32 %v5399_v51, %v15563_v38  ;;  %v6084_v38 = vpop.permute.xlu1 %6083 }
 0x666   :  { %v5352_v53 = vpop.f32.mrf.mxu2  ;;  %v5368_v1 = vpop.f32.mrf.mxu3  ;;  %v6102_v33 = vsel %vm6085_vm10, %v6082_v9, %v6084_v38 }
 0x667   :  { %v15713_v59 = vadd.f32 %v5368_v1, %v15556_v17  ;;  %10443 = vmatmul.msk.bf16.vlgmr.msra.gmra.mxu1 %vm535_vm4, %v15599_v10  ;;  %v6091_v17 = vsel %vm6085_vm10, %v6058_v24, %v6060_v12  ;;  %v6141_v13 = vsel %vm542_vm3, %v6102_v33, 0  ;;  %v6348_v29 = vpop.permute.xlu0 %6347 }
 0x668   :  { %6225 = vmatpush.bf16.msra.mxu0 %v6090_v3  ;;  %v5383_v27 = vpop.f32.mrf.mxu0  ;;  %6242 = vmatpush.bf16.msra.mxu1 %v6135_v19 }
 0x669   :  { %v15721_v42 = vadd.f32 %v5383_v27, %v15559_v4  ;;  %v6092_v4 = vsel %vm6085_vm10, %v6060_v12, %v6062_v57  ;;  %v6368_v56 = vpop.permute.xlu2 %6367 }
 0x66b   :  { %10445 = vmatmul.msk.bf16.vlgmr.msra.gmra.mxu2 %vm535_vm4, %v15599_v10 }
 0x66c   :  { %6260 = vmatpush.bf16.msra.mxu2 %v6138_v37  ;;  %6243 = vmatpush.bf16.msra.mxu1 %v6091_v17  ;;  %v5401_v16 = vpop.f32.mrf.mxu1 }
 0x66d   :  { %v15728_v23 = vadd.f32 %v5401_v16, %v15583_v11  ;;  %v6064_v11 = vpop.permute.xlu1 %6063 }
 0x66e   :  { %v5370_v21 = vpop.f32.mrf.mxu3  ;;  %v5555_v63 = vpop.f32.mrf.mxu2 }
 0x66f   :  { %v15731_v55 = vadd.f32 %v5555_v63, %v15572_v54  ;;  %v6352_v21 = vpop.permute.xlu0 %6351 }
 0x670   :  { %6261 = vmatpush.bf16.msra.mxu2 %v6092_v4  ;;  %v5386_v30 = vpop.f32.mrf.mxu0 }
 0x671   :  { %v15736_v62 = vadd.f32 %v5386_v30, %v15575_v46 }
 0x673   :  { %10447 = vmatmul.msk.bf16.vlgmr.msra.gmra.mxu3 %vm535_vm4, %v15599_v10  ;;  %10442 = vmatmul.msk.bf16.gmra.mxu0 %vm535_vm4, %v15633_v58  ;;  %v6093_v10 = vsel %vm6085_vm10, %v6062_v57, %v6064_v11 }
 0x674   :  { %6278 = vmatpush.bf16.msra.mxu3 %v6141_v13  ;;  %v5404_v54 = vpop.f32.mrf.mxu1 }
 0x675   :  { %v15744_v15 = vadd.f32 %v5404_v54, %v15603_v32  ;;  %v6066_v32 = vpop.permute.xlu2 %6065  ;;  %v6350_v24 = vpop.permute.xlu1 %6349 }
 0x676   :  { %v5557_v28 = vpop.f32.mrf.mxu2  ;;  %v5573_v50 = vpop.f32.mrf.mxu3  ;;  %v6103_v51 = vsel %vm6085_vm10, %v6084_v38, %v6066_v32  ;;  %v6094_v37 = vsel %vm6085_vm10, %v6064_v11, %v6066_v32  ;;  %v6386_v63 = vsel %vm6385_vm11, %v6348_v29, %v6350_v24  ;;  %v6387_v11 = vsel %vm6385_vm11, %v6350_v24, %v6352_v21 }
 0x677   :  { %v15747_v46 = vadd.f32 %v5557_v28, %v15590_v0  ;;  %v15750_v5 = vadd.f32 %v5573_v50, %v15593_v7  ;;  %10444 = vmatmul.msk.bf16.gmra.mxu1 %vm535_vm4, %v15633_v58 }
 0x678   :  { %6279 = vmatpush.bf16.msra.mxu3 %v6093_v10  ;;  %v5388_v44 = vpop.f32.mrf.mxu0 }
 0x67b   :  { %10446 = vmatmul.msk.bf16.gmra.mxu2 %vm535_vm4, %v15633_v58 }
 0x67c   :  { %v5406_v12 = vpop.f32.mrf.mxu1 }
 0x67d   :  { %v6372_v27 = vpop.permute.xlu2 %6371  ;;  %v6374_v57 = vpop.permute.xlu1 %6373 }
 0x67e   :  { %v5560_v2 = vpop.f32.mrf.mxu2  ;;  %v5575_v36 = vpop.f32.mrf.mxu3  ;;  %v6397_v54 = vsel %vm6385_vm11, %v6372_v27, %v6374_v57 }
 0x67f   :  { %v15758_v0 = vadd.f32 %v5560_v2, %v15611_v60  ;;  %v15761_v7 = vadd.f32 %v5575_v36, %v15614_v52  ;;  %v6144_v60 = vsel %vm542_vm3, %v6103_v51, 0  ;;  %v6395_v52 = vsel %vm6385_vm11, %v6368_v56, %v6370_v47 }
 0x680   :  { %v5591_v53 = vpop.f32.mrf.mxu0  ;;  %v6420_v38 = vsel %vm542_vm3, %v6395_v52, 0  ;;  %v6426_v10 = vsel %vm542_vm3, %v6397_v54, 0 }
 0x681   :  { %v15770_v1 = vadd.f32 %v5591_v53, %v15617_v48 }
 0x683   :  { %10448 = vmatmul.msk.bf16.gmra.mxu3 %vm535_vm4, %v15633_v58  ;;  %10456 = vmatmul.msk.bf16.vlgmr.msrb.gmra.mxu0 %vm535_vm4, %v15766_v40  ;;  %v6396_v58 = vsel %vm6385_vm11, %v6370_v47, %v6372_v27 }
 0x684   :  { %6296 = vmatpush.bf16.msrb.mxu0 %v6144_v60  ;;  %v5609_v9 = vpop.f32.mrf.mxu1  ;;  %v6423_v16 = vsel %vm542_vm3, %v6396_v58, 0 }
 0x685   :  { %v15779_v20 = vadd.f32 %v5609_v9, %v15637_v41  ;;  %v10451_v41 = vld [vmem:[%s18140_s2 + $0xec] sm:$0x3]  ;;  %v6376_v29 = vpop.permute.xlu2 %6375 }
 0x686   :  { %v5562_v19 = vpop.f32.mrf.mxu2  ;;  %v5578_v3 = vpop.f32.mrf.mxu3  ;;  %v6044_v4 = vunpack.c.l.b16 %v10451_v41  ;;  %v6398_v9 = vsel %vm6385_vm11, %v6374_v57, %v6376_v29 }
 0x687   :  { %v15782_v48 = vadd.f32 %v5578_v3, %v15628_v61  ;;  %10458 = vmatmul.msk.bf16.vlgmr.msrb.gmra.mxu1 %vm535_vm4, %v15766_v40  ;;  %v6429_v58 = vsel %vm542_vm3, %v6398_v9, 0 }
 0x688   :  { %6297 = vmatpush.bf16.msrb.mxu0 %v6094_v37  ;;  %v5593_v17 = vpop.f32.mrf.mxu0  ;;  %6452 = vmatpush.bf16.msrb.mxu1 %v6420_v38  ;;  %v15807_v28 = vpack.c.b16 %v6044_v4, %v6044_v4 }
 0x689   :  { %v15793_v61 = vadd.f32 %v5593_v17, %v15631_v31 }
 0x68b   :  { %10460 = vmatmul.msk.bf16.vlgmr.msrb.gmra.mxu2 %vm535_vm4, %v15766_v40 }
 0x68c   :  { %6470 = vmatpush.bf16.msrb.mxu2 %v6423_v16  ;;  %6453 = vmatpush.bf16.msrb.mxu1 %v6386_v63  ;;  %v5611_v33 = vpop.f32.mrf.mxu1 }
 0x68d   :  { %v15800_v30 = vadd.f32 %v5611_v33, %v15657_v49  ;;  %v6354_v49 = vpop.permute.xlu1 %6353  ;;  %v6356_v27 = vpop.permute.xlu2 %6355 }
 0x68e   :  { %v5580_v56 = vpop.f32.mrf.mxu3  ;;  %v5627_v13 = vpop.f32.mrf.mxu2  ;;  %v6388_v24 = vsel %vm6385_vm11, %v6352_v21, %v6354_v49  ;;  %v6389_v21 = vsel %vm6385_vm11, %v6354_v49, %v6356_v27 }
 0x68f   :  { %v15803_v31 = vadd.f32 %v5627_v13, %v15646_v25  ;;  %v6378_v25 = vpop.permute.xlu0 %6377 }
 0x690   :  { %6471 = vmatpush.bf16.msrb.mxu2 %v6387_v11  ;;  %v5596_v50 = vpop.f32.mrf.mxu0 }
 0x691   :  { %v15810_v47 = vadd.f32 %v5596_v50, %v15649_v35 }
 0x693   :  { %10462 = vmatmul.msk.bf16.vlgmr.msrb.gmra.mxu3 %vm535_vm4, %v15766_v40  ;;  %10457 = vmatmul.msk.bf16.gmra.mxu0 %vm535_vm4, %v15807_v28 }
 0x694   :  { %6488 = vmatpush.bf16.msrb.mxu3 %v6426_v10  ;;  %v5614_v44 = vpop.f32.mrf.mxu1 }
 0x695   :  { %v15818_v32 = vadd.f32 %v5614_v44, %v15672_v18  ;;  %v6360_v56 = vpop.permute.xlu2 %6359 }
 0x696   :  { %v5629_v12 = vpop.f32.mrf.mxu2  ;;  %v5645_v2 = vpop.f32.mrf.mxu3 }
 0x697   :  { %v15821_v35 = vadd.f32 %v5629_v12, %v15664_v6  ;;  %v15824_v36 = vadd.f32 %v5645_v2, %v15667_v43  ;;  %10459 = vmatmul.msk.bf16.gmra.mxu1 %vm535_vm4, %v15807_v28  ;;  %v6358_v52 = vpop.permute.xlu0 %6357 }
 0x698   :  { %6489 = vmatpush.bf16.msrb.mxu3 %v6388_v24  ;;  %v5598_v51 = vpop.f32.mrf.mxu0 }
 0x69b   :  { %10461 = vmatmul.msk.bf16.gmra.mxu2 %vm535_vm4, %v15807_v28 }
 0x69c   :  { %v5616_v18 = vpop.f32.mrf.mxu1 }
 0x69d   :  { %v6384_v51 = vpop.permute.xlu2 %6383 }
 0x69e   :  { %v5632_v53 = vpop.f32.mrf.mxu2  ;;  %v5647_v60 = vpop.f32.mrf.mxu3 }
 0x69f   :  { %v15832_v6 = vadd.f32 %v5632_v53, %v15680_v45  ;;  %v15835_v43 = vadd.f32 %v5647_v60, %v15683_v26  ;;  %v6399_v45 = vsel %vm6385_vm11, %v6376_v29, %v6378_v25  ;;  %v6380_v26 = vpop.permute.xlu1 %6379  ;;  %v6382_v4 = vpop.permute.xlu0 %6381 }
 0x6a0   :  { %v5663_v19 = vpop.f32.mrf.mxu0  ;;  %v6432_v57 = vsel %vm542_vm3, %v6399_v45, 0  ;;  %v6400_v16 = vsel %vm6385_vm11, %v6378_v25, %v6380_v26  ;;  %v6401_v49 = vsel %vm6385_vm11, %v6380_v26, %v6382_v4  ;;  %v6402_v45 = vsel %vm6385_vm11, %v6382_v4, %v6384_v51 }
 0x6a1   :  { %v15839_v3 = vadd.f32 %v5663_v19, %v15686_v34  ;;  %v6435_v33 = vsel %vm542_vm3, %v6400_v16, 0  ;;  %v6438_v12 = vsel %vm542_vm3, %v6401_v49, 0  ;;  %v10476_v49 = vld [vmem:[%s18140_s2 + $0xf8] sm:$0x3] }
 0x6a3   :  { %10463 = vmatmul.msk.bf16.gmra.mxu3 %vm535_vm4, %v15807_v28  ;;  %10464 = vmatmul.msk.bf16.vlgmr.msra.gmra.mxu0 %vm535_vm4, %v15766_v40 }
 0x6a4   :  { %6506 = vmatpush.bf16.msra.mxu0 %v6429_v58  ;;  %v5681_v38 = vpop.f32.mrf.mxu1 }
 0x6a5   :  { %v15848_v37 = vadd.f32 %v5681_v38, %v15701_v14  ;;  %v6668_v58 = vpop.permute.xlu2 %6667 }
 0x6a6   :  { %v5634_v17 = vpop.f32.mrf.mxu2  ;;  %v5650_v34 = vpop.f32.mrf.mxu3 }
 0x6a7   :  { %v15851_v41 = vadd.f32 %v5650_v34, %v15694_v22  ;;  %10466 = vmatmul.msk.bf16.vlgmr.msra.gmra.mxu1 %vm535_vm4, %v15766_v40  ;;  %v6390_v22 = vsel %vm6385_vm11, %v6356_v27, %v6358_v52  ;;  %v6366_v60 = vpop.permute.xlu1 %6365  ;;  %v6441_v34 = vsel %vm542_vm3, %v6402_v45, 0 }
 0x6a8   :  { %6507 = vmatpush.bf16.msra.mxu0 %v6389_v21  ;;  %v5665_v63 = vpop.f32.mrf.mxu0  ;;  %6524 = vmatpush.bf16.msra.mxu1 %v6432_v57 }
 0x6a9   :  { %v15859_v14 = vadd.f32 %v5665_v63, %v15697_v39  ;;  %v6391_v39 = vsel %vm6385_vm11, %v6358_v52, %v6360_v56 }
 0x6ab   :  { %10468 = vmatmul.msk.bf16.vlgmr.msra.gmra.mxu2 %vm535_vm4, %v15766_v40 }
 0x6ac   :  { %6542 = vmatpush.bf16.msra.mxu2 %v6435_v33  ;;  %6525 = vmatpush.bf16.msra.mxu1 %v6390_v22  ;;  %v5683_v13 = vpop.f32.mrf.mxu1 }
 0x6ad   :  { %v15866_v11 = vadd.f32 %v5683_v13, %v15721_v42  ;;  %v6362_v42 = vpop.permute.xlu0 %6361  ;;  %v6650_v13 = vpop.permute.xlu2 %6649 }
 0x6ae   :  { %v5652_v54 = vpop.f32.mrf.mxu3  ;;  %v5699_v50 = vpop.f32.mrf.mxu2  ;;  %v6392_v53 = vsel %vm6385_vm11, %v6360_v56, %v6362_v42 }
 0x6af   :  { %v15869_v10 = vadd.f32 %v5699_v50, %v15710_v8  ;;  %v6364_v38 = vpop.permute.xlu1 %6363 }
 0x6b0   :  { %6543 = vmatpush.bf16.msra.mxu2 %v6391_v39  ;;  %v5668_v25 = vpop.f32.mrf.mxu0  ;;  %v6393_v33 = vsel %vm6385_vm11, %v6362_v42, %v6364_v38  ;;  %v6394_v50 = vsel %vm6385_vm11, %v6364_v38, %v6366_v60 }
 0x6b1   :  { %v15874_v44 = vadd.f32 %v5668_v25, %v15713_v59 }
 0x6b3   :  { %10470 = vmatmul.msk.bf16.vlgmr.msra.gmra.mxu3 %vm535_vm4, %v15766_v40  ;;  %10465 = vmatmul.msk.bf16.gmra.mxu0 %vm535_vm4, %v15807_v28 }
 0x6b4   :  { %6560 = vmatpush.bf16.msra.mxu3 %v6438_v12  ;;  %v5686_v8 = vpop.f32.mrf.mxu1 }
 0x6b5   :  { %v15882_v2 = vadd.f32 %v5686_v8, %v15736_v62  ;;  %v6670_v27 = vpop.permute.xlu0 %6669 }
 0x6b6   :  { %v5701_v24 = vpop.f32.mrf.mxu2  ;;  %v5855_v29 = vpop.f32.mrf.mxu3 }
 0x6b7   :  { %v15885_v59 = vadd.f32 %v5701_v24, %v15728_v23  ;;  %v15888_v18 = vadd.f32 %v5855_v29, %v15731_v55  ;;  %10467 = vmatmul.msk.bf16.gmra.mxu1 %vm535_vm4, %v15807_v28  ;;  %v6648_v54 = vpop.permute.xlu1 %6647  ;;  %v6344_v29 = vunpack.c.l.b16 %v10476_v49 }
 0x6b8   :  { %6561 = vmatpush.bf16.msra.mxu3 %v6392_v53  ;;  %v5670_v52 = vpop.f32.mrf.mxu0  ;;  %v6686_v8 = vsel %vm6685_vm14, %v6648_v54, %v6650_v13 }
 0x6b9   :  { %v6676_v52 = vpop.permute.xlu2 %6675 }
 0x6bb   :  { %10469 = vmatmul.msk.bf16.gmra.mxu2 %vm535_vm4, %v15807_v28 }
 0x6bc   :  { %v5688_v62 = vpop.f32.mrf.mxu1 }
 0x6bd   :  { %v6672_v56 = vpop.permute.xlu0 %6671 }
 0x6be   :  { %v5704_v9 = vpop.f32.mrf.mxu2  ;;  %v5857_v19 = vpop.f32.mrf.mxu3  ;;  %v6696_v24 = vsel %vm6685_vm14, %v6670_v27, %v6672_v56 }
 0x6bf   :  { %v15896_v23 = vadd.f32 %v5704_v9, %v15744_v15  ;;  %v15899_v55 = vadd.f32 %v5857_v19, %v15747_v46  ;;  %v15913_v15 = vld [vmem:[%s18140_s2 + $0xf0] sm:$0xff]  ;;  %v6403_v46 = vsel %vm6385_vm11, %v6384_v51, %v6366_v60  ;;  %v6723_v60 = vsel %vm542_vm3, %v6696_v24, 0 }
 0x6c0   :  { %v5873_v26 = vpop.f32.mrf.mxu0  ;;  %v6444_v4 = vsel %vm542_vm3, %v6403_v46, 0 }
 0x6c1   :  { %v15903_v17 = vadd.f32 %v5873_v26, %v15750_v5 }
 0x6c3   :  { %10471 = vmatmul.msk.bf16.gmra.mxu3 %vm535_vm4, %v15807_v28  ;;  %10472 = vmatmul.msk.bf16.vlgmr.msrb.gmra.mxu0 %vm535_vm4, %v15766_v40  ;;  %v6695_v40 = vsel %vm6685_vm14, %v6668_v58, %v6670_v27  ;;  %v6674_v27 = vpop.permute.xlu1 %6673 }
 0x6c4   :  { %6578 = vmatpush.bf16.msrb.mxu0 %v6441_v34  ;;  %v5891_v57 = vpop.f32.mrf.mxu1 }
 0x6c5   :  { %v15917_v5 = vadd.f32 %v5891_v57, %v15770_v1  ;;  %v6697_v57 = vsel %vm6685_vm14, %v6672_v56, %v6674_v27 }
 0x6c6   :  { %v5706_v16 = vpop.f32.mrf.mxu2  ;;  %v5860_v21 = vpop.f32.mrf.mxu3 }
 0x6c7   :  { %v15920_v63 = vadd.f32 %v5860_v21, %v15758_v0  ;;  %10481 = vmatmul.msk.bf16.vlgmr.msrb.gmra.mxu1 %vm535_vm4, %v15913_v15  ;;  %v6720_v0 = vsel %vm542_vm3, %v6695_v40, 0 }
 0x6c8   :  { %6579 = vmatpush.bf16.msrb.mxu0 %v6393_v33  ;;  %v5875_v22 = vpop.f32.mrf.mxu0  ;;  %6596 = vmatpush.bf16.msrb.mxu1 %v6444_v4  ;;  %v6726_v4 = vsel %vm542_vm3, %v6697_v57, 0 }
 0x6c9   :  { %v15928_v1 = vadd.f32 %v5875_v22, %v15761_v7 }
 0x6cb   :  { %10483 = vmatmul.msk.bf16.vlgmr.msrb.gmra.mxu2 %vm535_vm4, %v15913_v15  ;;  %v6654_v16 = vpop.permute.xlu1 %6653 }
 0x6cc   :  { %6752 = vmatpush.bf16.msrb.mxu2 %v6720_v0  ;;  %6597 = vmatpush.bf16.msrb.mxu1 %v6394_v50  ;;  %v5893_v39 = vpop.f32.mrf.mxu1 }
 0x6cd   :  { %v15938_v25 = vadd.f32 %v5893_v39, %v15793_v61  ;;  %v6652_v61 = vpop.permute.xlu0 %6651 }
 0x6ce   :  { %v5862_v7 = vpop.f32.mrf.mxu3  ;;  %v5909_v12 = vpop.f32.mrf.mxu2  ;;  %v6687_v26 = vsel %vm6685_vm14, %v6650_v13, %v6652_v61  ;;  %v6688_v50 = vsel %vm6685_vm14, %v6652_v61, %v6654_v16 }
 0x6cf   :  { %v15941_v42 = vadd.f32 %v5909_v12, %v15779_v20  ;;  %v15953_v20 = vpack.c.b16 %v6344_v29, %v6344_v29 }
 0x6d0   :  { %6753 = vmatpush.bf16.msrb.mxu2 %v6686_v8  ;;  %v5878_v51 = vpop.f32.mrf.mxu0 }
 0x6d1   :  { %v15946_v53 = vadd.f32 %v5878_v51, %v15782_v48 }
 0x6d3   :  { %10485 = vmatmul.msk.bf16.vlgmr.msrb.gmra.mxu3 %vm535_vm4, %v15913_v15  ;;  %10473 = vmatmul.msk.bf16.gmra.mxu0 %vm535_vm4, %v15807_v28 }
 0x6d4   :  { %6770 = vmatpush.bf16.msrb.mxu3 %v6723_v60  ;;  %v5896_v62 = vpop.f32.mrf.mxu1 }
 0x6d5   :  { %v15956_v9 = vadd.f32 %v5896_v62, %v15810_v47 }
 0x6d6   :  { %v5911_v19 = vpop.f32.mrf.mxu2  ;;  %v5927_v48 = vpop.f32.mrf.mxu3 }
 0x6d7   :  { %v15959_v58 = vadd.f32 %v5911_v19, %v15800_v30  ;;  %v15962_v45 = vadd.f32 %v5927_v48, %v15803_v31  ;;  %10482 = vmatmul.msk.bf16.gmra.mxu1 %vm535_vm4, %v15953_v20  ;;  %v6656_v31 = vpop.permute.xlu2 %6655 }
 0x6d8   :  { %6771 = vmatpush.bf16.msrb.mxu3 %v6687_v26  ;;  %v5880_v28 = vpop.f32.mrf.mxu0  ;;  %v6689_v12 = vsel %vm6685_vm14, %v6654_v16, %v6656_v31 }
 0x6db   :  { %10484 = vmatmul.msk.bf16.gmra.mxu2 %vm535_vm4, %v15953_v20 }
 0x6dc   :  { %v5898_v47 = vpop.f32.mrf.mxu1 }
 0x6de   :  { %v5914_v38 = vpop.f32.mrf.mxu2  ;;  %v5929_v34 = vpop.f32.mrf.mxu3 }
 0x6df   :  { %v15970_v46 = vadd.f32 %v5914_v38, %v15818_v32  ;;  %v15973_v30 = vadd.f32 %v5929_v34, %v15821_v35  ;;  %v6678_v32 = vpop.permute.xlu0 %6677  ;;  %v6698_v35 = vsel %vm6685_vm14, %v6674_v27, %v6676_v52  ;;  %v6680_v49 = vpop.permute.xlu2 %6679 }
 0x6e0   :  { %v5945_v21 = vpop.f32.mrf.mxu0  ;;  %v6699_v0 = vsel %vm6685_vm14, %v6676_v52, %v6678_v32  ;;  %v6729_v54 = vsel %vm542_vm3, %v6698_v35, 0  ;;  %v6700_v61 = vsel %vm6685_vm14, %v6678_v32, %v6680_v49 }
 0x6e1   :  { %v15977_v40 = vadd.f32 %v5945_v21, %v15824_v36  ;;  %v6732_v7 = vsel %vm542_vm3, %v6699_v0, 0  ;;  %v6735_v19 = vsel %vm542_vm3, %v6700_v61, 0 }
 0x6e3   :  { %10486 = vmatmul.msk.bf16.gmra.mxu3 %vm535_vm4, %v15953_v20  ;;  %10487 = vmatmul.msk.bf16.vlgmr.msra.gmra.mxu0 %vm535_vm4, %v15913_v15 }
 0x6e4   :  { %6788 = vmatpush.bf16.msra.mxu0 %v6726_v4  ;;  %v5963_v33 = vpop.f32.mrf.mxu1 }
 0x6e5   :  { %v15986_v22 = vadd.f32 %v5963_v33, %v15839_v3 }
 0x6e6   :  { %v5916_v56 = vpop.f32.mrf.mxu2  ;;  %v5932_v13 = vpop.f32.mrf.mxu3 }
 0x6e7   :  { %v15989_v36 = vadd.f32 %v5932_v13, %v15832_v6  ;;  %10489 = vmatmul.msk.bf16.vlgmr.msra.gmra.mxu1 %vm535_vm4, %v15913_v15  ;;  %v6658_v6 = vpop.permute.xlu1 %6657 }
 0x6e8   :  { %6789 = vmatpush.bf16.msra.mxu0 %v6688_v50  ;;  %v5947_v39 = vpop.f32.mrf.mxu0  ;;  %6806 = vmatpush.bf16.msra.mxu1 %v6729_v54 }
 0x6e9   :  { %v15997_v3 = vadd.f32 %v5947_v39, %v15835_v43  ;;  %v6690_v43 = vsel %vm6685_vm14, %v6656_v31, %v6658_v6  ;;  %v6682_v31 = vpop.permute.xlu0 %6681  ;;  %v16058_v39 = vld [vmem:[%s18140_s2 + $0xfc] sm:$0xff] }
 0x6ea   :  { %v6701_v32 = vsel %vm6685_vm14, %v6680_v49, %v6682_v31 }
 0x6eb   :  { %10491 = vmatmul.msk.bf16.vlgmr.msra.gmra.mxu2 %vm535_vm4, %v15913_v15  ;;  %v6738_v56 = vsel %vm542_vm3, %v6701_v32, 0 }
 0x6ec   :  { %6824 = vmatpush.bf16.msra.mxu2 %v6732_v7  ;;  %6807 = vmatpush.bf16.msra.mxu1 %v6689_v12  ;;  %v5965_v8 = vpop.f32.mrf.mxu1 }
 0x6ed   :  { %v16004_v24 = vadd.f32 %v5965_v8, %v15859_v14  ;;  %v6660_v14 = vpop.permute.xlu2 %6659 }
 0x6ee   :  { %v5934_v29 = vpop.f32.mrf.mxu3  ;;  %v5981_v51 = vpop.f32.mrf.mxu2  ;;  %v6691_v38 = vsel %vm6685_vm14, %v6658_v6, %v6660_v14 }
 0x6ef   :  { %v16007_v60 = vadd.f32 %v5981_v51, %v15848_v37  ;;  %v6684_v37 = vpop.permute.xlu1 %6683 }
 0x6f0   :  { %6825 = vmatpush.bf16.msra.mxu2 %v6690_v43  ;;  %v5950_v52 = vpop.f32.mrf.mxu0 }
 0x6f1   :  { %v16012_v62 = vadd.f32 %v5950_v52, %v15851_v41 }
 0x6f3   :  { %10493 = vmatmul.msk.bf16.vlgmr.msra.gmra.mxu3 %vm535_vm4, %v15913_v15  ;;  %10488 = vmatmul.msk.bf16.gmra.mxu0 %vm535_vm4, %v15953_v20 }
 0x6f4   :  { %6842 = vmatpush.bf16.msra.mxu3 %v6735_v19  ;;  %v5968_v48 = vpop.f32.mrf.mxu1 }
 0x6f5   :  { %v16020_v27 = vadd.f32 %v5968_v48, %v15874_v44  ;;  %v6666_v4 = vpop.permute.xlu2 %6665  ;;  %v10501_v48 = vld [vmem:[%s18140_s2 + $0x104] sm:$0x3] }
 0x6f6   :  { %v5983_v26 = vpop.f32.mrf.mxu2  ;;  %v5999_v28 = vpop.f32.mrf.mxu3  ;;  %v6703_v49 = vsel %vm6685_vm14, %v6684_v37, %v6666_v4 }
 0x6f7   :  { %v16023_v41 = vadd.f32 %v5983_v26, %v15866_v11  ;;  %v16026_v47 = vadd.f32 %v5999_v28, %v15869_v10  ;;  %10490 = vmatmul.msk.bf16.gmra.mxu1 %vm535_vm4, %v15953_v20  ;;  %v6664_v21 = vpop.permute.xlu1 %6663  ;;  %v6744_v29 = vsel %vm542_vm3, %v6703_v49, 0 }
 0x6f8   :  { %6843 = vmatpush.bf16.msra.mxu3 %v6691_v38  ;;  %v5952_v34 = vpop.f32.mrf.mxu0 }
 0x6fb   :  { %10492 = vmatmul.msk.bf16.gmra.mxu2 %vm535_vm4, %v15953_v20 }
 0x6fc   :  { %v5970_v44 = vpop.f32.mrf.mxu1 }
 0x6fd   :  { %v6972_v8 = vpop.permute.xlu2 %6971 }
 0x6fe   :  { %v5986_v57 = vpop.f32.mrf.mxu2  ;;  %v6001_v16 = vpop.f32.mrf.mxu3 }
 0x6ff   :  { %v16034_v11 = vadd.f32 %v5986_v57, %v15882_v2  ;;  %v16037_v10 = vadd.f32 %v6001_v16, %v15885_v59  ;;  %v6662_v2 = vpop.permute.xlu0 %6661  ;;  %v6702_v59 = vsel %vm6685_vm14, %v6682_v31, %v6684_v37  ;;  %v6970_v12 = vpop.permute.xlu1 %6969 }
 0x700   :  { %v6155_v35 = vpop.f32.mrf.mxu0  ;;  %v6741_v7 = vsel %vm542_vm3, %v6702_v59, 0  ;;  %v6692_v6 = vsel %vm6685_vm14, %v6660_v14, %v6662_v2  ;;  %v6693_v51 = vsel %vm6685_vm14, %v6662_v2, %v6664_v21  ;;  %v6694_v14 = vsel %vm6685_vm14, %v6664_v21, %v6666_v4 }
 0x701   :  { %v16041_v33 = vadd.f32 %v6155_v35, %v15888_v18  ;;  %vm8746_vm14 = vcmask 916480  }
 0x703   :  { %10494 = vmatmul.msk.bf16.gmra.mxu3 %vm535_vm4, %v15953_v20  ;;  %10495 = vmatmul.msk.bf16.vlgmr.msrb.gmra.mxu0 %vm535_vm4, %v15913_v15 }
 0x704   :  { %6860 = vmatpush.bf16.msrb.mxu0 %v6738_v56  ;;  %v6173_v13 = vpop.f32.mrf.mxu1 }
 0x705   :  { %v16050_v0 = vadd.f32 %v6173_v13, %v15903_v17  ;;  %v6950_v34 = vpop.permute.xlu2 %6949 }
 0x706   :  { %v5988_v54 = vpop.f32.mrf.mxu2  ;;  %v6004_v50 = vpop.f32.mrf.mxu3 }
 0x707   :  { %v16053_v18 = vadd.f32 %v6004_v50, %v15896_v23  ;;  %10497 = vmatmul.msk.bf16.vlgmr.msrb.gmra.mxu1 %vm535_vm4, %v15913_v15  ;;  %v6968_v19 = vpop.permute.xlu0 %6967  ;;  %v6948_v38 = vpop.permute.xlu1 %6947  ;;  %v6996_v54 = vsel %vm6985_vm15, %v6970_v12, %v6972_v8 }
 0x708   :  { %6861 = vmatpush.bf16.msrb.mxu0 %v6692_v6  ;;  %v6157_v17 = vpop.f32.mrf.mxu0  ;;  %6878 = vmatpush.bf16.msrb.mxu1 %v6741_v7  ;;  %v6995_v37 = vsel %vm6985_vm15, %v6968_v19, %v6970_v12  ;;  %v6986_v4 = vsel %vm6985_vm15, %v6948_v38, %v6950_v34  ;;  %v7023_v7 = vsel %vm542_vm3, %v6996_v54, 0 }
 0x709   :  { %v16066_v23 = vadd.f32 %v6157_v17, %v15899_v55  ;;  %v7020_v28 = vsel %vm542_vm3, %v6995_v37, 0 }
 0x70b   :  { %10506 = vmatmul.msk.bf16.vlgmr.msrb.gmra.mxu2 %vm535_vm4, %v16058_v39 }
 0x70c   :  { %6896 = vmatpush.bf16.msrb.mxu2 %v6744_v29  ;;  %6879 = vmatpush.bf16.msrb.mxu1 %v6693_v51  ;;  %v6175_v43 = vpop.f32.mrf.mxu1 }
 0x70d   :  { %v16073_v15 = vadd.f32 %v6175_v43, %v15928_v1 }
 0x70e   :  { %v6006_v61 = vpop.f32.mrf.mxu3  ;;  %v6191_v52 = vpop.f32.mrf.mxu2 }
 0x70f   :  { %v16076_v55 = vadd.f32 %v6191_v52, %v15917_v5  ;;  %v6644_v5 = vunpack.c.l.b16 %v10501_v48  ;;  %v6974_v35 = vpop.permute.xlu0 %6973  ;;  %v6954_v13 = vpop.permute.xlu1 %6953 }
 0x710   :  { %6897 = vmatpush.bf16.msrb.mxu2 %v6694_v14  ;;  %v6160_v26 = vpop.f32.mrf.mxu0 }
 0x711   :  { %v16084_v1 = vadd.f32 %v6160_v26, %v15920_v63  ;;  %v16101_v32 = vpack.c.b16 %v6644_v5, %v6644_v5 }
 0x713   :  { %10508 = vmatmul.msk.bf16.vlgmr.msrb.gmra.mxu3 %vm535_vm4, %v16058_v39  ;;  %10496 = vmatmul.msk.bf16.gmra.mxu0 %vm535_vm4, %v15953_v20 }
 0x714   :  { %7052 = vmatpush.bf16.msrb.mxu3 %v7020_v28  ;;  %v6178_v31 = vpop.f32.mrf.mxu1 }
 0x715   :  { %v16092_v44 = vadd.f32 %v6178_v31, %v15946_v53 }
 0x716   :  { %v6193_v57 = vpop.f32.mrf.mxu2  ;;  %v6209_v16 = vpop.f32.mrf.mxu3 }
 0x717   :  { %v16095_v63 = vadd.f32 %v6193_v57, %v15938_v25  ;;  %v16098_v21 = vadd.f32 %v6209_v16, %v15941_v42  ;;  %10498 = vmatmul.msk.bf16.gmra.mxu1 %vm535_vm4, %v15953_v20  ;;  %v6952_v49 = vpop.permute.xlu0 %6951 }
 0x718   :  { %7053 = vmatpush.bf16.msrb.mxu3 %v6986_v4  ;;  %v6162_v56 = vpop.f32.mrf.mxu0  ;;  %v6987_v61 = vsel %vm6985_vm15, %v6950_v34, %v6952_v49 }
 0x71b   :  { %10507 = vmatmul.msk.bf16.gmra.mxu2 %vm535_vm4, %v16101_v32 }
 0x71c   :  { %v6180_v53 = vpop.f32.mrf.mxu1 }
 0x71e   :  { %v6196_v2 = vpop.f32.mrf.mxu2  ;;  %v6211_v25 = vpop.f32.mrf.mxu3 }
 0x71f   :  { %v16108_v59 = vadd.f32 %v6196_v2, %v15956_v9  ;;  %v16111_v42 = vadd.f32 %v6211_v25, %v15959_v58  ;;  %v6997_v9 = vsel %vm6985_vm15, %v6972_v8, %v6974_v35  ;;  %v6956_v14 = vpop.permute.xlu0 %6955 }
 0x720   :  { %v6227_v50 = vpop.f32.mrf.mxu0  ;;  %v7026_v43 = vsel %vm542_vm3, %v6997_v9, 0 }
 0x721   :  { %v16115_v20 = vadd.f32 %v6227_v50, %v15962_v45  ;;  %v6976_v45 = vpop.permute.xlu2 %6975 }
 0x722   :  { %v6998_v51 = vsel %vm6985_vm15, %v6974_v35, %v6976_v45 }
 0x723   :  { %10509 = vmatmul.msk.bf16.gmra.mxu3 %vm535_vm4, %v16101_v32  ;;  %10510 = vmatmul.msk.bf16.vlgmr.msra.gmra.mxu0 %vm535_vm4, %v16058_v39  ;;  %v7029_v19 = vsel %vm542_vm3, %v6998_v51, 0 }
 0x724   :  { %7070 = vmatpush.bf16.msra.mxu0 %v7023_v7  ;;  %v6245_v58 = vpop.f32.mrf.mxu1 }
 0x725   :  { %v16124_v6 = vadd.f32 %v6245_v58, %v15977_v40  ;;  %v6978_v40 = vpop.permute.xlu1 %6977 }
 0x726   :  { %v6198_v17 = vpop.f32.mrf.mxu2  ;;  %v6214_v12 = vpop.f32.mrf.mxu3  ;;  %v6999_v38 = vsel %vm6985_vm15, %v6976_v45, %v6978_v40 }
 0x727   :  { %v16127_v29 = vadd.f32 %v6214_v12, %v15970_v46  ;;  %10512 = vmatmul.msk.bf16.vlgmr.msra.gmra.mxu1 %vm535_vm4, %v16058_v39  ;;  %v6988_v46 = vsel %vm6985_vm15, %v6952_v49, %v6954_v13  ;;  %v7032_v57 = vsel %vm542_vm3, %v6999_v38, 0  ;;  %v6982_v56 = vpop.permute.xlu0 %6981 }
 0x728   :  { %7071 = vmatpush.bf16.msra.mxu0 %v6987_v61  ;;  %v6229_v8 = vpop.f32.mrf.mxu0  ;;  %7088 = vmatpush.bf16.msra.mxu1 %v7026_v43 }
 0x729   :  { %v16135_v52 = vadd.f32 %v6229_v8, %v15973_v30  ;;  %v6989_v30 = vsel %vm6985_vm15, %v6954_v13, %v6956_v14  ;;  %v6980_v25 = vpop.permute.xlu2 %6979 }
 0x72a   :  { %v7000_v7 = vsel %vm6985_vm15, %v6978_v40, %v6980_v25 }
 0x72b   :  { %10514 = vmatmul.msk.bf16.vlgmr.msra.gmra.mxu2 %vm535_vm4, %v16058_v39  ;;  %v7035_v12 = vsel %vm542_vm3, %v7000_v7, 0 }
 0x72c   :  { %7106 = vmatpush.bf16.msra.mxu2 %v7029_v19  ;;  %7089 = vmatpush.bf16.msra.mxu1 %v6988_v46  ;;  %v6247_v37 = vpop.f32.mrf.mxu1 }
 0x72d   :  { %v16142_v48 = vadd.f32 %v6247_v37, %v15997_v3  ;;  %v6958_v3 = vpop.permute.xlu1 %6957 }
 0x72e   :  { %v6216_v26 = vpop.f32.mrf.mxu3  ;;  %v6263_v28 = vpop.f32.mrf.mxu2  ;;  %v6990_v2 = vsel %vm6985_vm15, %v6956_v14, %v6958_v3 }
 0x72f   :  { %v16145_v5 = vadd.f32 %v6263_v28, %v15986_v22  ;;  %v6962_v49 = vpop.permute.xlu0 %6961 }
 0x730   :  { %7107 = vmatpush.bf16.msra.mxu2 %v6989_v30  ;;  %v6232_v34 = vpop.f32.mrf.mxu0 }
 0x731   :  { %v16150_v31 = vadd.f32 %v6232_v34, %v15989_v36  ;;  %v6960_v17 = vpop.permute.xlu2 %6959 }
 0x732   :  { %v6991_v19 = vsel %vm6985_vm15, %v6958_v3, %v6960_v17 }
 0x733   :  { %10516 = vmatmul.msk.bf16.vlgmr.msra.gmra.mxu3 %vm535_vm4, %v16058_v39  ;;  %10511 = vmatmul.msk.bf16.gmra.mxu0 %vm535_vm4, %v16101_v32 }
 0x734   :  { %7124 = vmatpush.bf16.msra.mxu3 %v7032_v57  ;;  %v6250_v22 = vpop.f32.mrf.mxu1 }
 0x735   :  { %v16158_v16 = vadd.f32 %v6250_v22, %v16012_v62 }
 0x736   :  { %v6265_v4 = vpop.f32.mrf.mxu2  ;;  %v6281_v35 = vpop.f32.mrf.mxu3 }
 0x737   :  { %v16161_v36 = vadd.f32 %v6265_v4, %v16004_v24  ;;  %v16164_v53 = vadd.f32 %v6281_v35, %v16007_v60  ;;  %10513 = vmatmul.msk.bf16.gmra.mxu1 %vm535_vm4, %v16101_v32  ;;  %v6966_v14 = vpop.permute.xlu0 %6965 }
 0x738   :  { %7125 = vmatpush.bf16.msra.mxu3 %v6990_v2  ;;  %v6234_v13 = vpop.f32.mrf.mxu0 }
 0x739   :  { %v6964_v26 = vpop.permute.xlu2 %6963 }
 0x73a   :  { %v6993_v57 = vsel %vm6985_vm15, %v6962_v49, %v6964_v26 }
 0x73b   :  { %10515 = vmatmul.msk.bf16.gmra.mxu2 %vm535_vm4, %v16101_v32 }
 0x73c   :  { %v6252_v62 = vpop.f32.mrf.mxu1 }
 0x73e   :  { %v6268_v54 = vpop.f32.mrf.mxu2  ;;  %v6283_v50 = vpop.f32.mrf.mxu3 }
 0x73f   :  { %v16172_v24 = vadd.f32 %v6268_v54, %v16020_v27  ;;  %v16175_v60 = vadd.f32 %v6283_v50, %v16023_v41  ;;  %v7001_v27 = vsel %vm6985_vm15, %v6980_v25, %v6982_v56  ;;  %v6984_v41 = vpop.permute.xlu1 %6983  ;;  %v6994_v54 = vsel %vm6985_vm15, %v6964_v26, %v6966_v14 }
 0x740   :  { %v6299_v9 = vpop.f32.mrf.mxu0  ;;  %v7038_v8 = vsel %vm542_vm3, %v7001_v27, 0  ;;  %v7002_v40 = vsel %vm6985_vm15, %v6982_v56, %v6984_v41  ;;  %v7003_v3 = vsel %vm6985_vm15, %v6984_v41, %v6966_v14 }
 0x741   :  { %v16179_v58 = vadd.f32 %v6299_v9, %v16026_v47  ;;  %v7041_v37 = vsel %vm542_vm3, %v7002_v40, 0  ;;  %v7044_v35 = vsel %vm542_vm3, %v7003_v3, 0  ;;  %v7272_v50 = vpop.permute.xlu2 %7271 }
 0x743   :  { %10517 = vmatmul.msk.bf16.gmra.mxu3 %vm535_vm4, %v16101_v32  ;;  %10518 = vmatmul.msk.bf16.vlgmr.msrb.gmra.mxu0 %vm535_vm4, %v16058_v39 }
 0x744   :  { %7142 = vmatpush.bf16.msrb.mxu0 %v7035_v12  ;;  %v6455_v45 = vpop.f32.mrf.mxu1 }
 0x745   :  { %v16188_v51 = vadd.f32 %v6455_v45, %v16041_v33 }
 0x746   :  { %v6270_v43 = vpop.f32.mrf.mxu2  ;;  %v6286_v47 = vpop.f32.mrf.mxu3 }
 0x747   :  { %v16191_v61 = vadd.f32 %v6286_v47, %v16034_v11  ;;  %10520 = vmatmul.msk.bf16.vlgmr.msrb.gmra.mxu1 %vm535_vm4, %v16058_v39  ;;  %v6992_v11 = vsel %vm6985_vm15, %v6960_v17, %v6962_v49  ;;  %v7270_v22 = vpop.permute.xlu1 %7269  ;;  %vm8752_vm15 = vcmask 359424  }
 0x748   :  { %7143 = vmatpush.bf16.msrb.mxu0 %v6991_v19  ;;  %v6301_v46 = vpop.f32.mrf.mxu0  ;;  %7160 = vmatpush.bf16.msrb.mxu1 %v7038_v8 }
 0x749   :  { %v16199_v33 = vadd.f32 %v6301_v46, %v16037_v10  ;;  %v7252_v8 = vpop.permute.xlu2 %7251 }
 0x74b   :  { %10522 = vmatmul.msk.bf16.vlgmr.msrb.gmra.mxu2 %vm535_vm4, %v16058_v39  ;;  %v16215_v39 = vld [vmem:[%s18140_s2 + $0x108] sm:$0xff] }
 0x74c   :  { %7178 = vmatpush.bf16.msrb.mxu2 %v7041_v37  ;;  %7161 = vmatpush.bf16.msrb.mxu1 %v6992_v11  ;;  %v6457_v28 = vpop.f32.mrf.mxu1 }
 0x74d   :  { %v16206_v30 = vadd.f32 %v6457_v28, %v16066_v23 }
 0x74e   :  { %v6288_v38 = vpop.f32.mrf.mxu3  ;;  %v6473_v34 = vpop.f32.mrf.mxu2 }
 0x74f   :  { %v16209_v10 = vadd.f32 %v6473_v34, %v16050_v0  ;;  %v7268_v0 = vpop.permute.xlu0 %7267  ;;  %v7250_v7 = vpop.permute.xlu1 %7249 }
 0x750   :  { %7179 = vmatpush.bf16.msrb.mxu2 %v6993_v57  ;;  %v6304_v4 = vpop.f32.mrf.mxu0  ;;  %v7295_v43 = vsel %vm7285_vm0, %v7268_v0, %v7270_v22  ;;  %v7287_v3 = vsel %vm7285_vm0, %v7250_v7, %v7252_v8 }
 0x751   :  { %v16219_v23 = vadd.f32 %v6304_v4, %v16053_v18 }
 0x753   :  { %10531 = vmatmul.msk.bf16.vlgmr.msrb.gmra.mxu3 %vm535_vm4, %v16215_v39  ;;  %10519 = vmatmul.msk.bf16.gmra.mxu0 %vm535_vm4, %v16101_v32 }
 0x754   :  { %7196 = vmatpush.bf16.msrb.mxu3 %v7044_v35  ;;  %v6460_v56 = vpop.f32.mrf.mxu1 }
 0x755   :  { %v16227_v2 = vadd.f32 %v6460_v56, %v16084_v1  ;;  %v10526_v1 = vld [vmem:[%s18140_s2 + $0x110] sm:$0x3] }
 0x756   :  { %v6475_v25 = vpop.f32.mrf.mxu2  ;;  %v6491_v13 = vpop.f32.mrf.mxu3 }
 0x757   :  { %v16230_v62 = vadd.f32 %v6475_v25, %v16073_v15  ;;  %v16233_v18 = vadd.f32 %v6491_v13, %v16076_v55  ;;  %10521 = vmatmul.msk.bf16.gmra.mxu1 %vm535_vm4, %v16101_v32  ;;  %v6944_v15 = vunpack.c.l.b16 %v10526_v1  ;;  %v7248_v45 = vpop.permute.xlu0 %7247  ;;  %v7274_v40 = vpop.permute.xlu1 %7273 }
 0x758   :  { %7197 = vmatpush.bf16.msrb.mxu3 %v6994_v54  ;;  %v6306_v49 = vpop.f32.mrf.mxu0  ;;  %v7297_v26 = vsel %vm7285_vm0, %v7272_v50, %v7274_v40  ;;  %v7286_v28 = vsel %vm7285_vm0, %v7248_v45, %v7250_v7 }
 0x759   :  { %v16249_v41 = vpack.c.b16 %v6944_v15, %v6944_v15  ;;  %v7326_v57 = vsel %vm542_vm3, %v7297_v26, 0 }
 0x75b   :  { %10523 = vmatmul.msk.bf16.gmra.mxu2 %vm535_vm4, %v16101_v32 }
 0x75c   :  { %v6462_v9 = vpop.f32.mrf.mxu1 }
 0x75e   :  { %v6478_v55 = vpop.f32.mrf.mxu2  ;;  %v6493_v17 = vpop.f32.mrf.mxu3 }
 0x75f   :  { %v16244_v12 = vadd.f32 %v6478_v55, %v16092_v44  ;;  %v16247_v27 = vadd.f32 %v6493_v17, %v16095_v63  ;;  %v7320_v44 = vsel %vm542_vm3, %v7295_v43, 0  ;;  %v7296_v63 = vsel %vm7285_vm0, %v7270_v22, %v7272_v50  ;;  %v7276_v34 = vpop.permute.xlu0 %7275  ;;  %v7278_v17 = vpop.permute.xlu1 %7277 }
 0x760   :  { %v6509_v47 = vpop.f32.mrf.mxu0  ;;  %v7323_v11 = vsel %vm542_vm3, %v7296_v63, 0  ;;  %v7298_v25 = vsel %vm7285_vm0, %v7274_v40, %v7276_v34 }
 0x761   :  { %v16253_v32 = vadd.f32 %v6509_v47, %v16098_v21  ;;  %v7329_v50 = vsel %vm542_vm3, %v7298_v25, 0 }
 0x763   :  { %10532 = vmatmul.msk.bf16.gmra.mxu3 %vm535_vm4, %v16249_v41  ;;  %10533 = vmatmul.msk.bf16.vlgmr.msra.gmra.mxu0 %vm535_vm4, %v16215_v39 }
 0x764   :  { %7352 = vmatpush.bf16.msra.mxu0 %v7320_v44  ;;  %v6527_v19 = vpop.f32.mrf.mxu1  ;;  %v7299_v44 = vsel %vm7285_vm0, %v7276_v34, %v7278_v17 }
 0x765   :  { %v16262_v46 = vadd.f32 %v6527_v19, %v16115_v20 }
 0x766   :  { %v6480_v14 = vpop.f32.mrf.mxu2  ;;  %v6496_v37 = vpop.f32.mrf.mxu3 }
 0x767   :  { %v16265_v21 = vadd.f32 %v6496_v37, %v16108_v59  ;;  %10535 = vmatmul.msk.bf16.vlgmr.msra.gmra.mxu1 %vm535_vm4, %v16215_v39  ;;  %v7254_v59 = vpop.permute.xlu2 %7253  ;;  %v7258_v40 = vpop.permute.xlu1 %7257  ;;  %v7332_v14 = vsel %vm542_vm3, %v7299_v44, 0 }
 0x768   :  { %7353 = vmatpush.bf16.msra.mxu0 %v7286_v28  ;;  %v6511_v38 = vpop.f32.mrf.mxu0  ;;  %7370 = vmatpush.bf16.msra.mxu1 %v7323_v11 }
 0x769   :  { %v16273_v20 = vadd.f32 %v6511_v38, %v16111_v42  ;;  %v7288_v42 = vsel %vm7285_vm0, %v7252_v8, %v7254_v59 }
 0x76b   :  { %10537 = vmatmul.msk.bf16.vlgmr.msra.gmra.mxu2 %vm535_vm4, %v16215_v39 }
 0x76c   :  { %7388 = vmatpush.bf16.msra.mxu2 %v7326_v57  ;;  %7371 = vmatpush.bf16.msra.mxu1 %v7287_v3  ;;  %v6529_v22 = vpop.f32.mrf.mxu1 }
 0x76d   :  { %v16280_v4 = vadd.f32 %v6529_v22, %v16135_v52  ;;  %v7256_v52 = vpop.permute.xlu0 %7255 }
 0x76e   :  { %v6498_v35 = vpop.f32.mrf.mxu3  ;;  %v6545_v0 = vpop.f32.mrf.mxu2  ;;  %v7289_v55 = vsel %vm7285_vm0, %v7254_v59, %v7256_v52  ;;  %v7290_v57 = vsel %vm7285_vm0, %v7256_v52, %v7258_v40 }
 0x76f   :  { %v16283_v56 = vadd.f32 %v6545_v0, %v16124_v6  ;;  %v7280_v15 = vpop.permute.xlu2 %7279 }
 0x770   :  { %7389 = vmatpush.bf16.msra.mxu2 %v7288_v42  ;;  %v6514_v13 = vpop.f32.mrf.mxu0 }
 0x771   :  { %v16288_v54 = vadd.f32 %v6514_v13, %v16127_v29 }
 0x773   :  { %10539 = vmatmul.msk.bf16.vlgmr.msra.gmra.mxu3 %vm535_vm4, %v16215_v39  ;;  %10534 = vmatmul.msk.bf16.gmra.mxu0 %vm535_vm4, %v16249_v41 }
 0x774   :  { %7406 = vmatpush.bf16.msra.mxu3 %v7329_v50  ;;  %v6532_v6 = vpop.f32.mrf.mxu1 }
 0x775   :  { %v16296_v1 = vadd.f32 %v6532_v6, %v16150_v31 }
 0x776   :  { %v6547_v49 = vpop.f32.mrf.mxu2  ;;  %v6563_v7 = vpop.f32.mrf.mxu3 }
 0x777   :  { %v16299_v29 = vadd.f32 %v6547_v49, %v16142_v48  ;;  %v16302_v9 = vadd.f32 %v6563_v7, %v16145_v5  ;;  %10536 = vmatmul.msk.bf16.gmra.mxu1 %vm535_vm4, %v16249_v41  ;;  %v7260_v8 = vpop.permute.xlu2 %7259 }
 0x778   :  { %7407 = vmatpush.bf16.msra.mxu3 %v7289_v55  ;;  %v6516_v45 = vpop.f32.mrf.mxu0  ;;  %v7291_v35 = vsel %vm7285_vm0, %v7258_v40, %v7260_v8 }
 0x77b   :  { %10538 = vmatmul.msk.bf16.gmra.mxu2 %vm535_vm4, %v16249_v41 }
 0x77c   :  { %v6534_v31 = vpop.f32.mrf.mxu1 }
 0x77e   :  { %v6550_v43 = vpop.f32.mrf.mxu2  ;;  %v6565_v47 = vpop.f32.mrf.mxu3 }
 0x77f   :  { %v16310_v48 = vadd.f32 %v6550_v43, %v16158_v16  ;;  %v16313_v5 = vadd.f32 %v6565_v47, %v16161_v36  ;;  %v7282_v16 = vpop.permute.xlu0 %7281  ;;  %v7300_v36 = vsel %vm7285_vm0, %v7278_v17, %v7280_v15  ;;  %v7284_v3 = vpop.permute.xlu2 %7283 }
 0x780   :  { %v6581_v63 = vpop.f32.mrf.mxu0  ;;  %v7301_v38 = vsel %vm7285_vm0, %v7280_v15, %v7282_v16  ;;  %v7335_v34 = vsel %vm542_vm3, %v7300_v36, 0  ;;  %v7302_v52 = vsel %vm7285_vm0, %v7282_v16, %v7284_v3 }
 0x781   :  { %v16317_v19 = vadd.f32 %v6581_v63, %v16164_v53  ;;  %v7338_v22 = vsel %vm542_vm3, %v7301_v38, 0  ;;  %v7341_v15 = vsel %vm542_vm3, %v7302_v52, 0 }
 0x783   :  { %10540 = vmatmul.msk.bf16.gmra.mxu3 %vm535_vm4, %v16249_v41  ;;  %10541 = vmatmul.msk.bf16.vlgmr.msrb.gmra.mxu0 %vm535_vm4, %v16215_v39 }
 0x784   :  { %7424 = vmatpush.bf16.msrb.mxu0 %v7332_v14  ;;  %v6599_v37 = vpop.f32.mrf.mxu1  ;;  %v16382_v14 = vld [vmem:[%s18140_s2 + $0x114] sm:$0xff] }
 0x785   :  { %v16326_v11 = vadd.f32 %v6599_v37, %v16179_v58 }
 0x786   :  { %v6552_v26 = vpop.f32.mrf.mxu2  ;;  %v6568_v28 = vpop.f32.mrf.mxu3 }
 0x787   :  { %v16329_v53 = vadd.f32 %v6568_v28, %v16172_v24  ;;  %10543 = vmatmul.msk.bf16.vlgmr.msrb.gmra.mxu1 %vm535_vm4, %v16215_v39  ;;  %v7262_v24 = vpop.permute.xlu1 %7261  ;;  %v7568_v6 = vpop.permute.xlu0 %7567 }
 0x788   :  { %7425 = vmatpush.bf16.msrb.mxu0 %v7290_v57  ;;  %v6583_v59 = vpop.f32.mrf.mxu0  ;;  %7442 = vmatpush.bf16.msrb.mxu1 %v7335_v34  ;;  %v7292_v50 = vsel %vm7285_vm0, %v7260_v8, %v7262_v24 }
 0x789   :  { %v16337_v58 = vadd.f32 %v6583_v59, %v16175_v60 }
 0x78b   :  { %10545 = vmatmul.msk.bf16.vlgmr.msrb.gmra.mxu2 %vm535_vm4, %v16215_v39 }
 0x78c   :  { %7460 = vmatpush.bf16.msrb.mxu2 %v7338_v22  ;;  %7443 = vmatpush.bf16.msrb.mxu1 %v7291_v35  ;;  %v6601_v0 = vpop.f32.mrf.mxu1 }
 0x78d   :  { %v16344_v42 = vadd.f32 %v6601_v0, %v16199_v33 }
 0x78e   :  { %v6570_v25 = vpop.f32.mrf.mxu3  ;;  %v6755_v13 = vpop.f32.mrf.mxu2 }
 0x78f   :  { %v16347_v60 = vadd.f32 %v6755_v13, %v16188_v51  ;;  %v7264_v51 = vpop.permute.xlu2 %7263  ;;  %v7570_v31 = vpop.permute.xlu1 %7569 }
 0x790   :  { %7461 = vmatpush.bf16.msrb.mxu2 %v7292_v50  ;;  %v6586_v49 = vpop.f32.mrf.mxu0  ;;  %v7266_v8 = vpop.permute.xlu0 %7265  ;;  %v7595_v28 = vsel %vm7585_vm1, %v7568_v6, %v7570_v31 }
 0x791   :  { %v16352_v7 = vadd.f32 %v6586_v49, %v16191_v61  ;;  %v7303_v16 = vsel %vm7285_vm0, %v7284_v3, %v7266_v8  ;;  %v7620_v3 = vsel %vm542_vm3, %v7595_v28, 0  ;;  %v7294_v22 = vsel %vm7285_vm0, %v7264_v51, %v7266_v8 }
 0x793   :  { %10547 = vmatmul.msk.bf16.vlgmr.msrb.gmra.mxu3 %vm535_vm4, %v16215_v39  ;;  %10542 = vmatmul.msk.bf16.gmra.mxu0 %vm535_vm4, %v16249_v41  ;;  %v7293_v39 = vsel %vm7285_vm0, %v7262_v24, %v7264_v51  ;;  %vm8754_vm0 = vcmask 523264  }
 0x794   :  { %7478 = vmatpush.bf16.msrb.mxu3 %v7341_v15  ;;  %v6604_v33 = vpop.f32.mrf.mxu1 }
 0x795   :  { %v16360_v55 = vadd.f32 %v6604_v33, %v16219_v23 }
 0x796   :  { %v6757_v17 = vpop.f32.mrf.mxu2  ;;  %v6773_v45 = vpop.f32.mrf.mxu3 }
 0x797   :  { %v16363_v61 = vadd.f32 %v6757_v17, %v16206_v30  ;;  %v16366_v43 = vadd.f32 %v6773_v45, %v16209_v10  ;;  %10544 = vmatmul.msk.bf16.gmra.mxu1 %vm535_vm4, %v16249_v41  ;;  %v7550_v40 = vpop.permute.xlu2 %7549  ;;  %v7548_v36 = vpop.permute.xlu1 %7547 }
 0x798   :  { %7479 = vmatpush.bf16.msrb.mxu3 %v7293_v39  ;;  %v6588_v47 = vpop.f32.mrf.mxu0  ;;  %v7586_v13 = vsel %vm7585_vm1, %v7548_v36, %v7550_v40 }
 0x79b   :  { %10546 = vmatmul.msk.bf16.gmra.mxu2 %vm535_vm4, %v16249_v41 }
 0x79c   :  { %v6606_v23 = vpop.f32.mrf.mxu1 }
 0x79e   :  { %v6760_v44 = vpop.f32.mrf.mxu2  ;;  %v6775_v63 = vpop.f32.mrf.mxu3 }
 0x79f   :  { %v16374_v30 = vadd.f32 %v6760_v44, %v16227_v2  ;;  %v16377_v10 = vadd.f32 %v6775_v63, %v16230_v62  ;;  %v7344_v2 = vsel %vm542_vm3, %v7303_v16, 0  ;;  %v7572_v62 = vpop.permute.xlu0 %7571  ;;  %v7574_v35 = vpop.permute.xlu2 %7573 }
 0x7a0   :  { %v6791_v37 = vpop.f32.mrf.mxu0  ;;  %v7552_v25 = vpop.permute.xlu1 %7551  ;;  %v7597_v33 = vsel %vm7585_vm1, %v7572_v62, %v7574_v35 }
 0x7a1   :  { %v16386_v26 = vadd.f32 %v6791_v37, %v16233_v18  ;;  %v7587_v51 = vsel %vm7585_vm1, %v7550_v40, %v7552_v25  ;;  %v7626_v39 = vsel %vm542_vm3, %v7597_v33, 0 }
 0x7a3   :  { %10548 = vmatmul.msk.bf16.gmra.mxu3 %vm535_vm4, %v16249_v41  ;;  %10556 = vmatmul.msk.bf16.vlgmr.msra.gmra.mxu0 %vm535_vm4, %v16382_v14  ;;  %v7596_v41 = vsel %vm7585_vm1, %v7570_v31, %v7572_v62 }
 0x7a4   :  { %7496 = vmatpush.bf16.msra.mxu0 %v7344_v2  ;;  %v6809_v38 = vpop.f32.mrf.mxu1  ;;  %v7623_v0 = vsel %vm542_vm3, %v7596_v41, 0 }
 0x7a5   :  { %v16395_v34 = vadd.f32 %v6809_v38, %v16253_v32  ;;  %v10551_v32 = vld [vmem:[%s18140_s2 + $0x11c] sm:$0x3] }
 0x7a6   :  { %v6762_v57 = vpop.f32.mrf.mxu2  ;;  %v6778_v59 = vpop.f32.mrf.mxu3  ;;  %v7244_v50 = vunpack.c.l.b16 %v10551_v32 }
 0x7a7   :  { %v16398_v18 = vadd.f32 %v6778_v59, %v16244_v12  ;;  %10558 = vmatmul.msk.bf16.vlgmr.msra.gmra.mxu1 %vm535_vm4, %v16382_v14  ;;  %v7576_v16 = vpop.permute.xlu0 %7575 }
 0x7a8   :  { %7497 = vmatpush.bf16.msra.mxu0 %v7294_v22  ;;  %v6793_v24 = vpop.f32.mrf.mxu0  ;;  %7652 = vmatpush.bf16.msra.mxu1 %v7620_v3  ;;  %v16423_v17 = vpack.c.b16 %v7244_v50, %v7244_v50  ;;  %v7598_v28 = vsel %vm7585_vm1, %v7574_v35, %v7576_v16 }
 0x7a9   :  { %v16409_v12 = vadd.f32 %v6793_v24, %v16247_v27  ;;  %v7629_v41 = vsel %vm542_vm3, %v7598_v28, 0 }
 0x7ab   :  { %10560 = vmatmul.msk.bf16.vlgmr.msra.gmra.mxu2 %vm535_vm4, %v16382_v14 }
 0x7ac   :  { %7670 = vmatpush.bf16.msra.mxu2 %v7623_v0  ;;  %7653 = vmatpush.bf16.msra.mxu1 %v7586_v13  ;;  %v6811_v52 = vpop.f32.mrf.mxu1 }
 0x7ad   :  { %v16416_v6 = vadd.f32 %v6811_v52, %v16273_v20  ;;  %v7554_v20 = vpop.permute.xlu2 %7553 }
 0x7ae   :  { %v6780_v49 = vpop.f32.mrf.mxu3  ;;  %v6827_v15 = vpop.f32.mrf.mxu2  ;;  %v7588_v40 = vsel %vm7585_vm1, %v7552_v25, %v7554_v20 }
 0x7af   :  { %v16419_v27 = vadd.f32 %v6827_v15, %v16262_v46  ;;  %v7578_v46 = vpop.permute.xlu1 %7577  ;;  %v7556_v59 = vpop.permute.xlu0 %7555 }
 0x7b0   :  { %7671 = vmatpush.bf16.msra.mxu2 %v7587_v51  ;;  %v6796_v45 = vpop.f32.mrf.mxu0  ;;  %v7589_v25 = vsel %vm7585_vm1, %v7554_v20, %v7556_v59 }
 0x7b1   :  { %v16426_v31 = vadd.f32 %v6796_v45, %v16265_v21 }
 0x7b3   :  { %10562 = vmatmul.msk.bf16.vlgmr.msra.gmra.mxu3 %vm535_vm4, %v16382_v14  ;;  %10557 = vmatmul.msk.bf16.gmra.mxu0 %vm535_vm4, %v16423_v17 }
 0x7b4   :  { %7688 = vmatpush.bf16.msra.mxu3 %v7626_v39  ;;  %v6814_v47 = vpop.f32.mrf.mxu1 }
 0x7b5   :  { %v16434_v8 = vadd.f32 %v6814_v47, %v16288_v54 }
 0x7b6   :  { %v6829_v23 = vpop.f32.mrf.mxu2  ;;  %v6845_v44 = vpop.f32.mrf.mxu3 }
 0x7b7   :  { %v16437_v21 = vadd.f32 %v6829_v23, %v16280_v4  ;;  %v16440_v63 = vadd.f32 %v6845_v44, %v16283_v56  ;;  %10559 = vmatmul.msk.bf16.gmra.mxu1 %vm535_vm4, %v16423_v17  ;;  %v7558_v62 = vpop.permute.xlu1 %7557  ;;  %v7560_v49 = vpop.permute.xlu0 %7559 }
 0x7b8   :  { %7689 = vmatpush.bf16.msra.mxu3 %v7588_v40  ;;  %v6798_v36 = vpop.f32.mrf.mxu0 }
 0x7bb   :  { %10561 = vmatmul.msk.bf16.gmra.mxu2 %vm535_vm4, %v16423_v17 }
 0x7bc   :  { %v6816_v54 = vpop.f32.mrf.mxu1 }
 0x7be   :  { %v6832_v37 = vpop.f32.mrf.mxu2  ;;  %v6847_v2 = vpop.f32.mrf.mxu3 }
 0x7bf   :  { %v16448_v4 = vadd.f32 %v6832_v37, %v16296_v1  ;;  %v16451_v56 = vadd.f32 %v6847_v2, %v16299_v29  ;;  %v7599_v1 = vsel %vm7585_vm1, %v7576_v16, %v7578_v46 }
 0x7c0   :  { %v6863_v38 = vpop.f32.mrf.mxu0  ;;  %v7632_v0 = vsel %vm542_vm3, %v7599_v1, 0 }
 0x7c1   :  { %v16455_v57 = vadd.f32 %v6863_v38, %v16302_v9  ;;  %v7580_v9 = vpop.permute.xlu2 %7579 }
 0x7c2   :  { %v7600_v35 = vsel %vm7585_vm1, %v7578_v46, %v7580_v9 }
 0x7c3   :  { %10563 = vmatmul.msk.bf16.gmra.mxu3 %vm535_vm4, %v16423_v17  ;;  %10564 = vmatmul.msk.bf16.vlgmr.msrb.gmra.mxu0 %vm535_vm4, %v16382_v14  ;;  %v7635_v52 = vsel %vm542_vm3, %v7600_v35, 0 }
 0x7c4   :  { %7706 = vmatpush.bf16.msrb.mxu0 %v7629_v41  ;;  %v6881_v29 = vpop.f32.mrf.mxu1  ;;  %v7584_v41 = vpop.permute.xlu0 %7583 }
 0x7c5   :  { %v16464_v3 = vadd.f32 %v6881_v29, %v16317_v19  ;;  %v7582_v19 = vpop.permute.xlu1 %7581 }
 0x7c6   :  { %v6834_v22 = vpop.f32.mrf.mxu2  ;;  %v6850_v24 = vpop.f32.mrf.mxu3  ;;  %v7601_v20 = vsel %vm7585_vm1, %v7580_v9, %v7582_v19  ;;  %v7602_v1 = vsel %vm7585_vm1, %v7582_v19, %v7584_v41 }
 0x7c7   :  { %v16467_v32 = vadd.f32 %v6850_v24, %v16310_v48  ;;  %10566 = vmatmul.msk.bf16.vlgmr.msrb.gmra.mxu1 %vm535_vm4, %v16382_v14  ;;  %v7590_v48 = vsel %vm7585_vm1, %v7556_v59, %v7558_v62  ;;  %v7638_v23 = vsel %vm542_vm3, %v7601_v20, 0  ;;  %v7641_v24 = vsel %vm542_vm3, %v7602_v1, 0 }
 0x7c8   :  { %7707 = vmatpush.bf16.msrb.mxu0 %v7589_v25  ;;  %v6865_v13 = vpop.f32.mrf.mxu0  ;;  %7724 = vmatpush.bf16.msrb.mxu1 %v7632_v0 }
 0x7c9   :  { %v16475_v50 = vadd.f32 %v6865_v13, %v16313_v5  ;;  %v7591_v5 = vsel %vm7585_vm1, %v7558_v62, %v7560_v49 }
 0x7cb   :  { %10568 = vmatmul.msk.bf16.vlgmr.msrb.gmra.mxu2 %vm535_vm4, %v16382_v14 }
 0x7cc   :  { %7742 = vmatpush.bf16.msrb.mxu2 %v7635_v52  ;;  %7725 = vmatpush.bf16.msrb.mxu1 %v7590_v48  ;;  %v6883_v15 = vpop.f32.mrf.mxu1 }
 0x7cd   :  { %v16482_v51 = vadd.f32 %v6883_v15, %v16337_v58  ;;  %v7562_v58 = vpop.permute.xlu1 %7561 }
 0x7ce   :  { %v6852_v33 = vpop.f32.mrf.mxu3  ;;  %v6899_v45 = vpop.f32.mrf.mxu2  ;;  %v7592_v37 = vsel %vm7585_vm1, %v7560_v49, %v7562_v58  ;;  %v10576_v49 = vld [vmem:[%s18140_s2 + $0x128] sm:$0x3] }
 0x7cf   :  { %v16485_v39 = vadd.f32 %v6899_v45, %v16326_v11  ;;  %v7835_v11 = vld [vmem:[%s18141_s3] sm:$0xff] }
 0x7d0   :  { %7743 = vmatpush.bf16.msrb.mxu2 %v7591_v5  ;;  %v6868_v46 = vpop.f32.mrf.mxu0  ;;  %7840 = vperm.xlu0 %11315, %v7835_v11   ;;  %v7544_v5 = vunpack.c.l.b16 %v10576_v49 }
 0x7d1   :  { %v16490_v47 = vadd.f32 %v6868_v46, %v16329_v53 }
 0x7d2   :  { %v16569_v46 = vpack.c.b16 %v7544_v5, %v7544_v5 }
 0x7d3   :  { %10570 = vmatmul.msk.bf16.vlgmr.msrb.gmra.mxu3 %vm535_vm4, %v16382_v14  ;;  %10565 = vmatmul.msk.bf16.gmra.mxu0 %vm535_vm4, %v16423_v17 }
 0x7d4   :  { %7760 = vmatpush.bf16.msrb.mxu3 %v7638_v23  ;;  %v6886_v44 = vpop.f32.mrf.mxu1 }
 0x7d5   :  { %v16501_v40 = vadd.f32 %v6886_v44, %v16352_v7  ;;  %v7836_v7 = vld [vmem:[%s18141_s3 + $0x8] sm:$0xff] }
 0x7d6   :  { %v6901_v53 = vpop.f32.mrf.mxu2  ;;  %v7055_v16 = vpop.f32.mrf.mxu3  ;;  %7845 = vperm.xlu1 %11316, %v7836_v7  }
 0x7d7   :  { %v16504_v36 = vadd.f32 %v6901_v53, %v16344_v42  ;;  %v16507_v54 = vadd.f32 %v7055_v16, %v16347_v60  ;;  %10567 = vmatmul.msk.bf16.gmra.mxu1 %vm535_vm4, %v16423_v17  ;;  %v7566_v42 = vpop.permute.xlu2 %7565 }
 0x7d8   :  { %7761 = vmatpush.bf16.msrb.mxu3 %v7592_v37  ;;  %v6870_v2 = vpop.f32.mrf.mxu0 }
 0x7db   :  { %10569 = vmatmul.msk.bf16.gmra.mxu2 %vm535_vm4, %v16423_v17 }
 0x7dc   :  { %v6888_v62 = vpop.f32.mrf.mxu1 }
 0x7de   :  { %v6904_v28 = vpop.f32.mrf.mxu2  ;;  %v7057_v60 = vpop.f32.mrf.mxu3 }
 0x7df   :  { %v16518_v38 = vadd.f32 %v6904_v28, %v16360_v55  ;;  %v16521_v59 = vadd.f32 %v7057_v60, %v16363_v61  ;;  %v16535_v55 = vld [vmem:[%s18140_s2 + $0x120] sm:$0xff]  ;;  %v7603_v61 = vsel %vm7585_vm1, %v7584_v41, %v7566_v42  ;;  %v7564_v25 = vpop.permute.xlu2 %7563  ;;  %s11382_s2 = smov 112  }
 0x7e0   :  { %v7073_v29 = vpop.f32.mrf.mxu0  ;;  %v7593_v19 = vsel %vm7585_vm1, %v7562_v58, %v7564_v25 }
 0x7e1   :  { %v16525_v22 = vadd.f32 %v7073_v29, %v16366_v43 }
 0x7e3   :  { %10571 = vmatmul.msk.bf16.gmra.mxu3 %vm535_vm4, %v16423_v17  ;;  %10572 = vmatmul.msk.bf16.vlgmr.msra.gmra.mxu0 %vm535_vm4, %v16382_v14  ;;  %v7644_v14 = vsel %vm542_vm3, %v7603_v61, 0  ;;  %vm8297_vm3 = vcmask 1047556  }
 0x7e4   :  { %7778 = vmatpush.bf16.msra.mxu0 %v7641_v24  ;;  %v7091_v9 = vpop.f32.mrf.mxu1 }
 0x7e5   :  { %v16539_v43 = vadd.f32 %v7091_v9, %v16386_v26  ;;  %v7594_v26 = vsel %vm7585_vm1, %v7564_v25, %v7566_v42  ;;  %vm8756_vm1 = vcmask 687104  }
 0x7e6   :  { %v6906_v35 = vpop.f32.mrf.mxu2  ;;  %v7060_v0 = vpop.f32.mrf.mxu3 }
 0x7e7   :  { %v16542_v13 = vadd.f32 %v7060_v0, %v16374_v30  ;;  %10581 = vmatmul.msk.bf16.vlgmr.msra.gmra.mxu1 %vm535_vm4, %v16535_v55 }
 0x7e8   :  { %7779 = vmatpush.bf16.msra.mxu0 %v7593_v19  ;;  %v7075_v52 = vpop.f32.mrf.mxu0  ;;  %7796 = vmatpush.bf16.msra.mxu1 %v7644_v14 }
 0x7e9   :  { %v16549_v48 = vadd.f32 %v7075_v52, %v16377_v10 }
 0x7eb   :  { %10583 = vmatmul.msk.bf16.vlgmr.msra.gmra.mxu2 %vm535_vm4, %v16535_v55 }
 0x7ec   :  { %7797 = vmatpush.bf16.msra.mxu1 %v7594_v26  ;;  %v7093_v30 = vpop.f32.mrf.mxu1 }
 0x7ed   :  { %v16558_v15 = vadd.f32 %v7093_v30, %v16409_v12 }
 0x7ee   :  { %v7062_v33 = vpop.f32.mrf.mxu3  ;;  %v16560_v45 = vpop.f32.mrf.mxu2 }
 0x7f0   :  { %v7078_v10 = vpop.f32.mrf.mxu0 }
 0x7f1   :  { %v16563_v20 = vadd.f32 %v7078_v10, %v16398_v18  ;;  %v7922_v10 = vld [vmem:[%s18142_s4 + $0x78] sm:$0xff] }
 0x7f2   :  { %8051 = vmatpush.msra.mxu2 %v7922_v10  ;;  %v7936_v10 = vld [vmem:[%s18142_s4 + $0xe8] sm:$0xff] }
 0x7f3   :  { %10585 = vmatmul.msk.bf16.vlgmr.msra.gmra.mxu3 %vm535_vm4, %v16535_v55  ;;  %10573 = vmatmul.msk.bf16.gmra.mxu0 %vm535_vm4, %v16423_v17  ;;  %v7837_v17 = vld [vmem:[%s18141_s3 + $0x10] sm:$0xf] }
 0x7f4   :  { %v7096_v23 = vpop.f32.mrf.mxu1  ;;  %7850 = vperm.xlu2 %11317, %v7837_v17   ;;  %v7919_v17 = vld [vmem:[%s18142_s4 + $0x60] sm:$0xff] }
 0x7f5   :  { %v16572_v12 = vadd.f32 %v7096_v23, %v16426_v31 }
 0x7f6   :  { %v16574_v58 = vpop.f32.mrf.mxu2  ;;  %v16576_v11 = vpop.f32.mrf.mxu3 }
 0x7f7   :  { %10582 = vmatmul.msk.bf16.gmra.mxu1 %vm535_vm4, %v16569_v46 }
 0x7f8   :  { %v7080_v18 = vpop.f32.mrf.mxu0 }
 0x7f9   :  { %v7920_v18 = vld [vmem:[%s18142_s4 + $0x68] sm:$0xff] }
 0x7fb   :  { %10584 = vmatmul.msk.bf16.gmra.mxu2 %vm535_vm4, %v16569_v46 }
 0x7fc   :  { %v7098_v44 = vpop.f32.mrf.mxu1 }
 0x7fd   :  { %v7211_v44 = vadd.f32 %v16560_v45, %v16395_v34  ;;  %v7938_v34 = vld [vmem:[%s18142_s4 + $0xf8] sm:$0xff]  ;;  %v7917_v45 = vld [vmem:[%s18142_s4 + $0x50] sm:$0xff] }
 0x7fe   :  { %v16585_v53 = vpop.f32.mrf.mxu2  ;;  %v16587_v31 = vpop.f32.mrf.mxu3  ;;  %8077 = vmatpush.msra.mxu3 %v7938_v34 }
 0x800   :  { %v16589_v16 = vpop.f32.mrf.mxu0 }
 0x803   :  { %10586 = vmatmul.msk.bf16.gmra.mxu3 %vm535_vm4, %v16569_v46  ;;  %10587 = vmatmul.msk.bf16.vlgmr.msrb.gmra.mxu0 %vm535_vm4, %v16535_v55 }
 0x804   :  { %v16595_v37 = vpop.f32.mrf.mxu1 }
 0x806   :  { %v7116_v2 = vpop.f32.mrf.mxu2  ;;  %v16597_v7 = vpop.f32.mrf.mxu3 }
 0x807   :  { %10589 = vmatmul.msk.bf16.vlgmr.msrb.gmra.mxu1 %vm535_vm4, %v16535_v55 }
 0x808   :  { %v16601_v42 = vpop.f32.mrf.mxu0 }
 0x80b   :  { %10591 = vmatmul.msk.bf16.vlgmr.msrb.gmra.mxu2 %vm535_vm4, %v16535_v55 }
 0x80c   :  { %v16605_v62 = vpop.f32.mrf.mxu1 }
 0x80e   :  { %v7134_v28 = vpop.f32.mrf.mxu3  ;;  %v16607_v60 = vpop.f32.mrf.mxu2 }
 0x810   :  { %v16609_v41 = vpop.f32.mrf.mxu0 }
 0x813   :  { %10593 = vmatmul.msk.bf16.vlgmr.msrb.gmra.mxu3 %vm535_vm4, %v16535_v55  ;;  %10588 = vmatmul.msk.bf16.gmra.mxu0 %vm535_vm4, %v16569_v46 }
 0x814   :  { %v16615_v1 = vpop.f32.mrf.mxu1 }
 0x816   :  { %v16617_v29 = vpop.f32.mrf.mxu2  ;;  %v16619_v24 = vpop.f32.mrf.mxu3 }
 0x817   :  { %10590 = vmatmul.msk.bf16.gmra.mxu1 %vm535_vm4, %v16569_v46 }
 0x818   :  { %v7152_v61 = vpop.f32.mrf.mxu0 }
 0x81b   :  { %10592 = vmatmul.msk.bf16.gmra.mxu2 %vm535_vm4, %v16569_v46 }
 0x81c   :  { %v7170_v9 = vpop.f32.mrf.mxu1 }
 0x81d   :  { %v7918_v9 = vld [vmem:[%s18142_s4 + $0x58] sm:$0xff] }
 0x81e   :  { %v16625_v35 = vpop.f32.mrf.mxu2  ;;  %v16627_v0 = vpop.f32.mrf.mxu3 }
 0x820   :  { %v16629_v25 = vpop.f32.mrf.mxu0 }
 0x823   :  { %10594 = vmatmul.msk.bf16.gmra.mxu3 %vm535_vm4, %v16569_v46  ;;  %10595 = vmatmul.msk.bf16.vlgmr.msra.gmra.mxu0 %vm535_vm4, %v16535_v55 }
 0x824   :  { %v16635_v14 = vpop.f32.mrf.mxu1 }
 0x826   :  { %v7188_v19 = vpop.f32.mrf.mxu2  ;;  %v7204_v52 = vpop.f32.mrf.mxu3 }
 0x827   :  { %v16638_v26 = vadd.f32 %v7204_v52, %v16518_v38  ;;  %10597 = vmatmul.msk.bf16.vlgmr.msra.gmra.mxu1 %vm535_vm4, %v16535_v55  ;;  %v7921_v38 = vld [vmem:[%s18142_s4 + $0x70] sm:$0xff] }
 0x828   :  { %v16642_v30 = vpop.f32.mrf.mxu0  ;;  %8052 = vmatpush.msra.mxu2 %v7921_v38  ;;  %v7935_v38 = vld [vmem:[%s18142_s4 + $0xe0] sm:$0xff] }
 0x82a   :  { %8053 = vmatpush.msra.mxu2 %v7920_v18  ;;  %v7914_v18 = vld [vmem:[%s18142_s4 + $0x38] sm:$0xff] }
 0x82c   :  { %v16644_v49 = vpop.f32.mrf.mxu1  ;;  %8054 = vmatpush.msra.mxu2 %v7919_v17 }
 0x82e   :  { %v7206_v33 = vpop.f32.mrf.mxu3  ;;  %v16646_v5 = vpop.f32.mrf.mxu2  ;;  %8055 = vmatpush.msra.mxu2 %v7918_v9  ;;  %v7212_v9 = vadd.f32 %v16576_v11, %v16419_v27  ;;  %v7932_v27 = vld [vmem:[%s18142_s4 + $0xc8] sm:$0xff] }
 0x82f   :  { %v7916_v33 = vld [vmem:[%s18142_s4 + $0x48] sm:$0xff] }
 0x830   :  { %v7360_v23 = vpop.f32.mrf.mxu0  ;;  %8056 = vmatpush.msra.mxu2 %v7917_v45  ;;  %v7952_v11 = vld [vmem:[%s18142_s4 + $0x168] sm:$0xff] }
 0x831   :  { %v16655_v55 = vadd.f32 %v7360_v23, %v16542_v13 }
 0x832   :  { %8057 = vmatpush.msra.mxu2 %v7916_v33  ;;  %v7912_v33 = vld [vmem:[%s18142_s4 + $0x28] sm:$0xff] }
 0x833   :  { %10596 = vmatmul.msk.bf16.gmra.mxu0 %vm535_vm4, %v16569_v46 }
 0x834   :  { %v7378_v2 = vpop.f32.mrf.mxu1 }
 0x835   :  { %v16668_v13 = vadd.f32 %v7378_v2, %v16563_v20  ;;  %v7934_v2 = vld [vmem:[%s18142_s4 + $0xd8] sm:$0xff] }
 0x836   :  { %v7393_v28 = vpop.f32.mrf.mxu2  ;;  %v7409_v61 = vpop.f32.mrf.mxu3 }
 0x837   :  { %v16674_v19 = vadd.f32 %v7393_v28, %v16558_v15  ;;  %v16676_v52 = vadd.f32 %v7409_v61, %v7211_v44  ;;  %10598 = vmatmul.msk.bf16.gmra.mxu1 %vm535_vm4, %v16569_v46  ;;  %v7937_v15 = vld [vmem:[%s18142_s4 + $0xf0] sm:$0xff]  ;;  %v7915_v46 = vld [vmem:[%s18142_s4 + $0x40] sm:$0xff]  ;;  %v7954_v28 = vld [vmem:[%s18142_s4 + $0x178] sm:$0xff] }
 0x838   :  { %v7362_v20 = vpop.f32.mrf.mxu0  ;;  %8078 = vmatpush.msra.mxu3 %v7937_v15  ;;  %8058 = vmatpush.msra.mxu2 %v7915_v46  ;;  %v7913_v61 = vld [vmem:[%s18142_s4 + $0x30] sm:$0xff]  ;;  %v7213_v46 = vadd.f32 %v16589_v16, %v16440_v63  ;;  %v7910_v63 = vld [vmem:[%s18142_s4 + $0x18] sm:$0xff] }
 0x839   :  { %8103 = vmatpush.msrb.mxu0 %v7954_v28  ;;  %v7933_v20 = vld [vmem:[%s18142_s4 + $0xd0] sm:$0xff] }
 0x83a   :  { %8079 = vmatpush.msra.mxu3 %v7936_v10  ;;  %8059 = vmatpush.msra.mxu2 %v7914_v18  ;;  %v7953_v15 = vld [vmem:[%s18142_s4 + $0x170] sm:$0xff]  ;;  %v7911_v10 = vld [vmem:[%s18142_s4 + $0x20] sm:$0xff]  ;;  %v7229_v18 = vadd.f32 %v16585_v53, %v16434_v8  ;;  %v7930_v8 = vld [vmem:[%s18142_s4 + $0xb8] sm:$0xff] }
 0x83b   :  { %8104 = vmatpush.msrb.mxu0 %v7953_v15  ;;  %v7950_v53 = vld [vmem:[%s18142_s4 + $0x158] sm:$0xff]  ;;  %v7929_v15 = vld [vmem:[%s18142_s4 + $0xb0] sm:$0xff] }
 0x83c   :  { %v7380_v23 = vpop.f32.mrf.mxu1  ;;  %8080 = vmatpush.msra.mxu3 %v7935_v38  ;;  %8060 = vmatpush.msra.mxu2 %v7913_v61  ;;  %v7931_v38 = vld [vmem:[%s18142_s4 + $0xc0] sm:$0xff] }
 0x83d   :  { %v7951_v23 = vld [vmem:[%s18142_s4 + $0x160] sm:$0xff]  ;;  %8105 = vmatpush.msrb.mxu0 %v7952_v11  ;;  %v7908_v11 = vld [vmem:[%s18142_s4 + $0x8] sm:$0xff] }
 0x83e   :  { %v16704_v17 = vpop.f32.mrf.mxu2  ;;  %v16706_v44 = vpop.f32.mrf.mxu3  ;;  %8081 = vmatpush.msra.mxu3 %v7934_v2  ;;  %8061 = vmatpush.msra.mxu2 %v7912_v33  ;;  %v7949_v33 = vld [vmem:[%s18142_s4 + $0x150] sm:$0xff] }
 0x83f   :  { %8106 = vmatpush.msrb.mxu0 %v7951_v23  ;;  %v7907_v23 = vld [vmem:[%s18142_s4] sm:$0xff] }
 0x840   :  { %v7427_v34 = vpop.f32.mrf.mxu0  ;;  %8082 = vmatpush.msra.mxu3 %v7933_v20  ;;  %8062 = vmatpush.msra.mxu2 %v7911_v10  ;;  %v7928_v10 = vld [vmem:[%s18142_s4 + $0xa8] sm:$0xff] }
 0x841   :  { %v16719_v45 = vadd.f32 %v7427_v34, %v7212_v9  ;;  %v7909_v34 = vld [vmem:[%s18142_s4 + $0x10] sm:$0xff]  ;;  %8107 = vmatpush.msrb.mxu0 %v7950_v53  ;;  %v7986_v53 = vld [vmem:[%s18142_s4 + $0x278] sm:$0xff] }
 0x842   :  { %8083 = vmatpush.msra.mxu3 %v7932_v27  ;;  %8063 = vmatpush.msra.mxu2 %v7910_v63  ;;  %v7970_v27 = vld [vmem:[%s18142_s4 + $0x1f8] sm:$0xff] }
 0x843   :  { %8108 = vmatpush.msrb.mxu0 %v7949_v33  ;;  %8129 = vmatpush.msrb.mxu1 %v7970_v27  ;;  %v7946_v33 = vld [vmem:[%s18142_s4 + $0x138] sm:$0xff]  ;;  %v7967_v27 = vld [vmem:[%s18142_s4 + $0x1e0] sm:$0xff] }
 0x844   :  { %v7445_v2 = vpop.f32.mrf.mxu1  ;;  %8084 = vmatpush.msra.mxu3 %v7931_v38  ;;  %8064 = vmatpush.msra.mxu2 %v7909_v34  ;;  %v7969_v38 = vld [vmem:[%s18142_s4 + $0x1f0] sm:$0xff]  ;;  %v7230_v34 = vadd.f32 %v16597_v7, %v16448_v4 }
 0x845   :  { %v16749_v28 = vadd.f32 %v7445_v2, %v7213_v46  ;;  %v7948_v46 = vld [vmem:[%s18142_s4 + $0x148] sm:$0xff]  ;;  %8130 = vmatpush.msrb.mxu1 %v7969_v38  ;;  %v7985_v4 = vld [vmem:[%s18142_s4 + $0x270] sm:$0xff]  ;;  %v7966_v38 = vld [vmem:[%s18142_s4 + $0x1d8] sm:$0xff] }
 0x846   :  { %v7398_v61 = vpop.f32.mrf.mxu2  ;;  %v7414_v9 = vpop.f32.mrf.mxu3  ;;  %8085 = vmatpush.msra.mxu3 %v7930_v8  ;;  %8065 = vmatpush.msra.mxu2 %v7908_v11 }
 0x847   :  { %v16754_v16 = vadd.f32 %v7414_v9, %v7229_v18  ;;  %v7927_v18 = vld [vmem:[%s18142_s4 + $0xa0] sm:$0xff]  ;;  %8109 = vmatpush.msrb.mxu0 %v7948_v46  ;;  %v7968_v9 = vld [vmem:[%s18142_s4 + $0x1e8] sm:$0xff]  ;;  %v7945_v46 = vld [vmem:[%s18142_s4 + $0x130] sm:$0xff] }
 0x848   :  { %v16765_v20 = vpop.f32.mrf.mxu0  ;;  %8086 = vmatpush.msra.mxu3 %v7929_v15  ;;  %v7947_v61 = vld [vmem:[%s18142_s4 + $0x140] sm:$0xff]  ;;  %8066 = vmatpush.msra.mxu2 %v7907_v23  ;;  %v7926_v15 = vld [vmem:[%s18142_s4 + $0x98] sm:$0xff]  ;;  %v7984_v23 = vld [vmem:[%s18142_s4 + $0x268] sm:$0xff] }
 0x849   :  { %8110 = vmatpush.msrb.mxu0 %v7947_v61  ;;  %8131 = vmatpush.msrb.mxu1 %v7968_v9  ;;  %v7944_v61 = vld [vmem:[%s18142_s4 + $0x128] sm:$0xff]  ;;  %v7231_v9 = vadd.f32 %v16609_v41, %v16467_v32  ;;  %v7215_v32 = vadd.f32 %v16607_v60, %v16464_v3  ;;  %v7982_v3 = vld [vmem:[%s18142_s4 + $0x258] sm:$0xff] }
 0x84a   :  { %8087 = vmatpush.msra.mxu3 %v7928_v10  ;;  %8155 = vmatpush.msrb.mxu2 %v7986_v53  ;;  %v7925_v10 = vld [vmem:[%s18142_s4 + $0x90] sm:$0xff]  ;;  %v7983_v53 = vld [vmem:[%s18142_s4 + $0x260] sm:$0xff]  ;;  %v7942_v60 = vld [vmem:[%s18142_s4 + $0x118] sm:$0xff] }
 0x84b   :  { %8111 = vmatpush.msrb.mxu0 %v7946_v33  ;;  %8132 = vmatpush.msrb.mxu1 %v7967_v27  ;;  %v7943_v33 = vld [vmem:[%s18142_s4 + $0x120] sm:$0xff]  ;;  %v7964_v27 = vld [vmem:[%s18142_s4 + $0x1c8] sm:$0xff] }
 0x84c   :  { %v16794_v2 = vpop.f32.mrf.mxu1  ;;  %8088 = vmatpush.msra.mxu3 %v7927_v18  ;;  %8156 = vmatpush.msrb.mxu2 %v7985_v4  ;;  %v7924_v18 = vld [vmem:[%s18142_s4 + $0x88] sm:$0xff] }
 0x84d   :  { %8112 = vmatpush.msrb.mxu0 %v7945_v46  ;;  %8133 = vmatpush.msrb.mxu1 %v7966_v38  ;;  %v7963_v46 = vld [vmem:[%s18142_s4 + $0x1c0] sm:$0xff]  ;;  %v8002_v38 = vld [vmem:[%s18142_s4 + $0x2f8] sm:$0xff] }
 0x84e   :  { %v7416_v63 = vpop.f32.mrf.mxu3  ;;  %v16802_v8 = vpop.f32.mrf.mxu2  ;;  %8089 = vmatpush.msra.mxu3 %v7926_v15  ;;  %8157 = vmatpush.msrb.mxu2 %v7984_v23  ;;  %v7223_v15 = vadd.f32 %v16605_v62, %v16475_v50 }
 0x84f   :  { %v7965_v63 = vld [vmem:[%s18142_s4 + $0x1d0] sm:$0xff]  ;;  %8113 = vmatpush.msrb.mxu0 %v7944_v61 }
 0x850   :  { %v7432_v11 = vpop.f32.mrf.mxu0  ;;  %8090 = vmatpush.msra.mxu3 %v7925_v10  ;;  %8134 = vmatpush.msrb.mxu1 %v7965_v63  ;;  %v7941_v61 = vld [vmem:[%s18142_s4 + $0x110] sm:$0xff] }
 0x851   :  { %v16821_v7 = vadd.f32 %v7432_v11, %v7230_v34  ;;  %v7923_v34 = vld [vmem:[%s18142_s4 + $0x80] sm:$0xff]  ;;  %8158 = vmatpush.msrb.mxu2 %v7983_v53  ;;  %8114 = vmatpush.msrb.mxu0 %v7943_v33  ;;  %v8001_v63 = vld [vmem:[%s18142_s4 + $0x2f0] sm:$0xff]  ;;  %v7980_v53 = vld [vmem:[%s18142_s4 + $0x248] sm:$0xff] }
 0x852   :  { %8091 = vmatpush.msra.mxu3 %v7924_v18  ;;  %8135 = vmatpush.msrb.mxu1 %v7964_v27  ;;  %v7981_v18 = vld [vmem:[%s18142_s4 + $0x250] sm:$0xff]  ;;  %v7939_v33 = vld [vmem:[%s18142_s4 + $0x100] sm:$0xff] }
 0x853   :  { %8159 = vmatpush.msrb.mxu2 %v7982_v3  ;;  %8115 = vmatpush.msrb.mxu0 %v7942_v60  ;;  %v7978_v3 = vld [vmem:[%s18142_s4 + $0x238] sm:$0xff] }
 0x854   :  { %v7450_v41 = vpop.f32.mrf.mxu1  ;;  %8092 = vmatpush.msra.mxu3 %v7923_v34  ;;  %8136 = vmatpush.msrb.mxu1 %v7963_v46  ;;  %v7940_v34 = vld [vmem:[%s18142_s4 + $0x108] sm:$0xff] }
 0x855   :  { %v16862_v11 = vadd.f32 %v7450_v41, %v7231_v9  ;;  %8160 = vmatpush.msrb.mxu2 %v7981_v18  ;;  %v7962_v9 = vld [vmem:[%s18142_s4 + $0x1b8] sm:$0xff]  ;;  %8116 = vmatpush.msrb.mxu0 %v7941_v61  ;;  %v7979_v41 = vld [vmem:[%s18142_s4 + $0x240] sm:$0xff] }
 0x856   :  { %v7465_v4 = vpop.f32.mrf.mxu2  ;;  %v7481_v10 = vpop.f32.mrf.mxu3  ;;  %8181 = vmatpush.msrb.mxu3 %v8002_v38  ;;  %8137 = vmatpush.msrb.mxu1 %v7962_v9  ;;  %v7216_v38 = vadd.f32 %v16619_v24, %v16485_v39  ;;  %v7998_v18 = vld [vmem:[%s18142_s4 + $0x2d8] sm:$0xff]  ;;  %v7977_v39 = vld [vmem:[%s18142_s4 + $0x230] sm:$0xff] }
 0x857   :  { %v16867_v50 = vadd.f32 %v7465_v4, %v7223_v15  ;;  %v16869_v62 = vadd.f32 %v7481_v10, %v7215_v32  ;;  %v7961_v15 = vld [vmem:[%s18142_s4 + $0x1b0] sm:$0xff]  ;;  %8161 = vmatpush.msrb.mxu2 %v7980_v53  ;;  %v8000_v32 = vld [vmem:[%s18142_s4 + $0x2e8] sm:$0xff]  ;;  %8117 = vmatpush.msrb.mxu0 %v7940_v34  ;;  %v7999_v10 = vld [vmem:[%s18142_s4 + $0x2e0] sm:$0xff] }
 0x858   :  { %v7434_v23 = vpop.f32.mrf.mxu0  ;;  %8182 = vmatpush.msrb.mxu3 %v8001_v63  ;;  %v7960_v4 = vld [vmem:[%s18142_s4 + $0x1a8] sm:$0xff]  ;;  %8138 = vmatpush.msrb.mxu1 %v7961_v15  ;;  %v8018_v61 = vld [vmem:[%s18142_s4 + $0x378] sm:$0xff]  ;;  %v7997_v53 = vld [vmem:[%s18142_s4 + $0x2d0] sm:$0xff] }
 0x859   :  { %8162 = vmatpush.msrb.mxu2 %v7979_v41  ;;  %8118 = vmatpush.msrb.mxu0 %v7939_v33  ;;  %v7959_v23 = vld [vmem:[%s18142_s4 + $0x1a0] sm:$0xff]  ;;  %v7958_v63 = vld [vmem:[%s18142_s4 + $0x198] sm:$0xff]  ;;  %v8017_v34 = vld [vmem:[%s18142_s4 + $0x370] sm:$0xff] }
 0x85a   :  { %8183 = vmatpush.msrb.mxu3 %v8000_v32  ;;  %8139 = vmatpush.msrb.mxu1 %v7960_v4  ;;  %v7976_v15 = vld [vmem:[%s18142_s4 + $0x228] sm:$0xff]  ;;  %v7508_v32 = vadd.f32 %v16629_v25, %v16507_v54  ;;  %v7957_v41 = vld [vmem:[%s18142_s4 + $0x190] sm:$0xff]  ;;  %v7233_v4 = vadd.f32 %v16625_v35, %v16501_v40  ;;  %v7975_v54 = vld [vmem:[%s18142_s4 + $0x220] sm:$0xff] }
 0x85b   :  { %8163 = vmatpush.msrb.mxu2 %v7978_v3  ;;  %8207 = vmatpush.msra.mxu0 %v8018_v61  ;;  %v7996_v33 = vld [vmem:[%s18142_s4 + $0x2c8] sm:$0xff]  ;;  %v16964_v3 = vpop.permute.xlu0 %7840  ;;  %v7995_v40 = vld [vmem:[%s18142_s4 + $0x2c0] sm:$0xff] }
 0x85c   :  { %v7452_v27 = vpop.f32.mrf.mxu1  ;;  %8184 = vmatpush.msrb.mxu3 %v7999_v10  ;;  %8140 = vmatpush.msrb.mxu1 %v7959_v23  ;;  %v8015_v35 = vld [vmem:[%s18142_s4 + $0x360] sm:$0xff] }
 0x85d   :  { %8164 = vmatpush.msrb.mxu2 %v7977_v39  ;;  %8208 = vmatpush.msra.mxu0 %v8017_v34  ;;  %v8016_v27 = vld [vmem:[%s18142_s4 + $0x368] sm:$0xff]  ;;  %v8014_v34 = vld [vmem:[%s18142_s4 + $0x358] sm:$0xff] }
 0x85e   :  { %v16919_v60 = vpop.f32.mrf.mxu2  ;;  %v16921_v46 = vpop.f32.mrf.mxu3  ;;  %8185 = vmatpush.msrb.mxu3 %v7998_v18  ;;  %8141 = vmatpush.msrb.mxu1 %v7958_v63  ;;  %v7956_v18 = vld [vmem:[%s18142_s4 + $0x188] sm:$0xff]  ;;  %v7955_v63 = vld [vmem:[%s18142_s4 + $0x180] sm:$0xff] }
 0x85f   :  { %8165 = vmatpush.msrb.mxu2 %v7976_v15  ;;  %8209 = vmatpush.msra.mxu0 %v8016_v27  ;;  %v8013_v27 = vld [vmem:[%s18142_s4 + $0x350] sm:$0xff] }
 0x860   :  { %v7499_v9 = vpop.f32.mrf.mxu0  ;;  %8186 = vmatpush.msrb.mxu3 %v7997_v53  ;;  %8142 = vmatpush.msrb.mxu1 %v7957_v41  ;;  %v7994_v53 = vld [vmem:[%s18142_s4 + $0x2b8] sm:$0xff] }
 0x861   :  { %v16937_v24 = vadd.f32 %v7499_v9, %v7216_v38  ;;  %8166 = vmatpush.msrb.mxu2 %v7975_v54  ;;  %8210 = vmatpush.msra.mxu0 %v8015_v35  ;;  %v7974_v9 = vld [vmem:[%s18142_s4 + $0x218] sm:$0xff]  ;;  %v7517_v54 = vadd.f32 %v16642_v30, %v16521_v59  ;;  %v17023_v35 = vpop.permute.xlu1 %7845  ;;  %v7971_v59 = vld [vmem:[%s18142_s4 + $0x200] sm:$0xff] }
 0x862   :  { %8187 = vmatpush.msrb.mxu3 %v7996_v33  ;;  %8143 = vmatpush.msrb.mxu1 %v7956_v18  ;;  %v7993_v33 = vld [vmem:[%s18142_s4 + $0x2b0] sm:$0xff]  ;;  %v7509_v18 = vadd.f32 %v16635_v14, %v16525_v22  ;;  %v8011_v22 = vld [vmem:[%s18142_s4 + $0x340] sm:$0xff]  ;;  %v8032_v14 = vld [vmem:[%s18142_s4 + $0x3e8] sm:$0xff] }
 0x863   :  { %8167 = vmatpush.msrb.mxu2 %v7974_v9  ;;  %8211 = vmatpush.msra.mxu0 %v8014_v34  ;;  %v8050_v34 = vld [vmem:[%s18142_s4 + $0x478] sm:$0xff] }
 0x864   :  { %v7655_v10 = vpop.f32.mrf.mxu1  ;;  %8188 = vmatpush.msrb.mxu3 %v7995_v40  ;;  %8144 = vmatpush.msrb.mxu1 %v7955_v63  ;;  %v7991_v63 = vld [vmem:[%s18142_s4 + $0x2a0] sm:$0xff] }
 0x865   :  { %v7808_v25 = vadd.f32 %v7655_v10, %v7508_v32  ;;  %v7973_v32 = vld [vmem:[%s18142_s4 + $0x210] sm:$0xff]  ;;  %8212 = vmatpush.msra.mxu0 %v8013_v27  ;;  %v7972_v10 = vld [vmem:[%s18142_s4 + $0x208] sm:$0xff]  ;;  %v8031_v27 = vld [vmem:[%s18142_s4 + $0x3e0] sm:$0xff] }
 0x866   :  { %v7470_v38 = vpop.f32.mrf.mxu2  ;;  %v7486_v23 = vpop.f32.mrf.mxu3  ;;  %8189 = vmatpush.msrb.mxu3 %v7994_v53  ;;  %8168 = vmatpush.msrb.mxu2 %v7973_v32 }
 0x867   :  { %v16978_v61 = vadd.f32 %v7486_v23, %v7233_v4  ;;  %v7853_v39 = vadd.f32 %v16964_v3, %v7808_v25  ;;  %v8034_v4 = vld [vmem:[%s18142_s4 + $0x3f8] sm:$0xff]  ;;  %v7992_v25 = vld [vmem:[%s18142_s4 + $0x2a8] sm:$0xff]  ;;  %v8033_v23 = vld [vmem:[%s18142_s4 + $0x3f0] sm:$0xff] }
 0x868   :  { %v16993_v15 = vpop.f32.mrf.mxu0  ;;  %8190 = vmatpush.msrb.mxu3 %v7993_v33  ;;  %8233 = vmatpush.msra.mxu1 %v8034_v4  ;;  %v8012_v38 = vld [vmem:[%s18142_s4 + $0x348] sm:$0xff]  ;;  %v8010_v33 = vld [vmem:[%s18142_s4 + $0x338] sm:$0xff] }
 0x869   :  { %v7880_v41 = vmax.f32 %v7853_v39, 0.0  ;;  %8169 = vmatpush.msrb.mxu2 %v7972_v10  ;;  %8213 = vmatpush.msra.mxu0 %v8012_v38 }
 0x86a   :  { %8191 = vmatpush.msrb.mxu3 %v7992_v25  ;;  %8234 = vmatpush.msra.mxu1 %v8033_v23  ;;  %v7989_v23 = vld [vmem:[%s18142_s4 + $0x290] sm:$0xff] }
 0x86b   :  { %8067 = vmatmul.f32.vlgmr.msra.gmra.mxu2 %v7880_v41  ;;  %8214 = vmatpush.msra.mxu0 %v8011_v22  ;;  %v7990_v41 = vld [vmem:[%s18142_s4 + $0x298] sm:$0xff]  ;;  %v7510_v22 = vadd.f32 %v16646_v5, %v16539_v43  ;;  %v8007_v43 = vld [vmem:[%s18142_s4 + $0x320] sm:$0xff] }
 0x86c   :  { %v7657_v40 = vpop.f32.mrf.mxu1  ;;  %8170 = vmatpush.msrb.mxu2 %v7971_v59  ;;  %8192 = vmatpush.msrb.mxu3 %v7991_v63  ;;  %v7518_v63 = vadd.f32 %v16644_v49, %v16549_v48  ;;  %v7987_v48 = vld [vmem:[%s18142_s4 + $0x280] sm:$0xff]  ;;  %v8028_v49 = vld [vmem:[%s18142_s4 + $0x3c8] sm:$0xff] }
 0x86d   :  { %v7817_v30 = vadd.f32 %v7657_v40, %v7517_v54  ;;  %8235 = vmatpush.msra.mxu1 %v8032_v14  ;;  %v8049_v54 = vld [vmem:[%s18142_s4 + $0x470] sm:$0xff]  ;;  %8215 = vmatpush.msra.mxu0 %v8010_v33  ;;  %v8030_v40 = vld [vmem:[%s18142_s4 + $0x3d8] sm:$0xff] }
 0x86e   :  { %v7488_v9 = vpop.f32.mrf.mxu3  ;;  %v7673_v39 = vpop.f32.mrf.mxu2  ;;  %8259 = vmatpush.msra.mxu2 %v8050_v34  ;;  %8193 = vmatpush.msrb.mxu3 %v7990_v41  ;;  %v8047_v34 = vld [vmem:[%s18142_s4 + $0x460] sm:$0xff] }
 0x86f   :  { %v7809_v53 = vadd.f32 %v7673_v39, %v7509_v18  ;;  %v7862_v32 = vadd.f32 %v17023_v35, %v7817_v30  ;;  %8236 = vmatpush.msra.mxu1 %v8031_v27  ;;  %v8009_v18 = vld [vmem:[%s18142_s4 + $0x330] sm:$0xff]  ;;  %v7988_v30 = vld [vmem:[%s18142_s4 + $0x288] sm:$0xff] }
 0x870   :  { %v7504_v10 = vpop.f32.mrf.mxu0  ;;  %8260 = vmatpush.msra.mxu2 %v8049_v54  ;;  %8194 = vmatpush.msrb.mxu3 %v7989_v23  ;;  %v8008_v9 = vld [vmem:[%s18142_s4 + $0x328] sm:$0xff]  ;;  %v8029_v39 = vld [vmem:[%s18142_s4 + $0x3d0] sm:$0xff]  ;;  %v8027_v54 = vld [vmem:[%s18142_s4 + $0x3c0] sm:$0xff] }
 0x871   :  { %v7854_v4 = vadd.f32 %v16964_v3, %v7809_v53  ;;  %v17055_v25 = vadd.f32 %v7504_v10, %v16638_v26  ;;  %v7889_v38 = vmax.f32 %v7862_v32, 0.0  ;;  %v8048_v26 = vld [vmem:[%s18142_s4 + $0x468] sm:$0xff]  ;;  %8216 = vmatpush.msra.mxu0 %v8009_v18  ;;  %v17082_v53 = vpop.permute.xlu2 %7850  ;;  %8237 = vmatpush.msra.mxu1 %v8030_v40  ;;  %v8006_v10 = vld [vmem:[%s18142_s4 + $0x318] sm:$0xff] }
 0x872   :  { %8261 = vmatpush.msra.mxu2 %v8048_v26  ;;  %8195 = vmatpush.msrb.mxu3 %v7988_v30  ;;  %v8045_v30 = vld [vmem:[%s18142_s4 + $0x450] sm:$0xff] }
 0x873   :  { %v7881_v59 = vmax.f32 %v7854_v4, 0.0  ;;  %8070 = vmatmul.f32.gmra.mxu2 %v7889_v38  ;;  %8217 = vmatpush.msra.mxu0 %v8008_v9  ;;  %v8005_v9 = vld [vmem:[%s18142_s4 + $0x310] sm:$0xff] }
 0x874   :  { %v7660_v14 = vpop.f32.mrf.mxu1  ;;  %8238 = vmatpush.msra.mxu1 %v8029_v39  ;;  %8262 = vmatpush.msra.mxu2 %v8047_v34  ;;  %v8026_v39 = vld [vmem:[%s18142_s4 + $0x3b8] sm:$0xff] }
 0x875   :  { %8093 = vmatmul.f32.vlgmr.msra.gmra.mxu3 %v7881_v59  ;;  %v7826_v32 = vadd.f32 %v7660_v14, %v16655_v55  ;;  %v8046_v55 = vld [vmem:[%s18142_s4 + $0x458] sm:$0xff]  ;;  %8218 = vmatpush.msra.mxu0 %v8007_v43  ;;  %v8004_v14 = vld [vmem:[%s18142_s4 + $0x308] sm:$0xff]  ;;  %v8043_v43 = vld [vmem:[%s18142_s4 + $0x440] sm:$0xff] }
 0x876   :  { %v7675_v41 = vpop.f32.mrf.mxu2  ;;  %v7691_v33 = vpop.f32.mrf.mxu3  ;;  %8196 = vmatpush.msrb.mxu3 %v7987_v48  ;;  %8239 = vmatpush.msra.mxu1 %v8028_v49  ;;  %v8003_v49 = vld [vmem:[%s18142_s4 + $0x300] sm:$0xff] }
 0x877   :  { %v7818_v5 = vadd.f32 %v7675_v41, %v7518_v63  ;;  %v7810_v27 = vadd.f32 %v7691_v33, %v7510_v22  ;;  %v7871_v4 = vadd.f32 %v17082_v53, %v7826_v32  ;;  %8263 = vmatpush.msra.mxu2 %v8046_v55  ;;  %8219 = vmatpush.msra.mxu0 %v8006_v10  ;;  %v8044_v22 = vld [vmem:[%s18142_s4 + $0x448] sm:$0xff]  ;;  %v8025_v41 = vld [vmem:[%s18142_s4 + $0x3b0] sm:$0xff]  ;;  %v8042_v55 = vld [vmem:[%s18142_s4 + $0x438] sm:$0xff] }
 0x878   :  { %v7506_v18 = vpop.f32.mrf.mxu0  ;;  %8240 = vmatpush.msra.mxu1 %v8027_v54 }
 0x879   :  { %v7863_v38 = vadd.f32 %v17023_v35, %v7818_v5  ;;  %v7855_v23 = vadd.f32 %v16964_v3, %v7810_v27  ;;  %v7898_v40 = vmax.f32 %v7871_v4, 0.0  ;;  %8264 = vmatpush.msra.mxu2 %v8045_v30  ;;  %8220 = vmatpush.msra.mxu0 %v8005_v9  ;;  %v8024_v5 = vld [vmem:[%s18142_s4 + $0x3a8] sm:$0xff] }
 0x87a   :  { %8241 = vmatpush.msra.mxu1 %v8026_v39 }
 0x87b   :  { %v7890_v59 = vmax.f32 %v7863_v38, 0.0  ;;  %v7882_v26 = vmax.f32 %v7855_v23, 0.0  ;;  %8073 = vmatmul.f32.gmra.mxu2 %v7898_v40  ;;  %8221 = vmatpush.msra.mxu0 %v8004_v14  ;;  %v8023_v38 = vld [vmem:[%s18142_s4 + $0x3a0] sm:$0xff]  ;;  %v8041_v23 = vld [vmem:[%s18142_s4 + $0x430] sm:$0xff]  ;;  %v7528_v40 = vadd.f32 %v16704_v17, %v16572_v12  ;;  %v8022_v12 = vld [vmem:[%s18142_s4 + $0x398] sm:$0xff] }
 0x87c   :  { %v7662_v63 = vpop.f32.mrf.mxu1  ;;  %8265 = vmatpush.msra.mxu2 %v8044_v22  ;;  %8242 = vmatpush.msra.mxu1 %v8025_v41  ;;  %v8039_v22 = vld [vmem:[%s18142_s4 + $0x420] sm:$0xff] }
 0x87d   :  { %8096 = vmatmul.f32.gmra.mxu3 %v7890_v59  ;;  %8119 = vmatmul.f32.vlgmr.msrb.gmra.mxu0 %v7882_v26  ;;  %v8040_v59 = vld [vmem:[%s18142_s4 + $0x428] sm:$0xff]  ;;  %v7220_v26 = vadd.f32 %v16574_v58, %v16416_v6  ;;  %v8021_v58 = vld [vmem:[%s18142_s4 + $0x390] sm:$0xff] }
 0x87e   :  { %v7678_v34 = vpop.f32.mrf.mxu2  ;;  %v7693_v32 = vpop.f32.mrf.mxu3  ;;  %8266 = vmatpush.msra.mxu2 %v8043_v43  ;;  %8222 = vmatpush.msra.mxu0 %v8003_v49  ;;  %v8038_v43 = vld [vmem:[%s18142_s4 + $0x418] sm:$0xff] }
 0x87f   :  { %v7827_v33 = vadd.f32 %v7678_v34, %v16668_v13  ;;  %v7819_v48 = vadd.f32 %v7693_v32, %v16674_v19  ;;  %8243 = vmatpush.msra.mxu1 %v8024_v5  ;;  %v7520_v14 = vadd.f32 %v16706_v44, %v7220_v26  ;;  %v7221_v32 = vadd.f32 %v16587_v31, %v16437_v21  ;;  %v8020_v44 = vld [vmem:[%s18142_s4 + $0x388] sm:$0xff]  ;;  %v8019_v21 = vld [vmem:[%s18142_s4 + $0x380] sm:$0xff] }
 0x880   :  { %v7709_v19 = vpop.f32.mrf.mxu0  ;;  %8267 = vmatpush.msra.mxu2 %v8042_v55 }
 0x881   :  { %v7872_v27 = vadd.f32 %v17082_v53, %v7827_v33  ;;  %v7864_v13 = vadd.f32 %v17023_v35, %v7819_v48  ;;  %v7811_v4 = vadd.f32 %v7709_v19, %v16676_v52  ;;  %8244 = vmatpush.msra.mxu1 %v8023_v38  ;;  %v7521_v49 = vadd.f32 %v16765_v20, %v7221_v32 }
 0x882   :  { %8268 = vmatpush.msra.mxu2 %v8041_v23 }
 0x883   :  { %v7899_v10 = vmax.f32 %v7872_v27, 0.0  ;;  %v7891_v54 = vmax.f32 %v7864_v13, 0.0  ;;  %v7856_v18 = vadd.f32 %v16964_v3, %v7811_v4  ;;  %8245 = vmatpush.msra.mxu1 %v8022_v12  ;;  %v8037_v27 = vld [vmem:[%s18142_s4 + $0x410] sm:$0xff] }
 0x884   :  { %v7727_v52 = vpop.f32.mrf.mxu1  ;;  %8269 = vmatpush.msra.mxu2 %v8040_v59  ;;  %v7222_v59 = vadd.f32 %v16601_v42, %v16451_v56 }
 0x885   :  { %8099 = vmatmul.f32.gmra.mxu3 %v7899_v10  ;;  %8122 = vmatmul.f32.gmra.mxu0 %v7891_v54  ;;  %v7883_v30 = vmax.f32 %v7856_v18, 0.0  ;;  %v7812_v9 = vadd.f32 %v7727_v52, %v16719_v45  ;;  %v8036_v10 = vld [vmem:[%s18142_s4 + $0x408] sm:$0xff]  ;;  %v7214_v52 = vadd.f32 %v16595_v37, %v16455_v57 }
 0x886   :  { %v7680_v39 = vpop.f32.mrf.mxu2  ;;  %v7696_v63 = vpop.f32.mrf.mxu3  ;;  %8270 = vmatpush.msra.mxu2 %v8039_v22  ;;  %8246 = vmatpush.msra.mxu1 %v8021_v58 }
 0x887   :  { %v7828_v17 = vadd.f32 %v7696_v63, %v7528_v40  ;;  %v7857_v6 = vadd.f32 %v16964_v3, %v7812_v9  ;;  %8145 = vmatmul.f32.vlgmr.msrb.gmra.mxu1 %v7883_v30  ;;  %v7522_v9 = vadd.f32 %v16794_v2, %v7222_v59  ;;  %v7514_v39 = vadd.f32 %v16802_v8, %v7214_v52 }
 0x888   :  { %v7711_v34 = vpop.f32.mrf.mxu0  ;;  %8247 = vmatpush.msra.mxu1 %v8020_v44  ;;  %8271 = vmatpush.msra.mxu2 %v8038_v43 }
 0x889   :  { %v7873_v45 = vadd.f32 %v17082_v53, %v7828_v17  ;;  %v7884_v41 = vmax.f32 %v7857_v6, 0.0  ;;  %v7820_v33 = vadd.f32 %v7711_v34, %v7520_v14 }
 0x88a   :  { %8248 = vmatpush.msra.mxu1 %v8019_v21  ;;  %8272 = vmatpush.msra.mxu2 %v8037_v27 }
 0x88b   :  { %v7900_v48 = vmax.f32 %v7873_v45, 0.0  ;;  %v7865_v5 = vadd.f32 %v17023_v35, %v7820_v33  ;;  %8171 = vmatmul.f32.vlgmr.msrb.gmra.mxu2 %v7884_v41 }
 0x88c   :  { %v7729_v31 = vpop.f32.mrf.mxu1  ;;  %8273 = vmatpush.msra.mxu2 %v8036_v10  ;;  %v7225_v10 = vadd.f32 %v16627_v0, %v16504_v36 }
 0x88d   :  { %8125 = vmatmul.f32.gmra.mxu0 %v7900_v48  ;;  %v7892_v13 = vmax.f32 %v7865_v5, 0.0  ;;  %v7821_v19 = vadd.f32 %v7729_v31, %v7521_v49  ;;  %v7232_v49 = vadd.f32 %v16615_v1, %v16490_v47 }
 0x88e   :  { %v7698_v55 = vpop.f32.mrf.mxu3  ;;  %v7745_v4 = vpop.f32.mrf.mxu2 }
 0x88f   :  { %v7813_v20 = vadd.f32 %v7745_v4, %v16749_v28  ;;  %v7866_v54 = vadd.f32 %v17023_v35, %v7821_v19  ;;  %8148 = vmatmul.f32.gmra.mxu1 %v7892_v13  ;;  %v8035_v28 = vld [vmem:[%s18142_s4 + $0x400] sm:$0xff]  ;;  %v7532_v27 = vadd.f32 %v16919_v60, %v7232_v49  ;;  %s11374_s4 = smov 108  }
 0x890   :  { %v7714_v23 = vpop.f32.mrf.mxu0  ;;  %8274 = vmatpush.msra.mxu2 %v8035_v28 }
 0x891   :  { %v7858_v38 = vadd.f32 %v16964_v3, %v7813_v20  ;;  %v7893_v18 = vmax.f32 %v7866_v54, 0.0  ;;  %v7829_v40 = vadd.f32 %v7714_v23, %v16754_v16 }
 0x893   :  { %v7885_v26 = vmax.f32 %v7858_v38, 0.0  ;;  %v7874_v30 = vadd.f32 %v17082_v53, %v7829_v40  ;;  %8174 = vmatmul.f32.gmra.mxu2 %v7893_v18 }
 0x894   :  { %v7732_v16 = vpop.f32.mrf.mxu1 }
 0x895   :  { %8197 = vmatmul.f32.vlgmr.msrb.gmra.mxu3 %v7885_v26  ;;  %v7901_v63 = vmax.f32 %v7874_v30, 0.0  ;;  %v7830_v12 = vadd.f32 %v7732_v16, %v16821_v7 }
 0x896   :  { %v7747_v17 = vpop.f32.mrf.mxu2  ;;  %v7763_v22 = vpop.f32.mrf.mxu3 }
 0x897   :  { %v7822_v57 = vadd.f32 %v7747_v17, %v7522_v9  ;;  %v7814_v37 = vadd.f32 %v7763_v22, %v7514_v39  ;;  %v7875_v56 = vadd.f32 %v17082_v53, %v7830_v12  ;;  %8151 = vmatmul.f32.gmra.mxu1 %v7901_v63 }
 0x898   :  { %v7716_v2 = vpop.f32.mrf.mxu0 }
 0x899   :  { %v7867_v42 = vadd.f32 %v17023_v35, %v7822_v57  ;;  %v7859_v14 = vadd.f32 %v16964_v3, %v7814_v37  ;;  %v7902_v6 = vmax.f32 %v7875_v56, 0.0 }
 0x89b   :  { %v7894_v8 = vmax.f32 %v7867_v42, 0.0  ;;  %v7886_v58 = vmax.f32 %v7859_v14, 0.0  ;;  %8177 = vmatmul.f32.gmra.mxu2 %v7902_v6 }
 0x89c   :  { %v7734_v45 = vpop.f32.mrf.mxu1 }
 0x89d   :  { %8200 = vmatmul.f32.gmra.mxu3 %v7894_v8  ;;  %8223 = vmatmul.f32.vlgmr.msra.gmra.mxu0 %v7886_v58 }
 0x89e   :  { %v7750_v7 = vpop.f32.mrf.mxu2  ;;  %v7765_v34 = vpop.f32.mrf.mxu3 }
 0x89f   :  { %v7831_v32 = vadd.f32 %v7750_v7, %v16862_v11  ;;  %v7823_v41 = vadd.f32 %v7765_v34, %v16867_v50  ;;  %v7224_v11 = vadd.f32 %v16617_v29, %v16482_v51  ;;  %v7525_v29 = vadd.f32 %v16993_v15, %v7225_v10 }
 0x8a0   :  { %v7781_v48 = vpop.f32.mrf.mxu0 }
 0x8a1   :  { %v7876_v33 = vadd.f32 %v17082_v53, %v7831_v32  ;;  %v7868_v44 = vadd.f32 %v17023_v35, %v7823_v41  ;;  %v7815_v43 = vadd.f32 %v7781_v48, %v16869_v62  ;;  %v7524_v47 = vadd.f32 %v16921_v46, %v7224_v11 }
 0x8a3   :  { %v7903_v5 = vmax.f32 %v7876_v33, 0.0  ;;  %v7895_v21 = vmax.f32 %v7868_v44, 0.0  ;;  %v7860_v31 = vadd.f32 %v16964_v3, %v7815_v43 }
 0x8a4   :  { %v7799_v13 = vpop.f32.mrf.mxu1 }
 0x8a5   :  { %8203 = vmatmul.f32.gmra.mxu3 %v7903_v5  ;;  %8226 = vmatmul.f32.gmra.mxu0 %v7895_v21  ;;  %v7887_v50 = vmax.f32 %v7860_v31, 0.0  ;;  %v7816_v19 = vadd.f32 %v7799_v13, %v16937_v24 }
 0x8a6   :  { %v7768_v55 = vpop.f32.mrf.mxu3  ;;  %v7752_v62 = vpop.f32.mrf.mxu2 }
 0x8a7   :  { %v7832_v4 = vadd.f32 %v7768_v55, %v7532_v27  ;;  %v7861_v1 = vadd.f32 %v16964_v3, %v7816_v19  ;;  %8249 = vmatmul.f32.vlgmr.msra.gmra.mxu1 %v7887_v50 }
 0x8a8   :  { %v7783_v60 = vpop.f32.mrf.mxu0 }
 0x8a9   :  { %v7877_v20 = vadd.f32 %v17082_v53, %v7832_v4  ;;  %v7888_v54 = vmax.f32 %v7861_v1, 0.0  ;;  %v7824_v38 = vadd.f32 %v7783_v60, %v7524_v47 }
 0x8ab   :  { %v7904_v51 = vmax.f32 %v7877_v20, 0.0  ;;  %v7869_v24 = vadd.f32 %v17023_v35, %v7824_v38  ;;  %8275 = vmatmul.f32.vlgmr.msra.gmra.mxu2 %v7888_v54 }
 0x8ac   :  { %v7801_v23 = vpop.f32.mrf.mxu1 }
 0x8ad   :  { %8229 = vmatmul.f32.gmra.mxu0 %v7904_v51  ;;  %v7896_v46 = vmax.f32 %v7869_v24, 0.0  ;;  %v7825_v18 = vadd.f32 %v7801_v23, %v7525_v29 }
 0x8ae   :  { %v7770_v3 = vpop.f32.mrf.mxu3 }
 0x8af   :  { %v7870_v40 = vadd.f32 %v17023_v35, %v7825_v18  ;;  %8252 = vmatmul.f32.gmra.mxu1 %v7896_v46  ;;  %v11375_v3 = vmov 1983009808  }
 0x8b0   :  { %v7786_v28 = vpop.f32.mrf.mxu0 }
 0x8b1   :  { %v7897_v52 = vmax.f32 %v7870_v40, 0.0  ;;  %v7833_v36 = vadd.f32 %v7786_v28, %v16978_v61  ;;  %v8300_v40 = vunpack.c.l.s4 %v11375_v3 }
 0x8b3   :  { %v7878_v0 = vadd.f32 %v17082_v53, %v7833_v36  ;;  %8278 = vmatmul.f32.gmra.mxu2 %v7897_v52  ;;  %v17235_v52 = vunpack.c.0.s8 %v8300_v40 }
 0x8b4   :  { %v7804_v59 = vpop.f32.mrf.mxu1 }
 0x8b5   :  { %v7905_v15 = vmax.f32 %v7878_v0, 0.0  ;;  %v7834_v26 = vadd.f32 %v7804_v59, %v17055_v25  ;;  %v11376_v59 = vmov 1934713408  }
 0x8b7   :  { %v7879_v30 = vadd.f32 %v17082_v53, %v7834_v26  ;;  %8255 = vmatmul.f32.gmra.mxu1 %v7905_v15  ;;  %v8322_v15 = vunpack.c.l.s4 %v11376_v59 }
 0x8b8   :  { %v7788_v9 = vpop.f32.mrf.mxu0 }
 0x8b9   :  { %v7906_v39 = vmax.f32 %v7879_v30, 0.0 }
 0x8bb   :  { %8281 = vmatmul.f32.gmra.mxu2 %v7906_v39 }
 0x8bc   :  { %v7806_v16 = vpop.f32.mrf.mxu1 }
 0x8ee   :  { %v8068_v35 = vpop.f32.mrf.mxu2 }
 0x8f6   :  { %v8071_v63 = vpop.f32.mrf.mxu2 }
 0x8f8   :  { %v8094_v12 = vpop.f32.mrf.mxu3 }
 0x8f9   :  { %v8095_v6 = vadd.f32 %v8094_v12, %v8068_v35  ;;  %v17241_v35 = vunpack.c.0.s8 %v8322_v15 }
 0x8fa   :  { %v8120_v17 = vpop.f32.mrf.mxu0 }
 0x8fb   :  { %v8121_v58 = vadd.f32 %v8120_v17, %v8095_v6 }
 0x8fe   :  { %v8074_v22 = vpop.f32.mrf.mxu2 }
 0x900   :  { %v8097_v57 = vpop.f32.mrf.mxu3 }
 0x901   :  { %v8098_v34 = vadd.f32 %v8097_v57, %v8071_v63 }
 0x902   :  { %v8123_v37 = vpop.f32.mrf.mxu0 }
 0x903   :  { %v8124_v48 = vadd.f32 %v8123_v37, %v8098_v34 }
 0x904   :  { %v8146_v61 = vpop.f32.mrf.mxu1 }
 0x905   :  { %v8147_v45 = vadd.f32 %v8146_v61, %v8121_v58 }
 0x908   :  { %v8100_v14 = vpop.f32.mrf.mxu3 }
 0x909   :  { %v8101_v21 = vadd.f32 %v8100_v14, %v8074_v22 }
 0x90a   :  { %v8126_v2 = vpop.f32.mrf.mxu0 }
 0x90b   :  { %v8127_v62 = vadd.f32 %v8126_v2, %v8101_v21 }
 0x90c   :  { %v8149_v42 = vpop.f32.mrf.mxu1 }
 0x90d   :  { %v8150_v49 = vadd.f32 %v8149_v42, %v8124_v48 }
 0x90e   :  { %v8172_v56 = vpop.f32.mrf.mxu2 }
 0x90f   :  { %v8173_v32 = vadd.f32 %v8172_v56, %v8147_v45 }
 0x914   :  { %v8152_v53 = vpop.f32.mrf.mxu1 }
 0x915   :  { %v8153_v4 = vadd.f32 %v8152_v53, %v8127_v62 }
 0x916   :  { %v8175_v25 = vpop.f32.mrf.mxu2 }
 0x917   :  { %v8176_v31 = vadd.f32 %v8175_v25, %v8150_v49 }
 0x918   :  { %v8198_v8 = vpop.f32.mrf.mxu3 }
 0x919   :  { %v8199_v44 = vadd.f32 %v8198_v8, %v8173_v32 }
 0x91a   :  { %v8224_v7 = vpop.f32.mrf.mxu0 }
 0x91b   :  { %v8225_v5 = vadd.f32 %v8224_v7, %v8199_v44 }
 0x91e   :  { %v8178_v41 = vpop.f32.mrf.mxu2 }
 0x91f   :  { %v8179_v20 = vadd.f32 %v8178_v41, %v8153_v4 }
 0x920   :  { %v8201_v43 = vpop.f32.mrf.mxu3 }
 0x921   :  { %v8202_v50 = vadd.f32 %v8201_v43, %v8176_v31 }
 0x922   :  { %v8227_v13 = vpop.f32.mrf.mxu0 }
 0x923   :  { %v8228_v47 = vadd.f32 %v8227_v13, %v8202_v50 }
 0x924   :  { %v8250_v33 = vpop.f32.mrf.mxu1 }
 0x925   :  { %v8251_v27 = vadd.f32 %v8250_v33, %v8225_v5 }
 0x928   :  { %v8204_v1 = vpop.f32.mrf.mxu3 }
 0x929   :  { %v8205_v54 = vadd.f32 %v8204_v1, %v8179_v20 }
 0x92a   :  { %v8230_v51 = vpop.f32.mrf.mxu0 }
 0x92b   :  { %v8231_v24 = vadd.f32 %v8230_v51, %v8205_v54 }
 0x92c   :  { %v8253_v55 = vpop.f32.mrf.mxu1 }
 0x92d   :  { %v8254_v60 = vadd.f32 %v8253_v55, %v8228_v47 }
 0x92e   :  { %v8276_v11 = vpop.f32.mrf.mxu2 }
 0x92f   :  { %v8277_v19 = vadd.f32 %v8276_v11, %v8251_v27 }
 0x931   :  { %8288 = vrot.lane.b32.xlu1 %v8277_v19, %s11374_s4  ;;  %v8296_v25 = vrot.slane %v8277_v19, 4  ;;  %v8302_v45 = vperm.slane %v8277_v19, %v17235_v52 }
 0x933   :  { %v8298_v7 = vsel %vm8297_vm3, 0.0, %v8296_v25  ;;  %v8319_v48 = vrot.slane %v8302_v45, 4 }
 0x934   :  { %v8256_v29 = vpop.f32.mrf.mxu1  ;;  %v8306_v44 = vperm.slane %v8298_v7, %v17235_v52 }
 0x935   :  { %v8257_v23 = vadd.f32 %v8256_v29, %v8231_v24 }
 0x936   :  { %v8279_v10 = vpop.f32.mrf.mxu2  ;;  %v8331_v55 = vrot.slane %v8306_v44, 4 }
 0x937   :  { %v8280_v38 = vadd.f32 %v8279_v10, %v8254_v60 }
 0x939   :  { %8290 = vrot.lane.b32.xlu2 %v8280_v38, %s11374_s4  ;;  %v8349_v28 = vrot.slane %v8280_v38, 4  ;;  %v8354_v0 = vperm.slane %v8280_v38, %v17235_v52 }
 0x93b   :  { %v8350_v36 = vsel %vm8297_vm3, 0.0, %v8349_v28  ;;  %v8371_v9 = vrot.slane %v8354_v0, 4 }
 0x93c   :  { %v8358_v26 = vperm.slane %v8350_v36, %v17235_v52 }
 0x93e   :  { %v8282_v46 = vpop.f32.mrf.mxu2  ;;  %v8383_v22 = vrot.slane %v8358_v26, 4 }
 0x93f   :  { %v17232_v18 = vadd.f32 %v8282_v46, %v8257_v23 }
 0x941   :  { %8292 = vrot.lane.b32.xlu0 %v17232_v18, %s11374_s4  ;;  %s11384_s4 = smov 24  }
 0x993   :  { %v8291_v30 = vpop.permute.xlu2 %8290 }
 0x994   :  { %v8359_v39 = vrot.slane %v8291_v30, 4  ;;  %v8364_v16 = vperm.slane %v8291_v30, %v17235_v52 }
 0x996   :  { %v8360_v63 = vsel %vm8297_vm3, 0.0, %v8359_v39  ;;  %v8369_v12 = vrot.slane %v8364_v16, 4  ;;  %v8372_v17 = vsel %vm8297_vm3, %v8364_v16, %v8371_v9  ;;  %v8404_v39 = vperm.slane %v17232_v18, %v17235_v52 }
 0x997   :  { %v8368_v61 = vperm.slane %v8360_v63, %v17235_v52  ;;  %v8380_v57 = vperm.slane %v8372_v17, %v17241_v35 }
 0x998   :  { %v8370_v42 = vsel %vm8297_vm3, %v8369_v12, %v8354_v0 }
 0x999   :  { %v8381_v37 = vrot.slane %v8368_v61, 4  ;;  %v8384_v56 = vsel %vm8297_vm3, %v8368_v61, %v8383_v22  ;;  %v8376_v6 = vperm.slane %v8370_v42, %v17241_v35  ;;  %v8395_v8 = vrot.slane %v8380_v57, 4 }
 0x99a   :  { %v8392_v14 = vperm.slane %v8384_v56, %v17241_v35 }
 0x99b   :  { %v8382_v2 = vsel %vm8297_vm3, %v8381_v37, %v8358_v26  ;;  %v8393_v34 = vrot.slane %v8376_v6, 4  ;;  %v8396_v32 = vsel %vm8297_vm3, 0.0, %v8395_v8  ;;  %v8464_v0 = vsel %vm8297_vm3, %v8395_v8, %v8376_v6 }
 0x99c   :  { %v8388_v53 = vperm.slane %v8382_v2, %v17241_v35  ;;  %v8399_v58 = vrot.slane %v8392_v14, 4  ;;  %v8469_v49 = vrot.slane %v8396_v32, 4  ;;  %v8468_v17 = vperm.slane %v8464_v0, %v17235_v52 }
 0x99d   :  { %v8394_v27 = vsel %vm8297_vm3, 0.0, %v8393_v34  ;;  %v8412_v2 = vrot.slane %v8404_v39, 4 }
 0x99e   :  { %v8397_v41 = vrot.slane %v8388_v53, 4  ;;  %v8400_v33 = vsel %vm8297_vm3, 0.0, %v8399_v58  ;;  %v8470_v47 = vsel %vm8297_vm3, %v8469_v49, %v8394_v27  ;;  %v8475_v22 = vsel %vm8297_vm3, %v8399_v58, %v8388_v53 }
 0x99f   :  { %v8480_v5 = vrot.slane %v8400_v33, 4  ;;  %v8474_v29 = vperm.slane %v8470_v47, %v17235_v52  ;;  %v8479_v25 = vperm.slane %v8475_v22, %v17235_v52 }
 0x9a0   :  { %v8398_v13 = vsel %vm8297_vm3, 0.0, %v8397_v41 }
 0x9a1   :  { %v8481_v1 = vsel %vm8297_vm3, %v8480_v5, %v8398_v13  ;;  %v8486_v16 = vrot.slane %v8474_v29, 4 }
 0x9a2   :  { %v8485_v3 = vperm.slane %v8481_v1, %v17235_v52 }
 0x9a3   :  { %v8289_v43 = vpop.permute.xlu1 %8288  ;;  %v8487_v6 = vsel %vm8297_vm3, %v8486_v16, %v8468_v17 }
 0x9a4   :  { %v8307_v21 = vrot.slane %v8289_v43, 4  ;;  %v8312_v31 = vperm.slane %v8289_v43, %v17235_v52  ;;  %v8492_v61 = vrot.slane %v8485_v3, 4  ;;  %v8491_v5 = vperm.slane %v8487_v6, %v17241_v35 }
 0x9a6   :  { %v8308_v11 = vsel %vm8297_vm3, 0.0, %v8307_v21  ;;  %v8317_v50 = vrot.slane %v8312_v31, 4  ;;  %v8320_v19 = vsel %vm8297_vm3, %v8312_v31, %v8319_v48  ;;  %v8493_v32 = vsel %vm8297_vm3, %v8492_v61, %v8479_v25 }
 0x9a7   :  { %v8316_v62 = vperm.slane %v8308_v11, %v17235_v52  ;;  %v8328_v4 = vperm.slane %v8320_v19, %v17241_v35  ;;  %v8497_v31 = vperm.slane %v8493_v32, %v17241_v35  ;;  %v8500_v1 = vrot.slane %v8491_v5, 4 }
 0x9a8   :  { %v8318_v20 = vsel %vm8297_vm3, %v8317_v50, %v8302_v45 }
 0x9a9   :  { %v8324_v60 = vperm.slane %v8318_v20, %v17241_v35  ;;  %v8329_v10 = vrot.slane %v8316_v62, 4  ;;  %v8332_v54 = vsel %vm8297_vm3, %v8316_v62, %v8331_v55  ;;  %v8343_v38 = vrot.slane %v8328_v4, 4 }
 0x9aa   :  { %v8340_v51 = vperm.slane %v8332_v54, %v17241_v35  ;;  %v8498_v54 = vrot.slane %v8497_v31, 4 }
 0x9ab   :  { %v8330_v24 = vsel %vm8297_vm3, %v8329_v10, %v8306_v44  ;;  %v8341_v23 = vrot.slane %v8324_v60, 4  ;;  %v8344_v46 = vsel %vm8297_vm3, 0.0, %v8343_v38  ;;  %v8426_v30 = vsel %vm8297_vm3, %v8343_v38, %v8324_v60 }
 0x9ac   :  { %v8336_v40 = vperm.slane %v8330_v24, %v17241_v35  ;;  %v8347_v28 = vrot.slane %v8340_v51, 4  ;;  %v8431_v36 = vrot.slane %v8344_v46, 4  ;;  %v8430_v37 = vperm.slane %v8426_v30, %v17235_v52 }
 0x9ad   :  { %v8342_v59 = vsel %vm8297_vm3, 0.0, %v8341_v23  ;;  %v8499_v17 = vsel %vm8297_vm3, %v8498_v54, %v8491_v5 }
 0x9ae   :  { %v8345_v15 = vrot.slane %v8336_v40, 4  ;;  %v8348_v26 = vsel %vm8297_vm3, 0.0, %v8347_v28  ;;  %v8432_v9 = vsel %vm8297_vm3, %v8431_v36, %v8342_v59  ;;  %v8437_v56 = vsel %vm8297_vm3, %v8347_v28, %v8336_v40 }
 0x9af   :  { %v8436_v63 = vperm.slane %v8432_v9, %v17235_v52  ;;  %v8442_v12 = vrot.slane %v8348_v26, 4  ;;  %v8441_v58 = vperm.slane %v8437_v56, %v17235_v52  ;;  %v8501_v59 = vsel %vm8297_vm3, %v8497_v31, %v8500_v1 }
 0x9b0   :  { %v8346_v57 = vsel %vm8297_vm3, 0.0, %v8345_v15  ;;  %v8581_v22 = vrot.slane %v8501_v59, 4  ;;  %v8586_v25 = vperm.slane %v8501_v59, %v17235_v52 }
 0x9b1   :  { %v8443_v42 = vsel %vm8297_vm3, %v8442_v12, %v8346_v57  ;;  %v8448_v14 = vrot.slane %v8436_v63, 4 }
 0x9b2   :  { %v8447_v18 = vperm.slane %v8443_v42, %v17235_v52 }
 0x9b3   :  { %v8449_v8 = vsel %vm8297_vm3, %v8448_v14, %v8430_v37  ;;  %v8293_v53 = vpop.permute.xlu0 %8292 }
 0x9b4   :  { %v8453_v45 = vperm.slane %v8449_v8, %v17241_v35  ;;  %v8454_v7 = vrot.slane %v8447_v18, 4  ;;  %v8409_v34 = vperm.slane %v8293_v53, %v17235_v52  ;;  %v8582_v8 = vsel %vm8297_vm3, 0.0, %v8581_v22 }
 0x9b5   :  { %v8590_v32 = vperm.slane %v8582_v8, %v17235_v52  ;;  %v10619_v8 = vld [vmem:[%s18143_s5 + $0x30] sm:$0xf0] }
 0x9b6   :  { %v8410_v41 = vrot.slane %v8409_v34, 4  ;;  %v8413_v33 = vsel %vm8297_vm3, %v8409_v34, %v8412_v2  ;;  %v8455_v44 = vsel %vm8297_vm3, %v8454_v7, %v8441_v58  ;;  %v8462_v48 = vrot.slane %v8453_v45, 4 }
 0x9b7   :  { %v8421_v43 = vperm.slane %v8413_v33, %v17241_v35  ;;  %v8459_v49 = vperm.slane %v8455_v44, %v17241_v35  ;;  %v8571_v2 = vrot.slane %v8499_v17, 4  ;;  %v8576_v44 = vperm.slane %v8499_v17, %v17235_v52 }
 0x9b8   :  { %v8411_v21 = vsel %vm8297_vm3, %v8410_v41, %v8404_v39 }
 0x9b9   :  { %v8417_v27 = vperm.slane %v8411_v21, %v17241_v35  ;;  %v8424_v13 = vrot.slane %v8421_v43, 4  ;;  %v8460_v11 = vrot.slane %v8459_v49, 4  ;;  %v8463_v50 = vsel %vm8297_vm3, %v8459_v49, %v8462_v48 }
 0x9ba   :  { %v8529_v19 = vrot.slane %v8463_v50, 4  ;;  %v8534_v55 = vperm.slane %v8463_v50, %v17235_v52  ;;  %v8591_v48 = vrot.slane %v8586_v25, 4  ;;  %v8572_v43 = vsel %vm8297_vm3, 0.0, %v8571_v2  ;;  %v10635_v2 = vld [vmem:[%s18143_s5 + $0x50] sm:$0xf0] }
 0x9bb   :  { %v8422_v62 = vrot.slane %v8417_v27, 4  ;;  %v8425_v4 = vsel %vm8297_vm3, 0.0, %v8424_v13  ;;  %v8461_v47 = vsel %vm8297_vm3, %v8460_v11, %v8453_v45  ;;  %v8502_v51 = vsel %vm8297_vm3, %v8424_v13, %v8417_v27 }
 0x9bc   :  { %v8507_v20 = vrot.slane %v8425_v4, 4  ;;  %v8524_v60 = vperm.slane %v8461_v47, %v17235_v52  ;;  %v8539_v10 = vrot.slane %v8534_v55, 4  ;;  %v8519_v29 = vrot.slane %v8461_v47, 4 }
 0x9bd   :  { %v8423_v38 = vsel %vm8297_vm3, 0.0, %v8422_v62  ;;  %v8530_v24 = vsel %vm8297_vm3, 0.0, %v8529_v19  ;;  %v8506_v9 = vperm.slane %v8502_v51, %v17235_v52  ;;  %v8580_v31 = vperm.slane %v8572_v43, %v17235_v52  ;;  %v11179_v43 = vld [vmem:[%s18143_s5 + $0xf4] sm:$0xf0] }
 0x9be   :  { %v8508_v23 = vsel %vm8297_vm3, %v8507_v20, %v8423_v38  ;;  %v8541_v46 = vrot.slane %v8524_v60, 4  ;;  %v8540_v3 = vsel %vm8297_vm3, %v8539_v10, %v8524_v60  ;;  %v8538_v40 = vperm.slane %v8530_v24, %v17235_v52  ;;  %v11176_v20 = vld [vmem:[%s18143_s5 + $0xe4] sm:$0xf]  ;;  %v10715_v60 = vld [vmem:[%s18143_s5 + $0xf0] sm:$0xf0] }
 0x9bf   :  { %v8512_v28 = vperm.slane %v8508_v23, %v17235_v52  ;;  %v17319_v36 = vperm.slane %v8540_v3, %v17241_v35  ;;  %v8520_v0 = vsel %vm8297_vm3, 0.0, %v8519_v29  ;;  %v8603_v27 = vrot.slane %v8590_v32, 4  ;;  %v11172_v10 = vld [vmem:[%s18143_s5 + $0xc4] sm:$0xf]  ;;  %v10699_v38 = vld [vmem:[%s18143_s5 + $0xd0] sm:$0xf0] }
 0x9c0   :  { %v8542_v15 = vsel %vm8297_vm3, %v8534_v55, %v8541_v46  ;;  %v8528_v26 = vperm.slane %v8520_v0, %v17235_v52  ;;  %v8551_v30 = vrot.slane %v8538_v40, 4  ;;  %v8592_v11 = vsel %vm8297_vm3, %v8591_v48, %v8576_v44  ;;  %v11168_v46 = vld [vmem:[%s18143_s5 + $0xa4] sm:$0xf]  ;;  %v10683_v3 = vld [vmem:[%s18143_s5 + $0xb0] sm:$0xf0] }
 0x9c1   :  { %v8513_v39 = vrot.slane %v8512_v28, 4  ;;  %v8550_v16 = vperm.slane %v8542_v15, %v17241_v35  ;;  %v8563_v63 = vrot.slane %v17319_v36, 4  ;;  %v8598_v55 = vperm.slane %v8592_v11, %v17241_v35  ;;  %v11164_v15 = vld [vmem:[%s18143_s5 + $0x84] sm:$0xf]  ;;  %v10721_v48 = vld [vmem:[%s18143_s5 + $0xe8] sm:$0xf] }
 0x9c2   :  { %v8552_v12 = vsel %vm8297_vm3, %v8551_v30, %v8528_v26  ;;  %v8553_v42 = vrot.slane %v8528_v26, 4  ;;  %v8604_v62 = vsel %vm8297_vm3, %v8603_v27, %v8580_v31  ;;  %v8605_v47 = vrot.slane %v8580_v31, 4  ;;  %v10667_v26 = vld [vmem:[%s18143_s5 + $0x90] sm:$0xf0]  ;;  %v11170_v31 = vld [vmem:[%s18143_s5 + $0xac] sm:$0xf0] }
 0x9c3   :  { %v8514_v61 = vsel %vm8297_vm3, %v8513_v39, %v8506_v9  ;;  %8654 = vrot.lane.b32.xlu2 %v8550_v16, %s11377_s11  ;;  %v8564_v57 = vsel %vm8297_vm3, 0.0, %v8563_v63  ;;  %v8565_v37 = vrot.slane %v8550_v16, 4  ;;  %v8558_v56 = vperm.slane %v8552_v12, %v17241_v35  ;;  %v11160_v16 = vld [vmem:[%s18143_s5 + $0x64] sm:$0xf]  ;;  %v10651_v63 = vld [vmem:[%s18143_s5 + $0x70] sm:$0xf0] }
 0x9c4   :  { %8650 = vrot.lane.b32.xlu1 %v8564_v57, %s11378_s12  ;;  %v8518_v14 = vperm.slane %v8514_v61, %v17241_v35  ;;  %v8554_v45 = vsel %vm8297_vm3, %v8538_v40, %v8553_v42  ;;  %v8610_v1 = vperm.slane %v8604_v62, %v17241_v35  ;;  %v10718_v54 = vor.u32 %v11176_v20, %v10715_v60  ;;  %v10705_v27 = vld [vmem:[%s18143_s5 + $0xc8] sm:$0xf] }
 0x9c5   :  { %v8566_v18 = vsel %vm8297_vm3, 0.0, %v8565_v37  ;;  %v8567_v6 = vrot.slane %v8558_v56, 4  ;;  %v8562_v49 = vperm.slane %v8554_v45, %v17241_v35  ;;  %v8615_v51 = vrot.slane %v8598_v55, 4  ;;  %v10689_v62 = vld [vmem:[%s18143_s5 + $0xa8] sm:$0xf] }
 0x9c6   :  { %8658 = vrot.lane.b32.xlu0 %v8566_v18, %s11379_s13  ;;  %v8626_v53 = vperm.slane %v8518_v14, %v17235_v52  ;;  %v8627_v58 = vrot.slane %v8518_v14, 4  ;;  %v8606_v24 = vsel %vm8297_vm3, %v8590_v32, %v8605_v47  ;;  %9432 = vmatpush.bf16.msrb.mxu2 %v10718_v54  ;;  %v10702_v23 = vor.u32 %v11172_v10, %v10699_v38  ;;  %v11156_v18 = vld [vmem:[%s18143_s5 + $0x44] sm:$0xf]  ;;  %v10603_v32 = vld [vmem:[%s18143_s5 + $0x10] sm:$0xf0] }
 0x9c7   :  { %v8568_v33 = vsel %vm8297_vm3, 0.0, %v8567_v6  ;;  %v8569_v19 = vrot.slane %v8562_v49, 4  ;;  %v8616_v40 = vsel %vm8297_vm3, 0.0, %v8615_v51  ;;  %v8614_v0 = vperm.slane %v8606_v24, %v17241_v35  ;;  %v10841_v47 = vld [vmem:[%s18143_s5 + $0x1e0] sm:$0xf] }
 0x9c8   :  { %v8628_v7 = vsel %vm8297_vm3, 0.0, %v8627_v58  ;;  %v8635_v34 = vrot.slane %v8626_v53, 4  ;;  %v10686_v59 = vor.u32 %v11168_v46, %v10683_v3  ;;  %v8619_v9 = vrot.slane %v8610_v1, 4  ;;  %v11178_v58 = vld [vmem:[%s18143_s5 + $0xec] sm:$0xf0] }
 0x9c9   :  { %v8632_v41 = vperm.slane %v8628_v7, %v17235_v52  ;;  %v8570_v4 = vsel %vm8297_vm3, 0.0, %v8569_v19  ;;  %v8593_v52 = vrot.slane %v8576_v44, 4  ;;  %v8621_v30 = vrot.slane %v8614_v0, 4  ;;  %v11174_v44 = vld [vmem:[%s18143_s5 + $0xcc] sm:$0xf0] }
 0x9ca   :  { %9433 = vmatpush.bf16.msrb.mxu2 %v10702_v23  ;;  %v10670_v39 = vor.u32 %v11164_v15, %v10667_v26  ;;  %v8620_v61 = vsel %vm8297_vm3, 0.0, %v8619_v9  ;;  %v10654_v57 = vor.u32 %v11160_v16, %v10651_v63  ;;  %v10638_v6 = vor.u32 %v11156_v18, %v10635_v2  ;;  %v10665_v19 = vld [vmem:[%s18143_s5 + $0x80] sm:$0xf]  ;;  %v11162_v54 = vld [vmem:[%s18143_s5 + $0x6c] sm:$0xf0] }
 0x9cb   :  { %8666 = vrot.lane.b32.xlu2 %v8568_v33, %s11358_s15  ;;  %v8636_v5 = vsel %vm8297_vm3, %v8632_v41, %v8635_v34  ;;  %v8633_v21 = vrot.slane %v8632_v41, 4  ;;  %s11381_s15 = smov 12   ;;  %v8594_v29 = vsel %vm8297_vm3, %v8586_v25, %v8593_v52  ;;  %v8622_v17 = vsel %vm8297_vm3, 0.0, %v8621_v30  ;;  %v11152_v25 = vld [vmem:[%s18143_s5 + $0x24] sm:$0xf] }
 0x9cc   :  { %8662 = vrot.lane.b32.xlu1 %v8558_v56, %s11359_s18  ;;  %v8602_v28 = vperm.slane %v8594_v29, %v17241_v35  ;;  %v8644_v22 = vperm.slane %v8636_v5, %v17241_v35  ;;  %s11387_s18 = smov 92   ;;  %v10622_v7 = vor.u32 %v11152_v25, %v10619_v8  ;;  %v11148_v34 = vld [vmem:[%s18143_s5 + $0x4] sm:$0xf]  ;;  %v10697_v41 = vld [vmem:[%s18143_s5 + $0xc0] sm:$0xf]  ;;  %v10722_v5 = vor.u32 %v11179_v43, %v10721_v48 }
 0x9cd   :  { %v8634_v13 = vsel %vm8297_vm3, %v8633_v21, %v8626_v53  ;;  %v10713_v53 = vld [vmem:[%s18143_s5 + $0xe0] sm:$0xf]  ;;  %v10606_v33 = vor.u32 %v11148_v34, %v10603_v32  ;;  %v11171_v52 = vld [vmem:[%s18143_s5 + $0xb4] sm:$0xf0]  ;;  %v10673_v38 = vld [vmem:[%s18143_s5 + $0x88] sm:$0xf] }
 0x9ce   :  { %8670 = vrot.lane.b32.xlu0 %v8562_v49, %s11380_s0  ;;  %v17353_v50 = vperm.slane %v8634_v13, %v17241_v35  ;;  %9434 = vmatpush.bf16.msrb.mxu2 %v10686_v59  ;;  %v8617_v12 = vrot.slane %v8602_v28, 4  ;;  %s11385_s0 = smov 44   ;;  %v8647_v56 = vrot.slane %v8644_v22, 4  ;;  %v10714_v45 = vor.u32 %v11178_v58, %v10713_v53  ;;  %v10681_v21 = vld [vmem:[%s18143_s5 + $0xa0] sm:$0xf] }
 0x9cf   :  { %v10698_v49 = vor.u32 %v11174_v44, %v10697_v41  ;;  %v11175_v13 = vld [vmem:[%s18143_s5 + $0xd4] sm:$0xf0]  ;;  %v10682_v11 = vor.u32 %v11170_v31, %v10681_v21  ;;  %v10690_v20 = vor.u32 %v11171_v52, %v10689_v62  ;;  %v10649_v10 = vld [vmem:[%s18143_s5 + $0x60] sm:$0xf]  ;;  %v11206_v24 = vld [vmem:[%s18143_s5 + $0x1cc] sm:$0xf0] }
 0x9d0   :  { %v8618_v37 = vsel %vm8297_vm3, 0.0, %v8617_v12  ;;  %v8645_v42 = vrot.slane %v17353_v50, 4  ;;  %v8648_v14 = vsel %vm8297_vm3, 0.0, %v8647_v56  ;;  %9380 = vmatpush.bf16.msra.mxu3 %v10714_v45  ;;  %v11167_v51 = vld [vmem:[%s18143_s5 + $0x94] sm:$0xf0]  ;;  %v10650_v23 = vor.u32 %v11162_v54, %v10649_v10 }
 0x9d1   :  { %v10825_v29 = vld [vmem:[%s18143_s5 + $0x1c0] sm:$0xf]  ;;  %v10674_v46 = vor.u32 %v11167_v51, %v10673_v38  ;;  %v11163_v15 = vld [vmem:[%s18143_s5 + $0x74] sm:$0xf0]  ;;  %v11202_v9 = vld [vmem:[%s18143_s5 + $0x1ac] sm:$0xf0] }
 0x9d2   :  { %9435 = vmatpush.bf16.msrb.mxu2 %v10670_v39  ;;  %v8646_v35 = vsel %vm8297_vm3, 0.0, %v8645_v42  ;;  %v10826_v3 = vor.u32 %v11206_v24, %v10825_v29  ;;  %v10809_v30 = vld [vmem:[%s18143_s5 + $0x1a0] sm:$0xf]  ;;  %v11154_v63 = vld [vmem:[%s18143_s5 + $0x2c] sm:$0xf0] }
 0x9d3   :  { %8678 = vrot.lane.b32.xlu2 %v8598_v55, %s11369_s14  ;;  %v11166_v55 = vld [vmem:[%s18143_s5 + $0x8c] sm:$0xf0]  ;;  %v10617_v39 = vld [vmem:[%s18143_s5 + $0x20] sm:$0xf]  ;;  %v10810_v16 = vor.u32 %v11202_v9, %v10809_v30  ;;  %v10641_v12 = vld [vmem:[%s18143_s5 + $0x48] sm:$0xf] }
 0x9d4   :  { %8674 = vrot.lane.b32.xlu1 %v8570_v4, %s11381_s15  ;;  %s11386_s15 = smov 4   ;;  %9381 = vmatpush.bf16.msra.mxu3 %v10698_v49  ;;  %v10666_v4 = vor.u32 %v11166_v55, %v10665_v19  ;;  %v10625_v18 = vld [vmem:[%s18143_s5 + $0x28] sm:$0xf]  ;;  %v11155_v25 = vld [vmem:[%s18143_s5 + $0x34] sm:$0xf0] }
 0x9d5   :  { %v10777_v8 = vld [vmem:[%s18143_s5 + $0x160] sm:$0xf]  ;;  %v11194_v53 = vld [vmem:[%s18143_s5 + $0x16c] sm:$0xf0]  ;;  %v10609_v32 = vld [vmem:[%s18143_s5 + $0x8] sm:$0xf] }
 0x9d6   :  { %8694 = vrot.lane.b32.xlu0 %v8610_v1, %s11382_s2  ;;  %9436 = vmatpush.bf16.msrb.mxu2 %v10654_v57  ;;  %v11210_v1 = vld [vmem:[%s18143_s5 + $0x1ec] sm:$0xf0]  ;;  %v10793_v57 = vld [vmem:[%s18143_s5 + $0x180] sm:$0xf]  ;;  %v10778_v45 = vor.u32 %v11194_v53, %v10777_v8  ;;  %v11151_v41 = vld [vmem:[%s18143_s5 + $0x14] sm:$0xf0] }
 0x9d7   :  { %v10842_v60 = vor.u32 %v11210_v1, %v10841_v47  ;;  %v10985_v58 = vld [vmem:[%s18143_s5 + $0x300] sm:$0xf]  ;;  %v10610_v44 = vor.u32 %v11151_v41, %v10609_v32  ;;  %v11190_v48 = vld [vmem:[%s18143_s5 + $0x14c] sm:$0xf0]  ;;  %v11240_v62 = vld [vmem:[%s18143_s5 + $0x2e4] sm:$0xf] }
 0x9d8   :  { %9382 = vmatpush.bf16.msra.mxu3 %v10682_v11  ;;  %v11186_v21 = vld [vmem:[%s18143_s5 + $0x12c] sm:$0xf0]  ;;  %v10953_v47 = vld [vmem:[%s18143_s5 + $0x2c0] sm:$0xf]  ;;  %v11236_v10 = vld [vmem:[%s18143_s5 + $0x2c4] sm:$0xf] }
 0x9d9   :  { %9393 = vmatpush.bf16.msrb.mxu0 %v10842_v60  ;;  %v11182_v19 = vld [vmem:[%s18143_s5 + $0x10c] sm:$0xf0]  ;;  %v10955_v54 = vld [vmem:[%s18143_s5 + $0x2d0] sm:$0xf0]  ;;  %v10937_v38 = vld [vmem:[%s18143_s5 + $0x2a0] sm:$0xf] }
 0x9da   :  { %9437 = vmatpush.bf16.msrb.mxu2 %v10638_v6  ;;  %v10626_v6 = vor.u32 %v11155_v25, %v10625_v18  ;;  %v11238_v1 = vld [vmem:[%s18143_s5 + $0x2cc] sm:$0xf0]  ;;  %v10958_v29 = vor.u32 %v11236_v10, %v10955_v54  ;;  %v10907_v18 = vld [vmem:[%s18143_s5 + $0x270] sm:$0xf0]  ;;  %v10889_v8 = vld [vmem:[%s18143_s5 + $0x240] sm:$0xf] }
 0x9db   :  { %8682 = vrot.lane.b32.xlu2 %v8616_v40, %s11368_s10  ;;  %v10633_v40 = vld [vmem:[%s18143_s5 + $0x40] sm:$0xf]  ;;  %v11234_v51 = vld [vmem:[%s18143_s5 + $0x2ac] sm:$0xf0]  ;;  %v10827_v41 = vld [vmem:[%s18143_s5 + $0x1d0] sm:$0xf0] }
 0x9dc   :  { %8686 = vrot.lane.b32.xlu1 %v8602_v28, %s11383_s28  ;;  %9383 = vmatpush.bf16.msra.mxu3 %v10666_v4  ;;  %v11158_v28 = vld [vmem:[%s18143_s5 + $0x4c] sm:$0xf0]  ;;  %v10971_v4 = vld [vmem:[%s18143_s5 + $0x2f0] sm:$0xf0]  ;;  %v10938_v24 = vor.u32 %v11234_v51, %v10937_v38  ;;  %v11196_v54 = vld [vmem:[%s18143_s5 + $0x184] sm:$0xf] }
 0x9dd   :  { %9394 = vmatpush.bf16.msrb.mxu0 %v10826_v3  ;;  %v10634_v59 = vor.u32 %v11158_v28, %v10633_v40  ;;  %v10974_v52 = vor.u32 %v11240_v62, %v10971_v4  ;;  %v10939_v3 = vld [vmem:[%s18143_s5 + $0x2b0] sm:$0xf0]  ;;  %v11222_v53 = vld [vmem:[%s18143_s5 + $0x24c] sm:$0xf0]  ;;  %v10691_v4 = vld [vmem:[%s18143_s5 + $0xb8] sm:$0xf0] }
 0x9de   :  { %8702 = vrot.lane.b32.xlu0 %v8614_v0, %s11384_s4  ;;  %9438 = vmatpush.bf16.msrb.mxu2 %v10622_v7  ;;  %v10657_v0 = vld [vmem:[%s18143_s5 + $0x68] sm:$0xf]  ;;  %v11246_v7 = vld [vmem:[%s18143_s5 + $0x30c] sm:$0xf0]  ;;  %v10795_v38 = vld [vmem:[%s18143_s5 + $0x190] sm:$0xf0] }
 0x9df   :  { %v10658_v26 = vor.u32 %v11163_v15, %v10657_v0  ;;  %v10986_v34 = vor.u32 %v11246_v7, %v10985_v58  ;;  %v11230_v15 = vld [vmem:[%s18143_s5 + $0x28c] sm:$0xf0] }
 0x9e0   :  { %9384 = vmatpush.bf16.msra.mxu3 %v10650_v23  ;;  %v11232_v23 = vld [vmem:[%s18143_s5 + $0x2a4] sm:$0xf] }
 0x9e1   :  { %9395 = vmatpush.bf16.msrb.mxu0 %v10810_v16  ;;  %v10942_v40 = vor.u32 %v11232_v23, %v10939_v3  ;;  %v11208_v16 = vld [vmem:[%s18143_s5 + $0x1e4] sm:$0xf]  ;;  %v10857_v23 = vld [vmem:[%s18143_s5 + $0x200] sm:$0xf]  ;;  %v10675_v3 = vld [vmem:[%s18143_s5 + $0x98] sm:$0xf0] }
 0x9e2   :  { %9439 = vmatpush.bf16.msrb.mxu2 %v10606_v33  ;;  %v10761_v33 = vld [vmem:[%s18143_s5 + $0x140] sm:$0xf] }
 0x9e3   :  { %8706 = vrot.lane.b32.xlu2 %v8622_v17, %s11385_s0  ;;  %v11159_v17 = vld [vmem:[%s18143_s5 + $0x54] sm:$0xf0]  ;;  %v10762_v49 = vor.u32 %v11190_v48, %v10761_v33  ;;  %v11173_v33 = vld [vmem:[%s18143_s5 + $0xcc] sm:$0xf]  ;;  %v10890_v48 = vor.u32 %v11222_v53, %v10889_v8 }
 0x9e4   :  { %8698 = vrot.lane.b32.xlu1 %v8620_v61, %s11386_s15  ;;  %9385 = vmatpush.bf16.msra.mxu3 %v10634_v59  ;;  %v10642_v61 = vor.u32 %v11159_v17, %v10641_v12  ;;  %v10921_v59 = vld [vmem:[%s18143_s5 + $0x280] sm:$0xf]  ;;  %v11226_v17 = vld [vmem:[%s18143_s5 + $0x26c] sm:$0xf0] }
 0x9e5   :  { %v10905_v12 = vld [vmem:[%s18143_s5 + $0x260] sm:$0xf] }
 0x9e6   :  { %8690 = vrot.lane.b32.xlu0 %v8618_v37, %s11387_s18  ;;  %9484 = vmatpush.bf16.msra.mxu2 %v10722_v5  ;;  %v11198_v37 = vld [vmem:[%s18143_s5 + $0x18c] sm:$0xf0]  ;;  %v10745_v5 = vld [vmem:[%s18143_s5 + $0x120] sm:$0xf] }
 0x9e7   :  { %v10794_v56 = vor.u32 %v11198_v37, %v10793_v57  ;;  %v10746_v31 = vor.u32 %v11186_v21, %v10745_v5  ;;  %v10843_v57 = vld [vmem:[%s18143_s5 + $0x1f0] sm:$0xf0]  ;;  %v11177_v37 = vld [vmem:[%s18143_s5 + $0xec] sm:$0xf]  ;;  %v10873_v5 = vld [vmem:[%s18143_s5 + $0x220] sm:$0xf] }
 0x9e9   :  { %9396 = vmatpush.bf16.msrb.mxu0 %v10794_v56  ;;  %v10723_v56 = vld [vmem:[%s18143_s5 + $0xf8] sm:$0xf0] }
 0x9ea   :  { %v10726_v7 = vor.u32 %v11177_v37, %v10723_v56 }
 0x9eb   :  { %8722 = vrot.lane.b32.xlu2 %v8648_v14, %s11353_s20  ;;  %v10601_v14 = vld [vmem:[%s18143_s5] sm:$0xf] }
 0x9ec   :  { %8710 = vrot.lane.b32.xlu1 %v17353_v50, %s11388_s16  ;;  %v10706_v50 = vor.u32 %v11175_v13, %v10705_v27  ;;  %v10969_v27 = vld [vmem:[%s18143_s5 + $0x2e0] sm:$0xf]  ;;  %v11242_v13 = vld [vmem:[%s18143_s5 + $0x2ec] sm:$0xf0] }
 0x9ed   :  { %9397 = vmatpush.bf16.msrb.mxu0 %v10778_v45  ;;  %v10970_v11 = vor.u32 %v11242_v13, %v10969_v27  ;;  %v10846_v45 = vor.u32 %v11208_v16, %v10843_v57  ;;  %v11192_v16 = vld [vmem:[%s18143_s5 + $0x164] sm:$0xf] }
 0x9ee   :  { %8714 = vrot.lane.b32.xlu0 %v8646_v35, %s11389_s17  ;;  %9485 = vmatpush.bf16.msra.mxu2 %v10706_v50  ;;  %v11150_v35 = vld [vmem:[%s18143_s5 + $0xc] sm:$0xf0]  ;;  %v10729_v50 = vld [vmem:[%s18143_s5 + $0x100] sm:$0xf] }
 0x9ef   :  { %v10602_v2 = vor.u32 %v11150_v35, %v10601_v14  ;;  %9406 = vmatpush.bf16.msrb.mxu1 %v10970_v11  ;;  %v10730_v55 = vor.u32 %v11182_v19, %v10729_v50  ;;  %v11224_v35 = vld [vmem:[%s18143_s5 + $0x264] sm:$0xf]  ;;  %v10811_v19 = vld [vmem:[%s18143_s5 + $0x1b0] sm:$0xf0] }
 0x9f0   :  { %v11200_v50 = vld [vmem:[%s18143_s5 + $0x1a4] sm:$0xf] }
 0x9f1   :  { %9398 = vmatpush.bf16.msrb.mxu0 %v10762_v49  ;;  %v10891_v49 = vld [vmem:[%s18143_s5 + $0x250] sm:$0xf0]  ;;  %v10814_v51 = vor.u32 %v11200_v50, %v10811_v19 }
 0x9f2   :  { %9486 = vmatpush.bf16.msra.mxu2 %v10690_v20  ;;  %v10954_v20 = vor.u32 %v11238_v1, %v10953_v47  ;;  %v11216_v47 = vld [vmem:[%s18143_s5 + $0x224] sm:$0xf]  ;;  %v10875_v1 = vld [vmem:[%s18143_s5 + $0x230] sm:$0xf0] }
 0x9f4   :  { %8718 = vrot.lane.b32.xlu1 %v8644_v22, %s11354_s25  ;;  %v10618_v22 = vor.u32 %v11154_v63, %v10617_v39  ;;  %9407 = vmatpush.bf16.msrb.mxu1 %v10954_v20  ;;  %v10923_v39 = vld [vmem:[%s18143_s5 + $0x290] sm:$0xf0]  ;;  %v10878_v20 = vor.u32 %v11216_v47, %v10875_v1 }
 0x9f5   :  { %9399 = vmatpush.bf16.msrb.mxu0 %v10746_v31  ;;  %v11218_v31 = vld [vmem:[%s18143_s5 + $0x22c] sm:$0xf0] }
 0x9f6   :  { %9487 = vmatpush.bf16.msra.mxu2 %v10674_v46  ;;  %9386 = vmatpush.bf16.msra.mxu3 %v10618_v22 }
 0x9f8   :  { %9408 = vmatpush.bf16.msrb.mxu1 %v10938_v24  ;;  %v11165_v24 = vld [vmem:[%s18143_s5 + $0x8c] sm:$0xf] }
 0x9f9   :  { %9400 = vmatpush.bf16.msrb.mxu0 %v10730_v55  ;;  %v11169_v55 = vld [vmem:[%s18143_s5 + $0xac] sm:$0xf] }
 0x9fa   :  { %9488 = vmatpush.bf16.msra.mxu2 %v10658_v26  ;;  %9387 = vmatpush.bf16.msra.mxu3 %v10602_v2  ;;  %v10922_v26 = vor.u32 %v11230_v15, %v10921_v59  ;;  %v11244_v15 = vld [vmem:[%s18143_s5 + $0x304] sm:$0xf] }
 0x9fc   :  { %9409 = vmatpush.bf16.msrb.mxu1 %v10922_v26  ;;  %v10987_v26 = vld [vmem:[%s18143_s5 + $0x310] sm:$0xf0] }
 0x9fd   :  { %9458 = vmatpush.bf16.msra.mxu0 %v10974_v52  ;;  %v10874_v52 = vor.u32 %v11218_v31, %v10873_v5  ;;  %v11180_v31 = vld [vmem:[%s18143_s5 + $0x104] sm:$0xf] }
 0x9fe   :  { %9489 = vmatpush.bf16.msra.mxu2 %v10642_v61  ;;  %9426 = vmatpush.bf16.msrb.mxu3 %v10986_v34  ;;  %v11204_v34 = vld [vmem:[%s18143_s5 + $0x1c4] sm:$0xf] }
 0x9ff   :  { %v10830_v13 = vor.u32 %v11204_v34, %v10827_v41  ;;  %v10627_v41 = vld [vmem:[%s18143_s5 + $0x38] sm:$0xf0] }
 0xa01   :  { %9459 = vmatpush.bf16.msra.mxu0 %v10958_v29  ;;  %v10694_v29 = vor.u32 %v11169_v55, %v10691_v4  ;;  %v11243_v55 = vld [vmem:[%s18143_s5 + $0x2f4] sm:$0xf0]  ;;  %v10611_v4 = vld [vmem:[%s18143_s5 + $0x18] sm:$0xf0] }
 0xa02   :  { %9490 = vmatpush.bf16.msra.mxu2 %v10626_v6  ;;  %v10910_v6 = vor.u32 %v11224_v35, %v10907_v18  ;;  %v10763_v18 = vld [vmem:[%s18143_s5 + $0x150] sm:$0xf0] }
 0xa05   :  { %9460 = vmatpush.bf16.msra.mxu0 %v10942_v40 }
 0xa06   :  { %9491 = vmatpush.bf16.msra.mxu2 %v10610_v44  ;;  %v10707_v44 = vld [vmem:[%s18143_s5 + $0xd8] sm:$0xf0] }
 0xa07   :  { %v10710_v11 = vor.u32 %v11173_v33, %v10707_v44  ;;  %v10993_v33 = vld [vmem:[%s18143_s5 + $0x308] sm:$0xf]  ;;  %v11247_v44 = vld [vmem:[%s18143_s5 + $0x314] sm:$0xf0] }
 0xa08   :  { %v10994_v50 = vor.u32 %v11247_v44, %v10993_v33 }
 0xa1d   :  { %v17526_v42 = vpop.permute.xlu2 %8654 }
 0xa25   :  { %v17564_v43 = vpop.permute.xlu2 %8666 }
 0xa2d   :  { %v17596_v60 = vpop.permute.xlu2 %8678 }
 0xa35   :  { %v17624_v30 = vpop.permute.xlu2 %8682 }
 0xa36   :  { %v8651_v46 = vpop.permute.xlu1 %8650 }
 0xa37   :  { %v8725_v28 = vsel %vm535_vm4, %v17319_v36, %v8651_v46  ;;  %v11228_v36 = vld [vmem:[%s18143_s5 + $0x284] sm:$0xf]  ;;  %v11214_v46 = vld [vmem:[%s18143_s5 + $0x20c] sm:$0xf0]  ;;  %vm8736_vm4 = vcmask 97280  }
 0xa38   :  { %v8659_v0 = vpop.permute.xlu0 %8658  ;;  %v8727_v9 = vsel %vm8726_vm2, %v8725_v28, %v17526_v42  ;;  %v10926_v63 = vor.u32 %v11228_v36, %v10923_v39  ;;  %v10906_v42 = vor.u32 %v11226_v17, %v10905_v12  ;;  %v10858_v40 = vor.u32 %v11214_v46, %v10857_v23  ;;  %v11212_v28 = vld [vmem:[%s18143_s5 + $0x204] sm:$0xf]  ;;  %v10779_v12 = vld [vmem:[%s18143_s5 + $0x170] sm:$0xf0]  ;;  %v11161_v17 = vld [vmem:[%s18143_s5 + $0x6c] sm:$0xf] }
 0xa39   :  { %v8729_v22 = vsel %vm8728_vm5, %v8727_v9, %v8659_v0  ;;  %v10859_v0 = vld [vmem:[%s18143_s5 + $0x210] sm:$0xf0]  ;;  %v10990_v9 = vor.u32 %v11244_v15, %v10987_v26  ;;  %v10798_v36 = vor.u32 %v11196_v54, %v10795_v38  ;;  %v10678_v39 = vor.u32 %v11165_v24, %v10675_v3  ;;  %v10945_v3 = vld [vmem:[%s18143_s5 + $0x2a8] sm:$0xf] }
 0xa3a   :  { %9461 = vmatpush.bf16.msra.mxu0 %v10926_v63  ;;  %9410 = vmatpush.bf16.msrb.mxu1 %v10906_v42  ;;  %v10862_v59 = vor.u32 %v11212_v28, %v10859_v0  ;;  %v10782_v56 = vor.u32 %v11192_v16, %v10779_v12  ;;  %v11211_v28 = vld [vmem:[%s18143_s5 + $0x1f4] sm:$0xf0]  ;;  %v10929_v26 = vld [vmem:[%s18143_s5 + $0x288] sm:$0xf] }
 0xa3d   :  { %v17698_v27 = vpop.permute.xlu2 %8706 }
 0xa3e   :  { %v8663_v61 = vpop.permute.xlu1 %8662  ;;  %9462 = vmatpush.bf16.msra.mxu0 %v10910_v6  ;;  %9411 = vmatpush.bf16.msrb.mxu1 %v10890_v48 }
 0xa3f   :  { %v8731_v14 = vsel %vm3385_vm13, %v8729_v22, %v8663_v61  ;;  %v10659_v22 = vld [vmem:[%s18143_s5 + $0x78] sm:$0xf0]  ;;  %vm8742_vm13 = vcmask 588800  }
 0xa40   :  { %v17658_v2 = vpop.permute.xlu0 %8670  ;;  %v8733_v25 = vsel %vm3085_vm12, %v8731_v14, %v17564_v43  ;;  %v11220_v43 = vld [vmem:[%s18143_s5 + $0x244] sm:$0xf]  ;;  %vm9376_vm12 = vcmask 130048   ;;  %v10662_v42 = vor.u32 %v11161_v17, %v10659_v22  ;;  %v10833_v17 = vld [vmem:[%s18143_s5 + $0x1c8] sm:$0xf] }
 0xa41   :  { %v8735_v58 = vsel %vm8734_vm6, %v8733_v25, %v17658_v2  ;;  %v10894_v21 = vor.u32 %v11220_v43, %v10891_v49  ;;  %v11188_v14 = vld [vmem:[%s18143_s5 + $0x144] sm:$0xf]  ;;  %v10643_v25 = vld [vmem:[%s18143_s5 + $0x58] sm:$0xf0]  ;;  %v11207_v22 = vld [vmem:[%s18143_s5 + $0x1d4] sm:$0xf0] }
 0xa42   :  { %v17673_v32 = vpack.c.bf16 %v8735_v58, %v8735_v58  ;;  %9412 = vmatpush.bf16.msrb.mxu1 %v10874_v52  ;;  %v10766_v8 = vor.u32 %v11188_v14, %v10763_v18  ;;  %v10835_v14 = vld [vmem:[%s18143_s5 + $0x1d8] sm:$0xf0]  ;;  %v10834_v18 = vor.u32 %v11207_v22, %v10833_v17  ;;  %v11237_v22 = vld [vmem:[%s18143_s5 + $0x2cc] sm:$0xf] }
 0xa43   :  { %9463 = vmatpush.bf16.msra.mxu0 %v10894_v21 }
 0xa44   :  { %9388 = vmatmul.bf16.vlgmr.msra.gmra.mxu3 %v17673_v32  ;;  %9440 = vmatmul.bf16.vlgmr.msrb.gmra.mxu2 %v17673_v32 }
 0xa45   :  { %9445 = vmatpush.bf16.msra.mxu3 %v10846_v45  ;;  %9536 = vmatpush.bf16.msrb.mxu2 %v10726_v7  ;;  %v17762_v61 = vpop.permute.xlu2 %8722  ;;  %v11184_v45 = vld [vmem:[%s18143_s5 + $0x124] sm:$0xf]  ;;  %v11153_v7 = vld [vmem:[%s18143_s5 + $0x2c] sm:$0xf] }
 0xa46   :  { %v8675_v62 = vpop.permute.xlu1 %8674  ;;  %9413 = vmatpush.bf16.msrb.mxu1 %v10858_v40  ;;  %v17770_v35 = vpack.c.bf16 %v17762_v61, %v17762_v61  ;;  %v10630_v21 = vor.u32 %v11153_v7, %v10627_v41  ;;  %v11235_v40 = vld [vmem:[%s18143_s5 + $0x2b4] sm:$0xf0] }
 0xa47   :  { %9464 = vmatpush.bf16.msra.mxu0 %v10878_v20  ;;  %v8737_v37 = vsel %vm8736_vm4, %v17658_v2, %v8675_v62  ;;  %v11157_v2 = vld [vmem:[%s18143_s5 + $0x4c] sm:$0xf]  ;;  %v10946_v15 = vor.u32 %v11235_v40, %v10945_v3  ;;  %v11199_v41 = vld [vmem:[%s18143_s5 + $0x194] sm:$0xf0] }
 0xa48   :  { %v17718_v10 = vpop.permute.xlu0 %8694  ;;  %v8739_v6 = vsel %vm6385_vm11, %v8737_v37, %v17596_v60  ;;  %v10646_v53 = vor.u32 %v11157_v2, %v10643_v25  ;;  %v10747_v60 = vld [vmem:[%s18143_s5 + $0x130] sm:$0xf0]  ;;  %vm8748_vm11 = vcmask 31744   ;;  %v11149_v62 = vld [vmem:[%s18143_s5 + $0xc] sm:$0xf] }
 0xa49   :  { %9446 = vmatpush.bf16.msra.mxu3 %v10830_v13  ;;  %9537 = vmatpush.bf16.msrb.mxu2 %v10710_v11  ;;  %v8741_v34 = vsel %vm6085_vm10, %v8739_v6, %v17624_v30  ;;  %v10750_v30 = vor.u32 %v11184_v45, %v10747_v60  ;;  %v10731_v13 = vld [vmem:[%s18143_s5 + $0x110] sm:$0xf0]  ;;  %v10977_v11 = vld [vmem:[%s18143_s5 + $0x2e8] sm:$0xf]  ;;  %vm8750_vm10 = vcmask 195584   ;;  %v10614_v54 = vor.u32 %v11149_v62, %v10611_v4 }
 0xa4a   :  { %9478 = vmatpush.bf16.msra.mxu1 %v10990_v9  ;;  %v10734_v47 = vor.u32 %v11180_v31, %v10731_v13  ;;  %v10978_v20 = vor.u32 %v11243_v55, %v10977_v11  ;;  %v10817_v2 = vld [vmem:[%s18143_s5 + $0x1a8] sm:$0xf]  ;;  %v11203_v25 = vld [vmem:[%s18143_s5 + $0x1b4] sm:$0xf0]  ;;  %v11201_v45 = vld [vmem:[%s18143_s5 + $0x1ac] sm:$0xf] }
 0xa4b   :  { %9465 = vmatpush.bf16.msra.mxu0 %v10862_v59  ;;  %v10819_v60 = vld [vmem:[%s18143_s5 + $0x1b8] sm:$0xf0]  ;;  %v10818_v7 = vor.u32 %v11203_v25, %v10817_v2  ;;  %v11195_v31 = vld [vmem:[%s18143_s5 + $0x174] sm:$0xf0]  ;;  %v11193_v62 = vld [vmem:[%s18143_s5 + $0x16c] sm:$0xf] }
 0xa4c   :  { %v10822_v44 = vor.u32 %v11201_v45, %v10819_v60  ;;  %v11215_v55 = vld [vmem:[%s18143_s5 + $0x214] sm:$0xf0]  ;;  %v10787_v4 = vld [vmem:[%s18143_s5 + $0x178] sm:$0xf0]  ;;  %v11225_v25 = vld [vmem:[%s18143_s5 + $0x26c] sm:$0xf] }
 0xa4d   :  { %9447 = vmatpush.bf16.msra.mxu3 %v10814_v51  ;;  %9538 = vmatpush.bf16.msrb.mxu2 %v10694_v29  ;;  %v10961_v51 = vld [vmem:[%s18143_s5 + $0x2c8] sm:$0xf]  ;;  %v11239_v29 = vld [vmem:[%s18143_s5 + $0x2d4] sm:$0xf0]  ;;  %v10883_v45 = vld [vmem:[%s18143_s5 + $0x238] sm:$0xf0] }
 0xa4e   :  { %v8687_v63 = vpop.permute.xlu1 %8686  ;;  %v10962_v24 = vor.u32 %v11239_v29, %v10961_v51  ;;  %v10790_v51 = vor.u32 %v11193_v62, %v10787_v4  ;;  %v11189_v29 = vld [vmem:[%s18143_s5 + $0x14c] sm:$0xf]  ;;  %v11187_v3 = vld [vmem:[%s18143_s5 + $0x134] sm:$0xf0]  ;;  %v11260_v62 = vld [vmem:[%s18145_s7 + $0x60] sm:$0xff] }
 0xa4f   :  { %v8743_v48 = vsel %vm8742_vm13, %v8741_v34, %v8687_v63  ;;  %v10801_v34 = vld [vmem:[%s18143_s5 + $0x188] sm:$0xf]  ;;  %v11248_v4 = vld [vmem:[%s18145_s7] sm:$0xff] }
 0xa50   :  { %v8703_v57 = vpop.permute.xlu0 %8702 }
 0xa51   :  { %9448 = vmatpush.bf16.msra.mxu3 %v10798_v36  ;;  %9539 = vmatpush.bf16.msrb.mxu2 %v10678_v39  ;;  %v11209_v36 = vld [vmem:[%s18143_s5 + $0x1ec] sm:$0xf]  ;;  %v10851_v39 = vld [vmem:[%s18143_s5 + $0x1f8] sm:$0xf0] }
 0xa52   :  { %v10854_v37 = vor.u32 %v11209_v36, %v10851_v39  ;;  %v11181_v36 = vld [vmem:[%s18143_s5 + $0x10c] sm:$0xf]  ;;  %v10739_v39 = vld [vmem:[%s18143_s5 + $0x118] sm:$0xf0] }
 0xa53   :  { %v10742_v17 = vor.u32 %v11181_v36, %v10739_v39 }
 0xa54   :  { %10999 = vmatmul.msk.bf16.vlgmr.msrb.gmra.mxu3 %vm9376_vm12, %v17770_v35  ;;  %9492 = vmatmul.bf16.vlgmr.msra.gmra.mxu2 %v17673_v32 }
 0xa55   :  { %9449 = vmatpush.bf16.msra.mxu3 %v10782_v56  ;;  %9540 = vmatpush.bf16.msrb.mxu2 %v10662_v42  ;;  %v10913_v56 = vld [vmem:[%s18143_s5 + $0x268] sm:$0xf]  ;;  %v11205_v42 = vld [vmem:[%s18143_s5 + $0x1cc] sm:$0xf] }
 0xa56   :  { %v8699_v58 = vpop.permute.xlu1 %8698 }
 0xa57   :  { %v8749_v52 = vsel %vm8748_vm11, %v17718_v10, %v8699_v58  ;;  %v11223_v58 = vld [vmem:[%s18143_s5 + $0x254] sm:$0xf0] }
 0xa58   :  { %v8691_v43 = vpop.permute.xlu0 %8690  ;;  %v8751_v38 = vsel %vm8750_vm10, %v8749_v52, %v8703_v57 }
 0xa59   :  { %v8745_v49 = vsel %vm8744_vm9, %v8743_v48, %v8691_v43  ;;  %9450 = vmatpush.bf16.msra.mxu3 %v10766_v8  ;;  %9541 = vmatpush.bf16.msrb.mxu2 %v10646_v53  ;;  %v10838_v8 = vor.u32 %v11205_v42, %v10835_v14  ;;  %v10897_v53 = vld [vmem:[%s18143_s5 + $0x248] sm:$0xf]  ;;  %v11219_v43 = vld [vmem:[%s18143_s5 + $0x234] sm:$0xf0]  ;;  %v11229_v14 = vld [vmem:[%s18143_s5 + $0x28c] sm:$0xf] }
 0xa5a   :  { %v8747_v5 = vsel %vm8746_vm14, %v8745_v49, %v17718_v10  ;;  %v8753_v10 = vsel %vm8752_vm15, %v8751_v38, %v17698_v27  ;;  %v10849_v27 = vld [vmem:[%s18143_s5 + $0x1e8] sm:$0xf]  ;;  %v10898_v33 = vor.u32 %v11223_v58, %v10897_v53  ;;  %v11197_v49 = vld [vmem:[%s18143_s5 + $0x18c] sm:$0xf]  ;;  %v10899_v53 = vld [vmem:[%s18143_s5 + $0x258] sm:$0xf0] }
 0xa5b   :  { %v17818_v19 = vpack.c.bf16 %v8747_v5, %v8747_v5  ;;  %v10850_v63 = vor.u32 %v11211_v28, %v10849_v27  ;;  %v10881_v48 = vld [vmem:[%s18143_s5 + $0x228] sm:$0xf]  ;;  %v10802_v5 = vor.u32 %v11199_v41, %v10801_v34  ;;  %v11185_v27 = vld [vmem:[%s18143_s5 + $0x12c] sm:$0xf]  ;;  %v10755_v28 = vld [vmem:[%s18143_s5 + $0x138] sm:$0xf0] }
 0xa5c   :  { %v10882_v13 = vor.u32 %v11219_v43, %v10881_v48  ;;  %v11217_v58 = vld [vmem:[%s18143_s5 + $0x22c] sm:$0xf]  ;;  %v10867_v34 = vld [vmem:[%s18143_s5 + $0x218] sm:$0xf0]  ;;  %v11252_v43 = vld [vmem:[%s18145_s7 + $0x20] sm:$0xff] }
 0xa5d   :  { %9451 = vmatpush.bf16.msra.mxu3 %v10750_v30  ;;  %9401 = vmatmul.bf16.vlgmr.msrb.gmra.mxu0 %v17818_v19  ;;  %v10803_v30 = vld [vmem:[%s18143_s5 + $0x198] sm:$0xf0]  ;;  %v10886_v60 = vor.u32 %v11217_v58, %v10883_v45  ;;  %v11253_v48 = vld [vmem:[%s18145_s7 + $0x28] sm:$0xff] }
 0xa5e   :  { %9542 = vmatpush.bf16.msrb.mxu2 %v10630_v21  ;;  %v8711_v1 = vpop.permute.xlu1 %8710  ;;  %9530 = vmatpush.bf16.msrb.mxu0 %v10994_v50  ;;  %v10785_v21 = vld [vmem:[%s18143_s5 + $0x168] sm:$0xf]  ;;  %v10806_v11 = vor.u32 %v11197_v49, %v10803_v30  ;;  %v11251_v49 = vld [vmem:[%s18145_s7 + $0x18] sm:$0xff]  ;;  %v11262_v30 = vld [vmem:[%s18145_s7 + $0x70] sm:$0xff] }
 0xa5f   :  { %v8755_v23 = vsel %vm8754_vm0, %v8753_v10, %v8711_v1  ;;  %v10865_v50 = vld [vmem:[%s18143_s5 + $0x208] sm:$0xf]  ;;  %v10786_v52 = vor.u32 %v11195_v31, %v10785_v21  ;;  %v10995_v1 = vld [vmem:[%s18143_s5 + $0x318] sm:$0xf0] }
 0xa60   :  { %v8715_v46 = vpop.permute.xlu0 %8714  ;;  %v10866_v38 = vor.u32 %v11215_v55, %v10865_v50  ;;  %v10771_v10 = vld [vmem:[%s18143_s5 + $0x158] sm:$0xf0]  ;;  %v11261_v50 = vld [vmem:[%s18145_s7 + $0x68] sm:$0xff] }
 0xa61   :  { %9452 = vmatpush.bf16.msra.mxu3 %v10734_v47  ;;  %v8757_v0 = vsel %vm8756_vm1, %v8755_v23, %v8715_v46  ;;  %v11245_v47 = vld [vmem:[%s18143_s5 + $0x30c] sm:$0xf]  ;;  %v10753_v46 = vld [vmem:[%s18143_s5 + $0x128] sm:$0xf]  ;;  %v10774_v40 = vor.u32 %v11189_v29, %v10771_v10  ;;  %v11270_v29 = vld [vmem:[%s18145_s7 + $0xb0] sm:$0xff] }
 0xa62   :  { %9543 = vmatpush.bf16.msrb.mxu2 %v10614_v54  ;;  %v11191_v54 = vld [vmem:[%s18143_s5 + $0x154] sm:$0xf0]  ;;  %v11249_v55 = vld [vmem:[%s18145_s7 + $0x8] sm:$0xff]  ;;  %v18098_v10 = vld [vmem:[%s18144_s6] ss:$2 sm:$0xf] }
 0xa64   :  { %9453 = vmatmul.bf16.vlgmr.msra.gmra.mxu3 %v17818_v19 }
 0xa65   :  { %9510 = vmatpush.bf16.msrb.mxu3 %v10978_v20  ;;  %9544 = vmatmul.bf16.vlgmr.msrb.gmra.mxu2 %v17673_v32  ;;  %v11231_v32 = vld [vmem:[%s18143_s5 + $0x294] sm:$0xf0]  ;;  %v10769_v20 = vld [vmem:[%s18143_s5 + $0x148] sm:$0xf] }
 0xa66   :  { %v8719_v59 = vpop.permute.xlu1 %8718  ;;  %v10930_v57 = vor.u32 %v11231_v32, %v10929_v26  ;;  %v10770_v23 = vor.u32 %v11191_v54, %v10769_v20  ;;  %v10758_v26 = vor.u32 %v11185_v27, %v10755_v28  ;;  %v10979_v32 = vld [vmem:[%s18143_s5 + $0x2f8] sm:$0xf0]  ;;  %v11258_v54 = vld [vmem:[%s18145_s7 + $0x50] sm:$0xff]  ;;  %v11268_v28 = vld [vmem:[%s18145_s7 + $0xa0] sm:$0xff] }
 0xa67   :  { %v8759_v9 = vsel %vm1885_vm8, %v8757_v0, %v8719_v59  ;;  %v10754_v0 = vor.u32 %v11187_v3, %v10753_v46  ;;  %v10737_v59 = vld [vmem:[%s18143_s5 + $0x108] sm:$0xf]  ;;  %v8868_v3 = vperm.slane %v18098_v10, 0 }
 0xa68   :  { %v8761_v16 = vsel %vm1585_vm7, %v8759_v9, %v17762_v61  ;;  %v11227_v61 = vld [vmem:[%s18143_s5 + $0x274] sm:$0xf0]  ;;  %v11241_v9 = vld [vmem:[%s18143_s5 + $0x2ec] sm:$0xf]  ;;  %vm9853_vm7 = vcmask 74752  }
 0xa69   :  { %9511 = vmatpush.bf16.msrb.mxu3 %v10962_v24  ;;  %v17868_v12 = vpack.c.bf16 %v8761_v16, %v8761_v16  ;;  %v10914_v6 = vor.u32 %v11227_v61, %v10913_v56  ;;  %v10998_v24 = vor.u32 %v11245_v47, %v10995_v1  ;;  %v11233_v56 = vld [vmem:[%s18143_s5 + $0x2ac] sm:$0xf]  ;;  %v10947_v61 = vld [vmem:[%s18143_s5 + $0x2b8] sm:$0xf0] }
 0xa6a   :  { %v10950_v42 = vor.u32 %v11233_v56, %v10947_v61  ;;  %v11259_v47 = vld [vmem:[%s18145_s7 + $0x58] sm:$0xff]  ;;  %v11269_v46 = vld [vmem:[%s18145_s7 + $0xa8] sm:$0xff] }
 0xa6b   :  { %9414 = vmatmul.bf16.vlgmr.msrb.gmra.mxu1 %v17868_v12 }
 0xa6c   :  { %9497 = vmatpush.bf16.msrb.mxu1 %v10850_v63  ;;  %v10982_v63 = vor.u32 %v11241_v9, %v10979_v32 }
 0xa6d   :  { %9512 = vmatpush.bf16.msrb.mxu3 %v10946_v15  ;;  %9466 = vmatmul.bf16.vlgmr.msra.gmra.mxu0 %v17868_v12  ;;  %v11183_v15 = vld [vmem:[%s18143_s5 + $0x114] sm:$0xf0] }
 0xa6e   :  { %9549 = vmatpush.bf16.msra.mxu0 %v10854_v37  ;;  %v10738_v16 = vor.u32 %v11183_v15, %v10737_v59 }
 0xa70   :  { %9498 = vmatpush.bf16.msrb.mxu1 %v10834_v18  ;;  %v10931_v18 = vld [vmem:[%s18143_s5 + $0x298] sm:$0xf0] }
 0xa71   :  { %9513 = vmatpush.bf16.msrb.mxu3 %v10930_v57  ;;  %v10963_v57 = vld [vmem:[%s18143_s5 + $0x2d8] sm:$0xf0]  ;;  %v10934_v2 = vor.u32 %v11229_v14, %v10931_v18 }
 0xa72   :  { %9550 = vmatpush.bf16.msra.mxu0 %v10838_v8  ;;  %v10966_v37 = vor.u32 %v11237_v22, %v10963_v57  ;;  %v11221_v8 = vld [vmem:[%s18143_s5 + $0x24c] sm:$0xf] }
 0xa74   :  { %9499 = vmatpush.bf16.msrb.mxu1 %v10818_v7  ;;  %v11213_v7 = vld [vmem:[%s18143_s5 + $0x20c] sm:$0xf] }
 0xa75   :  { %9514 = vmatpush.bf16.msrb.mxu3 %v10914_v6  ;;  %v10870_v41 = vor.u32 %v11213_v7, %v10867_v34  ;;  %v8870_v7 = vperm.slane %v18098_v10, 2 }
 0xa76   :  { %9551 = vmatpush.bf16.msra.mxu0 %v10822_v44  ;;  %v11254_v44 = vld [vmem:[%s18145_s7 + $0x30] sm:$0xff] }
 0xa78   :  { %9500 = vmatpush.bf16.msrb.mxu1 %v10802_v5  ;;  %v11250_v5 = vld [vmem:[%s18145_s7 + $0x10] sm:$0xff] }
 0xa79   :  { %9515 = vmatpush.bf16.msrb.mxu3 %v10898_v33  ;;  %v11255_v33 = vld [vmem:[%s18145_s7 + $0x38] sm:$0xff] }
 0xa7a   :  { %9552 = vmatpush.bf16.msra.mxu0 %v10806_v11  ;;  %9801 = vmatpush.bf16.msra.mxu2 %v11255_v33 }
 0xa7b   :  { %11000 = vmatmul.msk.bf16.vlgmr.msra.gmra.mxu1 %vm9376_vm12, %v17770_v35 }
 0xa7c   :  { %9501 = vmatpush.bf16.msrb.mxu1 %v10786_v52  ;;  %v11271_v52 = vld [vmem:[%s18145_s7 + $0xb8] sm:$0xff] }
 0xa7d   :  { %9516 = vmatpush.bf16.msrb.mxu3 %v10882_v13  ;;  %11001 = vmatmul.msk.bf16.vlgmr.msrb.gmra.mxu0 %vm9376_vm12, %v17770_v35 }
 0xa7e   :  { %9553 = vmatpush.bf16.msra.mxu0 %v10790_v51  ;;  %9802 = vmatpush.bf16.msra.mxu2 %v11254_v44  ;;  %v11257_v51 = vld [vmem:[%s18145_s7 + $0x48] sm:$0xff] }
 0xa80   :  { %9502 = vmatpush.bf16.msrb.mxu1 %v10770_v23 }
 0xa81   :  { %9517 = vmatpush.bf16.msrb.mxu3 %v10866_v38 }
 0xa82   :  { %9554 = vmatpush.bf16.msra.mxu0 %v10774_v40  ;;  %9803 = vmatpush.bf16.msra.mxu2 %v11253_v48  ;;  %v11256_v40 = vld [vmem:[%s18145_s7 + $0x40] sm:$0xff] }
 0xa84   :  { %9518 = vmatmul.bf16.vlgmr.msrb.gmra.mxu3 %v17868_v12  ;;  %9503 = vmatpush.bf16.msrb.mxu1 %v10754_v0 }
 0xa85   :  { %9582 = vmatpush.bf16.msra.mxu3 %v10998_v24 }
 0xa86   :  { %9555 = vmatpush.bf16.msra.mxu0 %v10758_v26  ;;  %9804 = vmatpush.bf16.msra.mxu2 %v11252_v43  ;;  %v11267_v26 = vld [vmem:[%s18145_s7 + $0x98] sm:$0xff] }
 0xa88   :  { %9504 = vmatpush.bf16.msrb.mxu1 %v10738_v16 }
 0xa8a   :  { %9556 = vmatpush.bf16.msra.mxu0 %v10742_v17  ;;  %9805 = vmatpush.bf16.msra.mxu2 %v11251_v49  ;;  %v11272_v49 = vld [vmem:[%s18145_s7 + $0xc0] sm:$0xff] }
 0xa8b   :  { %9505 = vmatmul.bf16.vlgmr.msrb.gmra.mxu1 %v17818_v19 }
 0xa8c   :  { %9562 = vmatpush.bf16.msra.mxu1 %v10982_v63  ;;  %v8869_v63 = vperm.slane %v18098_v10, 1 }
 0xa8d   :  { %9557 = vmatmul.bf16.vlgmr.msra.gmra.mxu0 %v17818_v19  ;;  %v10915_v19 = vld [vmem:[%s18143_s5 + $0x278] sm:$0xf0] }
 0xa8e   :  { %v10918_v6 = vor.u32 %v11225_v25, %v10915_v19  ;;  %9806 = vmatpush.bf16.msra.mxu2 %v11250_v5  ;;  %9827 = vmatpush.bf16.msrb.mxu0 %v11271_v52  ;;  %v11264_v19 = vld [vmem:[%s18145_s7 + $0x80] sm:$0xff] }
 0xa90   :  { %9563 = vmatpush.bf16.msra.mxu1 %v10966_v37 }
 0xa92   :  { %9807 = vmatpush.bf16.msra.mxu2 %v11249_v55  ;;  %9828 = vmatpush.bf16.msrb.mxu0 %v11270_v29  ;;  %v8871_v55 = vperm.slane %v18098_v10, 3  ;;  %v11318_v10 = vld [vmem:[%s18144_s6 + $0x1] ss:$0 sm:$0xff]  ;;  %s11390_s6 = smov [#allocation2]  }
 0xa93   :  { %s9872_s17 = sshll.u32 %s11390_s6, 4  ;;  %s9873_s17 = int_to_ptr.vmem [resolvable:$true] %s9872_s17 }
 0xa94   :  { %9564 = vmatpush.bf16.msra.mxu1 %v10950_v42  ;;  %11002 = vmatmul.msk.bf16.vlgmr.msra.gmra.mxu3 %vm9376_vm12, %v17770_v35  ;;  %v10902_v35 = vor.u32 %v11221_v8, %v10899_v53  ;;  %v11266_v42 = vld [vmem:[%s18145_s7 + $0x90] sm:$0xff] }
 0xa96   :  { %9808 = vmatpush.bf16.msra.mxu2 %v11248_v4  ;;  %9829 = vmatpush.bf16.msrb.mxu0 %v11269_v46 }
 0xa98   :  { %9565 = vmatpush.bf16.msra.mxu1 %v10934_v2  ;;  %v11265_v2 = vld [vmem:[%s18145_s7 + $0x88] sm:$0xff] }
 0xa9a   :  { %9830 = vmatpush.bf16.msrb.mxu0 %v11268_v28 }
 0xa9c   :  { %9566 = vmatpush.bf16.msra.mxu1 %v10918_v6 }
 0xa9e   :  { %9831 = vmatpush.bf16.msrb.mxu0 %v11267_v26 }
 0xaa0   :  { %9567 = vmatpush.bf16.msra.mxu1 %v10902_v35 }
 0xaa2   :  { %9832 = vmatpush.bf16.msrb.mxu0 %v11266_v42 }
 0xaa4   :  { %9568 = vmatpush.bf16.msra.mxu1 %v10886_v60 }
 0xaa6   :  { %9833 = vmatpush.bf16.msrb.mxu0 %v11265_v2 }
 0xaa8   :  { %9569 = vmatpush.bf16.msra.mxu1 %v10870_v41 }
 0xaaa   :  { %9834 = vmatpush.bf16.msrb.mxu0 %v11264_v19 }
 0xaab   :  { %9570 = vmatmul.bf16.vlgmr.msra.gmra.mxu1 %v17868_v12  ;;  %v11263_v12 = vld [vmem:[%s18145_s7 + $0x78] sm:$0xff] }
 0xaac   :  { %9814 = vmatpush.bf16.msrb.mxu3 %v11263_v12  ;;  %9847 = vmatpush.bf16.msrb.mxu1 %v11272_v49 }
 0xab0   :  { %9815 = vmatpush.bf16.msrb.mxu3 %v11262_v30 }
 0xab4   :  { %9816 = vmatpush.bf16.msrb.mxu3 %v11261_v50 }
 0xab8   :  { %9817 = vmatpush.bf16.msrb.mxu3 %v11260_v62 }
 0xabc   :  { %9818 = vmatpush.bf16.msrb.mxu3 %v11259_v47 }
 0xac0   :  { %9819 = vmatpush.bf16.msrb.mxu3 %v11258_v54 }
 0xac4   :  { %9820 = vmatpush.bf16.msrb.mxu3 %v11257_v51 }
 0xac7   :  { %v9389_v21 = vpop.f32.mrf.mxu3  ;;  %v9441_v31 = vpop.f32.mrf.mxu2 }
 0xac8   :  { %v9390_v0 = vadd.f32 %v9389_v21, %v8868_v3  ;;  %9821 = vmatpush.bf16.msrb.mxu3 %v11256_v40  ;;  %v9442_v61 = vadd.f32 %v9441_v31, %v8869_v63 }
 0xacf   :  { %v9391_v13 = vpop.f32.mrf.mxu3  ;;  %v9443_v11 = vpop.f32.mrf.mxu2 }
 0xad7   :  { %v9428_v1 = vpop.f32.mrf.mxu3  ;;  %v9493_v20 = vpop.f32.mrf.mxu2 }
 0xad8   :  { %v9494_v41 = vadd.f32 %v9493_v20, %v8870_v7 }
 0xada   :  { %v9402_v38 = vpop.f32.mrf.mxu0 }
 0xadb   :  { %v9403_v59 = vadd.f32 %v9402_v38, %v9390_v0 }
 0xadf   :  { %v9430_v24 = vpop.f32.mrf.mxu3  ;;  %v9495_v23 = vpop.f32.mrf.mxu2 }
 0xae2   :  { %v9404_v27 = vpop.f32.mrf.mxu0 }
 0xae7   :  { %v9454_v15 = vpop.f32.mrf.mxu3 }
 0xae8   :  { %v9545_v9 = vpop.f32.mrf.mxu2  ;;  %v9415_v32 = vpop.f32.mrf.mxu1  ;;  %v9455_v18 = vadd.f32 %v9454_v15, %v9442_v61 }
 0xae9   :  { %v9416_v36 = vadd.f32 %v9415_v32, %v9403_v59  ;;  %v9546_v62 = vadd.f32 %v9545_v9, %v8871_v55 }
 0xaea   :  { %v9467_v39 = vpop.f32.mrf.mxu0 }
 0xaeb   :  { %v9429_v16 = vadd.f32 %v9428_v1, %v9416_v36  ;;  %v9468_v25 = vadd.f32 %v9467_v39, %v9455_v18 }
 0xaed   :  { %v9588_v17 = vmax.f32 %v9429_v16, 0.0 }
 0xaef   :  { %v9592_v22 = vpack.c.bf16 %v9588_v17, %v9588_v17  ;;  %v9456_v57 = vpop.f32.mrf.mxu3 }
 0xaf0   :  { %v9547_v37 = vpop.f32.mrf.mxu2  ;;  %v9417_v56 = vpop.f32.mrf.mxu1 }
 0xaf1   :  { %9809 = vmatmul.bf16.vlgmr.msra.gmra.mxu2 %v9592_v22 }
 0xaf2   :  { %v9469_v14 = vpop.f32.mrf.mxu0 }
 0xaf8   :  { %v9480_v6 = vpop.f32.mrf.mxu1 }
 0xaf9   :  { %v9481_v8 = vadd.f32 %v9480_v6, %v9468_v25 }
 0xafa   :  { %v9532_v53 = vpop.f32.mrf.mxu0 }
 0xafb   :  { %v9589_v35 = vmax.f32 %v9481_v8, 0.0 }
 0xafd   :  { %v9593_v58 = vpack.c.bf16 %v9589_v35, %v9589_v35 }
 0xaff   :  { %9822 = vmatmul.bf16.vlgmr.msrb.gmra.mxu3 %v9593_v58 }
 0xb00   :  { %v9482_v45 = vpop.f32.mrf.mxu1 }
 0xb02   :  { %v9534_v60 = vpop.f32.mrf.mxu0 }
 0xb07   :  { %v9519_v34 = vpop.f32.mrf.mxu3 }
 0xb08   :  { %v9506_v33 = vpop.f32.mrf.mxu1 }
 0xb09   :  { %v9507_v44 = vadd.f32 %v9506_v33, %v9494_v41 }
 0xb0a   :  { %v9558_v48 = vpop.f32.mrf.mxu0 }
 0xb0b   :  { %v9520_v43 = vadd.f32 %v9519_v34, %v9507_v44  ;;  %v9559_v4 = vadd.f32 %v9558_v48, %v9546_v62 }
 0xb0d   :  { %v9533_v30 = vadd.f32 %v9532_v53, %v9520_v43 }
 0xb0f   :  { %v9521_v12 = vpop.f32.mrf.mxu3  ;;  %v9590_v5 = vmax.f32 %v9533_v30, 0.0 }
 0xb10   :  { %v9508_v21 = vpop.f32.mrf.mxu1 }
 0xb11   :  { %v9594_v31 = vpack.c.bf16 %v9590_v5, %v9590_v5 }
 0xb12   :  { %v9560_v13 = vpop.f32.mrf.mxu0 }
 0xb13   :  { %9835 = vmatmul.bf16.vlgmr.msrb.gmra.mxu0 %v9594_v31 }
 0xb17   :  { %v9584_v11 = vpop.f32.mrf.mxu3 }
 0xb1f   :  { %v9586_v50 = vpop.f32.mrf.mxu3 }
 0xb28   :  { %v9571_v52 = vpop.f32.mrf.mxu1 }
 0xb29   :  { %v9572_v47 = vadd.f32 %v9571_v52, %v9559_v4 }
 0xb2b   :  { %v9585_v1 = vadd.f32 %v9584_v11, %v9572_v47 }
 0xb2d   :  { %v9591_v20 = vmax.f32 %v9585_v1, 0.0 }
 0xb2f   :  { %v9595_v54 = vpack.c.bf16 %v9591_v20, %v9591_v20 }
 0xb30   :  { %v9573_v38 = vpop.f32.mrf.mxu1 }
 0xb31   :  { %11103 = vmatmul.msk.bf16.vlgmr.msrb.gmra.mxu1 %vm9376_vm12, %v9595_v54 }
 0xb74   :  { %v9810_v51 = vpop.f32.mrf.mxu2 }
 0xb75   :  { %v9811_v40 = vadd.f32 %v11318_v10, %v9810_v51 }
 0xb7c   :  { %v9812_v29 = vpop.f32.mrf.mxu2 }
 0xb82   :  { %v9823_v24 = vpop.f32.mrf.mxu3 }
 0xb83   :  { %v9824_v27 = vadd.f32 %v9823_v24, %v9811_v40 }
 0xb8a   :  { %v9825_v23 = vpop.f32.mrf.mxu3 }
 0xb90   :  { %v9836_v46 = vpop.f32.mrf.mxu0 }
 0xb91   :  { %v9837_v28 = vadd.f32 %v9836_v46, %v9824_v27 }
 0xb98   :  { %v9838_v3 = vpop.f32.mrf.mxu0 }
 0xbae   :  { %v9849_v0 = vpop.f32.mrf.mxu1 }
 0xbaf   :  { %v9850_v59 = vadd.f32 %v9849_v0, %v9837_v28 }
 0xbb1   :  { %v9854_v15 = vsel %vm9853_vm7, %v9850_v59, -inf }
 0xbb2   :  { %9855 = vmax.xlane.f32.xlu2 %v9854_v15 }
 0xbb6   :  { %v9851_v26 = vpop.f32.mrf.mxu1 }
 0xc25   :  { %v9856_v9 = vpop.xlane.xlu2 %9855 }
 0xc26   :  { %v9857_v32 = vsub.f32 %v9850_v59, %v9856_v9 }
 0xc28   :  { %v9858_v36 = vmul.f32 1.442695, %v9857_v32 }
 0xc2a   :  { %11319 = vpow2.f32 %v9858_v36 }
 0xc30   :  { %v11320_v39 = vpop.eup %11319 }
 0xc31   :  { %v9860_v16 = vsel %vm9853_vm7, %v11320_v39, 0.0 }
 0xc32   :  { %9861 = vadd.xlane.f32.xlu0 %v9860_v16 }
 0xca5   :  { %v9862_v63 = vpop.xlane.xlu0 %9861 }
 0xca6   :  { %11321 = vlog2.f32 %v9862_v63 }
 0xcac   :  { %v11322_v17 = vpop.eup %11321 }
 0xcad   :  { %v9864_v22 = vmul.f32 0.6931472, %v11322_v17 }
 0xcaf   :  { %v9865_v57 = vsub.f32 %v9857_v32, %v9864_v22 }
 0xcb1   :  { %9866 = vst.msk [vmem:[#allocation2] sm:$0x3] %vm9853_vm7, %v9865_v57 }
 0xcb2   :  { %9877 = dma.vmem_to_hbm [thread:$0]  %s9873_s17, 32, %s9875_s22, [#allocation3]  }
 0xcb3   :  { %11347 = dma.done.wait [#allocation3], 32  }
 0xcb4   :  { %11348 = vsyncadd [#allocation3], 4294967264 }
 0xcb5   :  { %9882 = vsyncpa [#allocation3], 1 }

</bundles_post_ra>
